<compile_context>
chip_gen: v5e
topology: v5e:2x2
jax: 0.10.0
libtpu: 0.0.40
codegen_flags: <defaults>
</compile_context>

<pallas_src>
import functools

import jax
import jax.numpy as jnp
from jax.experimental import pallas as pl
from jax.experimental.pallas import tpu as pltpu

_TAPS = tuple((dy, dx) for dy in range(3) for dx in range(3))
_EPS = 1e-5


def _preact_block_kernel(*refs, H, W, Cin, Cout, row_block, has_shortcut):
    """One batch image per grid step; everything stays in VMEM."""
    if has_shortcut:
        (x_ref, w1_ref, w2_ref, wsc_ref, s1_ref, b1_ref, s2_ref, b2_ref,
         out_ref, a_pad, acc1, b_pad, acc2, sc_acc) = refs
    else:
        (x_ref, w1_ref, w2_ref, s1_ref, b1_ref, s2_ref, b2_ref,
         out_ref, a_pad, acc1, b_pad, acc2) = refs
        wsc_ref = sc_acc = None

    f32 = jnp.float32
    bf16 = jnp.bfloat16
    Ho, Wo = H, W                       # stride == 1 (enforced in the wrapper)
    Wp1 = W + 2                         # padded row pitch of the conv1 input
    Wp2 = Wo + 2                        # padded row pitch of the conv2 input
    M1 = (Ho - 1) * Wp1 + Wo            # rows of the conv1 / shortcut matmuls
    M2 = (Ho - 1) * Wp2 + Wo            # rows of the conv2 matmuls

    # Zero the padded activation scratches.  With "parallel" batch semantics
    # each core owns its own scratch copy, so a "program_id==0 only" init would
    # be wrong; the interior is fully overwritten below, only the border truly
    # needs the zeros (see TODO at top).  bf16 -> half the old memset traffic.
    a_pad[...] = jnp.zeros(a_pad.shape, a_pad.dtype)
    b_pad[...] = jnp.zeros(b_pad.shape, b_pad.dtype)

    # ---- BN1 + ReLU -> bf16, rows scattered into the interior of a_pad -----
    s1 = jnp.broadcast_to(s1_ref[...], (W, Cin))      # hoisted out of the loop
    b1 = jnp.broadcast_to(b1_ref[...], (W, Cin))
    for r in range(H):
        xr = x_ref[0, pl.ds(r * W, W), :]                        # [W, Cin] f32
        a_pad[pl.ds((r + 1) * Wp1 + 1, W), :] = (
            jnp.maximum(xr * s1 + b1, 0.0).astype(bf16))

    # ---- blocked 9-tap 3x3 convolution -------------------------------------
    def conv3x3(src_pad, w_ref, dst_acc, pitch, m_total,
                sc_w_ref=None, sc_dst=None):
        for off in range(0, m_total, row_block):
            m = min(row_block, m_total - off)
            acc = None
            for k, (dy, dx) in enumerate(_TAPS):
                patch = src_pad[pl.ds(dy * pitch + dx + off, m), :]   # bf16
                prod = jnp.dot(patch, w_ref[k], preferred_element_type=f32)
                acc = prod if acc is None else acc + prod
                if sc_w_ref is not None and k == 4:
                    # center tap patch == the 1x1-conv (stride-matched) patch
                    sc_dst[pl.ds(off, m), :] = jnp.dot(
                        patch, sc_w_ref[...], preferred_element_type=f32)
            dst_acc[pl.ds(off, m), :] = acc           # single store per block

    # conv1 (3x3) + fused projection shortcut (reuses the center-tap patch)
    conv3x3(a_pad, w1_ref, acc1, Wp1, M1,
            sc_w_ref=wsc_ref if has_shortcut else None,
            sc_dst=sc_acc)

    # ---- BN2 + ReLU -> bf16, rows scattered into the interior of b_pad -----
    s2 = jnp.broadcast_to(s2_ref[...], (Wo, Cout))
    b2 = jnp.broadcast_to(b2_ref[...], (Wo, Cout))
    for i in range(Ho):
        row = acc1[pl.ds(i * Wp1, Wo), :]             # skip the row-wrap junk
        b_pad[pl.ds((i + 1) * Wp2 + 1, Wo), :] = (
            jnp.maximum(row * s2 + b2, 0.0).astype(bf16))

    # ---- conv2 (3x3, stride 1) ----------------------------------------------
    conv3x3(b_pad, w2_ref, acc2, Wp2, M2)

    # ---- residual add + lane-dense flattened output write -------------------
    for i in range(Ho):
        row = acc2[pl.ds(i * Wp2, Wo), :]
        if has_shortcut:
            row = row + sc_acc[pl.ds(i * Wp1, Wo), :]
        else:
            row = row + x_ref[0, pl.ds(i * W, Wo), :]   # identity: Cin == Cout
        out_ref[0, pl.ds(i * Wo, Wo), :] = row.astype(out_ref.dtype)


def preact_block_forward(x_nchw, params, *, stride=1, row_block=256):
    """Forward of PreActBlock. Input/output in PyTorch NCHW (float32)."""
    if stride != 1:
        # TODO(synk): implement the stride-2 patch gather; see header comment.
        raise NotImplementedError("preact_block_forward supports stride=1 only")

    N, Cin, H, W = x_nchw.shape
    Cout = params['w1'].shape[0]                       # conv1 weight is OIHW
    has_shortcut = (stride != 1) or (Cin != Cout)
    Ho, Wo = H, W
    Hp1, Wp1 = H + 2, W + 2
    Wp2 = Wo + 2
    M1 = (Ho - 1) * Wp1 + Wo
    M2 = (Ho - 1) * Wp2 + Wo

    # NCHW -> NHWC, flatten spatial (channels stay on the lane dim).
    x = jnp.transpose(x_nchw, (0, 2, 3, 1)).astype(jnp.float32)
    x_flat = x.reshape(N, H * W, Cin)

    # Fold BatchNorm (inference semantics) into per-channel scale/bias (f32).
    s1 = (params['bn1_gamma'] / jnp.sqrt(params['bn1_var'] + _EPS)).astype(jnp.float32)
    b1 = (params['bn1_beta'] - params['bn1_mean'] * s1).astype(jnp.float32)
    s2 = (params['bn2_gamma'] / jnp.sqrt(params['bn2_var'] + _EPS)).astype(jnp.float32)
    b2 = (params['bn2_beta'] - params['bn2_mean'] * s2).astype(jnp.float32)

    # OIHW -> tap-major [9, Cin, Cout], bf16 for the MXU.
    w1 = jnp.transpose(params['w1'], (2, 3, 1, 0)).reshape(9, Cin, Cout).astype(jnp.bfloat16)
    w2 = jnp.transpose(params['w2'], (2, 3, 1, 0)).reshape(9, Cout, Cout).astype(jnp.bfloat16)

    kernel = functools.partial(
        _preact_block_kernel, H=H, W=W, Cin=Cin, Cout=Cout,
        row_block=int(row_block), has_shortcut=has_shortcut)

    in_specs = [
        pl.BlockSpec((1, H * W, Cin), lambda n: (n, 0, 0)),   # x (per image)
        pl.BlockSpec((9, Cin, Cout), lambda n: (0, 0, 0)),    # w1 (resident)
        pl.BlockSpec((9, Cout, Cout), lambda n: (0, 0, 0)),   # w2 (resident)
    ]
    args = [x_flat, w1, w2]
    if has_shortcut:
        wsc = jnp.transpose(params['w_sc'], (2, 3, 1, 0)).reshape(Cin, Cout).astype(jnp.bfloat16)
        in_specs.append(pl.BlockSpec((Cin, Cout), lambda n: (0, 0)))   # w_sc
        args.append(wsc)
    in_specs += [
        pl.BlockSpec((1, Cin), lambda n: (0, 0)),             # s1
        pl.BlockSpec((1, Cin), lambda n: (0, 0)),             # b1
        pl.BlockSpec((1, Cout), lambda n: (0, 0)),            # s2
        pl.BlockSpec((1, Cout), lambda n: (0, 0)),            # b2
    ]
    args += [s1.reshape(1, Cin), b1.reshape(1, Cin),
             s2.reshape(1, Cout), b2.reshape(1, Cout)]

    scratch_shapes = [
        pltpu.VMEM((Hp1 * Wp1, Cin), jnp.bfloat16),        # padded relu(bn1(x))
        pltpu.VMEM((M1, Cout), jnp.float32),               # conv1 accumulator
        pltpu.VMEM(((Ho + 2) * Wp2, Cout), jnp.bfloat16),  # padded relu(bn2(.))
        pltpu.VMEM((M2, Cout), jnp.float32),               # conv2 accumulator
    ]
    if has_shortcut:
        scratch_shapes.append(pltpu.VMEM((M1, Cout), jnp.float32))  # shortcut

    out = pl.pallas_call(
        kernel,
        grid=(N,),
        in_specs=in_specs,
        out_specs=pl.BlockSpec((1, Ho * Wo, Cout), lambda n: (n, 0, 0)),
        out_shape=jax.ShapeDtypeStruct((N, Ho * Wo, Cout), jnp.float32),
        scratch_shapes=scratch_shapes,
        compiler_params=pltpu.CompilerParams(
            dimension_semantics=("parallel",),
            # Enough for standard ResNet block sizes; raise on v5e/v6e
            # (128 MiB physical VMEM) if per-step tiles are enlarged.
            vmem_limit_bytes=32 * 1024 * 1024),
    )(*args)

    out = out.reshape(N, Ho, Wo, Cout)
    return jnp.transpose(out, (0, 3, 1, 2))               # back to NCHW


# ----------------------- pure-JAX reference (NCHW) -------------------------
def _reference(x, params, *, stride=1):
    def bn(v, g, b, m, var):
        rs = lambda a: a.reshape(1, -1, 1, 1)
        return (v - rs(m)) / jnp.sqrt(rs(var) + _EPS) * rs(g) + rs(b)

    def conv(v, w, s, pad):
        return jax.lax.conv_general_dilated(
            v, w, (s, s), [(pad, pad), (pad, pad)],
            dimension_numbers=('NCHW', 'OIHW', 'NCHW'),
            precision=jax.lax.Precision.HIGHEST)

    Cin = x.shape[1]
    Cout = params['w1'].shape[0]
    has_shortcut = (stride != 1) or (Cin != Cout)

    a = jax.nn.relu(bn(x, params['bn1_gamma'], params['bn1_beta'],
                       params['bn1_mean'], params['bn1_var']))
    shortcut = conv(a, params['w_sc'], stride, 0) if has_shortcut else x
    o = conv(a, params['w1'], stride, 1)
    o = conv(jax.nn.relu(bn(o, params['bn2_gamma'], params['bn2_beta'],
                            params['bn2_mean'], params['bn2_var'])),
             params['w2'], 1, 1)
    return o + shortcut


def _init_params(key, in_planes, planes):
    ks = jax.random.split(key, 11)
    f32 = jnp.float32
    return {
        'bn1_gamma': jax.random.uniform(ks[0], (in_planes,), f32, 0.5, 1.5),
        'bn1_beta':  0.1 * jax.random.normal(ks[1], (in_planes,), f32),
        'bn1_mean':  0.1 * jax.random.normal(ks[2], (in_planes,), f32),
        'bn1_var':   jax.random.uniform(ks[3], (in_planes,), f32, 0.5, 1.5),
        'w1':        0.2 * jax.random.normal(ks[4], (planes, in_planes, 3, 3), f32),
        'bn2_gamma': jax.random.uniform(ks[5], (planes,), f32, 0.5, 1.5),
        'bn2_beta':  0.1 * jax.random.normal(ks[6], (planes,), f32),
        'bn2_mean':  0.1 * jax.random.normal(ks[7], (planes,), f32),
        'bn2_var':   jax.random.uniform(ks[8], (planes,), f32, 0.5, 1.5),
        'w2':        0.2 * jax.random.normal(ks[9], (planes, planes, 3, 3), f32),
        'w_sc':      0.2 * jax.random.normal(ks[10], (planes, in_planes, 1, 1), f32),
    }


if __name__ == "__main__":
    N, in_planes, planes, H, W = 2, 4, 8, 16, 16
    stride = 1   # in_planes != planes -> the 1x1-conv projection shortcut runs

    key = jax.random.PRNGKey(0)
    k_x, k_p = jax.random.split(key)
    x = jax.random.normal(k_x, (N, in_planes, H, W), jnp.float32)   # NCHW
    params = _init_params(k_p, in_planes, planes)

    out = preact_block_forward(x, params, stride=stride)
    out = jax.block_until_ready(out)

    ref = _reference(x, params, stride=stride)
    assert out.shape == ref.shape, (out.shape, ref.shape)
    # Kernel uses bf16 MXU operands with f32 accumulation vs. an f32 HIGHEST
    # reference; tolerance reflects bf16 operand rounding through two convs.
    max_err = float(jnp.max(jnp.abs(out - ref)))
    assert jnp.allclose(out, ref, rtol=5e-2, atol=5e-2), max_err

    print("KERNEL_OK")
</pallas_src>

<mosaic_0001>
module attributes {stable_mosaic.version = 11 : i64} {
  func.func @_preact_block_kernel(%arg0: i32, %arg1: memref<1x256x4xf32, #tpu.memory_space<vmem>>, %arg2: memref<9x4x8xbf16, #tpu.memory_space<vmem>>, %arg3: memref<9x8x8xbf16, #tpu.memory_space<vmem>>, %arg4: memref<4x8xbf16, #tpu.memory_space<vmem>>, %arg5: memref<1x4xf32, #tpu.memory_space<vmem>>, %arg6: memref<1x4xf32, #tpu.memory_space<vmem>>, %arg7: memref<1x8xf32, #tpu.memory_space<vmem>>, %arg8: memref<1x8xf32, #tpu.memory_space<vmem>>, %arg9: memref<1x256x8xf32, #tpu.memory_space<vmem>>, %arg10: memref<324x4xbf16, #tpu.memory_space<vmem>>, %arg11: memref<286x8xf32, #tpu.memory_space<vmem>>, %arg12: memref<324x8xbf16, #tpu.memory_space<vmem>>, %arg13: memref<286x8xf32, #tpu.memory_space<vmem>>, %arg14: memref<286x8xf32, #tpu.memory_space<vmem>>) attributes {dimension_semantics = [#tpu.dimension_semantics<parallel>], iteration_bounds = array<i64: 2>, scalar_prefetch = 0 : i64, scratch_operands = 5 : i64, tpu.core_type = #tpu.core_type<tc>, window_params = [{transform_indices = @transform_0, window_bounds = array<i64: 1, 256, 4>}, {pipeline_mode = #tpu.pipeline_mode<synchronous>, transform_indices = @transform_1, window_bounds = array<i64: 9, 4, 8>}, {pipeline_mode = #tpu.pipeline_mode<synchronous>, transform_indices = @transform_2, window_bounds = array<i64: 9, 8, 8>}, {pipeline_mode = #tpu.pipeline_mode<synchronous>, transform_indices = @transform_3, window_bounds = array<i64: 4, 8>}, {pipeline_mode = #tpu.pipeline_mode<synchronous>, transform_indices = @transform_4, window_bounds = array<i64: 1, 4>}, {pipeline_mode = #tpu.pipeline_mode<synchronous>, transform_indices = @transform_5, window_bounds = array<i64: 1, 4>}, {pipeline_mode = #tpu.pipeline_mode<synchronous>, transform_indices = @transform_6, window_bounds = array<i64: 1, 8>}, {pipeline_mode = #tpu.pipeline_mode<synchronous>, transform_indices = @transform_7, window_bounds = array<i64: 1, 8>}, {transform_indices = @transform_8, window_bounds = array<i64: 1, 256, 8>}]} {
    %cst = arith.constant 0.000000e+00 : bf16
    %0 = vector.broadcast %cst : bf16 to vector<324x4xbf16>
    %c0 = arith.constant 0 : index
    %c0_0 = arith.constant 0 : index
    %1 = vector.load %arg10[%c0, %c0_0] : memref<324x4xbf16, #tpu.memory_space<vmem>>, vector<324x4xbf16>
    tpu.vector_store %arg10[%c0, %c0_0], %0 {strides = array<i32>} : memref<324x4xbf16, #tpu.memory_space<vmem>>, vector<324x4xbf16>,
    %cst_1 = arith.constant 0.000000e+00 : bf16
    %2 = vector.broadcast %cst_1 : bf16 to vector<324x8xbf16>
    %c0_2 = arith.constant 0 : index
    %c0_3 = arith.constant 0 : index
    %3 = vector.load %arg12[%c0_2, %c0_3] : memref<324x8xbf16, #tpu.memory_space<vmem>>, vector<324x8xbf16>
    tpu.vector_store %arg12[%c0_2, %c0_3], %2 {strides = array<i32>} : memref<324x8xbf16, #tpu.memory_space<vmem>>, vector<324x8xbf16>,
    %c0_4 = arith.constant 0 : index
    %c0_5 = arith.constant 0 : index
    %4 = vector.load %arg5[%c0_4, %c0_5] : memref<1x4xf32, #tpu.memory_space<vmem>>, vector<1x4xf32>
    %5 = vector.shape_cast %4 : vector<1x4xf32> to vector<1x4xf32>
    %6 = vector.broadcast %5 : vector<1x4xf32> to vector<16x4xf32>
    %c0_6 = arith.constant 0 : index
    %c0_7 = arith.constant 0 : index
    %7 = vector.load %arg6[%c0_6, %c0_7] : memref<1x4xf32, #tpu.memory_space<vmem>>, vector<1x4xf32>
    %8 = vector.shape_cast %7 : vector<1x4xf32> to vector<1x4xf32>
    %9 = vector.broadcast %8 : vector<1x4xf32> to vector<16x4xf32>
    %c0_8 = arith.constant 0 : index
    %c0_9 = arith.constant 0 : index
    %c0_10 = arith.constant 0 : index
    %10 = vector.load %arg1[%c0_8, %c0_9, %c0_10] : memref<1x256x4xf32, #tpu.memory_space<vmem>>, vector<1x16x4xf32>
    %11 = vector.shape_cast %10 : vector<1x16x4xf32> to vector<16x4xf32>
    %12 = arith.mulf %11, %6 : vector<16x4xf32>
    %13 = arith.addf %12, %9 : vector<16x4xf32>
    %cst_11 = arith.constant 0.000000e+00 : f32
    %14 = vector.broadcast %cst_11 : f32 to vector<16x4xf32>
    %15 = arith.maximumf %13, %14 : vector<16x4xf32>
    %16 = arith.truncf %15 : vector<16x4xf32> to vector<16x4xbf16>
    %c19 = arith.constant 19 : index
    %c0_12 = arith.constant 0 : index
    %17 = vector.load %arg10[%c19, %c0_12] : memref<324x4xbf16, #tpu.memory_space<vmem>>, vector<16x4xbf16>
    tpu.vector_store %arg10[%c19, %c0_12], %16 {strides = array<i32>} : memref<324x4xbf16, #tpu.memory_space<vmem>>, vector<16x4xbf16>,
    %c0_13 = arith.constant 0 : index
    %c16 = arith.constant 16 : index
    %c0_14 = arith.constant 0 : index
    %18 = vector.load %arg1[%c0_13, %c16, %c0_14] : memref<1x256x4xf32, #tpu.memory_space<vmem>>, vector<1x16x4xf32>
    %19 = vector.shape_cast %18 : vector<1x16x4xf32> to vector<16x4xf32>
    %20 = arith.mulf %19, %6 : vector<16x4xf32>
    %21 = arith.addf %20, %9 : vector<16x4xf32>
    %cst_15 = arith.constant 0.000000e+00 : f32
    %22 = vector.broadcast %cst_15 : f32 to vector<16x4xf32>
    %23 = arith.maximumf %21, %22 : vector<16x4xf32>
    %24 = arith.truncf %23 : vector<16x4xf32> to vector<16x4xbf16>
    %c37 = arith.constant 37 : index
    %c0_16 = arith.constant 0 : index
    %25 = vector.load %arg10[%c37, %c0_16] : memref<324x4xbf16, #tpu.memory_space<vmem>>, vector<16x4xbf16>
    tpu.vector_store %arg10[%c37, %c0_16], %24 {strides = array<i32>} : memref<324x4xbf16, #tpu.memory_space<vmem>>, vector<16x4xbf16>,
    %c0_17 = arith.constant 0 : index
    %c32 = arith.constant 32 : index
    %c0_18 = arith.constant 0 : index
    %26 = vector.load %arg1[%c0_17, %c32, %c0_18] : memref<1x256x4xf32, #tpu.memory_space<vmem>>, vector<1x16x4xf32>
    %27 = vector.shape_cast %26 : vector<1x16x4xf32> to vector<16x4xf32>
    %28 = arith.mulf %27, %6 : vector<16x4xf32>
    %29 = arith.addf %28, %9 : vector<16x4xf32>
    %cst_19 = arith.constant 0.000000e+00 : f32
    %30 = vector.broadcast %cst_19 : f32 to vector<16x4xf32>
    %31 = arith.maximumf %29, %30 : vector<16x4xf32>
    %32 = arith.truncf %31 : vector<16x4xf32> to vector<16x4xbf16>
    %c55 = arith.constant 55 : index
    %c0_20 = arith.constant 0 : index
    %33 = vector.load %arg10[%c55, %c0_20] : memref<324x4xbf16, #tpu.memory_space<vmem>>, vector<16x4xbf16>
    tpu.vector_store %arg10[%c55, %c0_20], %32 {strides = array<i32>} : memref<324x4xbf16, #tpu.memory_space<vmem>>, vector<16x4xbf16>,
    %c0_21 = arith.constant 0 : index
    %c48 = arith.constant 48 : index
    %c0_22 = arith.constant 0 : index
    %34 = vector.load %arg1[%c0_21, %c48, %c0_22] : memref<1x256x4xf32, #tpu.memory_space<vmem>>, vector<1x16x4xf32>
    %35 = vector.shape_cast %34 : vector<1x16x4xf32> to vector<16x4xf32>
    %36 = arith.mulf %35, %6 : vector<16x4xf32>
    %37 = arith.addf %36, %9 : vector<16x4xf32>
    %cst_23 = arith.constant 0.000000e+00 : f32
    %38 = vector.broadcast %cst_23 : f32 to vector<16x4xf32>
    %39 = arith.maximumf %37, %38 : vector<16x4xf32>
    %40 = arith.truncf %39 : vector<16x4xf32> to vector<16x4xbf16>
    %c73 = arith.constant 73 : index
    %c0_24 = arith.constant 0 : index
    %41 = vector.load %arg10[%c73, %c0_24] : memref<324x4xbf16, #tpu.memory_space<vmem>>, vector<16x4xbf16>
    tpu.vector_store %arg10[%c73, %c0_24], %40 {strides = array<i32>} : memref<324x4xbf16, #tpu.memory_space<vmem>>, vector<16x4xbf16>,
    %c0_25 = arith.constant 0 : index
    %c64 = arith.constant 64 : index
    %c0_26 = arith.constant 0 : index
    %42 = vector.load %arg1[%c0_25, %c64, %c0_26] : memref<1x256x4xf32, #tpu.memory_space<vmem>>, vector<1x16x4xf32>
    %43 = vector.shape_cast %42 : vector<1x16x4xf32> to vector<16x4xf32>
    %44 = arith.mulf %43, %6 : vector<16x4xf32>
    %45 = arith.addf %44, %9 : vector<16x4xf32>
    %cst_27 = arith.constant 0.000000e+00 : f32
    %46 = vector.broadcast %cst_27 : f32 to vector<16x4xf32>
    %47 = arith.maximumf %45, %46 : vector<16x4xf32>
    %48 = arith.truncf %47 : vector<16x4xf32> to vector<16x4xbf16>
    %c91 = arith.constant 91 : index
    %c0_28 = arith.constant 0 : index
    %49 = vector.load %arg10[%c91, %c0_28] : memref<324x4xbf16, #tpu.memory_space<vmem>>, vector<16x4xbf16>
    tpu.vector_store %arg10[%c91, %c0_28], %48 {strides = array<i32>} : memref<324x4xbf16, #tpu.memory_space<vmem>>, vector<16x4xbf16>,
    %c0_29 = arith.constant 0 : index
    %c80 = arith.constant 80 : index
    %c0_30 = arith.constant 0 : index
    %50 = vector.load %arg1[%c0_29, %c80, %c0_30] : memref<1x256x4xf32, #tpu.memory_space<vmem>>, vector<1x16x4xf32>
    %51 = vector.shape_cast %50 : vector<1x16x4xf32> to vector<16x4xf32>
    %52 = arith.mulf %51, %6 : vector<16x4xf32>
    %53 = arith.addf %52, %9 : vector<16x4xf32>
    %cst_31 = arith.constant 0.000000e+00 : f32
    %54 = vector.broadcast %cst_31 : f32 to vector<16x4xf32>
    %55 = arith.maximumf %53, %54 : vector<16x4xf32>
    %56 = arith.truncf %55 : vector<16x4xf32> to vector<16x4xbf16>
    %c109 = arith.constant 109 : index
    %c0_32 = arith.constant 0 : index
    %57 = vector.load %arg10[%c109, %c0_32] : memref<324x4xbf16, #tpu.memory_space<vmem>>, vector<16x4xbf16>
    tpu.vector_store %arg10[%c109, %c0_32], %56 {strides = array<i32>} : memref<324x4xbf16, #tpu.memory_space<vmem>>, vector<16x4xbf16>,
    %c0_33 = arith.constant 0 : index
    %c96 = arith.constant 96 : index
    %c0_34 = arith.constant 0 : index
    %58 = vector.load %arg1[%c0_33, %c96, %c0_34] : memref<1x256x4xf32, #tpu.memory_space<vmem>>, vector<1x16x4xf32>
    %59 = vector.shape_cast %58 : vector<1x16x4xf32> to vector<16x4xf32>
    %60 = arith.mulf %59, %6 : vector<16x4xf32>
    %61 = arith.addf %60, %9 : vector<16x4xf32>
    %cst_35 = arith.constant 0.000000e+00 : f32
    %62 = vector.broadcast %cst_35 : f32 to vector<16x4xf32>
    %63 = arith.maximumf %61, %62 : vector<16x4xf32>
    %64 = arith.truncf %63 : vector<16x4xf32> to vector<16x4xbf16>
    %c127 = arith.constant 127 : index
    %c0_36 = arith.constant 0 : index
    %65 = vector.load %arg10[%c127, %c0_36] : memref<324x4xbf16, #tpu.memory_space<vmem>>, vector<16x4xbf16>
    tpu.vector_store %arg10[%c127, %c0_36], %64 {strides = array<i32>} : memref<324x4xbf16, #tpu.memory_space<vmem>>, vector<16x4xbf16>,
    %c0_37 = arith.constant 0 : index
    %c112 = arith.constant 112 : index
    %c0_38 = arith.constant 0 : index
    %66 = vector.load %arg1[%c0_37, %c112, %c0_38] : memref<1x256x4xf32, #tpu.memory_space<vmem>>, vector<1x16x4xf32>
    %67 = vector.shape_cast %66 : vector<1x16x4xf32> to vector<16x4xf32>
    %68 = arith.mulf %67, %6 : vector<16x4xf32>
    %69 = arith.addf %68, %9 : vector<16x4xf32>
    %cst_39 = arith.constant 0.000000e+00 : f32
    %70 = vector.broadcast %cst_39 : f32 to vector<16x4xf32>
    %71 = arith.maximumf %69, %70 : vector<16x4xf32>
    %72 = arith.truncf %71 : vector<16x4xf32> to vector<16x4xbf16>
    %c145 = arith.constant 145 : index
    %c0_40 = arith.constant 0 : index
    %73 = vector.load %arg10[%c145, %c0_40] : memref<324x4xbf16, #tpu.memory_space<vmem>>, vector<16x4xbf16>
    tpu.vector_store %arg10[%c145, %c0_40], %72 {strides = array<i32>} : memref<324x4xbf16, #tpu.memory_space<vmem>>, vector<16x4xbf16>,
    %c0_41 = arith.constant 0 : index
    %c128 = arith.constant 128 : index
    %c0_42 = arith.constant 0 : index
    %74 = vector.load %arg1[%c0_41, %c128, %c0_42] : memref<1x256x4xf32, #tpu.memory_space<vmem>>, vector<1x16x4xf32>
    %75 = vector.shape_cast %74 : vector<1x16x4xf32> to vector<16x4xf32>
    %76 = arith.mulf %75, %6 : vector<16x4xf32>
    %77 = arith.addf %76, %9 : vector<16x4xf32>
    %cst_43 = arith.constant 0.000000e+00 : f32
    %78 = vector.broadcast %cst_43 : f32 to vector<16x4xf32>
    %79 = arith.maximumf %77, %78 : vector<16x4xf32>
    %80 = arith.truncf %79 : vector<16x4xf32> to vector<16x4xbf16>
    %c163 = arith.constant 163 : index
    %c0_44 = arith.constant 0 : index
    %81 = vector.load %arg10[%c163, %c0_44] : memref<324x4xbf16, #tpu.memory_space<vmem>>, vector<16x4xbf16>
    tpu.vector_store %arg10[%c163, %c0_44], %80 {strides = array<i32>} : memref<324x4xbf16, #tpu.memory_space<vmem>>, vector<16x4xbf16>,
    %c0_45 = arith.constant 0 : index
    %c144 = arith.constant 144 : index
    %c0_46 = arith.constant 0 : index
    %82 = vector.load %arg1[%c0_45, %c144, %c0_46] : memref<1x256x4xf32, #tpu.memory_space<vmem>>, vector<1x16x4xf32>
    %83 = vector.shape_cast %82 : vector<1x16x4xf32> to vector<16x4xf32>
    %84 = arith.mulf %83, %6 : vector<16x4xf32>
    %85 = arith.addf %84, %9 : vector<16x4xf32>
    %cst_47 = arith.constant 0.000000e+00 : f32
    %86 = vector.broadcast %cst_47 : f32 to vector<16x4xf32>
    %87 = arith.maximumf %85, %86 : vector<16x4xf32>
    %88 = arith.truncf %87 : vector<16x4xf32> to vector<16x4xbf16>
    %c181 = arith.constant 181 : index
    %c0_48 = arith.constant 0 : index
    %89 = vector.load %arg10[%c181, %c0_48] : memref<324x4xbf16, #tpu.memory_space<vmem>>, vector<16x4xbf16>
    tpu.vector_store %arg10[%c181, %c0_48], %88 {strides = array<i32>} : memref<324x4xbf16, #tpu.memory_space<vmem>>, vector<16x4xbf16>,
    %c0_49 = arith.constant 0 : index
    %c160 = arith.constant 160 : index
    %c0_50 = arith.constant 0 : index
    %90 = vector.load %arg1[%c0_49, %c160, %c0_50] : memref<1x256x4xf32, #tpu.memory_space<vmem>>, vector<1x16x4xf32>
    %91 = vector.shape_cast %90 : vector<1x16x4xf32> to vector<16x4xf32>
    %92 = arith.mulf %91, %6 : vector<16x4xf32>
    %93 = arith.addf %92, %9 : vector<16x4xf32>
    %cst_51 = arith.constant 0.000000e+00 : f32
    %94 = vector.broadcast %cst_51 : f32 to vector<16x4xf32>
    %95 = arith.maximumf %93, %94 : vector<16x4xf32>
    %96 = arith.truncf %95 : vector<16x4xf32> to vector<16x4xbf16>
    %c199 = arith.constant 199 : index
    %c0_52 = arith.constant 0 : index
    %97 = vector.load %arg10[%c199, %c0_52] : memref<324x4xbf16, #tpu.memory_space<vmem>>, vector<16x4xbf16>
    tpu.vector_store %arg10[%c199, %c0_52], %96 {strides = array<i32>} : memref<324x4xbf16, #tpu.memory_space<vmem>>, vector<16x4xbf16>,
    %c0_53 = arith.constant 0 : index
    %c176 = arith.constant 176 : index
    %c0_54 = arith.constant 0 : index
    %98 = vector.load %arg1[%c0_53, %c176, %c0_54] : memref<1x256x4xf32, #tpu.memory_space<vmem>>, vector<1x16x4xf32>
    %99 = vector.shape_cast %98 : vector<1x16x4xf32> to vector<16x4xf32>
    %100 = arith.mulf %99, %6 : vector<16x4xf32>
    %101 = arith.addf %100, %9 : vector<16x4xf32>
    %cst_55 = arith.constant 0.000000e+00 : f32
    %102 = vector.broadcast %cst_55 : f32 to vector<16x4xf32>
    %103 = arith.maximumf %101, %102 : vector<16x4xf32>
    %104 = arith.truncf %103 : vector<16x4xf32> to vector<16x4xbf16>
    %c217 = arith.constant 217 : index
    %c0_56 = arith.constant 0 : index
    %105 = vector.load %arg10[%c217, %c0_56] : memref<324x4xbf16, #tpu.memory_space<vmem>>, vector<16x4xbf16>
    tpu.vector_store %arg10[%c217, %c0_56], %104 {strides = array<i32>} : memref<324x4xbf16, #tpu.memory_space<vmem>>, vector<16x4xbf16>,
    %c0_57 = arith.constant 0 : index
    %c192 = arith.constant 192 : index
    %c0_58 = arith.constant 0 : index
    %106 = vector.load %arg1[%c0_57, %c192, %c0_58] : memref<1x256x4xf32, #tpu.memory_space<vmem>>, vector<1x16x4xf32>
    %107 = vector.shape_cast %106 : vector<1x16x4xf32> to vector<16x4xf32>
    %108 = arith.mulf %107, %6 : vector<16x4xf32>
    %109 = arith.addf %108, %9 : vector<16x4xf32>
    %cst_59 = arith.constant 0.000000e+00 : f32
    %110 = vector.broadcast %cst_59 : f32 to vector<16x4xf32>
    %111 = arith.maximumf %109, %110 : vector<16x4xf32>
    %112 = arith.truncf %111 : vector<16x4xf32> to vector<16x4xbf16>
    %c235 = arith.constant 235 : index
    %c0_60 = arith.constant 0 : index
    %113 = vector.load %arg10[%c235, %c0_60] : memref<324x4xbf16, #tpu.memory_space<vmem>>, vector<16x4xbf16>
    tpu.vector_store %arg10[%c235, %c0_60], %112 {strides = array<i32>} : memref<324x4xbf16, #tpu.memory_space<vmem>>, vector<16x4xbf16>,
    %c0_61 = arith.constant 0 : index
    %c208 = arith.constant 208 : index
    %c0_62 = arith.constant 0 : index
    %114 = vector.load %arg1[%c0_61, %c208, %c0_62] : memref<1x256x4xf32, #tpu.memory_space<vmem>>, vector<1x16x4xf32>
    %115 = vector.shape_cast %114 : vector<1x16x4xf32> to vector<16x4xf32>
    %116 = arith.mulf %115, %6 : vector<16x4xf32>
    %117 = arith.addf %116, %9 : vector<16x4xf32>
    %cst_63 = arith.constant 0.000000e+00 : f32
    %118 = vector.broadcast %cst_63 : f32 to vector<16x4xf32>
    %119 = arith.maximumf %117, %118 : vector<16x4xf32>
    %120 = arith.truncf %119 : vector<16x4xf32> to vector<16x4xbf16>
    %c253 = arith.constant 253 : index
    %c0_64 = arith.constant 0 : index
    %121 = vector.load %arg10[%c253, %c0_64] : memref<324x4xbf16, #tpu.memory_space<vmem>>, vector<16x4xbf16>
    tpu.vector_store %arg10[%c253, %c0_64], %120 {strides = array<i32>} : memref<324x4xbf16, #tpu.memory_space<vmem>>, vector<16x4xbf16>,
    %c0_65 = arith.constant 0 : index
    %c224 = arith.constant 224 : index
    %c0_66 = arith.constant 0 : index
    %122 = vector.load %arg1[%c0_65, %c224, %c0_66] : memref<1x256x4xf32, #tpu.memory_space<vmem>>, vector<1x16x4xf32>
    %123 = vector.shape_cast %122 : vector<1x16x4xf32> to vector<16x4xf32>
    %124 = arith.mulf %123, %6 : vector<16x4xf32>
    %125 = arith.addf %124, %9 : vector<16x4xf32>
    %cst_67 = arith.constant 0.000000e+00 : f32
    %126 = vector.broadcast %cst_67 : f32 to vector<16x4xf32>
    %127 = arith.maximumf %125, %126 : vector<16x4xf32>
    %128 = arith.truncf %127 : vector<16x4xf32> to vector<16x4xbf16>
    %c271 = arith.constant 271 : index
    %c0_68 = arith.constant 0 : index
    %129 = vector.load %arg10[%c271, %c0_68] : memref<324x4xbf16, #tpu.memory_space<vmem>>, vector<16x4xbf16>
    tpu.vector_store %arg10[%c271, %c0_68], %128 {strides = array<i32>} : memref<324x4xbf16, #tpu.memory_space<vmem>>, vector<16x4xbf16>,
    %c0_69 = arith.constant 0 : index
    %c240 = arith.constant 240 : index
    %c0_70 = arith.constant 0 : index
    %130 = vector.load %arg1[%c0_69, %c240, %c0_70] : memref<1x256x4xf32, #tpu.memory_space<vmem>>, vector<1x16x4xf32>
    %131 = vector.shape_cast %130 : vector<1x16x4xf32> to vector<16x4xf32>
    %132 = arith.mulf %131, %6 : vector<16x4xf32>
    %133 = arith.addf %132, %9 : vector<16x4xf32>
    %cst_71 = arith.constant 0.000000e+00 : f32
    %134 = vector.broadcast %cst_71 : f32 to vector<16x4xf32>
    %135 = arith.maximumf %133, %134 : vector<16x4xf32>
    %136 = arith.truncf %135 : vector<16x4xf32> to vector<16x4xbf16>
    %c289 = arith.constant 289 : index
    %c0_72 = arith.constant 0 : index
    %137 = vector.load %arg10[%c289, %c0_72] : memref<324x4xbf16, #tpu.memory_space<vmem>>, vector<16x4xbf16>
    tpu.vector_store %arg10[%c289, %c0_72], %136 {strides = array<i32>} : memref<324x4xbf16, #tpu.memory_space<vmem>>, vector<16x4xbf16>,
    %c0_73 = arith.constant 0 : index
    %c0_74 = arith.constant 0 : index
    %138 = vector.load %arg10[%c0_73, %c0_74] : memref<324x4xbf16, #tpu.memory_space<vmem>>, vector<256x4xbf16>
    %c0_75 = arith.constant 0 : index
    %c0_76 = arith.constant 0 : index
    %c0_77 = arith.constant 0 : index
    %139 = vector.load %arg2[%c0_75, %c0_76, %c0_77] : memref<9x4x8xbf16, #tpu.memory_space<vmem>>, vector<1x4x8xbf16>
    %140 = vector.shape_cast %139 : vector<1x4x8xbf16> to vector<4x8xbf16>
    %cst_78 = arith.constant dense<0.000000e+00> : vector<256x8xf32>
    %141 = tpu.matmul %138, %140, %cst_78 {dimension_numbers = #tpu.dot_dimension_numbers<[1], [0], [0], [1], [0, 0, 1, 1], [], []>} : vector<256x4xbf16>, vector<4x8xbf16>, vector<256x8xf32> -> vector<256x8xf32>
    %c1 = arith.constant 1 : index
    %c0_79 = arith.constant 0 : index
    %142 = vector.load %arg10[%c1, %c0_79] : memref<324x4xbf16, #tpu.memory_space<vmem>>, vector<256x4xbf16>
    %c1_80 = arith.constant 1 : index
    %c0_81 = arith.constant 0 : index
    %c0_82 = arith.constant 0 : index
    %143 = vector.load %arg2[%c1_80, %c0_81, %c0_82] : memref<9x4x8xbf16, #tpu.memory_space<vmem>>, vector<1x4x8xbf16>
    %144 = vector.shape_cast %143 : vector<1x4x8xbf16> to vector<4x8xbf16>
    %cst_83 = arith.constant dense<0.000000e+00> : vector<256x8xf32>
    %145 = tpu.matmul %142, %144, %cst_83 {dimension_numbers = #tpu.dot_dimension_numbers<[1], [0], [0], [1], [0, 0, 1, 1], [], []>} : vector<256x4xbf16>, vector<4x8xbf16>, vector<256x8xf32> -> vector<256x8xf32>
    %146 = arith.addf %141, %145 : vector<256x8xf32>
    %c2 = arith.constant 2 : index
    %c0_84 = arith.constant 0 : index
    %147 = vector.load %arg10[%c2, %c0_84] : memref<324x4xbf16, #tpu.memory_space<vmem>>, vector<256x4xbf16>
    %c2_85 = arith.constant 2 : index
    %c0_86 = arith.constant 0 : index
    %c0_87 = arith.constant 0 : index
    %148 = vector.load %arg2[%c2_85, %c0_86, %c0_87] : memref<9x4x8xbf16, #tpu.memory_space<vmem>>, vector<1x4x8xbf16>
    %149 = vector.shape_cast %148 : vector<1x4x8xbf16> to vector<4x8xbf16>
    %cst_88 = arith.constant dense<0.000000e+00> : vector<256x8xf32>
    %150 = tpu.matmul %147, %149, %cst_88 {dimension_numbers = #tpu.dot_dimension_numbers<[1], [0], [0], [1], [0, 0, 1, 1], [], []>} : vector<256x4xbf16>, vector<4x8xbf16>, vector<256x8xf32> -> vector<256x8xf32>
    %151 = arith.addf %146, %150 : vector<256x8xf32>
    %c18 = arith.constant 18 : index
    %c0_89 = arith.constant 0 : index
    %152 = vector.load %arg10[%c18, %c0_89] : memref<324x4xbf16, #tpu.memory_space<vmem>>, vector<256x4xbf16>
    %c3 = arith.constant 3 : index
    %c0_90 = arith.constant 0 : index
    %c0_91 = arith.constant 0 : index
    %153 = vector.load %arg2[%c3, %c0_90, %c0_91] : memref<9x4x8xbf16, #tpu.memory_space<vmem>>, vector<1x4x8xbf16>
    %154 = vector.shape_cast %153 : vector<1x4x8xbf16> to vector<4x8xbf16>
    %cst_92 = arith.constant dense<0.000000e+00> : vector<256x8xf32>
    %155 = tpu.matmul %152, %154, %cst_92 {dimension_numbers = #tpu.dot_dimension_numbers<[1], [0], [0], [1], [0, 0, 1, 1], [], []>} : vector<256x4xbf16>, vector<4x8xbf16>, vector<256x8xf32> -> vector<256x8xf32>
    %156 = arith.addf %151, %155 : vector<256x8xf32>
    %c19_93 = arith.constant 19 : index
    %c0_94 = arith.constant 0 : index
    %157 = vector.load %arg10[%c19_93, %c0_94] : memref<324x4xbf16, #tpu.memory_space<vmem>>, vector<256x4xbf16>
    %c4 = arith.constant 4 : index
    %c0_95 = arith.constant 0 : index
    %c0_96 = arith.constant 0 : index
    %158 = vector.load %arg2[%c4, %c0_95, %c0_96] : memref<9x4x8xbf16, #tpu.memory_space<vmem>>, vector<1x4x8xbf16>
    %159 = vector.shape_cast %158 : vector<1x4x8xbf16> to vector<4x8xbf16>
    %cst_97 = arith.constant dense<0.000000e+00> : vector<256x8xf32>
    %160 = tpu.matmul %157, %159, %cst_97 {dimension_numbers = #tpu.dot_dimension_numbers<[1], [0], [0], [1], [0, 0, 1, 1], [], []>} : vector<256x4xbf16>, vector<4x8xbf16>, vector<256x8xf32> -> vector<256x8xf32>
    %161 = arith.addf %156, %160 : vector<256x8xf32>
    %c0_98 = arith.constant 0 : index
    %c0_99 = arith.constant 0 : index
    %162 = vector.load %arg4[%c0_98, %c0_99] : memref<4x8xbf16, #tpu.memory_space<vmem>>, vector<4x8xbf16>
    %cst_100 = arith.constant dense<0.000000e+00> : vector<256x8xf32>
    %163 = tpu.matmul %157, %162, %cst_100 {dimension_numbers = #tpu.dot_dimension_numbers<[1], [0], [0], [1], [0, 0, 1, 1], [], []>} : vector<256x4xbf16>, vector<4x8xbf16>, vector<256x8xf32> -> vector<256x8xf32>
    %c0_101 = arith.constant 0 : index
    %c0_102 = arith.constant 0 : index
    %164 = vector.load %arg14[%c0_101, %c0_102] : memref<286x8xf32, #tpu.memory_space<vmem>>, vector<256x8xf32>
    tpu.vector_store %arg14[%c0_101, %c0_102], %163 {strides = array<i32>} : memref<286x8xf32, #tpu.memory_space<vmem>>, vector<256x8xf32>,
    %c20 = arith.constant 20 : index
    %c0_103 = arith.constant 0 : index
    %165 = vector.load %arg10[%c20, %c0_103] : memref<324x4xbf16, #tpu.memory_space<vmem>>, vector<256x4xbf16>
    %c5 = arith.constant 5 : index
    %c0_104 = arith.constant 0 : index
    %c0_105 = arith.constant 0 : index
    %166 = vector.load %arg2[%c5, %c0_104, %c0_105] : memref<9x4x8xbf16, #tpu.memory_space<vmem>>, vector<1x4x8xbf16>
    %167 = vector.shape_cast %166 : vector<1x4x8xbf16> to vector<4x8xbf16>
    %cst_106 = arith.constant dense<0.000000e+00> : vector<256x8xf32>
    %168 = tpu.matmul %165, %167, %cst_106 {dimension_numbers = #tpu.dot_dimension_numbers<[1], [0], [0], [1], [0, 0, 1, 1], [], []>} : vector<256x4xbf16>, vector<4x8xbf16>, vector<256x8xf32> -> vector<256x8xf32>
    %169 = arith.addf %161, %168 : vector<256x8xf32>
    %c36 = arith.constant 36 : index
    %c0_107 = arith.constant 0 : index
    %170 = vector.load %arg10[%c36, %c0_107] : memref<324x4xbf16, #tpu.memory_space<vmem>>, vector<256x4xbf16>
    %c6 = arith.constant 6 : index
    %c0_108 = arith.constant 0 : index
    %c0_109 = arith.constant 0 : index
    %171 = vector.load %arg2[%c6, %c0_108, %c0_109] : memref<9x4x8xbf16, #tpu.memory_space<vmem>>, vector<1x4x8xbf16>
    %172 = vector.shape_cast %171 : vector<1x4x8xbf16> to vector<4x8xbf16>
    %cst_110 = arith.constant dense<0.000000e+00> : vector<256x8xf32>
    %173 = tpu.matmul %170, %172, %cst_110 {dimension_numbers = #tpu.dot_dimension_numbers<[1], [0], [0], [1], [0, 0, 1, 1], [], []>} : vector<256x4xbf16>, vector<4x8xbf16>, vector<256x8xf32> -> vector<256x8xf32>
    %174 = arith.addf %169, %173 : vector<256x8xf32>
    %c37_111 = arith.constant 37 : index
    %c0_112 = arith.constant 0 : index
    %175 = vector.load %arg10[%c37_111, %c0_112] : memref<324x4xbf16, #tpu.memory_space<vmem>>, vector<256x4xbf16>
    %c7 = arith.constant 7 : index
    %c0_113 = arith.constant 0 : index
    %c0_114 = arith.constant 0 : index
    %176 = vector.load %arg2[%c7, %c0_113, %c0_114] : memref<9x4x8xbf16, #tpu.memory_space<vmem>>, vector<1x4x8xbf16>
    %177 = vector.shape_cast %176 : vector<1x4x8xbf16> to vector<4x8xbf16>
    %cst_115 = arith.constant dense<0.000000e+00> : vector<256x8xf32>
    %178 = tpu.matmul %175, %177, %cst_115 {dimension_numbers = #tpu.dot_dimension_numbers<[1], [0], [0], [1], [0, 0, 1, 1], [], []>} : vector<256x4xbf16>, vector<4x8xbf16>, vector<256x8xf32> -> vector<256x8xf32>
    %179 = arith.addf %174, %178 : vector<256x8xf32>
    %c38 = arith.constant 38 : index
    %c0_116 = arith.constant 0 : index
    %180 = vector.load %arg10[%c38, %c0_116] : memref<324x4xbf16, #tpu.memory_space<vmem>>, vector<256x4xbf16>
    %c8 = arith.constant 8 : index
    %c0_117 = arith.constant 0 : index
    %c0_118 = arith.constant 0 : index
    %181 = vector.load %arg2[%c8, %c0_117, %c0_118] : memref<9x4x8xbf16, #tpu.memory_space<vmem>>, vector<1x4x8xbf16>
    %182 = vector.shape_cast %181 : vector<1x4x8xbf16> to vector<4x8xbf16>
    %cst_119 = arith.constant dense<0.000000e+00> : vector<256x8xf32>
    %183 = tpu.matmul %180, %182, %cst_119 {dimension_numbers = #tpu.dot_dimension_numbers<[1], [0], [0], [1], [0, 0, 1, 1], [], []>} : vector<256x4xbf16>, vector<4x8xbf16>, vector<256x8xf32> -> vector<256x8xf32>
    %184 = arith.addf %179, %183 : vector<256x8xf32>
    %c0_120 = arith.constant 0 : index
    %c0_121 = arith.constant 0 : index
    %185 = vector.load %arg11[%c0_120, %c0_121] : memref<286x8xf32, #tpu.memory_space<vmem>>, vector<256x8xf32>
    tpu.vector_store %arg11[%c0_120, %c0_121], %184 {strides = array<i32>} : memref<286x8xf32, #tpu.memory_space<vmem>>, vector<256x8xf32>,
    %c256 = arith.constant 256 : index
    %c0_122 = arith.constant 0 : index
    %186 = vector.load %arg10[%c256, %c0_122] : memref<324x4xbf16, #tpu.memory_space<vmem>>, vector<30x4xbf16>
    %c0_123 = arith.constant 0 : index
    %c0_124 = arith.constant 0 : index
    %c0_125 = arith.constant 0 : index
    %187 = vector.load %arg2[%c0_123, %c0_124, %c0_125] : memref<9x4x8xbf16, #tpu.memory_space<vmem>>, vector<1x4x8xbf16>
    %188 = vector.shape_cast %187 : vector<1x4x8xbf16> to vector<4x8xbf16>
    %cst_126 = arith.constant dense<0.000000e+00> : vector<30x8xf32>
    %189 = tpu.matmul %186, %188, %cst_126 {dimension_numbers = #tpu.dot_dimension_numbers<[1], [0], [0], [1], [0, 0, 1, 1], [], []>} : vector<30x4xbf16>, vector<4x8xbf16>, vector<30x8xf32> -> vector<30x8xf32>
    %c257 = arith.constant 257 : index
    %c0_127 = arith.constant 0 : index
    %190 = vector.load %arg10[%c257, %c0_127] : memref<324x4xbf16, #tpu.memory_space<vmem>>, vector<30x4xbf16>
    %c1_128 = arith.constant 1 : index
    %c0_129 = arith.constant 0 : index
    %c0_130 = arith.constant 0 : index
    %191 = vector.load %arg2[%c1_128, %c0_129, %c0_130] : memref<9x4x8xbf16, #tpu.memory_space<vmem>>, vector<1x4x8xbf16>
    %192 = vector.shape_cast %191 : vector<1x4x8xbf16> to vector<4x8xbf16>
    %cst_131 = arith.constant dense<0.000000e+00> : vector<30x8xf32>
    %193 = tpu.matmul %190, %192, %cst_131 {dimension_numbers = #tpu.dot_dimension_numbers<[1], [0], [0], [1], [0, 0, 1, 1], [], []>} : vector<30x4xbf16>, vector<4x8xbf16>, vector<30x8xf32> -> vector<30x8xf32>
    %194 = arith.addf %189, %193 : vector<30x8xf32>
    %c258 = arith.constant 258 : index
    %c0_132 = arith.constant 0 : index
    %195 = vector.load %arg10[%c258, %c0_132] : memref<324x4xbf16, #tpu.memory_space<vmem>>, vector<30x4xbf16>
    %c2_133 = arith.constant 2 : index
    %c0_134 = arith.constant 0 : index
    %c0_135 = arith.constant 0 : index
    %196 = vector.load %arg2[%c2_133, %c0_134, %c0_135] : memref<9x4x8xbf16, #tpu.memory_space<vmem>>, vector<1x4x8xbf16>
    %197 = vector.shape_cast %196 : vector<1x4x8xbf16> to vector<4x8xbf16>
    %cst_136 = arith.constant dense<0.000000e+00> : vector<30x8xf32>
    %198 = tpu.matmul %195, %197, %cst_136 {dimension_numbers = #tpu.dot_dimension_numbers<[1], [0], [0], [1], [0, 0, 1, 1], [], []>} : vector<30x4xbf16>, vector<4x8xbf16>, vector<30x8xf32> -> vector<30x8xf32>
    %199 = arith.addf %194, %198 : vector<30x8xf32>
    %c274 = arith.constant 274 : index
    %c0_137 = arith.constant 0 : index
    %200 = vector.load %arg10[%c274, %c0_137] : memref<324x4xbf16, #tpu.memory_space<vmem>>, vector<30x4xbf16>
    %c3_138 = arith.constant 3 : index
    %c0_139 = arith.constant 0 : index
    %c0_140 = arith.constant 0 : index
    %201 = vector.load %arg2[%c3_138, %c0_139, %c0_140] : memref<9x4x8xbf16, #tpu.memory_space<vmem>>, vector<1x4x8xbf16>
    %202 = vector.shape_cast %201 : vector<1x4x8xbf16> to vector<4x8xbf16>
    %cst_141 = arith.constant dense<0.000000e+00> : vector<30x8xf32>
    %203 = tpu.matmul %200, %202, %cst_141 {dimension_numbers = #tpu.dot_dimension_numbers<[1], [0], [0], [1], [0, 0, 1, 1], [], []>} : vector<30x4xbf16>, vector<4x8xbf16>, vector<30x8xf32> -> vector<30x8xf32>
    %204 = arith.addf %199, %203 : vector<30x8xf32>
    %c275 = arith.constant 275 : index
    %c0_142 = arith.constant 0 : index
    %205 = vector.load %arg10[%c275, %c0_142] : memref<324x4xbf16, #tpu.memory_space<vmem>>, vector<30x4xbf16>
    %c4_143 = arith.constant 4 : index
    %c0_144 = arith.constant 0 : index
    %c0_145 = arith.constant 0 : index
    %206 = vector.load %arg2[%c4_143, %c0_144, %c0_145] : memref<9x4x8xbf16, #tpu.memory_space<vmem>>, vector<1x4x8xbf16>
    %207 = vector.shape_cast %206 : vector<1x4x8xbf16> to vector<4x8xbf16>
    %cst_146 = arith.constant dense<0.000000e+00> : vector<30x8xf32>
    %208 = tpu.matmul %205, %207, %cst_146 {dimension_numbers = #tpu.dot_dimension_numbers<[1], [0], [0], [1], [0, 0, 1, 1], [], []>} : vector<30x4xbf16>, vector<4x8xbf16>, vector<30x8xf32> -> vector<30x8xf32>
    %209 = arith.addf %204, %208 : vector<30x8xf32>
    %c0_147 = arith.constant 0 : index
    %c0_148 = arith.constant 0 : index
    %210 = vector.load %arg4[%c0_147, %c0_148] : memref<4x8xbf16, #tpu.memory_space<vmem>>, vector<4x8xbf16>
    %cst_149 = arith.constant dense<0.000000e+00> : vector<30x8xf32>
    %211 = tpu.matmul %205, %210, %cst_149 {dimension_numbers = #tpu.dot_dimension_numbers<[1], [0], [0], [1], [0, 0, 1, 1], [], []>} : vector<30x4xbf16>, vector<4x8xbf16>, vector<30x8xf32> -> vector<30x8xf32>
    %c256_150 = arith.constant 256 : index
    %c0_151 = arith.constant 0 : index
    %212 = vector.load %arg14[%c256_150, %c0_151] : memref<286x8xf32, #tpu.memory_space<vmem>>, vector<30x8xf32>
    tpu.vector_store %arg14[%c256_150, %c0_151], %211 {strides = array<i32>} : memref<286x8xf32, #tpu.memory_space<vmem>>, vector<30x8xf32>,
    %c276 = arith.constant 276 : index
    %c0_152 = arith.constant 0 : index
    %213 = vector.load %arg10[%c276, %c0_152] : memref<324x4xbf16, #tpu.memory_space<vmem>>, vector<30x4xbf16>
    %c5_153 = arith.constant 5 : index
    %c0_154 = arith.constant 0 : index
    %c0_155 = arith.constant 0 : index
    %214 = vector.load %arg2[%c5_153, %c0_154, %c0_155] : memref<9x4x8xbf16, #tpu.memory_space<vmem>>, vector<1x4x8xbf16>
    %215 = vector.shape_cast %214 : vector<1x4x8xbf16> to vector<4x8xbf16>
    %cst_156 = arith.constant dense<0.000000e+00> : vector<30x8xf32>
    %216 = tpu.matmul %213, %215, %cst_156 {dimension_numbers = #tpu.dot_dimension_numbers<[1], [0], [0], [1], [0, 0, 1, 1], [], []>} : vector<30x4xbf16>, vector<4x8xbf16>, vector<30x8xf32> -> vector<30x8xf32>
    %217 = arith.addf %209, %216 : vector<30x8xf32>
    %c292 = arith.constant 292 : index
    %c0_157 = arith.constant 0 : index
    %218 = vector.load %arg10[%c292, %c0_157] : memref<324x4xbf16, #tpu.memory_space<vmem>>, vector<30x4xbf16>
    %c6_158 = arith.constant 6 : index
    %c0_159 = arith.constant 0 : index
    %c0_160 = arith.constant 0 : index
    %219 = vector.load %arg2[%c6_158, %c0_159, %c0_160] : memref<9x4x8xbf16, #tpu.memory_space<vmem>>, vector<1x4x8xbf16>
    %220 = vector.shape_cast %219 : vector<1x4x8xbf16> to vector<4x8xbf16>
    %cst_161 = arith.constant dense<0.000000e+00> : vector<30x8xf32>
    %221 = tpu.matmul %218, %220, %cst_161 {dimension_numbers = #tpu.dot_dimension_numbers<[1], [0], [0], [1], [0, 0, 1, 1], [], []>} : vector<30x4xbf16>, vector<4x8xbf16>, vector<30x8xf32> -> vector<30x8xf32>
    %222 = arith.addf %217, %221 : vector<30x8xf32>
    %c293 = arith.constant 293 : index
    %c0_162 = arith.constant 0 : index
    %223 = vector.load %arg10[%c293, %c0_162] : memref<324x4xbf16, #tpu.memory_space<vmem>>, vector<30x4xbf16>
    %c7_163 = arith.constant 7 : index
    %c0_164 = arith.constant 0 : index
    %c0_165 = arith.constant 0 : index
    %224 = vector.load %arg2[%c7_163, %c0_164, %c0_165] : memref<9x4x8xbf16, #tpu.memory_space<vmem>>, vector<1x4x8xbf16>
    %225 = vector.shape_cast %224 : vector<1x4x8xbf16> to vector<4x8xbf16>
    %cst_166 = arith.constant dense<0.000000e+00> : vector<30x8xf32>
    %226 = tpu.matmul %223, %225, %cst_166 {dimension_numbers = #tpu.dot_dimension_numbers<[1], [0], [0], [1], [0, 0, 1, 1], [], []>} : vector<30x4xbf16>, vector<4x8xbf16>, vector<30x8xf32> -> vector<30x8xf32>
    %227 = arith.addf %222, %226 : vector<30x8xf32>
    %c294 = arith.constant 294 : index
    %c0_167 = arith.constant 0 : index
    %228 = vector.load %arg10[%c294, %c0_167] : memref<324x4xbf16, #tpu.memory_space<vmem>>, vector<30x4xbf16>
    %c8_168 = arith.constant 8 : index
    %c0_169 = arith.constant 0 : index
    %c0_170 = arith.constant 0 : index
    %229 = vector.load %arg2[%c8_168, %c0_169, %c0_170] : memref<9x4x8xbf16, #tpu.memory_space<vmem>>, vector<1x4x8xbf16>
    %230 = vector.shape_cast %229 : vector<1x4x8xbf16> to vector<4x8xbf16>
    %cst_171 = arith.constant dense<0.000000e+00> : vector<30x8xf32>
    %231 = tpu.matmul %228, %230, %cst_171 {dimension_numbers = #tpu.dot_dimension_numbers<[1], [0], [0], [1], [0, 0, 1, 1], [], []>} : vector<30x4xbf16>, vector<4x8xbf16>, vector<30x8xf32> -> vector<30x8xf32>
    %232 = arith.addf %227, %231 : vector<30x8xf32>
    %c256_172 = arith.constant 256 : index
    %c0_173 = arith.constant 0 : index
    %233 = vector.load %arg11[%c256_172, %c0_173] : memref<286x8xf32, #tpu.memory_space<vmem>>, vector<30x8xf32>
    tpu.vector_store %arg11[%c256_172, %c0_173], %232 {strides = array<i32>} : memref<286x8xf32, #tpu.memory_space<vmem>>, vector<30x8xf32>,
    %c0_174 = arith.constant 0 : index
    %c0_175 = arith.constant 0 : index
    %234 = vector.load %arg7[%c0_174, %c0_175] : memref<1x8xf32, #tpu.memory_space<vmem>>, vector<1x8xf32>
    %235 = vector.shape_cast %234 : vector<1x8xf32> to vector<1x8xf32>
    %236 = vector.broadcast %235 : vector<1x8xf32> to vector<16x8xf32>
    %c0_176 = arith.constant 0 : index
    %c0_177 = arith.constant 0 : index
    %237 = vector.load %arg8[%c0_176, %c0_177] : memref<1x8xf32, #tpu.memory_space<vmem>>, vector<1x8xf32>
    %238 = vector.shape_cast %237 : vector<1x8xf32> to vector<1x8xf32>
    %239 = vector.broadcast %238 : vector<1x8xf32> to vector<16x8xf32>
    %c0_178 = arith.constant 0 : index
    %c0_179 = arith.constant 0 : index
    %240 = vector.load %arg11[%c0_178, %c0_179] : memref<286x8xf32, #tpu.memory_space<vmem>>, vector<16x8xf32>
    %241 = arith.mulf %240, %236 : vector<16x8xf32>
    %242 = arith.addf %241, %239 : vector<16x8xf32>
    %cst_180 = arith.constant 0.000000e+00 : f32
    %243 = vector.broadcast %cst_180 : f32 to vector<16x8xf32>
    %244 = arith.maximumf %242, %243 : vector<16x8xf32>
    %245 = arith.truncf %244 : vector<16x8xf32> to vector<16x8xbf16>
    %c19_181 = arith.constant 19 : index
    %c0_182 = arith.constant 0 : index
    %246 = vector.load %arg12[%c19_181, %c0_182] : memref<324x8xbf16, #tpu.memory_space<vmem>>, vector<16x8xbf16>
    tpu.vector_store %arg12[%c19_181, %c0_182], %245 {strides = array<i32>} : memref<324x8xbf16, #tpu.memory_space<vmem>>, vector<16x8xbf16>,
    %c18_183 = arith.constant 18 : index
    %c0_184 = arith.constant 0 : index
    %247 = vector.load %arg11[%c18_183, %c0_184] : memref<286x8xf32, #tpu.memory_space<vmem>>, vector<16x8xf32>
    %248 = arith.mulf %247, %236 : vector<16x8xf32>
    %249 = arith.addf %248, %239 : vector<16x8xf32>
    %cst_185 = arith.constant 0.000000e+00 : f32
    %250 = vector.broadcast %cst_185 : f32 to vector<16x8xf32>
    %251 = arith.maximumf %249, %250 : vector<16x8xf32>
    %252 = arith.truncf %251 : vector<16x8xf32> to vector<16x8xbf16>
    %c37_186 = arith.constant 37 : index
    %c0_187 = arith.constant 0 : index
    %253 = vector.load %arg12[%c37_186, %c0_187] : memref<324x8xbf16, #tpu.memory_space<vmem>>, vector<16x8xbf16>
    tpu.vector_store %arg12[%c37_186, %c0_187], %252 {strides = array<i32>} : memref<324x8xbf16, #tpu.memory_space<vmem>>, vector<16x8xbf16>,
    %c36_188 = arith.constant 36 : index
    %c0_189 = arith.constant 0 : index
    %254 = vector.load %arg11[%c36_188, %c0_189] : memref<286x8xf32, #tpu.memory_space<vmem>>, vector<16x8xf32>
    %255 = arith.mulf %254, %236 : vector<16x8xf32>
    %256 = arith.addf %255, %239 : vector<16x8xf32>
    %cst_190 = arith.constant 0.000000e+00 : f32
    %257 = vector.broadcast %cst_190 : f32 to vector<16x8xf32>
    %258 = arith.maximumf %256, %257 : vector<16x8xf32>
    %259 = arith.truncf %258 : vector<16x8xf32> to vector<16x8xbf16>
    %c55_191 = arith.constant 55 : index
    %c0_192 = arith.constant 0 : index
    %260 = vector.load %arg12[%c55_191, %c0_192] : memref<324x8xbf16, #tpu.memory_space<vmem>>, vector<16x8xbf16>
    tpu.vector_store %arg12[%c55_191, %c0_192], %259 {strides = array<i32>} : memref<324x8xbf16, #tpu.memory_space<vmem>>, vector<16x8xbf16>,
    %c54 = arith.constant 54 : index
    %c0_193 = arith.constant 0 : index
    %261 = vector.load %arg11[%c54, %c0_193] : memref<286x8xf32, #tpu.memory_space<vmem>>, vector<16x8xf32>
    %262 = arith.mulf %261, %236 : vector<16x8xf32>
    %263 = arith.addf %262, %239 : vector<16x8xf32>
    %cst_194 = arith.constant 0.000000e+00 : f32
    %264 = vector.broadcast %cst_194 : f32 to vector<16x8xf32>
    %265 = arith.maximumf %263, %264 : vector<16x8xf32>
    %266 = arith.truncf %265 : vector<16x8xf32> to vector<16x8xbf16>
    %c73_195 = arith.constant 73 : index
    %c0_196 = arith.constant 0 : index
    %267 = vector.load %arg12[%c73_195, %c0_196] : memref<324x8xbf16, #tpu.memory_space<vmem>>, vector<16x8xbf16>
    tpu.vector_store %arg12[%c73_195, %c0_196], %266 {strides = array<i32>} : memref<324x8xbf16, #tpu.memory_space<vmem>>, vector<16x8xbf16>,
    %c72 = arith.constant 72 : index
    %c0_197 = arith.constant 0 : index
    %268 = vector.load %arg11[%c72, %c0_197] : memref<286x8xf32, #tpu.memory_space<vmem>>, vector<16x8xf32>
    %269 = arith.mulf %268, %236 : vector<16x8xf32>
    %270 = arith.addf %269, %239 : vector<16x8xf32>
    %cst_198 = arith.constant 0.000000e+00 : f32
    %271 = vector.broadcast %cst_198 : f32 to vector<16x8xf32>
    %272 = arith.maximumf %270, %271 : vector<16x8xf32>
    %273 = arith.truncf %272 : vector<16x8xf32> to vector<16x8xbf16>
    %c91_199 = arith.constant 91 : index
    %c0_200 = arith.constant 0 : index
    %274 = vector.load %arg12[%c91_199, %c0_200] : memref<324x8xbf16, #tpu.memory_space<vmem>>, vector<16x8xbf16>
    tpu.vector_store %arg12[%c91_199, %c0_200], %273 {strides = array<i32>} : memref<324x8xbf16, #tpu.memory_space<vmem>>, vector<16x8xbf16>,
    %c90 = arith.constant 90 : index
    %c0_201 = arith.constant 0 : index
    %275 = vector.load %arg11[%c90, %c0_201] : memref<286x8xf32, #tpu.memory_space<vmem>>, vector<16x8xf32>
    %276 = arith.mulf %275, %236 : vector<16x8xf32>
    %277 = arith.addf %276, %239 : vector<16x8xf32>
    %cst_202 = arith.constant 0.000000e+00 : f32
    %278 = vector.broadcast %cst_202 : f32 to vector<16x8xf32>
    %279 = arith.maximumf %277, %278 : vector<16x8xf32>
    %280 = arith.truncf %279 : vector<16x8xf32> to vector<16x8xbf16>
    %c109_203 = arith.constant 109 : index
    %c0_204 = arith.constant 0 : index
    %281 = vector.load %arg12[%c109_203, %c0_204] : memref<324x8xbf16, #tpu.memory_space<vmem>>, vector<16x8xbf16>
    tpu.vector_store %arg12[%c109_203, %c0_204], %280 {strides = array<i32>} : memref<324x8xbf16, #tpu.memory_space<vmem>>, vector<16x8xbf16>,
    %c108 = arith.constant 108 : index
    %c0_205 = arith.constant 0 : index
    %282 = vector.load %arg11[%c108, %c0_205] : memref<286x8xf32, #tpu.memory_space<vmem>>, vector<16x8xf32>
    %283 = arith.mulf %282, %236 : vector<16x8xf32>
    %284 = arith.addf %283, %239 : vector<16x8xf32>
    %cst_206 = arith.constant 0.000000e+00 : f32
    %285 = vector.broadcast %cst_206 : f32 to vector<16x8xf32>
    %286 = arith.maximumf %284, %285 : vector<16x8xf32>
    %287 = arith.truncf %286 : vector<16x8xf32> to vector<16x8xbf16>
    %c127_207 = arith.constant 127 : index
    %c0_208 = arith.constant 0 : index
    %288 = vector.load %arg12[%c127_207, %c0_208] : memref<324x8xbf16, #tpu.memory_space<vmem>>, vector<16x8xbf16>
    tpu.vector_store %arg12[%c127_207, %c0_208], %287 {strides = array<i32>} : memref<324x8xbf16, #tpu.memory_space<vmem>>, vector<16x8xbf16>,
    %c126 = arith.constant 126 : index
    %c0_209 = arith.constant 0 : index
    %289 = vector.load %arg11[%c126, %c0_209] : memref<286x8xf32, #tpu.memory_space<vmem>>, vector<16x8xf32>
    %290 = arith.mulf %289, %236 : vector<16x8xf32>
    %291 = arith.addf %290, %239 : vector<16x8xf32>
    %cst_210 = arith.constant 0.000000e+00 : f32
    %292 = vector.broadcast %cst_210 : f32 to vector<16x8xf32>
    %293 = arith.maximumf %291, %292 : vector<16x8xf32>
    %294 = arith.truncf %293 : vector<16x8xf32> to vector<16x8xbf16>
    %c145_211 = arith.constant 145 : index
    %c0_212 = arith.constant 0 : index
    %295 = vector.load %arg12[%c145_211, %c0_212] : memref<324x8xbf16, #tpu.memory_space<vmem>>, vector<16x8xbf16>
    tpu.vector_store %arg12[%c145_211, %c0_212], %294 {strides = array<i32>} : memref<324x8xbf16, #tpu.memory_space<vmem>>, vector<16x8xbf16>,
    %c144_213 = arith.constant 144 : index
    %c0_214 = arith.constant 0 : index
    %296 = vector.load %arg11[%c144_213, %c0_214] : memref<286x8xf32, #tpu.memory_space<vmem>>, vector<16x8xf32>
    %297 = arith.mulf %296, %236 : vector<16x8xf32>
    %298 = arith.addf %297, %239 : vector<16x8xf32>
    %cst_215 = arith.constant 0.000000e+00 : f32
    %299 = vector.broadcast %cst_215 : f32 to vector<16x8xf32>
    %300 = arith.maximumf %298, %299 : vector<16x8xf32>
    %301 = arith.truncf %300 : vector<16x8xf32> to vector<16x8xbf16>
    %c163_216 = arith.constant 163 : index
    %c0_217 = arith.constant 0 : index
    %302 = vector.load %arg12[%c163_216, %c0_217] : memref<324x8xbf16, #tpu.memory_space<vmem>>, vector<16x8xbf16>
    tpu.vector_store %arg12[%c163_216, %c0_217], %301 {strides = array<i32>} : memref<324x8xbf16, #tpu.memory_space<vmem>>, vector<16x8xbf16>,
    %c162 = arith.constant 162 : index
    %c0_218 = arith.constant 0 : index
    %303 = vector.load %arg11[%c162, %c0_218] : memref<286x8xf32, #tpu.memory_space<vmem>>, vector<16x8xf32>
    %304 = arith.mulf %303, %236 : vector<16x8xf32>
    %305 = arith.addf %304, %239 : vector<16x8xf32>
    %cst_219 = arith.constant 0.000000e+00 : f32
    %306 = vector.broadcast %cst_219 : f32 to vector<16x8xf32>
    %307 = arith.maximumf %305, %306 : vector<16x8xf32>
    %308 = arith.truncf %307 : vector<16x8xf32> to vector<16x8xbf16>
    %c181_220 = arith.constant 181 : index
    %c0_221 = arith.constant 0 : index
    %309 = vector.load %arg12[%c181_220, %c0_221] : memref<324x8xbf16, #tpu.memory_space<vmem>>, vector<16x8xbf16>
    tpu.vector_store %arg12[%c181_220, %c0_221], %308 {strides = array<i32>} : memref<324x8xbf16, #tpu.memory_space<vmem>>, vector<16x8xbf16>,
    %c180 = arith.constant 180 : index
    %c0_222 = arith.constant 0 : index
    %310 = vector.load %arg11[%c180, %c0_222] : memref<286x8xf32, #tpu.memory_space<vmem>>, vector<16x8xf32>
    %311 = arith.mulf %310, %236 : vector<16x8xf32>
    %312 = arith.addf %311, %239 : vector<16x8xf32>
    %cst_223 = arith.constant 0.000000e+00 : f32
    %313 = vector.broadcast %cst_223 : f32 to vector<16x8xf32>
    %314 = arith.maximumf %312, %313 : vector<16x8xf32>
    %315 = arith.truncf %314 : vector<16x8xf32> to vector<16x8xbf16>
    %c199_224 = arith.constant 199 : index
    %c0_225 = arith.constant 0 : index
    %316 = vector.load %arg12[%c199_224, %c0_225] : memref<324x8xbf16, #tpu.memory_space<vmem>>, vector<16x8xbf16>
    tpu.vector_store %arg12[%c199_224, %c0_225], %315 {strides = array<i32>} : memref<324x8xbf16, #tpu.memory_space<vmem>>, vector<16x8xbf16>,
    %c198 = arith.constant 198 : index
    %c0_226 = arith.constant 0 : index
    %317 = vector.load %arg11[%c198, %c0_226] : memref<286x8xf32, #tpu.memory_space<vmem>>, vector<16x8xf32>
    %318 = arith.mulf %317, %236 : vector<16x8xf32>
    %319 = arith.addf %318, %239 : vector<16x8xf32>
    %cst_227 = arith.constant 0.000000e+00 : f32
    %320 = vector.broadcast %cst_227 : f32 to vector<16x8xf32>
    %321 = arith.maximumf %319, %320 : vector<16x8xf32>
    %322 = arith.truncf %321 : vector<16x8xf32> to vector<16x8xbf16>
    %c217_228 = arith.constant 217 : index
    %c0_229 = arith.constant 0 : index
    %323 = vector.load %arg12[%c217_228, %c0_229] : memref<324x8xbf16, #tpu.memory_space<vmem>>, vector<16x8xbf16>
    tpu.vector_store %arg12[%c217_228, %c0_229], %322 {strides = array<i32>} : memref<324x8xbf16, #tpu.memory_space<vmem>>, vector<16x8xbf16>,
    %c216 = arith.constant 216 : index
    %c0_230 = arith.constant 0 : index
    %324 = vector.load %arg11[%c216, %c0_230] : memref<286x8xf32, #tpu.memory_space<vmem>>, vector<16x8xf32>
    %325 = arith.mulf %324, %236 : vector<16x8xf32>
    %326 = arith.addf %325, %239 : vector<16x8xf32>
    %cst_231 = arith.constant 0.000000e+00 : f32
    %327 = vector.broadcast %cst_231 : f32 to vector<16x8xf32>
    %328 = arith.maximumf %326, %327 : vector<16x8xf32>
    %329 = arith.truncf %328 : vector<16x8xf32> to vector<16x8xbf16>
    %c235_232 = arith.constant 235 : index
    %c0_233 = arith.constant 0 : index
    %330 = vector.load %arg12[%c235_232, %c0_233] : memref<324x8xbf16, #tpu.memory_space<vmem>>, vector<16x8xbf16>
    tpu.vector_store %arg12[%c235_232, %c0_233], %329 {strides = array<i32>} : memref<324x8xbf16, #tpu.memory_space<vmem>>, vector<16x8xbf16>,
    %c234 = arith.constant 234 : index
    %c0_234 = arith.constant 0 : index
    %331 = vector.load %arg11[%c234, %c0_234] : memref<286x8xf32, #tpu.memory_space<vmem>>, vector<16x8xf32>
    %332 = arith.mulf %331, %236 : vector<16x8xf32>
    %333 = arith.addf %332, %239 : vector<16x8xf32>
    %cst_235 = arith.constant 0.000000e+00 : f32
    %334 = vector.broadcast %cst_235 : f32 to vector<16x8xf32>
    %335 = arith.maximumf %333, %334 : vector<16x8xf32>
    %336 = arith.truncf %335 : vector<16x8xf32> to vector<16x8xbf16>
    %c253_236 = arith.constant 253 : index
    %c0_237 = arith.constant 0 : index
    %337 = vector.load %arg12[%c253_236, %c0_237] : memref<324x8xbf16, #tpu.memory_space<vmem>>, vector<16x8xbf16>
    tpu.vector_store %arg12[%c253_236, %c0_237], %336 {strides = array<i32>} : memref<324x8xbf16, #tpu.memory_space<vmem>>, vector<16x8xbf16>,
    %c252 = arith.constant 252 : index
    %c0_238 = arith.constant 0 : index
    %338 = vector.load %arg11[%c252, %c0_238] : memref<286x8xf32, #tpu.memory_space<vmem>>, vector<16x8xf32>
    %339 = arith.mulf %338, %236 : vector<16x8xf32>
    %340 = arith.addf %339, %239 : vector<16x8xf32>
    %cst_239 = arith.constant 0.000000e+00 : f32
    %341 = vector.broadcast %cst_239 : f32 to vector<16x8xf32>
    %342 = arith.maximumf %340, %341 : vector<16x8xf32>
    %343 = arith.truncf %342 : vector<16x8xf32> to vector<16x8xbf16>
    %c271_240 = arith.constant 271 : index
    %c0_241 = arith.constant 0 : index
    %344 = vector.load %arg12[%c271_240, %c0_241] : memref<324x8xbf16, #tpu.memory_space<vmem>>, vector<16x8xbf16>
    tpu.vector_store %arg12[%c271_240, %c0_241], %343 {strides = array<i32>} : memref<324x8xbf16, #tpu.memory_space<vmem>>, vector<16x8xbf16>,
    %c270 = arith.constant 270 : index
    %c0_242 = arith.constant 0 : index
    %345 = vector.load %arg11[%c270, %c0_242] : memref<286x8xf32, #tpu.memory_space<vmem>>, vector<16x8xf32>
    %346 = arith.mulf %345, %236 : vector<16x8xf32>
    %347 = arith.addf %346, %239 : vector<16x8xf32>
    %cst_243 = arith.constant 0.000000e+00 : f32
    %348 = vector.broadcast %cst_243 : f32 to vector<16x8xf32>
    %349 = arith.maximumf %347, %348 : vector<16x8xf32>
    %350 = arith.truncf %349 : vector<16x8xf32> to vector<16x8xbf16>
    %c289_244 = arith.constant 289 : index
    %c0_245 = arith.constant 0 : index
    %351 = vector.load %arg12[%c289_244, %c0_245] : memref<324x8xbf16, #tpu.memory_space<vmem>>, vector<16x8xbf16>
    tpu.vector_store %arg12[%c289_244, %c0_245], %350 {strides = array<i32>} : memref<324x8xbf16, #tpu.memory_space<vmem>>, vector<16x8xbf16>,
    %c0_246 = arith.constant 0 : index
    %c0_247 = arith.constant 0 : index
    %352 = vector.load %arg12[%c0_246, %c0_247] : memref<324x8xbf16, #tpu.memory_space<vmem>>, vector<256x8xbf16>
    %c0_248 = arith.constant 0 : index
    %c0_249 = arith.constant 0 : index
    %c0_250 = arith.constant 0 : index
    %353 = vector.load %arg3[%c0_248, %c0_249, %c0_250] : memref<9x8x8xbf16, #tpu.memory_space<vmem>>, vector<1x8x8xbf16>
    %354 = vector.shape_cast %353 : vector<1x8x8xbf16> to vector<8x8xbf16>
    %cst_251 = arith.constant dense<0.000000e+00> : vector<256x8xf32>
    %355 = tpu.matmul %352, %354, %cst_251 {dimension_numbers = #tpu.dot_dimension_numbers<[1], [0], [0], [1], [0, 0, 1, 1], [], []>} : vector<256x8xbf16>, vector<8x8xbf16>, vector<256x8xf32> -> vector<256x8xf32>
    %c1_252 = arith.constant 1 : index
    %c0_253 = arith.constant 0 : index
    %356 = vector.load %arg12[%c1_252, %c0_253] : memref<324x8xbf16, #tpu.memory_space<vmem>>, vector<256x8xbf16>
    %c1_254 = arith.constant 1 : index
    %c0_255 = arith.constant 0 : index
    %c0_256 = arith.constant 0 : index
    %357 = vector.load %arg3[%c1_254, %c0_255, %c0_256] : memref<9x8x8xbf16, #tpu.memory_space<vmem>>, vector<1x8x8xbf16>
    %358 = vector.shape_cast %357 : vector<1x8x8xbf16> to vector<8x8xbf16>
    %cst_257 = arith.constant dense<0.000000e+00> : vector<256x8xf32>
    %359 = tpu.matmul %356, %358, %cst_257 {dimension_numbers = #tpu.dot_dimension_numbers<[1], [0], [0], [1], [0, 0, 1, 1], [], []>} : vector<256x8xbf16>, vector<8x8xbf16>, vector<256x8xf32> -> vector<256x8xf32>
    %360 = arith.addf %355, %359 : vector<256x8xf32>
    %c2_258 = arith.constant 2 : index
    %c0_259 = arith.constant 0 : index
    %361 = vector.load %arg12[%c2_258, %c0_259] : memref<324x8xbf16, #tpu.memory_space<vmem>>, vector<256x8xbf16>
    %c2_260 = arith.constant 2 : index
    %c0_261 = arith.constant 0 : index
    %c0_262 = arith.constant 0 : index
    %362 = vector.load %arg3[%c2_260, %c0_261, %c0_262] : memref<9x8x8xbf16, #tpu.memory_space<vmem>>, vector<1x8x8xbf16>
    %363 = vector.shape_cast %362 : vector<1x8x8xbf16> to vector<8x8xbf16>
    %cst_263 = arith.constant dense<0.000000e+00> : vector<256x8xf32>
    %364 = tpu.matmul %361, %363, %cst_263 {dimension_numbers = #tpu.dot_dimension_numbers<[1], [0], [0], [1], [0, 0, 1, 1], [], []>} : vector<256x8xbf16>, vector<8x8xbf16>, vector<256x8xf32> -> vector<256x8xf32>
    %365 = arith.addf %360, %364 : vector<256x8xf32>
    %c18_264 = arith.constant 18 : index
    %c0_265 = arith.constant 0 : index
    %366 = vector.load %arg12[%c18_264, %c0_265] : memref<324x8xbf16, #tpu.memory_space<vmem>>, vector<256x8xbf16>
    %c3_266 = arith.constant 3 : index
    %c0_267 = arith.constant 0 : index
    %c0_268 = arith.constant 0 : index
    %367 = vector.load %arg3[%c3_266, %c0_267, %c0_268] : memref<9x8x8xbf16, #tpu.memory_space<vmem>>, vector<1x8x8xbf16>
    %368 = vector.shape_cast %367 : vector<1x8x8xbf16> to vector<8x8xbf16>
    %cst_269 = arith.constant dense<0.000000e+00> : vector<256x8xf32>
    %369 = tpu.matmul %366, %368, %cst_269 {dimension_numbers = #tpu.dot_dimension_numbers<[1], [0], [0], [1], [0, 0, 1, 1], [], []>} : vector<256x8xbf16>, vector<8x8xbf16>, vector<256x8xf32> -> vector<256x8xf32>
    %370 = arith.addf %365, %369 : vector<256x8xf32>
    %c19_270 = arith.constant 19 : index
    %c0_271 = arith.constant 0 : index
    %371 = vector.load %arg12[%c19_270, %c0_271] : memref<324x8xbf16, #tpu.memory_space<vmem>>, vector<256x8xbf16>
    %c4_272 = arith.constant 4 : index
    %c0_273 = arith.constant 0 : index
    %c0_274 = arith.constant 0 : index
    %372 = vector.load %arg3[%c4_272, %c0_273, %c0_274] : memref<9x8x8xbf16, #tpu.memory_space<vmem>>, vector<1x8x8xbf16>
    %373 = vector.shape_cast %372 : vector<1x8x8xbf16> to vector<8x8xbf16>
    %cst_275 = arith.constant dense<0.000000e+00> : vector<256x8xf32>
    %374 = tpu.matmul %371, %373, %cst_275 {dimension_numbers = #tpu.dot_dimension_numbers<[1], [0], [0], [1], [0, 0, 1, 1], [], []>} : vector<256x8xbf16>, vector<8x8xbf16>, vector<256x8xf32> -> vector<256x8xf32>
    %375 = arith.addf %370, %374 : vector<256x8xf32>
    %c20_276 = arith.constant 20 : index
    %c0_277 = arith.constant 0 : index
    %376 = vector.load %arg12[%c20_276, %c0_277] : memref<324x8xbf16, #tpu.memory_space<vmem>>, vector<256x8xbf16>
    %c5_278 = arith.constant 5 : index
    %c0_279 = arith.constant 0 : index
    %c0_280 = arith.constant 0 : index
    %377 = vector.load %arg3[%c5_278, %c0_279, %c0_280] : memref<9x8x8xbf16, #tpu.memory_space<vmem>>, vector<1x8x8xbf16>
    %378 = vector.shape_cast %377 : vector<1x8x8xbf16> to vector<8x8xbf16>
    %cst_281 = arith.constant dense<0.000000e+00> : vector<256x8xf32>
    %379 = tpu.matmul %376, %378, %cst_281 {dimension_numbers = #tpu.dot_dimension_numbers<[1], [0], [0], [1], [0, 0, 1, 1], [], []>} : vector<256x8xbf16>, vector<8x8xbf16>, vector<256x8xf32> -> vector<256x8xf32>
    %380 = arith.addf %375, %379 : vector<256x8xf32>
    %c36_282 = arith.constant 36 : index
    %c0_283 = arith.constant 0 : index
    %381 = vector.load %arg12[%c36_282, %c0_283] : memref<324x8xbf16, #tpu.memory_space<vmem>>, vector<256x8xbf16>
    %c6_284 = arith.constant 6 : index
    %c0_285 = arith.constant 0 : index
    %c0_286 = arith.constant 0 : index
    %382 = vector.load %arg3[%c6_284, %c0_285, %c0_286] : memref<9x8x8xbf16, #tpu.memory_space<vmem>>, vector<1x8x8xbf16>
    %383 = vector.shape_cast %382 : vector<1x8x8xbf16> to vector<8x8xbf16>
    %cst_287 = arith.constant dense<0.000000e+00> : vector<256x8xf32>
    %384 = tpu.matmul %381, %383, %cst_287 {dimension_numbers = #tpu.dot_dimension_numbers<[1], [0], [0], [1], [0, 0, 1, 1], [], []>} : vector<256x8xbf16>, vector<8x8xbf16>, vector<256x8xf32> -> vector<256x8xf32>
    %385 = arith.addf %380, %384 : vector<256x8xf32>
    %c37_288 = arith.constant 37 : index
    %c0_289 = arith.constant 0 : index
    %386 = vector.load %arg12[%c37_288, %c0_289] : memref<324x8xbf16, #tpu.memory_space<vmem>>, vector<256x8xbf16>
    %c7_290 = arith.constant 7 : index
    %c0_291 = arith.constant 0 : index
    %c0_292 = arith.constant 0 : index
    %387 = vector.load %arg3[%c7_290, %c0_291, %c0_292] : memref<9x8x8xbf16, #tpu.memory_space<vmem>>, vector<1x8x8xbf16>
    %388 = vector.shape_cast %387 : vector<1x8x8xbf16> to vector<8x8xbf16>
    %cst_293 = arith.constant dense<0.000000e+00> : vector<256x8xf32>
    %389 = tpu.matmul %386, %388, %cst_293 {dimension_numbers = #tpu.dot_dimension_numbers<[1], [0], [0], [1], [0, 0, 1, 1], [], []>} : vector<256x8xbf16>, vector<8x8xbf16>, vector<256x8xf32> -> vector<256x8xf32>
    %390 = arith.addf %385, %389 : vector<256x8xf32>
    %c38_294 = arith.constant 38 : index
    %c0_295 = arith.constant 0 : index
    %391 = vector.load %arg12[%c38_294, %c0_295] : memref<324x8xbf16, #tpu.memory_space<vmem>>, vector<256x8xbf16>
    %c8_296 = arith.constant 8 : index
    %c0_297 = arith.constant 0 : index
    %c0_298 = arith.constant 0 : index
    %392 = vector.load %arg3[%c8_296, %c0_297, %c0_298] : memref<9x8x8xbf16, #tpu.memory_space<vmem>>, vector<1x8x8xbf16>
    %393 = vector.shape_cast %392 : vector<1x8x8xbf16> to vector<8x8xbf16>
    %cst_299 = arith.constant dense<0.000000e+00> : vector<256x8xf32>
    %394 = tpu.matmul %391, %393, %cst_299 {dimension_numbers = #tpu.dot_dimension_numbers<[1], [0], [0], [1], [0, 0, 1, 1], [], []>} : vector<256x8xbf16>, vector<8x8xbf16>, vector<256x8xf32> -> vector<256x8xf32>
    %395 = arith.addf %390, %394 : vector<256x8xf32>
    %c0_300 = arith.constant 0 : index
    %c0_301 = arith.constant 0 : index
    %396 = vector.load %arg13[%c0_300, %c0_301] : memref<286x8xf32, #tpu.memory_space<vmem>>, vector<256x8xf32>
    tpu.vector_store %arg13[%c0_300, %c0_301], %395 {strides = array<i32>} : memref<286x8xf32, #tpu.memory_space<vmem>>, vector<256x8xf32>,
    %c256_302 = arith.constant 256 : index
    %c0_303 = arith.constant 0 : index
    %397 = vector.load %arg12[%c256_302, %c0_303] : memref<324x8xbf16, #tpu.memory_space<vmem>>, vector<30x8xbf16>
    %c0_304 = arith.constant 0 : index
    %c0_305 = arith.constant 0 : index
    %c0_306 = arith.constant 0 : index
    %398 = vector.load %arg3[%c0_304, %c0_305, %c0_306] : memref<9x8x8xbf16, #tpu.memory_space<vmem>>, vector<1x8x8xbf16>
    %399 = vector.shape_cast %398 : vector<1x8x8xbf16> to vector<8x8xbf16>
    %cst_307 = arith.constant dense<0.000000e+00> : vector<30x8xf32>
    %400 = tpu.matmul %397, %399, %cst_307 {dimension_numbers = #tpu.dot_dimension_numbers<[1], [0], [0], [1], [0, 0, 1, 1], [], []>} : vector<30x8xbf16>, vector<8x8xbf16>, vector<30x8xf32> -> vector<30x8xf32>
    %c257_308 = arith.constant 257 : index
    %c0_309 = arith.constant 0 : index
    %401 = vector.load %arg12[%c257_308, %c0_309] : memref<324x8xbf16, #tpu.memory_space<vmem>>, vector<30x8xbf16>
    %c1_310 = arith.constant 1 : index
    %c0_311 = arith.constant 0 : index
    %c0_312 = arith.constant 0 : index
    %402 = vector.load %arg3[%c1_310, %c0_311, %c0_312] : memref<9x8x8xbf16, #tpu.memory_space<vmem>>, vector<1x8x8xbf16>
    %403 = vector.shape_cast %402 : vector<1x8x8xbf16> to vector<8x8xbf16>
    %cst_313 = arith.constant dense<0.000000e+00> : vector<30x8xf32>
    %404 = tpu.matmul %401, %403, %cst_313 {dimension_numbers = #tpu.dot_dimension_numbers<[1], [0], [0], [1], [0, 0, 1, 1], [], []>} : vector<30x8xbf16>, vector<8x8xbf16>, vector<30x8xf32> -> vector<30x8xf32>
    %405 = arith.addf %400, %404 : vector<30x8xf32>
    %c258_314 = arith.constant 258 : index
    %c0_315 = arith.constant 0 : index
    %406 = vector.load %arg12[%c258_314, %c0_315] : memref<324x8xbf16, #tpu.memory_space<vmem>>, vector<30x8xbf16>
    %c2_316 = arith.constant 2 : index
    %c0_317 = arith.constant 0 : index
    %c0_318 = arith.constant 0 : index
    %407 = vector.load %arg3[%c2_316, %c0_317, %c0_318] : memref<9x8x8xbf16, #tpu.memory_space<vmem>>, vector<1x8x8xbf16>
    %408 = vector.shape_cast %407 : vector<1x8x8xbf16> to vector<8x8xbf16>
    %cst_319 = arith.constant dense<0.000000e+00> : vector<30x8xf32>
    %409 = tpu.matmul %406, %408, %cst_319 {dimension_numbers = #tpu.dot_dimension_numbers<[1], [0], [0], [1], [0, 0, 1, 1], [], []>} : vector<30x8xbf16>, vector<8x8xbf16>, vector<30x8xf32> -> vector<30x8xf32>
    %410 = arith.addf %405, %409 : vector<30x8xf32>
    %c274_320 = arith.constant 274 : index
    %c0_321 = arith.constant 0 : index
    %411 = vector.load %arg12[%c274_320, %c0_321] : memref<324x8xbf16, #tpu.memory_space<vmem>>, vector<30x8xbf16>
    %c3_322 = arith.constant 3 : index
    %c0_323 = arith.constant 0 : index
    %c0_324 = arith.constant 0 : index
    %412 = vector.load %arg3[%c3_322, %c0_323, %c0_324] : memref<9x8x8xbf16, #tpu.memory_space<vmem>>, vector<1x8x8xbf16>
    %413 = vector.shape_cast %412 : vector<1x8x8xbf16> to vector<8x8xbf16>
    %cst_325 = arith.constant dense<0.000000e+00> : vector<30x8xf32>
    %414 = tpu.matmul %411, %413, %cst_325 {dimension_numbers = #tpu.dot_dimension_numbers<[1], [0], [0], [1], [0, 0, 1, 1], [], []>} : vector<30x8xbf16>, vector<8x8xbf16>, vector<30x8xf32> -> vector<30x8xf32>
    %415 = arith.addf %410, %414 : vector<30x8xf32>
    %c275_326 = arith.constant 275 : index
    %c0_327 = arith.constant 0 : index
    %416 = vector.load %arg12[%c275_326, %c0_327] : memref<324x8xbf16, #tpu.memory_space<vmem>>, vector<30x8xbf16>
    %c4_328 = arith.constant 4 : index
    %c0_329 = arith.constant 0 : index
    %c0_330 = arith.constant 0 : index
    %417 = vector.load %arg3[%c4_328, %c0_329, %c0_330] : memref<9x8x8xbf16, #tpu.memory_space<vmem>>, vector<1x8x8xbf16>
    %418 = vector.shape_cast %417 : vector<1x8x8xbf16> to vector<8x8xbf16>
    %cst_331 = arith.constant dense<0.000000e+00> : vector<30x8xf32>
    %419 = tpu.matmul %416, %418, %cst_331 {dimension_numbers = #tpu.dot_dimension_numbers<[1], [0], [0], [1], [0, 0, 1, 1], [], []>} : vector<30x8xbf16>, vector<8x8xbf16>, vector<30x8xf32> -> vector<30x8xf32>
    %420 = arith.addf %415, %419 : vector<30x8xf32>
    %c276_332 = arith.constant 276 : index
    %c0_333 = arith.constant 0 : index
    %421 = vector.load %arg12[%c276_332, %c0_333] : memref<324x8xbf16, #tpu.memory_space<vmem>>, vector<30x8xbf16>
    %c5_334 = arith.constant 5 : index
    %c0_335 = arith.constant 0 : index
    %c0_336 = arith.constant 0 : index
    %422 = vector.load %arg3[%c5_334, %c0_335, %c0_336] : memref<9x8x8xbf16, #tpu.memory_space<vmem>>, vector<1x8x8xbf16>
    %423 = vector.shape_cast %422 : vector<1x8x8xbf16> to vector<8x8xbf16>
    %cst_337 = arith.constant dense<0.000000e+00> : vector<30x8xf32>
    %424 = tpu.matmul %421, %423, %cst_337 {dimension_numbers = #tpu.dot_dimension_numbers<[1], [0], [0], [1], [0, 0, 1, 1], [], []>} : vector<30x8xbf16>, vector<8x8xbf16>, vector<30x8xf32> -> vector<30x8xf32>
    %425 = arith.addf %420, %424 : vector<30x8xf32>
    %c292_338 = arith.constant 292 : index
    %c0_339 = arith.constant 0 : index
    %426 = vector.load %arg12[%c292_338, %c0_339] : memref<324x8xbf16, #tpu.memory_space<vmem>>, vector<30x8xbf16>
    %c6_340 = arith.constant 6 : index
    %c0_341 = arith.constant 0 : index
    %c0_342 = arith.constant 0 : index
    %427 = vector.load %arg3[%c6_340, %c0_341, %c0_342] : memref<9x8x8xbf16, #tpu.memory_space<vmem>>, vector<1x8x8xbf16>
    %428 = vector.shape_cast %427 : vector<1x8x8xbf16> to vector<8x8xbf16>
    %cst_343 = arith.constant dense<0.000000e+00> : vector<30x8xf32>
    %429 = tpu.matmul %426, %428, %cst_343 {dimension_numbers = #tpu.dot_dimension_numbers<[1], [0], [0], [1], [0, 0, 1, 1], [], []>} : vector<30x8xbf16>, vector<8x8xbf16>, vector<30x8xf32> -> vector<30x8xf32>
    %430 = arith.addf %425, %429 : vector<30x8xf32>
    %c293_344 = arith.constant 293 : index
    %c0_345 = arith.constant 0 : index
    %431 = vector.load %arg12[%c293_344, %c0_345] : memref<324x8xbf16, #tpu.memory_space<vmem>>, vector<30x8xbf16>
    %c7_346 = arith.constant 7 : index
    %c0_347 = arith.constant 0 : index
    %c0_348 = arith.constant 0 : index
    %432 = vector.load %arg3[%c7_346, %c0_347, %c0_348] : memref<9x8x8xbf16, #tpu.memory_space<vmem>>, vector<1x8x8xbf16>
    %433 = vector.shape_cast %432 : vector<1x8x8xbf16> to vector<8x8xbf16>
    %cst_349 = arith.constant dense<0.000000e+00> : vector<30x8xf32>
    %434 = tpu.matmul %431, %433, %cst_349 {dimension_numbers = #tpu.dot_dimension_numbers<[1], [0], [0], [1], [0, 0, 1, 1], [], []>} : vector<30x8xbf16>, vector<8x8xbf16>, vector<30x8xf32> -> vector<30x8xf32>
    %435 = arith.addf %430, %434 : vector<30x8xf32>
    %c294_350 = arith.constant 294 : index
    %c0_351 = arith.constant 0 : index
    %436 = vector.load %arg12[%c294_350, %c0_351] : memref<324x8xbf16, #tpu.memory_space<vmem>>, vector<30x8xbf16>
    %c8_352 = arith.constant 8 : index
    %c0_353 = arith.constant 0 : index
    %c0_354 = arith.constant 0 : index
    %437 = vector.load %arg3[%c8_352, %c0_353, %c0_354] : memref<9x8x8xbf16, #tpu.memory_space<vmem>>, vector<1x8x8xbf16>
    %438 = vector.shape_cast %437 : vector<1x8x8xbf16> to vector<8x8xbf16>
    %cst_355 = arith.constant dense<0.000000e+00> : vector<30x8xf32>
    %439 = tpu.matmul %436, %438, %cst_355 {dimension_numbers = #tpu.dot_dimension_numbers<[1], [0], [0], [1], [0, 0, 1, 1], [], []>} : vector<30x8xbf16>, vector<8x8xbf16>, vector<30x8xf32> -> vector<30x8xf32>
    %440 = arith.addf %435, %439 : vector<30x8xf32>
    %c256_356 = arith.constant 256 : index
    %c0_357 = arith.constant 0 : index
    %441 = vector.load %arg13[%c256_356, %c0_357] : memref<286x8xf32, #tpu.memory_space<vmem>>, vector<30x8xf32>
    tpu.vector_store %arg13[%c256_356, %c0_357], %440 {strides = array<i32>} : memref<286x8xf32, #tpu.memory_space<vmem>>, vector<30x8xf32>,
    %c0_358 = arith.constant 0 : index
    %c0_359 = arith.constant 0 : index
    %442 = vector.load %arg13[%c0_358, %c0_359] : memref<286x8xf32, #tpu.memory_space<vmem>>, vector<16x8xf32>
    %c0_360 = arith.constant 0 : index
    %c0_361 = arith.constant 0 : index
    %443 = vector.load %arg14[%c0_360, %c0_361] : memref<286x8xf32, #tpu.memory_space<vmem>>, vector<16x8xf32>
    %444 = arith.addf %442, %443 : vector<16x8xf32>
    %c0_362 = arith.constant 0 : index
    %c0_363 = arith.constant 0 : index
    %c0_364 = arith.constant 0 : index
    %445 = vector.load %arg9[%c0_362, %c0_363, %c0_364] : memref<1x256x8xf32, #tpu.memory_space<vmem>>, vector<1x16x8xf32>
    %446 = vector.shape_cast %445 : vector<1x16x8xf32> to vector<16x8xf32>
    %447 = vector.shape_cast %444 : vector<16x8xf32> to vector<1x16x8xf32>
    tpu.vector_store %arg9[%c0_362, %c0_363, %c0_364], %447 {strides = array<i32>} : memref<1x256x8xf32, #tpu.memory_space<vmem>>, vector<1x16x8xf32>,
    %c18_365 = arith.constant 18 : index
    %c0_366 = arith.constant 0 : index
    %448 = vector.load %arg13[%c18_365, %c0_366] : memref<286x8xf32, #tpu.memory_space<vmem>>, vector<16x8xf32>
    %c18_367 = arith.constant 18 : index
    %c0_368 = arith.constant 0 : index
    %449 = vector.load %arg14[%c18_367, %c0_368] : memref<286x8xf32, #tpu.memory_space<vmem>>, vector<16x8xf32>
    %450 = arith.addf %448, %449 : vector<16x8xf32>
    %c0_369 = arith.constant 0 : index
    %c16_370 = arith.constant 16 : index
    %c0_371 = arith.constant 0 : index
    %451 = vector.load %arg9[%c0_369, %c16_370, %c0_371] : memref<1x256x8xf32, #tpu.memory_space<vmem>>, vector<1x16x8xf32>
    %452 = vector.shape_cast %451 : vector<1x16x8xf32> to vector<16x8xf32>
    %453 = vector.shape_cast %450 : vector<16x8xf32> to vector<1x16x8xf32>
    tpu.vector_store %arg9[%c0_369, %c16_370, %c0_371], %453 {strides = array<i32>} : memref<1x256x8xf32, #tpu.memory_space<vmem>>, vector<1x16x8xf32>,
    %c36_372 = arith.constant 36 : index
    %c0_373 = arith.constant 0 : index
    %454 = vector.load %arg13[%c36_372, %c0_373] : memref<286x8xf32, #tpu.memory_space<vmem>>, vector<16x8xf32>
    %c36_374 = arith.constant 36 : index
    %c0_375 = arith.constant 0 : index
    %455 = vector.load %arg14[%c36_374, %c0_375] : memref<286x8xf32, #tpu.memory_space<vmem>>, vector<16x8xf32>
    %456 = arith.addf %454, %455 : vector<16x8xf32>
    %c0_376 = arith.constant 0 : index
    %c32_377 = arith.constant 32 : index
    %c0_378 = arith.constant 0 : index
    %457 = vector.load %arg9[%c0_376, %c32_377, %c0_378] : memref<1x256x8xf32, #tpu.memory_space<vmem>>, vector<1x16x8xf32>
    %458 = vector.shape_cast %457 : vector<1x16x8xf32> to vector<16x8xf32>
    %459 = vector.shape_cast %456 : vector<16x8xf32> to vector<1x16x8xf32>
    tpu.vector_store %arg9[%c0_376, %c32_377, %c0_378], %459 {strides = array<i32>} : memref<1x256x8xf32, #tpu.memory_space<vmem>>, vector<1x16x8xf32>,
    %c54_379 = arith.constant 54 : index
    %c0_380 = arith.constant 0 : index
    %460 = vector.load %arg13[%c54_379, %c0_380] : memref<286x8xf32, #tpu.memory_space<vmem>>, vector<16x8xf32>
    %c54_381 = arith.constant 54 : index
    %c0_382 = arith.constant 0 : index
    %461 = vector.load %arg14[%c54_381, %c0_382] : memref<286x8xf32, #tpu.memory_space<vmem>>, vector<16x8xf32>
    %462 = arith.addf %460, %461 : vector<16x8xf32>
    %c0_383 = arith.constant 0 : index
    %c48_384 = arith.constant 48 : index
    %c0_385 = arith.constant 0 : index
    %463 = vector.load %arg9[%c0_383, %c48_384, %c0_385] : memref<1x256x8xf32, #tpu.memory_space<vmem>>, vector<1x16x8xf32>
    %464 = vector.shape_cast %463 : vector<1x16x8xf32> to vector<16x8xf32>
    %465 = vector.shape_cast %462 : vector<16x8xf32> to vector<1x16x8xf32>
    tpu.vector_store %arg9[%c0_383, %c48_384, %c0_385], %465 {strides = array<i32>} : memref<1x256x8xf32, #tpu.memory_space<vmem>>, vector<1x16x8xf32>,
    %c72_386 = arith.constant 72 : index
    %c0_387 = arith.constant 0 : index
    %466 = vector.load %arg13[%c72_386, %c0_387] : memref<286x8xf32, #tpu.memory_space<vmem>>, vector<16x8xf32>
    %c72_388 = arith.constant 72 : index
    %c0_389 = arith.constant 0 : index
    %467 = vector.load %arg14[%c72_388, %c0_389] : memref<286x8xf32, #tpu.memory_space<vmem>>, vector<16x8xf32>
    %468 = arith.addf %466, %467 : vector<16x8xf32>
    %c0_390 = arith.constant 0 : index
    %c64_391 = arith.constant 64 : index
    %c0_392 = arith.constant 0 : index
    %469 = vector.load %arg9[%c0_390, %c64_391, %c0_392] : memref<1x256x8xf32, #tpu.memory_space<vmem>>, vector<1x16x8xf32>
    %470 = vector.shape_cast %469 : vector<1x16x8xf32> to vector<16x8xf32>
    %471 = vector.shape_cast %468 : vector<16x8xf32> to vector<1x16x8xf32>
    tpu.vector_store %arg9[%c0_390, %c64_391, %c0_392], %471 {strides = array<i32>} : memref<1x256x8xf32, #tpu.memory_space<vmem>>, vector<1x16x8xf32>,
    %c90_393 = arith.constant 90 : index
    %c0_394 = arith.constant 0 : index
    %472 = vector.load %arg13[%c90_393, %c0_394] : memref<286x8xf32, #tpu.memory_space<vmem>>, vector<16x8xf32>
    %c90_395 = arith.constant 90 : index
    %c0_396 = arith.constant 0 : index
    %473 = vector.load %arg14[%c90_395, %c0_396] : memref<286x8xf32, #tpu.memory_space<vmem>>, vector<16x8xf32>
    %474 = arith.addf %472, %473 : vector<16x8xf32>
    %c0_397 = arith.constant 0 : index
    %c80_398 = arith.constant 80 : index
    %c0_399 = arith.constant 0 : index
    %475 = vector.load %arg9[%c0_397, %c80_398, %c0_399] : memref<1x256x8xf32, #tpu.memory_space<vmem>>, vector<1x16x8xf32>
    %476 = vector.shape_cast %475 : vector<1x16x8xf32> to vector<16x8xf32>
    %477 = vector.shape_cast %474 : vector<16x8xf32> to vector<1x16x8xf32>
    tpu.vector_store %arg9[%c0_397, %c80_398, %c0_399], %477 {strides = array<i32>} : memref<1x256x8xf32, #tpu.memory_space<vmem>>, vector<1x16x8xf32>,
    %c108_400 = arith.constant 108 : index
    %c0_401 = arith.constant 0 : index
    %478 = vector.load %arg13[%c108_400, %c0_401] : memref<286x8xf32, #tpu.memory_space<vmem>>, vector<16x8xf32>
    %c108_402 = arith.constant 108 : index
    %c0_403 = arith.constant 0 : index
    %479 = vector.load %arg14[%c108_402, %c0_403] : memref<286x8xf32, #tpu.memory_space<vmem>>, vector<16x8xf32>
    %480 = arith.addf %478, %479 : vector<16x8xf32>
    %c0_404 = arith.constant 0 : index
    %c96_405 = arith.constant 96 : index
    %c0_406 = arith.constant 0 : index
    %481 = vector.load %arg9[%c0_404, %c96_405, %c0_406] : memref<1x256x8xf32, #tpu.memory_space<vmem>>, vector<1x16x8xf32>
    %482 = vector.shape_cast %481 : vector<1x16x8xf32> to vector<16x8xf32>
    %483 = vector.shape_cast %480 : vector<16x8xf32> to vector<1x16x8xf32>
    tpu.vector_store %arg9[%c0_404, %c96_405, %c0_406], %483 {strides = array<i32>} : memref<1x256x8xf32, #tpu.memory_space<vmem>>, vector<1x16x8xf32>,
    %c126_407 = arith.constant 126 : index
    %c0_408 = arith.constant 0 : index
    %484 = vector.load %arg13[%c126_407, %c0_408] : memref<286x8xf32, #tpu.memory_space<vmem>>, vector<16x8xf32>
    %c126_409 = arith.constant 126 : index
    %c0_410 = arith.constant 0 : index
    %485 = vector.load %arg14[%c126_409, %c0_410] : memref<286x8xf32, #tpu.memory_space<vmem>>, vector<16x8xf32>
    %486 = arith.addf %484, %485 : vector<16x8xf32>
    %c0_411 = arith.constant 0 : index
    %c112_412 = arith.constant 112 : index
    %c0_413 = arith.constant 0 : index
    %487 = vector.load %arg9[%c0_411, %c112_412, %c0_413] : memref<1x256x8xf32, #tpu.memory_space<vmem>>, vector<1x16x8xf32>
    %488 = vector.shape_cast %487 : vector<1x16x8xf32> to vector<16x8xf32>
    %489 = vector.shape_cast %486 : vector<16x8xf32> to vector<1x16x8xf32>
    tpu.vector_store %arg9[%c0_411, %c112_412, %c0_413], %489 {strides = array<i32>} : memref<1x256x8xf32, #tpu.memory_space<vmem>>, vector<1x16x8xf32>,
    %c144_414 = arith.constant 144 : index
    %c0_415 = arith.constant 0 : index
    %490 = vector.load %arg13[%c144_414, %c0_415] : memref<286x8xf32, #tpu.memory_space<vmem>>, vector<16x8xf32>
    %c144_416 = arith.constant 144 : index
    %c0_417 = arith.constant 0 : index
    %491 = vector.load %arg14[%c144_416, %c0_417] : memref<286x8xf32, #tpu.memory_space<vmem>>, vector<16x8xf32>
    %492 = arith.addf %490, %491 : vector<16x8xf32>
    %c0_418 = arith.constant 0 : index
    %c128_419 = arith.constant 128 : index
    %c0_420 = arith.constant 0 : index
    %493 = vector.load %arg9[%c0_418, %c128_419, %c0_420] : memref<1x256x8xf32, #tpu.memory_space<vmem>>, vector<1x16x8xf32>
    %494 = vector.shape_cast %493 : vector<1x16x8xf32> to vector<16x8xf32>
    %495 = vector.shape_cast %492 : vector<16x8xf32> to vector<1x16x8xf32>
    tpu.vector_store %arg9[%c0_418, %c128_419, %c0_420], %495 {strides = array<i32>} : memref<1x256x8xf32, #tpu.memory_space<vmem>>, vector<1x16x8xf32>,
    %c162_421 = arith.constant 162 : index
    %c0_422 = arith.constant 0 : index
    %496 = vector.load %arg13[%c162_421, %c0_422] : memref<286x8xf32, #tpu.memory_space<vmem>>, vector<16x8xf32>
    %c162_423 = arith.constant 162 : index
    %c0_424 = arith.constant 0 : index
    %497 = vector.load %arg14[%c162_423, %c0_424] : memref<286x8xf32, #tpu.memory_space<vmem>>, vector<16x8xf32>
    %498 = arith.addf %496, %497 : vector<16x8xf32>
    %c0_425 = arith.constant 0 : index
    %c144_426 = arith.constant 144 : index
    %c0_427 = arith.constant 0 : index
    %499 = vector.load %arg9[%c0_425, %c144_426, %c0_427] : memref<1x256x8xf32, #tpu.memory_space<vmem>>, vector<1x16x8xf32>
    %500 = vector.shape_cast %499 : vector<1x16x8xf32> to vector<16x8xf32>
    %501 = vector.shape_cast %498 : vector<16x8xf32> to vector<1x16x8xf32>
    tpu.vector_store %arg9[%c0_425, %c144_426, %c0_427], %501 {strides = array<i32>} : memref<1x256x8xf32, #tpu.memory_space<vmem>>, vector<1x16x8xf32>,
    %c180_428 = arith.constant 180 : index
    %c0_429 = arith.constant 0 : index
    %502 = vector.load %arg13[%c180_428, %c0_429] : memref<286x8xf32, #tpu.memory_space<vmem>>, vector<16x8xf32>
    %c180_430 = arith.constant 180 : index
    %c0_431 = arith.constant 0 : index
    %503 = vector.load %arg14[%c180_430, %c0_431] : memref<286x8xf32, #tpu.memory_space<vmem>>, vector<16x8xf32>
    %504 = arith.addf %502, %503 : vector<16x8xf32>
    %c0_432 = arith.constant 0 : index
    %c160_433 = arith.constant 160 : index
    %c0_434 = arith.constant 0 : index
    %505 = vector.load %arg9[%c0_432, %c160_433, %c0_434] : memref<1x256x8xf32, #tpu.memory_space<vmem>>, vector<1x16x8xf32>
    %506 = vector.shape_cast %505 : vector<1x16x8xf32> to vector<16x8xf32>
    %507 = vector.shape_cast %504 : vector<16x8xf32> to vector<1x16x8xf32>
    tpu.vector_store %arg9[%c0_432, %c160_433, %c0_434], %507 {strides = array<i32>} : memref<1x256x8xf32, #tpu.memory_space<vmem>>, vector<1x16x8xf32>,
    %c198_435 = arith.constant 198 : index
    %c0_436 = arith.constant 0 : index
    %508 = vector.load %arg13[%c198_435, %c0_436] : memref<286x8xf32, #tpu.memory_space<vmem>>, vector<16x8xf32>
    %c198_437 = arith.constant 198 : index
    %c0_438 = arith.constant 0 : index
    %509 = vector.load %arg14[%c198_437, %c0_438] : memref<286x8xf32, #tpu.memory_space<vmem>>, vector<16x8xf32>
    %510 = arith.addf %508, %509 : vector<16x8xf32>
    %c0_439 = arith.constant 0 : index
    %c176_440 = arith.constant 176 : index
    %c0_441 = arith.constant 0 : index
    %511 = vector.load %arg9[%c0_439, %c176_440, %c0_441] : memref<1x256x8xf32, #tpu.memory_space<vmem>>, vector<1x16x8xf32>
    %512 = vector.shape_cast %511 : vector<1x16x8xf32> to vector<16x8xf32>
    %513 = vector.shape_cast %510 : vector<16x8xf32> to vector<1x16x8xf32>
    tpu.vector_store %arg9[%c0_439, %c176_440, %c0_441], %513 {strides = array<i32>} : memref<1x256x8xf32, #tpu.memory_space<vmem>>, vector<1x16x8xf32>,
    %c216_442 = arith.constant 216 : index
    %c0_443 = arith.constant 0 : index
    %514 = vector.load %arg13[%c216_442, %c0_443] : memref<286x8xf32, #tpu.memory_space<vmem>>, vector<16x8xf32>
    %c216_444 = arith.constant 216 : index
    %c0_445 = arith.constant 0 : index
    %515 = vector.load %arg14[%c216_444, %c0_445] : memref<286x8xf32, #tpu.memory_space<vmem>>, vector<16x8xf32>
    %516 = arith.addf %514, %515 : vector<16x8xf32>
    %c0_446 = arith.constant 0 : index
    %c192_447 = arith.constant 192 : index
    %c0_448 = arith.constant 0 : index
    %517 = vector.load %arg9[%c0_446, %c192_447, %c0_448] : memref<1x256x8xf32, #tpu.memory_space<vmem>>, vector<1x16x8xf32>
    %518 = vector.shape_cast %517 : vector<1x16x8xf32> to vector<16x8xf32>
    %519 = vector.shape_cast %516 : vector<16x8xf32> to vector<1x16x8xf32>
    tpu.vector_store %arg9[%c0_446, %c192_447, %c0_448], %519 {strides = array<i32>} : memref<1x256x8xf32, #tpu.memory_space<vmem>>, vector<1x16x8xf32>,
    %c234_449 = arith.constant 234 : index
    %c0_450 = arith.constant 0 : index
    %520 = vector.load %arg13[%c234_449, %c0_450] : memref<286x8xf32, #tpu.memory_space<vmem>>, vector<16x8xf32>
    %c234_451 = arith.constant 234 : index
    %c0_452 = arith.constant 0 : index
    %521 = vector.load %arg14[%c234_451, %c0_452] : memref<286x8xf32, #tpu.memory_space<vmem>>, vector<16x8xf32>
    %522 = arith.addf %520, %521 : vector<16x8xf32>
    %c0_453 = arith.constant 0 : index
    %c208_454 = arith.constant 208 : index
    %c0_455 = arith.constant 0 : index
    %523 = vector.load %arg9[%c0_453, %c208_454, %c0_455] : memref<1x256x8xf32, #tpu.memory_space<vmem>>, vector<1x16x8xf32>
    %524 = vector.shape_cast %523 : vector<1x16x8xf32> to vector<16x8xf32>
    %525 = vector.shape_cast %522 : vector<16x8xf32> to vector<1x16x8xf32>
    tpu.vector_store %arg9[%c0_453, %c208_454, %c0_455], %525 {strides = array<i32>} : memref<1x256x8xf32, #tpu.memory_space<vmem>>, vector<1x16x8xf32>,
    %c252_456 = arith.constant 252 : index
    %c0_457 = arith.constant 0 : index
    %526 = vector.load %arg13[%c252_456, %c0_457] : memref<286x8xf32, #tpu.memory_space<vmem>>, vector<16x8xf32>
    %c252_458 = arith.constant 252 : index
    %c0_459 = arith.constant 0 : index
    %527 = vector.load %arg14[%c252_458, %c0_459] : memref<286x8xf32, #tpu.memory_space<vmem>>, vector<16x8xf32>
    %528 = arith.addf %526, %527 : vector<16x8xf32>
    %c0_460 = arith.constant 0 : index
    %c224_461 = arith.constant 224 : index
    %c0_462 = arith.constant 0 : index
    %529 = vector.load %arg9[%c0_460, %c224_461, %c0_462] : memref<1x256x8xf32, #tpu.memory_space<vmem>>, vector<1x16x8xf32>
    %530 = vector.shape_cast %529 : vector<1x16x8xf32> to vector<16x8xf32>
    %531 = vector.shape_cast %528 : vector<16x8xf32> to vector<1x16x8xf32>
    tpu.vector_store %arg9[%c0_460, %c224_461, %c0_462], %531 {strides = array<i32>} : memref<1x256x8xf32, #tpu.memory_space<vmem>>, vector<1x16x8xf32>,
    %c270_463 = arith.constant 270 : index
    %c0_464 = arith.constant 0 : index
    %532 = vector.load %arg13[%c270_463, %c0_464] : memref<286x8xf32, #tpu.memory_space<vmem>>, vector<16x8xf32>
    %c270_465 = arith.constant 270 : index
    %c0_466 = arith.constant 0 : index
    %533 = vector.load %arg14[%c270_465, %c0_466] : memref<286x8xf32, #tpu.memory_space<vmem>>, vector<16x8xf32>
    %534 = arith.addf %532, %533 : vector<16x8xf32>
    %c0_467 = arith.constant 0 : index
    %c240_468 = arith.constant 240 : index
    %c0_469 = arith.constant 0 : index
    %535 = vector.load %arg9[%c0_467, %c240_468, %c0_469] : memref<1x256x8xf32, #tpu.memory_space<vmem>>, vector<1x16x8xf32>
    %536 = vector.shape_cast %535 : vector<1x16x8xf32> to vector<16x8xf32>
    %537 = vector.shape_cast %534 : vector<16x8xf32> to vector<1x16x8xf32>
    tpu.vector_store %arg9[%c0_467, %c240_468, %c0_469], %537 {strides = array<i32>} : memref<1x256x8xf32, #tpu.memory_space<vmem>>, vector<1x16x8xf32>,
    return
  }
  func.func @transform_0(%arg0: i32) -> (i32, i32, i32) {
    %c0_i32 = arith.constant 0 : i32
    %c0_i32_0 = arith.constant 0 : i32
    %c0_i32_1 = arith.constant 0 : i32
    return %arg0, %c0_i32, %c0_i32_0 : i32, i32, i32
  }
  func.func @transform_1(%arg0: i32) -> (i32, i32, i32) {
    %c0_i32 = arith.constant 0 : i32
    %c0_i32_0 = arith.constant 0 : i32
    %c0_i32_1 = arith.constant 0 : i32
    %c0_i32_2 = arith.constant 0 : i32
    return %c0_i32, %c0_i32_0, %c0_i32_1 : i32, i32, i32
  }
  func.func @transform_2(%arg0: i32) -> (i32, i32, i32) {
    %c0_i32 = arith.constant 0 : i32
    %c0_i32_0 = arith.constant 0 : i32
    %c0_i32_1 = arith.constant 0 : i32
    %c0_i32_2 = arith.constant 0 : i32
    return %c0_i32, %c0_i32_0, %c0_i32_1 : i32, i32, i32
  }
  func.func @transform_3(%arg0: i32) -> (i32, i32) {
    %c0_i32 = arith.constant 0 : i32
    %c0_i32_0 = arith.constant 0 : i32
    %c0_i32_1 = arith.constant 0 : i32
    return %c0_i32, %c0_i32_0 : i32, i32
  }
  func.func @transform_4(%arg0: i32) -> (i32, i32) {
    %c0_i32 = arith.constant 0 : i32
    %c0_i32_0 = arith.constant 0 : i32
    %c0_i32_1 = arith.constant 0 : i32
    return %c0_i32, %c0_i32_0 : i32, i32
  }
  func.func @transform_5(%arg0: i32) -> (i32, i32) {
    %c0_i32 = arith.constant 0 : i32
    %c0_i32_0 = arith.constant 0 : i32
    %c0_i32_1 = arith.constant 0 : i32
    return %c0_i32, %c0_i32_0 : i32, i32
  }
  func.func @transform_6(%arg0: i32) -> (i32, i32) {
    %c0_i32 = arith.constant 0 : i32
    %c0_i32_0 = arith.constant 0 : i32
    %c0_i32_1 = arith.constant 0 : i32
    return %c0_i32, %c0_i32_0 : i32, i32
  }
  func.func @transform_7(%arg0: i32) -> (i32, i32) {
    %c0_i32 = arith.constant 0 : i32
    %c0_i32_0 = arith.constant 0 : i32
    %c0_i32_1 = arith.constant 0 : i32
    return %c0_i32, %c0_i32_0 : i32, i32
  }
  func.func @transform_8(%arg0: i32) -> (i32, i32, i32) {
    %c0_i32 = arith.constant 0 : i32
    %c0_i32_0 = arith.constant 0 : i32
    %c0_i32_1 = arith.constant 0 : i32
    return %arg0, %c0_i32, %c0_i32_0 : i32, i32, i32
  }
}

</mosaic_0001>

<bundles_post_ra>
// kernel: tpu_custom_call.1
= control target key start
LH: loop header
LB: loop body
LE: loop exit
PB: predicated region body
PF: predicated region fallthrough
CT: control target
= control target key end

     0   :  { %s9199_s27 = smov 0   ;;  %s13397_s0 = inlined_call_operand.vmem [shape: f32[2,256,4], index: 0, kind: input, shape index: {}]   ;;  %s13398_s1 = inlined_call_operand.vmem [shape: bf16[9,4,8], index: 1, kind: input, shape index: {}]   ;;  %s13399_s2 = inlined_call_operand.vmem [shape: bf16[9,8,8], index: 2, kind: input, shape index: {}]   ;;  %s13400_s3 = inlined_call_operand.vmem [shape: bf16[4,8], index: 3, kind: input, shape index: {}]   ;;  %s13401_s4 = inlined_call_operand.vmem [shape: f32[1,4], index: 4, kind: input, shape index: {}]   ;;  %s13402_s5 = inlined_call_operand.vmem [shape: f32[1,4], index: 5, kind: input, shape index: {}]   ;;  %s13403_s6 = inlined_call_operand.vmem [shape: f32[1,8], index: 6, kind: input, shape index: {}]   ;;  %s13404_s7 = inlined_call_operand.vmem [shape: f32[1,8], index: 7, kind: input, shape index: {}]   ;;  %s13405_s8 = inlined_call_operand.vmem [shape: f32[2,256,8], index: 8, kind: output, shape index: {}]  }
   0x1 LB: > { %s8051_s28 = sadd.s32 4294967295, %s9151_s27   ;;  %p8055_p0 = scmp.ge.s32.totalorder %s9151_s27, 1  ;;  %s9151_s27 = sphi %s9199_s27, %s18_s27  }
   0x2   : > { %p262_p1 = scmp.lt.s32.totalorder %s9151_s27, 3 }
   0x4   : > { %p263_p2 = pnand %p8055_p0, %p262_p1 }
   0x6   : > { %266 = sbr.rel (%p263_p2) target bundleno = 1717 (0x6b5), region = 52 }
   0xb   : > { %vm13410_vm0 = vcmask 1041408   ;;  %v8170_v0 = vld [vmem:[%s13398_s1 + $0x6] sm:$0x3]  ;;  %v8060_v1 = vld [vmem:[%s13398_s1 + $0x2] sm:$0x3]  ;;  %p296_p3 = scmp.lt.s32.totalorder %s8051_s28, 1 }
   0xc   : > { %v1978_v2 = vsel %vm13410_vm0, %v8170_v0, 0  ;;  %v1351_v3 = vsel %vm13410_vm0, %v8060_v1, 0  ;;  %vm13419_vm1 = vcmask 27648   ;;  %v13422_v4 = vmov 0   ;;  %v9224_v5 = vld [vmem:[%s13401_s4] ss:$0 sm:$0xff] }
   0xd   : > { %1987 = vmatpush.bf16.msra.mxu3 %v1978_v2  ;;  %1360 = vmatpush.bf16.msra.mxu0 %v1351_v3  ;;  %s14152_s28 = smov (!%p296_p3, %s8051_s28), 1  ;;  %310 = vst.msk [vmem:[#allocation2 + $0x8] sm:$0xf] %vm13419_vm1, %v13422_v4  ;;  %v9241_v6 = vld [vmem:[%s13402_s5] ss:$0 sm:$0xff]  ;;  %vm348_vm2 = vcmask 25600  }
   0xe   : > { %9078 = vmatpush.bf16.msra.mxu1 %v1351_v3  ;;  %311 = vst.msk [vmem:[#allocation2 + $0xc] sm:$0xf] %vm13419_vm1, %v13422_v4  ;;  %s8908_s13 = sshll.u32 %s14152_s28, 8  ;;  %vm13407_vm3 = vsmask.f32 1280  ;;  %vm436_vm6 = vcmask 27649  }
   0xf   : > { %312 = vst.msk [vmem:[#allocation2 + $0x10] sm:$0xf] %vm13419_vm1, %v13422_v4  ;;  %s9234_s16 = scalar_lea.vmem %s13397_s0, %s8908_s13  ;;  %vm412_vm4 = vsmask.f32 5392  ;;  %vm13408_vm5 = vsmask.f32 7942  ;;  %vm9282_vm11 = vmand %vm348_vm2, %vm13407_vm3  ;;  %s13203_s19 = scalar_lea.vmem %s13405_s8, %s8908_s13 }
  0x10   : > { %313 = vst.msk [vmem:[#allocation2 + $0x14] sm:$0xf] %vm13419_vm1, %v13422_v4  ;;  %v401_v7 = vld [vmem:[%s9234_s16] sm:$0xff]  ;;  %v402_v8 = vld [vmem:[%s9234_s16 + $0x8] sm:$0xff]  ;;  %v448_v11 = vld [vmem:[%s9234_s16 + $0x10] sm:$0xff]  ;;  %vm483_vm9 = vcmask 27650  }
  0x11   : > { %v403_v9 = vmul.f32 %v9224_v5, %v401_v7  ;;  %v404_v10 = vmul.f32 %v9224_v5, %v402_v8  ;;  %v449_v12 = vld [vmem:[%s9234_s16 + $0x18] sm:$0xff]  ;;  %v450_v13 = vmul.f32 %v9224_v5, %v448_v11  ;;  %308 = vst.msk [vmem:[#allocation2] sm:$0xf] %vm13419_vm1, %v13422_v4  ;;  %v857_v15 = vld [vmem:[%s9234_s16 + $0xb0] sm:$0xff]  ;;  %vm13415_vm7 = vsmask.f32 2304  ;;  %vm9290_vm12 = vmor %vm13407_vm3, %vm412_vm4 }
  0x12   : > { %v451_v14 = vmul.f32 %v9224_v5, %v449_v12  ;;  %v858_v16 = vld [vmem:[%s9234_s16 + $0xb8] sm:$0xff]  ;;  %309 = vst.msk [vmem:[#allocation2 + $0x4] sm:$0xf] %vm13419_vm1, %v13422_v4  ;;  %v859_v19 = vmul.f32 %v9224_v5, %v857_v15  ;;  %vm459_vm8 = vsmask.f32 6416  ;;  %v894_v23 = vld [vmem:[%s9234_s16 + $0xc0] sm:$0xff]  ;;  %vm9307_vm14 = vmand %vm436_vm6, %vm13408_vm5 }
  0x13   : > { %v405_v17 = vadd.f32 %v9241_v6, %v403_v9  ;;  %v406_v18 = vadd.f32 %v9241_v6, %v404_v10  ;;  %v452_v20 = vadd.f32 %v9241_v6, %v450_v13  ;;  %314 = vst.msk [vmem:[#allocation2 + $0x18] sm:$0xf] %vm13419_vm1, %v13422_v4  ;;  %v860_v22 = vmul.f32 %v9224_v5, %v858_v16  ;;  %v895_v36 = vld [vmem:[%s9234_s16 + $0xc8] sm:$0xff]  ;;  %vm9319_vm15 = vmor %vm13415_vm7, %vm459_vm8 }
  0x14   : > { %v453_v21 = vadd.f32 %v9241_v6, %v451_v14  ;;  %v861_v26 = vadd.f32 %v9241_v6, %v859_v19  ;;  %315 = vst.msk [vmem:[#allocation2 + $0x1c] sm:$0xf] %vm13419_vm1, %v13422_v4  ;;  %vm13406_vm10 = vsmask.f32 7946  ;;  %v896_v31 = vmul.f32 %v9224_v5, %v894_v23  ;;  %v439_v41 = vld [vmem:[#allocation2 + $0x8] sm:$0xe] }
  0x15   : > { %v407_v24 = vmax.f32 %v405_v17, 0.0  ;;  %v408_v25 = vmax.f32 %v406_v18, 0.0  ;;  %v454_v27 = vmax.f32 %v452_v20, 0.0  ;;  %316 = vst.msk [vmem:[#allocation2 + $0x20] sm:$0xf] %vm13419_vm1, %v13422_v4  ;;  %v862_v34 = vadd.f32 %v9241_v6, %v860_v22  ;;  %vm9298_vm13 = vmand %vm483_vm9, %vm13406_vm10  ;;  %v933_v14 = vld [vmem:[%s9234_s16 + $0xd0] sm:$0xff] }
  0x16   : > { %v455_v28 = vmax.f32 %v453_v21, 0.0  ;;  %317 = vst.msk [vmem:[#allocation2 + $0x24] sm:$0xf] %vm13419_vm1, %v13422_v4  ;;  %v863_v35 = vmax.f32 %v861_v26, 0.0  ;;  %v13490_v51 = vmov 0  ;;  %v897_v60 = vmul.f32 %v9224_v5, %v895_v36  ;;  %v495_v18 = vld [vmem:[%s9234_s16 + $0x20] sm:$0xff] }
  0x17   : > { %v409_v29 = vpack.c.bf16 %v407_v24, %v407_v24  ;;  %v410_v30 = vpack.c.bf16 %v408_v25, %v408_v25  ;;  %v456_v32 = vpack.c.bf16 %v454_v27, %v454_v27  ;;  %318 = vst.msk [vmem:[#allocation2 + $0x28] sm:$0xf] %vm13419_vm1, %v13422_v4  ;;  %v13491_v51 = vsel %vm9290_vm12, 4294967295, %v13490_v51  ;;  %v486_v59 = vld [vmem:[#allocation2 + $0x10] sm:$0xc]  ;;  %v819_v50 = vld [vmem:[%s9234_s16 + $0xa8] sm:$0xff] }
  0x18   : > { %v457_v33 = vpack.c.bf16 %v455_v28, %v455_v28  ;;  %319 = vst.msk [vmem:[#allocation2 + $0x2c] sm:$0xf] %vm13419_vm1, %v13422_v4  ;;  %v445_v62 = vld [vmem:[#allocation2 + $0x10] sm:$0x3]  ;;  %v864_v1 = vmax.f32 %v862_v34, 0.0  ;;  %v13497_v8 = vmov 0  ;;  %v898_v10 = vadd.f32 %v9241_v6, %v896_v31 }
  0x19   : > { %v415_v37 = vshrl.u32 %v409_v29, 16  ;;  %v418_v38 = vshll.u32 %v409_v29, 16  ;;  %v424_v39 = vshrl.u32 %v410_v30, 16  ;;  %v427_v40 = vshll.u32 %v410_v30, 16  ;;  %320 = vst.msk [vmem:[#allocation2 + $0x30] sm:$0xf] %vm13419_vm1, %v13422_v4 }
  0x1a   : > { %v462_v42 = vshrl.u32 %v456_v32, 16  ;;  %v465_v43 = vshll.u32 %v456_v32, 16  ;;  %v471_v44 = vshrl.u32 %v457_v33, 16  ;;  %v474_v45 = vshll.u32 %v457_v33, 16  ;;  %13492 = vst [vmem:[#allocation7_spill] sm:$0xff] %v13491_v51  ;;  %v9325_v9 = vld [vmem:[#allocation2] sm:$0xff]  }
  0x1b   : > { %v417_v46 = vrot.slane %v415_v37, 6  ;;  %v420_v47 = vrot.slane %v418_v38, 7  ;;  %v426_v48 = vrot.slane %v424_v39, 6  ;;  %v429_v49 = vrot.slane %v427_v40, 7  ;;  %321 = vst.msk [vmem:[#allocation2 + $0x34] sm:$0xf] %vm13419_vm1, %v13422_v4 }
  0x1c   : > { %v464_v52 = vrot.slane %v462_v42, 5  ;;  %v467_v53 = vrot.slane %v465_v43, 6  ;;  %v473_v54 = vrot.slane %v471_v44, 5  ;;  %v476_v55 = vrot.slane %v474_v45, 6  ;;  %322 = vst.msk [vmem:[#allocation2 + $0x38] sm:$0xf] %vm13419_vm1, %v13422_v4 }
  0x1d   : > { %v421_v56 = vor.u32 %v420_v47, %v417_v46  ;;  %v430_v57 = vor.u32 %v429_v49, %v426_v48  ;;  %323 = vst.msk [vmem:[#allocation2 + $0x3c] sm:$0xf] %vm13419_vm1, %v13422_v4  ;;  %v13498_v8 = vsel %vm9319_vm15, 4294967295, %v13497_v8  ;;  %v9330_v13 = vpack.c.bf16 %v863_v35, %v863_v35  ;;  %v496_v30 = vld [vmem:[%s9234_s16 + $0x28] sm:$0xff] }
  0x1e   : > { %v468_v63 = vor.u32 %v467_v53, %v464_v52  ;;  %v9311_v0 = vor.u32 %v476_v55, %v473_v54  ;;  %13499 = vst [vmem:[#allocation8_spill] sm:$0xff] %v13498_v8  ;;  %v899_v17 = vadd.f32 %v9241_v6, %v897_v60  ;;  %v1171_v20 = vshll.u32 %v9325_v9, 16 }
  0x1f   : > { %v422_v2 = vrot.slane %v421_v56, 4  ;;  %v432_v3 = vrot.slane %v430_v57, 4  ;;  %v440_v7 = vsel %vm9307_vm14, %v421_v56, %v439_v41  ;;  %324 = vst.msk [vmem:[#allocation2 + $0x40] sm:$0xf] %vm13419_vm1, %v13422_v4  ;;  %v9344_v21 = vpack.c.bf16 %v864_v1, %v864_v1 }
  0x20   : > { %441 = vst [vmem:[#allocation2 + $0x8] sm:$0xe] %v440_v7  ;;  %v469_v11 = vrot.slane %v468_v63, 4  ;;  %v487_v12 = vsel %vm9298_vm13, %v468_v63, %v486_v59  ;;  %v900_v22 = vmax.f32 %v898_v10, 0.0  ;;  %v901_v23 = vmax.f32 %v899_v17, 0.0 }
  0x21   : > { %v431_v15 = vsel %vm9290_vm12, %v422_v2, %v430_v57  ;;  %v446_v16 = vsel %vm9282_vm11, %v432_v3, %v445_v62  ;;  %488 = vst [vmem:[#allocation2 + $0x10] sm:$0xc] %v487_v12  ;;  %v935_v24 = vmul.f32 %v9224_v5, %v933_v14  ;;  %v868_v25 = vshrl.u32 %v9330_v13, 16  ;;  %v934_v12 = vld [vmem:[%s9234_s16 + $0xd8] sm:$0xff] }
  0x22   : > { %442 = vst.msk [vmem:[#allocation2 + $0xc] sm:$0xf] %vm13419_vm1, %v431_v15  ;;  %v478_v19 = vsel %vm9319_vm15, %v469_v11, %v9311_v0  ;;  %v497_v26 = vmul.f32 %v9224_v5, %v495_v18  ;;  %vm13411_vm4 = vcmask 31744   ;;  %vm13409_vm6 = vcmask 1046528  }
  0x23   : > { %447 = vst [vmem:[#allocation2 + $0x10] sm:$0x3] %v446_v16  ;;  %v902_v27 = vpack.c.bf16 %v900_v22, %v900_v22  ;;  %v903_v28 = vpack.c.bf16 %v901_v23, %v901_v23  ;;  %v937_v29 = vadd.f32 %v9241_v6, %v935_v24  ;;  %v1169_v31 = vshrl.u32 %v9325_v9, 16  ;;  %v8153_v22 = vld [vmem:[%s13398_s1 + $0x4] sm:$0x3] }
  0x24   : > { %489 = vst.msk [vmem:[#allocation2 + $0x14] sm:$0xf] %vm13419_vm1, %v478_v19  ;;  %v1173_v32 = vrot.slane %v1171_v20, 1  ;;  %v876_v33 = vshrl.u32 %v9344_v21, 16  ;;  %v498_v34 = vmul.f32 %v9224_v5, %v496_v30  ;;  %v499_v38 = vadd.f32 %v9241_v6, %v497_v26  ;;  %v542_v20 = vld [vmem:[%s9234_s16 + $0x30] sm:$0xff]  ;;  %v586_v30 = vld [vmem:[%s9234_s16 + $0x40] sm:$0xff] }
  0x25   : > { %325 = vst.msk [vmem:[#allocation2 + $0x44] sm:$0xf] %vm13419_vm1, %v13422_v4  ;;  %v905_v36 = vshrl.u32 %v902_v27, 16  ;;  %v908_v37 = vshll.u32 %v902_v27, 16  ;;  %v9364_v39 = vrot.slane %v868_v25, 7  ;;  %v914_v40 = vshrl.u32 %v903_v28, 16 }
  0x26   : > { %326 = vst.msk [vmem:[#allocation2 + $0x48] sm:$0xf] %vm13419_vm1, %v13422_v4  ;;  %v917_v41 = vshll.u32 %v903_v28, 16  ;;  %v939_v42 = vmax.f32 %v937_v29, 0.0  ;;  %vm13413_vm8 = vsmask.f32 256  ;;  %v500_v46 = vadd.f32 %v9241_v6, %v498_v34 }
  0x27   : > { %v8173_v35 = vld [vmem:[#allocation2 + $0x8] sm:$0xe]  ;;  %327 = vst.msk [vmem:[#allocation2 + $0x4c] sm:$0xf] %vm13419_vm1, %v13422_v4  ;;  %vm553_vm9 = vsmask.f32 4368  ;;  %v1174_v54 = vor.u32 %v1173_v32, %v1169_v31  ;;  %v936_v25 = vmul.f32 %v9224_v5, %v934_v12 }
  0x28   : > { %328 = vst.msk [vmem:[#allocation2 + $0x50] sm:$0xf] %vm13419_vm1, %v13422_v4  ;;  %v907_v45 = vrot.slane %v905_v36, 6  ;;  %v910_v48 = vrot.slane %v908_v37, 7  ;;  %v916_v49 = vrot.slane %v914_v40, 6  ;;  %v919_v52 = vrot.slane %v917_v41, 7 }
  0x29   : > { %v8925_v43 = vld [vmem:[#allocation2 + $0x8] sm:$0xf0]  ;;  %329 = vst.msk [vmem:[#allocation2 + $0x54] sm:$0xf] %vm13419_vm1, %v13422_v4  ;;  %v941_v56 = vpack.c.bf16 %v939_v42, %v939_v42  ;;  %v501_v57 = vmax.f32 %v499_v38, 0.0  ;;  %v9383_v60 = vrot.slane %v876_v33, 7 }
  0x2a   : > { %v9368_v44 = vld [vmem:[#allocation2 + $0x8] sm:$0xff]  ;;  %v9371_v47 = vor.u32 %v8925_v43, %v8173_v35  ;;  %330 = vst.msk [vmem:[#allocation2 + $0x58] sm:$0xf] %vm13419_vm1, %v13422_v4  ;;  %vm13412_vm10 = vsmask.f32 7424  ;;  %v9385_v62 = vor.u32 %v910_v48, %v907_v45  ;;  %vm581_vm3 = vcmask 24576  }
  0x2b   : > { %v9375_v53 = vld [vmem:[#allocation2 + $0x10] sm:$0xff]  ;;  %331 = vst.msk [vmem:[#allocation2 + $0x5c] sm:$0xf] %vm13419_vm1, %v13422_v4  ;;  %v1176_v55 = vshll.u32 %v9368_v44, 16  ;;  %v502_v2 = vmax.f32 %v500_v46, 0.0  ;;  %v874_v3 = vrot.slane %v9364_v39, 4  ;;  %v9396_v10 = vor.u32 %v919_v52, %v916_v49 }
  0x2c   : > { %v1896_v59 = vrot.slane %v9371_v47, 1  ;;  %332 = vst.msk [vmem:[#allocation2 + $0x60] sm:$0xf] %vm13419_vm1, %v13422_v4  ;;  %v1897_v63 = vrot.slane %v9375_v53, 1  ;;  %v879_v7 = vshll.u32 %v9344_v21, 16  ;;  %v944_v11 = vshrl.u32 %v941_v56, 16 }
  0x2d   : > { %333 = vst.msk [vmem:[#allocation2 + $0x64] sm:$0xf] %vm13419_vm1, %v13422_v4  ;;  %v9390_v1 = vrot.slane %v1176_v55, 1  ;;  %v947_v16 = vshll.u32 %v941_v56, 16  ;;  %v503_v17 = vpack.c.bf16 %v501_v57, %v501_v57  ;;  %v883_v18 = vrot.slane %v9383_v60, 4  ;;  %v543_v21 = vld [vmem:[%s9234_s16 + $0x38] sm:$0xff] }
  0x2e   : > { %334 = vst.msk [vmem:[#allocation2 + $0x68] sm:$0xf] %vm13419_vm1, %v13422_v4  ;;  %v1898_v14 = vsel %vm13409_vm6, %v1896_v59, %v1897_v63  ;;  %v912_v19 = vrot.slane %v9385_v62, 4  ;;  %v1080_v23 = vld [vmem:[%s13398_s1] sm:$0x3]  ;;  %v504_v24 = vpack.c.bf16 %v502_v2, %v502_v2  ;;  %v881_v26 = vor.u32 %v879_v7, %v9383_v60  ;;  %vm9436_vm6 = vmor %vm13413_vm8, %vm553_vm9  ;;  %v8942_v8 = vld [vmem:[#allocation2 + $0x10] sm:$0xff] }
  0x2f   : > { %335 = vst.msk [vmem:[#allocation2 + $0x6c] sm:$0xf] %vm13419_vm1, %v13422_v4  ;;  %v1179_v15 = vsel %vm13412_vm10, %v1174_v54, %v9390_v1  ;;  %8235 = vmatmul.msk.bf16.vlgmr.msra.gmra.mxu3 %vm13411_vm4, %v1898_v14  ;;  %v922_v27 = vrot.slane %v9396_v10, 4  ;;  %v1655_v28 = vsel %vm13410_vm0, %v8153_v22, 0  ;;  %v1475_v29 = vsel %vm13410_vm0, %v1080_v23, 0  ;;  %vm9446_vm10 = vmand %vm581_vm3, %vm13413_vm8  ;;  %v9471_v54 = vld [vmem:[#allocation2 + $0x10] sm:$0xff] }
  0x30   : > { %336 = vst.msk [vmem:[#allocation2 + $0x70] sm:$0xf] %vm13419_vm1, %v13422_v4  ;;  %8121 = vmatmul.msk.bf16.vlgmr.msra.gmra.mxu0 %vm13411_vm4, %v1179_v15  ;;  %v946_v31 = vrot.slane %v944_v11, 5  ;;  %v949_v32 = vrot.slane %v947_v16, 6  ;;  %1484 = vmatpush.bf16.msrb.mxu1 %v1475_v29  ;;  %vm490_vm5 = vcmask 26624   ;;  %v509_v33 = vshll.u32 %v503_v17, 16 }
  0x31   : > { %337 = vst.msk [vmem:[#allocation2 + $0x74] sm:$0xf] %vm13419_vm1, %v13422_v4  ;;  %1664 = vmatpush.bf16.msrb.mxu0 %v1655_v28  ;;  %v13500_v34 = vmov 0  ;;  %vm506_vm4 = vsmask.f32 7440  ;;  %9079 = vmatpush.bf16.msra.mxu2 %v1655_v28  ;;  %v544_v35 = vmul.f32 %v9224_v5, %v542_v20  ;;  %v545_v36 = vmul.f32 %v9224_v5, %v543_v21  ;;  %vm9457_vm9 = vmand %vm490_vm5, %vm13415_vm7  ;;  %v587_v16 = vld [vmem:[%s9234_s16 + $0x48] sm:$0xff] }
  0x32   : > { %338 = vst.msk [vmem:[#allocation2 + $0x78] sm:$0xf] %vm13419_vm1, %v13422_v4  ;;  %v13501_v34 = vsel %vm9436_vm6, 4294967295, %v13500_v34  ;;  %v13503_v37 = vmov 0  ;;  %v479_v38 = vrot.slane %v9311_v0, 4  ;;  %v9451_v41 = vrot.slane %v509_v33, 5 }
  0x33   : > { %339 = vst.msk [vmem:[#allocation2 + $0x7c] sm:$0xf] %vm13419_vm1, %v13422_v4  ;;  %v13504_v37 = vsel %vm9446_vm10, 4294967295, %v13503_v37  ;;  %v492_v40 = vld [vmem:[#allocation2 + $0x18] sm:$0x7]  ;;  %v512_v42 = vshrl.u32 %v503_v17, 16  ;;  %v588_v48 = vmul.f32 %v9224_v5, %v586_v30  ;;  %v938_v55 = vadd.f32 %v9241_v6, %v936_v25 }
  0x34   : > { %340 = vst.msk [vmem:[#allocation2 + $0x80] sm:$0xf] %vm13419_vm1, %v13422_v4  ;;  %v518_v43 = vshll.u32 %v504_v24, 16  ;;  %v13506_v45 = vmov 0  ;;  %v522_v46 = vshrl.u32 %v504_v24, 16  ;;  %vm530_vm3 = vcmask 27651  }
  0x35   : > { %13502 = vst [vmem:[#allocation9_spill] sm:$0xff] %v13501_v34  ;;  %v13507_v45 = vsel %vm9457_vm9, 4294967295, %v13506_v45  ;;  %vm13414_vm8 = vsmask.f32 7950  ;;  %v514_v0 = vrot.slane %v512_v42, 4  ;;  %v13508_v49 = vmov 0 }
  0x36   : > { %341 = vst.msk [vmem:[#allocation2 + $0x84] sm:$0xf] %vm13419_vm1, %v13422_v4  ;;  %vm9465_vm0 = vmand %vm530_vm3, %vm13414_vm8  ;;  %v9469_v52 = vld [vmem:[#allocation2 + $0x18] sm:$0x8]  ;;  %v882_v56 = vsel %vm9436_vm6, %v874_v3, %v881_v26  ;;  %v921_v59 = vsel %vm9290_vm12, %v912_v19, %v9396_v10  ;;  %v9483_v7 = vor.u32 %v949_v32, %v946_v31  ;;  %v546_v11 = vadd.f32 %v9241_v6, %v544_v35  ;;  %v9096_v51 = vld [vmem:[#allocation2 + $0x8] sm:$0xff] }
  0x37   : > { %13505 = vst [vmem:[#allocation10_spill] sm:$0xff] %v13504_v37  ;;  %v13509_v49 = vsel %vm9465_vm0, 4294967295, %v13508_v49  ;;  %v515_v12 = vor.u32 %v514_v0, %v9451_v41  ;;  %v9489_v14 = vrot.slane %v518_v43, 5  ;;  %v524_v15 = vrot.slane %v522_v46, 4 }
  0x38   : > { %342 = vst.msk [vmem:[#allocation2 + $0x88] sm:$0xf] %vm13419_vm1, %v13422_v4  ;;  %v891_v57 = vld [vmem:[#allocation2 + $0x74] sm:$0x1]  ;;  %v926_v2 = vld [vmem:[#allocation2 + $0x74] sm:$0xe]  ;;  %v547_v3 = vadd.f32 %v9241_v6, %v545_v36  ;;  %v493_v20 = vsel %vm9457_vm9, %v479_v38, %v492_v40  ;;  %v534_v21 = vsel %vm9465_vm0, %v9451_v41, %v9469_v52  ;;  %v590_v22 = vadd.f32 %v9241_v6, %v588_v48 }
  0x39   : > { %343 = vst.msk [vmem:[#allocation2 + $0x8c] sm:$0xf] %vm13419_vm1, %v13422_v4  ;;  %v892_v10 = vsel %vm9446_vm10, %v883_v18, %v891_v57  ;;  %v927_v60 = vsel %vm9307_vm14, %v9385_v62, %v926_v2  ;;  %v525_v23 = vor.u32 %v524_v15, %v9489_v14  ;;  %v589_v24 = vmul.f32 %v9224_v5, %v587_v16  ;;  %v539_v38 = vld [vmem:[#allocation2 + $0x20] sm:$0xf]  ;;  %v577_v15 = vld [vmem:[#allocation2 + $0x24] sm:$0xf] }
  0x3a   : > { %344 = vst.msk [vmem:[#allocation2 + $0x90] sm:$0xf] %vm13419_vm1, %v13422_v4  ;;  %v930_v17 = vld [vmem:[#allocation2 + $0x7c] sm:$0x3]  ;;  %v965_v19 = vld [vmem:[#allocation2 + $0x7c] sm:$0xc] }
  0x3b   : > { %345 = vst.msk [vmem:[#allocation2 + $0x94] sm:$0xf] %vm13419_vm1, %v13422_v4  ;;  %v931_v18 = vsel %vm9282_vm11, %v922_v27, %v930_v17  ;;  %v966_v25 = vsel %vm9298_vm13, %v9483_v7, %v965_v19  ;;  %v1180_v26 = vshrl.u32 %v9368_v44, 16  ;;  %v1184_v28 = vshll.u32 %v9471_v54, 16 }
  0x3c   : > { %346 = vst.msk [vmem:[#allocation2 + $0x98] sm:$0xf] %vm13419_vm1, %v13422_v4  ;;  %v940_v29 = vmax.f32 %v938_v55, 0.0  ;;  %v516_v62 = vrot.slane %v515_v12, 4  ;;  %v951_v27 = vrot.slane %v9483_v7, 4  ;;  %v548_v30 = vmax.f32 %v546_v11, 0.0 }
  0x3d   : > { %347 = vst.msk [vmem:[#allocation2 + $0x9c] sm:$0xf] %vm13419_vm1, %v13422_v4  ;;  %v549_v31 = vmax.f32 %v547_v3, 0.0  ;;  %v526_v32 = vrot.slane %v525_v23, 4  ;;  %v1182_v33 = vor.u32 %v1180_v26, %v9390_v1  ;;  %v9525_v35 = vrot.slane %v1184_v28, 1  ;;  %v625_v55 = vld [vmem:[%s9234_s16 + $0x50] sm:$0xff] }
  0x3e   : > { %349 = vst.msk [vmem:[#allocation2 + $0xa0] sm:$0x3] %vm348_vm2, %v13422_v4  ;;  %v942_v36 = vpack.c.bf16 %v940_v29, %v940_v29  ;;  %vm13510_vm2 = vsmask.f32 3328  ;;  %v13511_v40 = vmov 0  ;;  %v550_v41 = vpack.c.bf16 %v548_v30, %v548_v30 }
  0x3f   : > { %890 = vst.msk [vmem:[#allocation2 + $0x70] sm:$0xf] %vm13419_vm1, %v882_v56  ;;  %vm9529_vm5 = vmor %vm13510_vm2, %vm506_vm4  ;;  %v551_v42 = vpack.c.bf16 %v549_v31, %v549_v31  ;;  %vm13418_vm3 = vsmask.f32 7938  ;;  %v592_v43 = vmax.f32 %v590_v22, 0.0  ;;  %v13516_v0 = vmov 0 }
  0x40   : > { %893 = vst [vmem:[#allocation2 + $0x74] sm:$0x1] %v892_v10  ;;  %v13512_v40 = vsel %vm9529_vm5, 4294967295, %v13511_v40  ;;  %vm13514_vm8 = vsmask.f32 7424  ;;  %v953_v46 = vshrl.u32 %v942_v36, 16  ;;  %vm13515_vm7 = vmmov %vm13510_vm2  ;;  %v591_v52 = vadd.f32 %v9241_v6, %v589_v24 }
  0x41   : > { %928 = vst [vmem:[#allocation2 + $0x74] sm:$0xe] %v927_v60  ;;  %v1187_v1 = vsel %vm13514_vm8, %v1182_v33, %v9525_v35  ;;  %v956_v48 = vshll.u32 %v942_v36, 16  ;;  %vm9538_vm0 = vmand %vm13419_vm1, %vm13515_vm7  ;;  %vm13519_vm4 = vcmask 31744   ;;  %v556_v56 = vshrl.u32 %v550_v41, 16 }
  0x42   : > { %13513 = vst [vmem:[#allocation11_spill] sm:$0xff] %v13512_v40  ;;  %v13517_v0 = vsel %vm9538_vm0, 4294967295, %v13516_v0  ;;  %8122 = vmatmul.msk.bf16.gmra.mxu0 %vm13519_vm4, %v1187_v1  ;;  %v559_v57 = vshll.u32 %v550_v41, 16  ;;  %v567_v2 = vshll.u32 %v551_v42, 16  ;;  %v521_v7 = vsel %vm9529_vm5, %v516_v62, %v9489_v14  ;;  %vm9554_vm7 = vmand %vm13419_vm1, %vm13418_vm3  ;;  %v583_v14 = vld [vmem:[#allocation2 + $0x2c] sm:$0x1] }
  0x43   : > { %929 = vst.msk [vmem:[#allocation2 + $0x78] sm:$0xf] %vm13419_vm1, %v921_v59  ;;  %v564_v59 = vshrl.u32 %v551_v42, 16  ;;  %v955_v11 = vrot.slane %v953_v46, 5  ;;  %v958_v12 = vrot.slane %v956_v48, 6  ;;  %v594_v3 = vpack.c.bf16 %v592_v43, %v592_v43  ;;  %vm13523_vm2 = vmmov %vm13519_vm4 }
  0x44   : > { %13518 = vst [vmem:[#allocation12_spill] sm:$0xff] %v13517_v0  ;;  %v540_v16 = vsel %vm9538_vm0, %v526_v32, %v539_v38  ;;  %v558_v10 = vrot.slane %v556_v56, 7  ;;  %v593_v19 = vmax.f32 %v591_v52, 0.0  ;;  %v13520_v60 = vmov 0  ;;  %v618_v38 = vld [vmem:[#allocation2 + $0x2c] sm:$0xe] }
  0x45   : > { %932 = vst [vmem:[#allocation2 + $0x7c] sm:$0x3] %v931_v18  ;;  %v566_v17 = vrot.slane %v564_v59, 7  ;;  %v9550_v22 = vor.u32 %v958_v12, %v955_v11  ;;  %v13521_v60 = vsel %vm9554_vm7, 4294967295, %v13520_v60  ;;  %v597_v18 = vshrl.u32 %v594_v3, 16 }
  0x46   : > { %967 = vst [vmem:[#allocation2 + $0x7c] sm:$0xc] %v966_v25  ;;  %v600_v23 = vshll.u32 %v594_v3, 16  ;;  %v561_v24 = vor.u32 %v559_v57, %v558_v10  ;;  %v562_v25 = vrot.slane %v558_v10, 4  ;;  %v1188_v31 = vshrl.u32 %v9471_v54, 16 }
  0x47   : > { %494 = vst [vmem:[#allocation2 + $0x18] sm:$0x7] %v493_v20  ;;  %v627_v20 = vmul.f32 %v9224_v5, %v625_v55  ;;  %v569_v26 = vor.u32 %v567_v2, %v566_v17  ;;  %v571_v28 = vrot.slane %v566_v17, 4  ;;  %v960_v29 = vsel %vm9319_vm15, %v951_v27, %v9550_v22  ;;  %v626_v55 = vld [vmem:[%s9234_s16 + $0x58] sm:$0xff] }
  0x48   : > { %535 = vst [vmem:[#allocation2 + $0x18] sm:$0x8] %v534_v21  ;;  %v9560_v21 = vld [vmem:[#allocation2 + $0x70] sm:$0xff]  ;;  %v599_v62 = vrot.slane %v597_v18, 6  ;;  %v602_v30 = vrot.slane %v600_v23, 7  ;;  %v578_v33 = vsel %vm9554_vm7, %v561_v24, %v577_v15  ;;  %v595_v41 = vpack.c.bf16 %v593_v19, %v593_v19 }
  0x49   : > { %13522 = vst [vmem:[#allocation13_spill] sm:$0xff] %v13521_v60  ;;  %v570_v32 = vsel %vm9436_vm6, %v562_v25, %v569_v26  ;;  %v584_v36 = vsel %vm9446_vm10, %v571_v28, %v583_v14  ;;  %v1280_v27 = vshll.u32 %v9560_v21, 16  ;;  %v1284_v42 = vshrl.u32 %v9560_v21, 16 }
  0x4a   : > { %536 = vst.msk [vmem:[#allocation2 + $0x1c] sm:$0xf] %vm13419_vm1, %v521_v7  ;;  %v603_v43 = vor.u32 %v602_v30, %v599_v62  ;;  %v629_v1 = vadd.f32 %v9241_v6, %v627_v20  ;;  %v606_v48 = vshrl.u32 %v595_v41, 16  ;;  %v609_v52 = vshll.u32 %v595_v41, 16 }
  0x4b   : > { %541 = vst [vmem:[#allocation2 + $0x20] sm:$0xf] %v540_v16  ;;  %v9580_v56 = vrot.slane %v1280_v27, 1  ;;  %v628_v59 = vmul.f32 %v9224_v5, %v626_v55  ;;  %v1190_v14 = vor.u32 %v1188_v31, %v9525_v35  ;;  %vm13524_vm4 = vcmask 1046528  }
  0x4c   : > { %968 = vst.msk [vmem:[#allocation2 + $0x80] sm:$0xf] %vm13419_vm1, %v960_v29  ;;  %v619_v57 = vsel %vm9307_vm14, %v603_v43, %v618_v38  ;;  %v604_v7 = vrot.slane %v603_v43, 4  ;;  %v608_v11 = vrot.slane %v606_v48, 6  ;;  %v611_v12 = vrot.slane %v609_v52, 7 }
  0x4d   : > { %579 = vst [vmem:[#allocation2 + $0x24] sm:$0xf] %v578_v33  ;;  %v9576_v46 = vld [vmem:[#allocation2 + $0x78] sm:$0xff]  ;;  %v1286_v15 = vor.u32 %v1284_v42, %v9580_v56  ;;  %v631_v10 = vmax.f32 %v629_v1, 0.0  ;;  %v630_v17 = vadd.f32 %v9241_v6, %v628_v59  ;;  %v2432_v33 = vld [vmem:[%s13400_s3] sm:$0x3] }
  0x4e   : > { %580 = vst.msk [vmem:[#allocation2 + $0x28] sm:$0xf] %vm13419_vm1, %v570_v32  ;;  %v1288_v2 = vshll.u32 %v9576_v46, 16  ;;  %v612_v18 = vor.u32 %v611_v12, %v608_v11  ;;  %v622_v32 = vld [vmem:[#allocation2 + $0x34] sm:$0x3]  ;;  %v664_v59 = vld [vmem:[%s9234_s16 + $0x60] sm:$0xff] }
  0x4f   : > { %585 = vst [vmem:[#allocation2 + $0x2c] sm:$0x1] %v584_v36  ;;  %v633_v25 = vpack.c.bf16 %v631_v10, %v631_v10  ;;  %v632_v26 = vmax.f32 %v630_v17, 0.0  ;;  %v657_v11 = vld [vmem:[#allocation2 + $0x34] sm:$0xc]  ;;  %v1574_v37 = vrot.slane %v9096_v51, 1 }
  0x50   : > { %620 = vst [vmem:[#allocation2 + $0x2c] sm:$0xe] %v619_v57  ;;  %v1290_v19 = vrot.slane %v1288_v2, 1  ;;  %v613_v30 = vsel %vm9290_vm12, %v604_v7, %v612_v18  ;;  %v614_v36 = vrot.slane %v612_v18, 4  ;;  %v1292_v2 = vshrl.u32 %v9576_v46, 16 }
  0x51   : > { %v9587_v3 = vld [vmem:[#allocation2 + $0x18] sm:$0xff]  ;;  %621 = vst.msk [vmem:[#allocation2 + $0x30] sm:$0xf] %vm13419_vm1, %v613_v30  ;;  %v634_v53 = vpack.c.bf16 %v632_v26, %v632_v26  ;;  %v636_v1 = vshrl.u32 %v633_v25, 16  ;;  %v639_v48 = vshll.u32 %v633_v25, 16 }
  0x52   : > { %v9589_v16 = vld [vmem:[#allocation2 + $0x18] sm:$0xff]  ;;  %v1899_v23 = vrot.slane %v9587_v3, 1  ;;  %v1291_v28 = vsel %vm13514_vm8, %v1286_v15, %v1290_v19  ;;  %vm13525_vm8 = vmmov %vm13523_vm2  ;;  %v623_v43 = vsel %vm9282_vm11, %v614_v36, %v622_v32  ;;  %v1294_v30 = vor.u32 %v1292_v2, %v1290_v19  ;;  %v8251_v51 = vld [vmem:[%s13398_s1 + $0x8] sm:$0x3] }
  0x53   : > { %v1081_v20 = vld [vmem:[#allocation2 + $0x80] sm:$0x1]  ;;  %v1192_v24 = vshll.u32 %v9589_v16, 16  ;;  %8135 = vmatmul.msk.bf16.vlgmr.msra.gmra.mxu1 %vm13523_vm2, %v1291_v28  ;;  %vm13526_vm2 = vcmask 1041408   ;;  %vm13528_vm3 = vmmov %vm13525_vm8  ;;  %624 = vst [vmem:[#allocation2 + $0x34] sm:$0x3] %v623_v43 }
  0x54   : > { %v1149_v29 = vunpack.c.l.b16 %v1081_v20  ;;  %v9596_v62 = vld [vmem:[#allocation2 + $0x20] sm:$0xff]  ;;  %v1900_v35 = vsel %vm13524_vm4, %v1897_v63, %v1899_v23  ;;  %v2434_v27 = vsel %vm13526_vm2, %v2432_v33, 0  ;;  %vm13527_vm4 = vsmask.f32 7424 }
  0x55   : > { %v1194_v31 = vrot.slane %v1192_v24, 1  ;;  %8236 = vmatmul.msk.bf16.gmra.mxu3 %vm13525_vm8, %v1900_v35  ;;  %v13424_v41 = vrot.slane %v9596_v62, 1  ;;  %2443 = vmatpush.bf16.msra.mxu1 %v2434_v27  ;;  %v638_v55 = vrot.slane %v636_v1, 5  ;;  %v641_v57 = vrot.slane %v639_v48, 6  ;;  %v9628_v10 = vld [vmem:[#allocation2 + $0x20] sm:$0xff]  ;;  %v665_v27 = vld [vmem:[%s9234_s16 + $0x68] sm:$0xff]  ;;  %vm13530_vm2 = vmmov %vm13527_vm4 }
  0x56   : > { %v9611_v38 = vpack.c.b16 %v1149_v29, %v1149_v29  ;;  %v645_v12 = vshrl.u32 %v634_v53, 16  ;;  %vm13529_vm8 = vcmask 1046528   ;;  %v1196_v18 = vshrl.u32 %v9589_v16, 16  ;;  %v8944_v60 = vld [vmem:[#allocation2 + $0x20] sm:$0xff] }
  0x57   : > { %v9615_v42 = vld [vmem:[#allocation2 + $0x28] sm:$0xff]  ;;  %v1195_v63 = vsel %vm13527_vm4, %v1190_v14, %v1194_v31  ;;  %v642_v17 = vor.u32 %v641_v57, %v638_v55  ;;  %v648_v14 = vshll.u32 %v634_v53, 16  ;;  %v666_v24 = vmul.f32 %v9224_v5, %v664_v59  ;;  %v661_v53 = vld [vmem:[#allocation2 + $0x3c] sm:$0x7]  ;;  %vm13531_vm4 = vmmov %vm13529_vm8 }
  0x58   : > { %8123 = vmatmul.msk.bf16.gmra.mxu0 %vm13528_vm3, %v1195_v63  ;;  %v1582_v52 = vrot.slane %v9615_v42, 1  ;;  %v1296_v7 = vshll.u32 %v9611_v38, 16  ;;  %v647_v20 = vrot.slane %v645_v12, 5  ;;  %v1200_v26 = vshll.u32 %v9596_v62, 16 }
  0x59   : > { %v658_v25 = vsel %vm9298_vm13, %v642_v17, %v657_v11  ;;  %v643_v28 = vrot.slane %v642_v17, 4  ;;  %v650_v29 = vrot.slane %v648_v14, 6  ;;  %v668_v35 = vadd.f32 %v9241_v6, %v666_v24  ;;  %v696_v17 = vld [vmem:[#allocation2 + $0x3c] sm:$0x8] }
  0x5a   : > { %v1583_v15 = vsel %vm13529_vm8, %v13424_v41, %v1582_v52  ;;  %v1298_v32 = vrot.slane %v1296_v7, 1  ;;  %659 = vst [vmem:[#allocation2 + $0x34] sm:$0xc] %v658_v25  ;;  %v1901_v33 = vrot.slane %v9628_v10, 1  ;;  %v667_v43 = vmul.f32 %v9224_v5, %v665_v27  ;;  %vm13532_vm8 = vmmov %vm13528_vm3 }
  0x5b   : > { %8158 = vmatmul.msk.bf16.vlgmr.msra.gmra.mxu2 %vm13528_vm3, %v1583_v15  ;;  %v651_v36 = vor.u32 %v650_v29, %v647_v20  ;;  %v670_v63 = vmax.f32 %v668_v35, 0.0  ;;  %v1198_v1 = vor.u32 %v1196_v18, %v1194_v31  ;;  %v1202_v48 = vrot.slane %v1200_v26, 1  ;;  %vm13533_vm3 = vmmov %vm13530_vm2 }
  0x5c   : > { %v1299_v19 = vsel %vm13530_vm2, %v1294_v30, %v1298_v32  ;;  %v669_v2 = vadd.f32 %v9241_v6, %v667_v43  ;;  %v1902_v7 = vsel %vm13531_vm4, %v1899_v23, %v1901_v33  ;;  %vm13534_vm2 = vmmov %vm13532_vm8  ;;  %v9660_v30 = vld [vmem:[#allocation2 + $0x28] sm:$0xff]  ;;  %v1208_v27 = vshll.u32 %v9615_v42, 16  ;;  %v700_v43 = vld [vmem:[#allocation2 + $0x44] sm:$0xf] }
  0x5d   : > { %v652_v55 = vsel %vm9319_vm15, %v643_v28, %v651_v36  ;;  %v653_v57 = vrot.slane %v651_v36, 4  ;;  %v672_v59 = vpack.c.bf16 %v670_v63, %v670_v63  ;;  %v1203_v10 = vsel %vm13533_vm3, %v1198_v1, %v1202_v48  ;;  %vm13535_vm4 = vmmov %vm13534_vm2 }
  0x5e   : > { %660 = vst.msk [vmem:[#allocation2 + $0x38] sm:$0xf] %vm13419_vm1, %v652_v55  ;;  %v671_v12 = vmax.f32 %v669_v2, 0.0  ;;  %vm13536_vm1 = vnez %v13509_v49  ;;  %v1204_v36 = vshrl.u32 %v9596_v62, 16  ;;  %vm13540_vm3 = vcmask 1046528  }
  0x5f   : > { %v662_v11 = vsel %vm9457_vm9, %v653_v57, %v661_v53  ;;  %v675_v31 = vshll.u32 %v672_v59, 16  ;;  %v678_v23 = vshrl.u32 %v672_v59, 16  ;;  %vm13537_vm9 = vcmask 1046528   ;;  %v704_v59 = vld [vmem:[%s9234_s16 + $0x78] sm:$0xff] }
  0x60   : > { %663 = vst [vmem:[#allocation2 + $0x3c] sm:$0x7] %v662_v11  ;;  %v673_v18 = vpack.c.bf16 %v671_v12, %v671_v12  ;;  %v1206_v57 = vor.u32 %v1204_v36, %v1202_v48  ;;  %v706_v12 = vmul.f32 %v9224_v5, %v704_v59  ;;  %v1212_v36 = vshrl.u32 %v9615_v42, 16 }
  0x61   : > { %v9651_v15 = vld [vmem:[#allocation2 + $0x30] sm:$0xff]  ;;  %v677_v14 = vrot.slane %v675_v31, 5  ;;  %v680_v26 = vrot.slane %v678_v23, 4 }
  0x62   : > { %v1584_v3 = vrot.slane %v9651_v15, 1  ;;  %v684_v24 = vshll.u32 %v673_v18, 16  ;;  %v688_v28 = vshrl.u32 %v673_v18, 16  ;;  %v708_v48 = vadd.f32 %v9241_v6, %v706_v12 }
  0x63   : > { %8136 = vmatmul.msk.bf16.gmra.mxu1 %vm13532_vm8, %v1299_v19  ;;  %v697_v20 = vsel %vm13536_vm1, %v677_v14, %v696_v17  ;;  %v681_v32 = vor.u32 %v680_v26, %v677_v14  ;;  %vm13538_vm8 = vmmov %vm13534_vm2  ;;  %v703_v19 = vld [vmem:[%s9234_s16 + $0x70] sm:$0xff] }
  0x64   : > { %v1585_v25 = vsel %vm13537_vm9, %v1582_v52, %v1584_v3  ;;  %698 = vst [vmem:[#allocation2 + $0x3c] sm:$0x8] %v697_v20  ;;  %v686_v29 = vrot.slane %v684_v24, 5  ;;  %v690_v35 = vrot.slane %v688_v28, 4  ;;  %v1903_v52 = vrot.slane %v9660_v30, 1 }
  0x65   : > { %8237 = vmatmul.msk.bf16.gmra.mxu3 %vm13534_vm2, %v1902_v7  ;;  %v682_v53 = vrot.slane %v681_v32, 4  ;;  %vm13539_vm9 = vcmask 27648   ;;  %v1210_v7 = vrot.slane %v1208_v27, 1  ;;  %v705_v31 = vmul.f32 %v9224_v5, %v703_v19 }
  0x66   : > { %v691_v63 = vor.u32 %v690_v35, %v686_v29  ;;  %v710_v20 = vmax.f32 %v708_v48, 0.0  ;;  %v1216_v27 = vshll.u32 %v9651_v15, 16 }
  0x67   : > { %v687_v1 = vsel %vm9529_vm5, %v682_v53, %v686_v29  ;;  %v707_v17 = vadd.f32 %v9241_v6, %v705_v31  ;;  %v9687_v29 = vld [vmem:[#allocation2 + $0x30] sm:$0xff]  ;;  %v1214_v12 = vor.u32 %v1212_v36, %v1210_v7 }
  0x68   : > { %8124 = vmatmul.msk.bf16.gmra.mxu0 %vm13535_vm4, %v1203_v10  ;;  %v692_v55 = vrot.slane %v691_v63, 4  ;;  %699 = vst.msk [vmem:[#allocation2 + $0x40] sm:$0xf] %vm13539_vm9, %v687_v1  ;;  %v1904_v10 = vsel %vm13540_vm3, %v1901_v33, %v1903_v52  ;;  %vm13541_vm4 = vsmask.f32 7424  ;;  %vm13543_vm9 = vmmov %vm13534_vm2 }
  0x69   : > { %v1211_v18 = vsel %vm13541_vm4, %v1206_v57, %v1210_v7  ;;  %v709_v23 = vmax.f32 %v707_v17, 0.0  ;;  %v733_v1 = vld [vmem:[#allocation2 + $0x48] sm:$0xf]  ;;  %vm13544_vm4 = vcmask 27648  }
  0x6a   : > { %v701_v11 = vsel %vm9538_vm0, %v692_v55, %v700_v43  ;;  %v1905_v55 = vrot.slane %v9687_v29, 1 }
  0x6b   : > { %8159 = vmatmul.msk.bf16.gmra.mxu2 %vm13538_vm8, %v1585_v25  ;;  %v9671_v2 = vld [vmem:[#allocation2 + $0x38] sm:$0xff]  ;;  %702 = vst [vmem:[#allocation2 + $0x44] sm:$0xf] %v701_v11  ;;  %vm13542_vm8 = vmmov %vm13534_vm2  ;;  %v711_v24 = vpack.c.bf16 %v709_v23, %v709_v23  ;;  %v712_v25 = vpack.c.bf16 %v710_v20, %v710_v20  ;;  %v741_v11 = vld [vmem:[%s9234_s16 + $0x88] sm:$0xff] }
  0x6c   : > { %v1586_v14 = vrot.slane %v9671_v2, 1  ;;  %v743_v17 = vmul.f32 %v9224_v5, %v741_v11 }
  0x6d   : > { %v714_v26 = vshrl.u32 %v711_v24, 16  ;;  %v722_v28 = vshrl.u32 %v712_v25, 16  ;;  %v717_v30 = vshll.u32 %v711_v24, 16  ;;  %v725_v35 = vshll.u32 %v712_v25, 16 }
  0x6e   : > { %v1587_v33 = vsel %vm13540_vm3, %v1584_v3, %v1586_v14  ;;  %v740_v3 = vld [vmem:[%s9234_s16 + $0x80] sm:$0xff]  ;;  %v745_v23 = vadd.f32 %v9241_v6, %v743_v17 }
  0x6f   : > { %v724_v32 = vrot.slane %v722_v28, 7  ;;  %v742_v19 = vmul.f32 %v9224_v5, %v740_v3  ;;  %v9728_v17 = vld [vmem:[%s13401_s4] ss:$0 sm:$0xff] }
  0x70   : > { %v747_v7 = vmax.f32 %v745_v23, 0.0  ;;  %v821_v58 = vmul.f32 %v9728_v17, %v819_v50 }
  0x71   : > { %v727_v43 = vor.u32 %v725_v35, %v724_v32  ;;  %v744_v48 = vadd.f32 %v9241_v6, %v742_v19  ;;  %v779_v19 = vld [vmem:[%s9234_s16 + $0x90] sm:$0xff] }
  0x72   : > { %v9700_v31 = vld [vmem:[#allocation2 + $0x40] sm:$0xff] }
  0x73   : > { %8137 = vmatmul.msk.bf16.vlgmr.msrb.gmra.mxu1 %vm13534_vm2, %v9325_v9  ;;  %v716_v9 = vrot.slane %v714_v26, 7  ;;  %v746_v20 = vmax.f32 %v744_v48, 0.0  ;;  %v1588_v24 = vrot.slane %v9700_v31, 1  ;;  %v749_v26 = vpack.c.bf16 %v747_v7, %v747_v7  ;;  %v9740_v7 = vld [vmem:[%s13402_s5] ss:$0 sm:$0xff] }
  0x75   : > { %8238 = vmatmul.msk.bf16.gmra.mxu3 %vm13542_vm8, %v1904_v10  ;;  %v719_v53 = vor.u32 %v717_v30, %v716_v9  ;;  %v720_v63 = vrot.slane %v716_v9, 4  ;;  %v1218_v10 = vrot.slane %v1216_v27, 1  ;;  %vm13545_vm8 = vmmov %vm13540_vm3  ;;  %vm13547_vm3 = vsmask.f32 7424  ;;  %v9714_v30 = vld [vmem:[#allocation2 + $0x38] sm:$0xff] }
  0x76   : > { %v760_v9 = vshrl.u32 %v749_v26, 16 }
  0x77   : > { %v734_v57 = vsel %vm9554_vm7, %v719_v53, %v733_v1  ;;  %v728_v59 = vsel %vm9436_vm6, %v720_v63, %v727_v43  ;;  %v1219_v25 = vsel %vm13547_vm3, %v1214_v12, %v1218_v10  ;;  %v1220_v53 = vshrl.u32 %v9651_v15, 16  ;;  %vm13551_vm3 = vmmov %vm13545_vm8 }
  0x78   : > { %8125 = vmatmul.msk.bf16.gmra.mxu0 %vm13543_vm9, %v1211_v18  ;;  %735 = vst [vmem:[#allocation2 + $0x48] sm:$0xf] %v734_v57  ;;  %v1906_v18 = vsel %vm13545_vm8, %v1903_v52, %v1905_v55  ;;  %vm13546_vm9 = vmmov %vm13534_vm2  ;;  %v1589_v52 = vsel %vm13545_vm8, %v1586_v14, %v1588_v24  ;;  %v762_v36 = vrot.slane %v760_v9, 6  ;;  %v1224_v63 = vshll.u32 %v9671_v2, 16  ;;  %v737_v14 = vld [vmem:[#allocation2 + $0x50] sm:$0x1] }
  0x79   : > { %736 = vst.msk [vmem:[#allocation2 + $0x4c] sm:$0xf] %vm13544_vm4, %v728_v59  ;;  %vm13548_vm4 = vmmov %vm13534_vm2  ;;  %v729_v43 = vrot.slane %v724_v32, 4  ;;  %v772_v57 = vld [vmem:[#allocation2 + $0x50] sm:$0xe]  ;;  %v1907_v59 = vrot.slane %v9714_v30, 1  ;;  %v781_v32 = vmul.f32 %v9728_v17, %v779_v19 }
  0x7a   : > { %vm13553_vm8 = vmmov %vm13534_vm2 }
  0x7b   : > { %8160 = vmatmul.msk.bf16.gmra.mxu2 %vm13534_vm2, %v1587_v33  ;;  %v748_v33 = vpack.c.bf16 %v746_v20, %v746_v20  ;;  %v738_v11 = vsel %vm9446_vm10, %v729_v43, %v737_v14  ;;  %v1222_v20 = vor.u32 %v1220_v53, %v1218_v10  ;;  %v9753_v53 = vld [vmem:[#allocation2 + $0x40] sm:$0xff]  ;;  %v1228_v14 = vshrl.u32 %v9671_v2, 16 }
  0x7c   : > { %739 = vst [vmem:[#allocation2 + $0x50] sm:$0x1] %v738_v11 }
  0x7d   : > { %v751_v5 = vshrl.u32 %v748_v33, 16  ;;  %v754_v28 = vshll.u32 %v748_v33, 16  ;;  %v783_v33 = vadd.f32 %v9740_v7, %v781_v32  ;;  %v811_v32 = vld [vmem:[#allocation2 + $0x58] sm:$0xc] }
  0x7f   : > { %v753_v6 = vrot.slane %v751_v5, 6  ;;  %v756_v29 = vrot.slane %v754_v28, 7  ;;  %v785_v28 = vmax.f32 %v783_v33, 0.0 }
  0x80   : > { %v9734_v23 = vld [vmem:[#allocation2 + $0x48] sm:$0xff] }
  0x81   : > { %v757_v35 = vor.u32 %v756_v29, %v753_v6  ;;  %v1590_v10 = vrot.slane %v9734_v23, 1  ;;  %v787_v29 = vpack.c.bf16 %v785_v28, %v785_v28 }
  0x83   : > { %8138 = vmatmul.msk.bf16.gmra.mxu1 %vm13546_vm9, %v9368_v44  ;;  %v763_v44 = vshll.u32 %v749_v26, 16  ;;  %vm13549_vm9 = vmmov %vm13534_vm2  ;;  %v758_v1 = vrot.slane %v757_v35, 4  ;;  %v773_v12 = vsel %vm9307_vm14, %v757_v35, %v772_v57  ;;  %vm13550_vm14 = vcmask 27648  }
  0x84   : > { %774 = vst [vmem:[#allocation2 + $0x50] sm:$0xe] %v773_v12  ;;  %v1908_v26 = vsel %vm13551_vm3, %v1905_v55, %v1907_v59  ;;  %v793_v30 = vshll.u32 %v787_v29, 16  ;;  %v1232_v57 = vshll.u32 %v9700_v31, 16  ;;  %v776_v12 = vld [vmem:[#allocation2 + $0x58] sm:$0x3] }
  0x85   : > { %8239 = vmatmul.msk.bf16.gmra.mxu3 %vm13534_vm2, %v1906_v18  ;;  %v765_v27 = vrot.slane %v763_v44, 7  ;;  %v780_v18 = vld [vmem:[%s9234_s16 + $0x98] sm:$0xff]  ;;  %v790_v44 = vshrl.u32 %v787_v29, 16 }
  0x86   : > { %v782_v61 = vmul.f32 %v9728_v17, %v780_v18  ;;  %v1909_v18 = vrot.slane %v9753_v53, 1  ;;  %v1234_v28 = vrot.slane %v1232_v57, 1 }
  0x87   : > { %v766_v3 = vor.u32 %v765_v27, %v762_v36  ;;  %v792_v35 = vrot.slane %v790_v44, 5  ;;  %v795_v36 = vrot.slane %v793_v30, 6  ;;  %v823_v30 = vadd.f32 %v9740_v7, %v821_v58 }
  0x88   : > { %8126 = vmatmul.msk.bf16.gmra.mxu0 %vm13548_vm4, %v1219_v25  ;;  %v1226_v25 = vrot.slane %v1224_v63, 1  ;;  %v784_v5 = vadd.f32 %v9740_v7, %v782_v61  ;;  %vm13552_vm4 = vsmask.f32 7424 }
  0x89   : > { %v767_v48 = vsel %vm9290_vm12, %v758_v1, %v766_v3  ;;  %v796_v63 = vor.u32 %v795_v36, %v792_v35  ;;  %v768_v19 = vrot.slane %v766_v3, 4  ;;  %v825_v35 = vmax.f32 %v823_v30, 0.0 }
  0x8a   : > { %775 = vst.msk [vmem:[#allocation2 + $0x54] sm:$0xf] %vm13550_vm14, %v767_v48  ;;  %v786_v6 = vmax.f32 %v784_v5, 0.0  ;;  %vm13555_vm14 = vmmov %vm13551_vm3  ;;  %v818_v48 = vld [vmem:[%s9234_s16 + $0xa0] sm:$0xff]  ;;  %v1230_v5 = vor.u32 %v1228_v14, %v1226_v25 }
  0x8b   : > { %8161 = vmatmul.msk.bf16.gmra.mxu2 %vm13549_vm9, %v1589_v52  ;;  %v1227_v52 = vsel %vm13552_vm4, %v1222_v20, %v1226_v25  ;;  %vm13554_vm9 = vmmov %vm13534_vm2  ;;  %v1591_v55 = vsel %vm13555_vm14, %v1588_v24, %v1590_v10  ;;  %v797_v11 = vrot.slane %v796_v63, 4  ;;  %v777_v20 = vsel %vm9282_vm11, %v768_v19, %v776_v12  ;;  %v8284_v25 = vld [vmem:[%s13398_s1 + $0xa] sm:$0x3]  ;;  %v815_v12 = vld [vmem:[#allocation2 + $0x60] sm:$0x7] }
  0x8c   : > { %v788_v9 = vpack.c.bf16 %v786_v6, %v786_v6  ;;  %vm13556_vm3 = vmmov %vm13534_vm2  ;;  %v812_v61 = vsel %vm9298_vm13, %v796_v63, %v811_v32  ;;  %v820_v33 = vmul.f32 %v9728_v17, %v818_v48  ;;  %778 = vst [vmem:[#allocation2 + $0x58] sm:$0x3] %v777_v20  ;;  %v1235_v44 = vsel %vm13552_vm4, %v1230_v5, %v1234_v28  ;;  %v850_v32 = vld [vmem:[#allocation2 + $0x60] sm:$0x8] }
  0x8d   : > { %813 = vst [vmem:[#allocation2 + $0x58] sm:$0xc] %v812_v61  ;;  %vm13558_vm11 = vmmov %vm13555_vm14 }
  0x8e   : > { %v799_v27 = vshrl.u32 %v788_v9, 16  ;;  %v1910_v6 = vsel %vm13558_vm11, %v1907_v59, %v1909_v18  ;;  %vm13559_vm13 = vmmov %vm13556_vm3 }
  0x8f   : > { %vm13562_vm14 = vmmov %vm13556_vm3 }
  0x90   : > { %v801_v43 = vrot.slane %v799_v27, 5 }
  0x93   : > { %8139 = vmatmul.msk.bf16.gmra.mxu1 %vm13534_vm2, %v9471_v54  ;;  %v802_v54 = vshll.u32 %v788_v9, 16  ;;  %vm13557_vm2 = vcmask 27648  }
  0x95   : > { %8240 = vmatmul.msk.bf16.gmra.mxu3 %vm13553_vm8, %v1908_v26  ;;  %v804_v1 = vrot.slane %v802_v54, 6  ;;  %v9767_v26 = vld [vmem:[#allocation2 + $0x50] sm:$0xff]  ;;  %vm13560_vm8 = vmmov %vm13556_vm3  ;;  %v827_v54 = vpack.c.bf16 %v825_v35, %v825_v35 }
  0x96   : > { %v1592_v9 = vrot.slane %v9767_v26, 1 }
  0x97   : > { %v805_v24 = vor.u32 %v804_v1, %v801_v43  ;;  %v8933_v43 = vld [vmem:[#allocation2 + $0x48] sm:$0xff]  ;;  %v838_v14 = vshll.u32 %v827_v54, 16 }
  0x98   : > { %8127 = vmatmul.msk.bf16.gmra.mxu0 %vm13554_vm9, %v1227_v52  ;;  %v822_v52 = vadd.f32 %v9740_v7, %v820_v33  ;;  %vm13561_vm9 = vcmask 1041408   ;;  %v1911_v48 = vrot.slane %v8933_v43, 1  ;;  %v1236_v33 = vshrl.u32 %v9700_v31, 16 }
  0x99   : > { %v806_v3 = vsel %vm9319_vm15, %v797_v11, %v805_v24  ;;  %v2759_v59 = vsel %vm13561_vm9, %v8284_v25, 0  ;;  %v807_v57 = vrot.slane %v805_v24, 4  ;;  %v840_v11 = vrot.slane %v838_v14, 5 }
  0x9a   : > { %814 = vst.msk [vmem:[#allocation2 + $0x5c] sm:$0xf] %vm13557_vm2, %v806_v3  ;;  %v824_v29 = vmax.f32 %v822_v52, 0.0  ;;  %2768 = vmatpush.bf16.msrb.mxu2 %v2759_v59  ;;  %vm13564_vm2 = vmmov %vm13560_vm8  ;;  %v1240_v3 = vshll.u32 %v9734_v23, 16  ;;  %v1238_v52 = vor.u32 %v1236_v33, %v1234_v28  ;;  %vm13569_vm9 = vsmask.f32 7424 }
  0x9b   : > { %8162 = vmatmul.msk.bf16.gmra.mxu2 %vm13556_vm3, %v1591_v55  ;;  %vm13563_vm3 = vmmov %vm13558_vm11  ;;  %vm13565_vm11 = vnez %v13507_v45  ;;  %v1248_v14 = vshll.u32 %v9767_v26, 16 }
  0x9c   : > { %v826_v55 = vpack.c.bf16 %v824_v29, %v824_v29  ;;  %v816_v20 = vsel %vm13565_vm11, %v807_v57, %v815_v12  ;;  %v1242_v50 = vrot.slane %v1240_v3, 1  ;;  %vm13567_vm4 = vmmov %vm13563_vm3  ;;  %v1252_v3 = vshrl.u32 %v9767_v26, 16 }
  0x9d   : > { %817 = vst [vmem:[#allocation2 + $0x60] sm:$0x7] %v816_v20 }
  0x9e   : > { %v829_v36 = vshll.u32 %v826_v55, 16  ;;  %v832_v27 = vshrl.u32 %v826_v55, 16  ;;  %v1243_v29 = vsel %vm13569_vm9, %v1238_v52, %v1242_v50  ;;  %v8934_v55 = vld [vmem:[#allocation2 + $0x50] sm:$0xff] }
  0xa0   : > { %v831_v53 = vrot.slane %v829_v36, 5  ;;  %v834_v63 = vrot.slane %v832_v27, 4  ;;  %v871_v36 = vshll.u32 %v9330_v13, 16 }
  0xa1   : > { %v9795_v24 = vld [vmem:[#allocation2 + $0x58] sm:$0xff] }
  0xa2   : > { %v835_v1 = vor.u32 %v834_v63, %v831_v53  ;;  %v851_v61 = vsel %vm13536_vm1, %v831_v53, %v850_v32  ;;  %v1594_v58 = vrot.slane %v9795_v24, 1  ;;  %v1913_v53 = vrot.slane %v8934_v55, 1 }
  0xa3   : > { %8140 = vmatmul.msk.bf16.gmra.mxu1 %vm13559_vm13, %v9589_v16  ;;  %v1593_v16 = vsel %vm13563_vm3, %v1590_v10, %v1592_v9  ;;  %852 = vst [vmem:[#allocation2 + $0x60] sm:$0x8] %v851_v61  ;;  %vm13566_vm13 = vcmask 27648   ;;  %vm13571_vm3 = vmmov %vm13564_vm2  ;;  %v8935_v61 = vld [vmem:[#allocation2 + $0x58] sm:$0xff]  ;;  %v1256_v52 = vshll.u32 %v9795_v24, 16 }
  0xa4   : > { %v836_v19 = vrot.slane %v835_v1, 4  ;;  %v1244_v1 = vshrl.u32 %v9734_v23, 16  ;;  %vm13576_vm9 = vmmov %vm13571_vm3 }
  0xa5   : > { %8241 = vmatmul.msk.bf16.gmra.mxu3 %vm13560_vm8, %v1910_v6  ;;  %v1912_v6 = vsel %vm13567_vm4, %v1909_v18, %v1911_v48  ;;  %vm13568_vm8 = vmmov %vm13564_vm2  ;;  %v8365_v18 = vld [vmem:[%s13398_s1 + $0xc] sm:$0x3] }
  0xa6   : > { %v841_v10 = vsel %vm9529_vm5, %v836_v19, %v840_v11  ;;  %v1246_v57 = vor.u32 %v1244_v1, %v1242_v50  ;;  %v1250_v19 = vrot.slane %v1248_v14, 1 }
  0xa7   : > { %853 = vst.msk [vmem:[#allocation2 + $0x64] sm:$0xf] %vm13566_vm13, %v841_v10  ;;  %vm13573_vm13 = vcmask 1041408  }
  0xa8   : > { %8128 = vmatmul.msk.bf16.gmra.mxu0 %vm13562_vm14, %v1235_v44  ;;  %vm13570_vm14 = vmmov %vm13564_vm2  ;;  %v842_v44 = vshrl.u32 %v827_v54, 16  ;;  %v3082_v59 = vsel %vm13573_vm13, %v8365_v18, 0  ;;  %v887_v54 = vld [vmem:[#allocation2 + $0x6c] sm:$0xf] }
  0xa9   : > { %3091 = vmatpush.bf16.msrb.mxu3 %v3082_v59 }
  0xaa   : > { %v844_v28 = vrot.slane %v842_v44, 4  ;;  %v1258_v44 = vrot.slane %v1256_v52, 1 }
  0xab   : > { %8163 = vmatmul.msk.bf16.gmra.mxu2 %vm13564_vm2, %v1593_v16  ;;  %vm13572_vm2 = vmmov %vm13567_vm4  ;;  %v873_v16 = vor.u32 %v871_v36, %v9364_v39 }
  0xac   : > { %v1595_v25 = vsel %vm13572_vm2, %v1592_v9, %v1594_v58  ;;  %v845_v35 = vor.u32 %v844_v28, %v840_v11  ;;  %vm13574_vm4 = vmmov %vm13571_vm3  ;;  %v854_v9 = vld [vmem:[#allocation2 + $0x68] sm:$0xf] }
  0xad   : > { %v9797_v5 = vpop.f32.mrf.mxu0  ;;  %v888_v43 = vsel %vm9554_vm7, %v873_v16, %v887_v54 }
  0xae   : > { %v846_v27 = vrot.slane %v845_v35, 4  ;;  %v9823_v13 = vld [vmem:[#allocation2 + $0x60] sm:$0xff]  ;;  %889 = vst [vmem:[#allocation2 + $0x6c] sm:$0xf] %v888_v43 }
  0xaf   : > { %v1596_v32 = vrot.slane %v9823_v13, 1  ;;  %v8936_v36 = vld [vmem:[#allocation2 + $0x60] sm:$0xff]  ;;  %v1264_v54 = vshll.u32 %v9823_v13, 16  ;;  %v1268_v52 = vshrl.u32 %v9823_v13, 16 }
  0xb0   : > { %v855_v63 = vsel %vm9538_vm0, %v846_v27, %v854_v9  ;;  %v1917_v16 = vrot.slane %v8936_v36, 1  ;;  %v1260_v9 = vshrl.u32 %v9795_v24, 16 }
  0xb1   : > { %856 = vst [vmem:[#allocation2 + $0x68] sm:$0xf] %v855_v63  ;;  %v1266_v1 = vrot.slane %v1264_v54, 1 }
  0xb2   : > { %v9830_v12 = vpop.f32.mrf.mxu3  ;;  %v1262_v43 = vor.u32 %v1260_v9, %v1258_v44  ;;  %v1602_v9 = vrot.slane %v9576_v46, 1  ;;  %v9919_v46 = vld [vmem:[#allocation2 + $0x70] sm:$0xff] }
  0xb3   : > { %8141 = vmatmul.msk.bf16.gmra.mxu1 %vm13568_vm8, %v9596_v62  ;;  %vm13575_vm8 = vmmov %vm13572_vm2 }
  0xb4   : > { %v1914_v39 = vsel %vm13575_vm8, %v1911_v48, %v1913_v53  ;;  %vm13578_vm2 = vmmov %vm13571_vm3 }
  0xb5   : > { %8242 = vmatmul.msk.bf16.gmra.mxu3 %vm13570_vm14, %v1912_v6  ;;  %v9808_v30 = vpop.f32.mrf.mxu0  ;;  %vm13577_vm14 = vsmask.f32 7424  ;;  %vm13579_vm13 = vmmov %vm13575_vm8 }
  0xb6   : > { %v1251_v20 = vsel %vm13577_vm14, %v1246_v57, %v1250_v19  ;;  %v1597_v10 = vsel %vm13579_vm13, %v1594_v58, %v1596_v32  ;;  %vm13583_vm13 = vmmov %vm13575_vm8  ;;  %v1600_v57 = vrot.slane %v9560_v21, 1 }
  0xb8   : > { %8129 = vmatmul.msk.bf16.gmra.mxu0 %vm13571_vm3, %v1243_v29  ;;  %v9844_v50 = vld [vmem:[#allocation2 + $0x68] sm:$0xff]  ;;  %v1254_v29 = vor.u32 %v1252_v3, %v1250_v19 }
  0xba   : > { %v9840_v48 = vpop.f32.mrf.mxu3  ;;  %v1259_v18 = vsel %vm13577_vm14, %v1254_v29, %v1258_v44  ;;  %v1272_v29 = vshll.u32 %v9844_v50, 16 }
  0xbb   : > { %8164 = vmatmul.msk.bf16.gmra.mxu2 %vm13574_vm4, %v1595_v25  ;;  %vm13580_vm4 = vmmov %vm13578_vm2  ;;  %v1598_v25 = vrot.slane %v9844_v50, 1 }
  0xbd   : > { %v1599_v59 = vsel %vm13583_vm13, %v1596_v32, %v1598_v25  ;;  %vm13587_vm13 = vmmov %vm13575_vm8 }
  0xbf   : > { %v9826_v11 = vpop.f32.mrf.mxu0 }
  0xc3   : > { %8142 = vmatmul.msk.bf16.gmra.mxu1 %vm13576_vm9, %v9615_v42  ;;  %v1915_v42 = vrot.slane %v8935_v61, 1  ;;  %vm13581_vm9 = vmmov %vm13578_vm2 }
  0xc5   : > { %8243 = vmatmul.msk.bf16.gmra.mxu3 %vm13571_vm3, %v1914_v39  ;;  %v1916_v58 = vsel %vm13575_vm8, %v1913_v53, %v1915_v42  ;;  %vm13582_vm3 = vmmov %vm13578_vm2  ;;  %v1918_v14 = vsel %vm13575_vm8, %v1915_v42, %v1917_v16  ;;  %v1267_v39 = vsel %vm13577_vm14, %v1262_v43, %v1266_v1  ;;  %v8937_v42 = vld [vmem:[#allocation2 + $0x68] sm:$0xff] }
  0xc6   : > { %v1919_v3 = vrot.slane %v8937_v42, 1 }
  0xc7   : > { %v9837_v33 = vpop.f32.mrf.mxu0 }
  0xc8   : > { %8130 = vmatmul.msk.bf16.gmra.mxu0 %vm13578_vm2, %v1251_v20  ;;  %v1920_v36 = vsel %vm13575_vm8, %v1917_v16, %v1919_v3 }
  0xcb   : > { %8165 = vmatmul.msk.bf16.gmra.mxu2 %vm13580_vm4, %v1597_v10  ;;  %vm13584_vm4 = vmmov %vm13578_vm2  ;;  %v1601_v10 = vsel %vm13587_vm13, %v1598_v25, %v1600_v57  ;;  %v1274_v25 = vrot.slane %v1272_v29, 1 }
  0xcc   : > { %vm13593_vm13 = vmmov %vm13575_vm8 }
  0xd0   : > { %v9846_v6 = vpop.f32.mrf.mxu1 }
  0xd3   : > { %8143 = vmatmul.msk.bf16.gmra.mxu1 %vm13581_vm9, %v9651_v15  ;;  %vm13585_vm9 = vmmov %vm13578_vm2 }
  0xd5   : > { %v9852_v28 = vpop.f32.mrf.mxu0  ;;  %8244 = vmatmul.msk.bf16.gmra.mxu3 %vm13582_vm3, %v1916_v58  ;;  %vm13586_vm3 = vmmov %vm13578_vm2 }
  0xd8   : > { %8131 = vmatmul.msk.bf16.gmra.mxu0 %vm13578_vm2, %v1259_v18  ;;  %v9857_v55 = vpop.f32.mrf.mxu3  ;;  %v9860_v35 = vpop.f32.mrf.mxu1  ;;  %v1270_v18 = vor.u32 %v1268_v52, %v1266_v1 }
  0xda   : > { %v1275_v43 = vsel %vm13577_vm14, %v1270_v18, %v1274_v25  ;;  %v1276_v18 = vshrl.u32 %v9844_v50, 16 }
  0xdb   : > { %8166 = vmatmul.msk.bf16.gmra.mxu2 %vm13584_vm4, %v1599_v59  ;;  %vm13588_vm4 = vmmov %vm13578_vm2 }
  0xdd   : > { %v9863_v15 = vpop.f32.mrf.mxu0 }
  0xde   : > { %v9865_v27 = vpop.f32.mrf.mxu2 }
  0xe0   : > { %v9869_v53 = vpop.f32.mrf.mxu3  ;;  %v9871_v63 = vpop.f32.mrf.mxu1 }
  0xe3   : > { %8144 = vmatmul.msk.bf16.gmra.mxu1 %vm13585_vm9, %v9671_v2  ;;  %vm13590_vm9 = vmmov %vm13578_vm2 }
  0xe5   : > { %v9877_v19 = vpop.f32.mrf.mxu0  ;;  %8245 = vmatmul.msk.bf16.gmra.mxu3 %vm13586_vm3, %v1918_v14  ;;  %vm13591_vm3 = vmmov %vm13578_vm2 }
  0xe6   : > { %v9881_v32 = vpop.f32.mrf.mxu2 }
  0xe8   : > { %8132 = vmatmul.msk.bf16.gmra.mxu0 %vm13578_vm2, %v1267_v39  ;;  %v9884_v20 = vpop.f32.mrf.mxu3  ;;  %v9887_v61 = vpop.f32.mrf.mxu1  ;;  %v972_v39 = vld [vmem:[%s9234_s16 + $0xe0] sm:$0xff] }
  0xeb   : > { %8167 = vmatmul.msk.bf16.gmra.mxu2 %vm13588_vm4, %v1601_v10  ;;  %v974_v10 = vmul.f32 %v9728_v17, %v972_v39  ;;  %vm13594_vm4 = vmmov %vm13578_vm2  ;;  %v961_v39 = vrot.slane %v9550_v22, 4  ;;  %v969_v22 = vld [vmem:[#allocation2 + $0x84] sm:$0x7] }
  0xed   : > { %v9890_v21 = vpop.f32.mrf.mxu0  ;;  %v976_v52 = vadd.f32 %v9740_v7, %v974_v10 }
  0xee   : > { %v9892_v2 = vpop.f32.mrf.mxu2 }
  0xf0   : > { %v9896_v44 = vpop.f32.mrf.mxu3  ;;  %v1486_v58 = vpop.f32.mrf.mxu1 }
  0xf1   : > { %13589 = vst [vmem:[#allocation14_spill] sm:$0xff] %v9896_v44  ;;  %v9899_v59 = vadd.f32 %v1486_v58, %v9797_v5  ;;  %v1603_v5 = vsel %vm13593_vm13, %v1600_v57, %v1602_v9  ;;  %v1921_v58 = vrot.slane %v9919_v46, 1  ;;  %v978_v57 = vmax.f32 %v976_v52, 0.0  ;;  %vm13598_vm13 = vmmov %vm13575_vm8 }
  0xf2   : > { %v1604_v46 = vrot.slane %v9611_v38, 1 }
  0xf3   : > { %8145 = vmatmul.msk.bf16.gmra.mxu1 %vm13590_vm9, %v9700_v31  ;;  %v1922_v10 = vsel %vm13575_vm8, %v1919_v3, %v1921_v58  ;;  %vm13596_vm9 = vmmov %vm13578_vm2  ;;  %v1004_v3 = vld [vmem:[#allocation2 + $0x84] sm:$0x8] }
  0xf5   : > { %v9905_v54 = vpop.f32.mrf.mxu0  ;;  %8246 = vmatmul.msk.bf16.gmra.mxu3 %vm13591_vm3, %v1920_v36  ;;  %vm13597_vm3 = vmmov %vm13578_vm2 }
  0xf6   : > { %v9909_v14 = vpop.f32.mrf.mxu2 }
  0xf8   : > { %8133 = vmatmul.msk.bf16.gmra.mxu0 %vm13578_vm2, %v1275_v43  ;;  %v9912_v1 = vpop.f32.mrf.mxu3  ;;  %v1488_v16 = vpop.f32.mrf.mxu1 }
  0xf9   : > { %13592 = vst [vmem:[#allocation15_spill] sm:$0xff] %v9912_v1  ;;  %v9917_v31 = vadd.f32 %v1488_v16, %v9808_v30  ;;  %v980_v30 = vpack.c.bf16 %v978_v57, %v978_v57  ;;  %v1278_v16 = vor.u32 %v1276_v18, %v1274_v25  ;;  %v973_v18 = vld [vmem:[%s9234_s16 + $0xe8] sm:$0xff] }
  0xfb   : > { %8168 = vmatmul.msk.bf16.gmra.mxu2 %vm13594_vm4, %v1603_v5  ;;  %v983_v4 = vshll.u32 %v980_v30, 16  ;;  %v1283_v57 = vsel %vm13577_vm14, %v1278_v16, %v9580_v56  ;;  %vm13602_vm4 = vmmov %vm13578_vm2  ;;  %vm13448_vm14 = vcmask 1045504  }
  0xfd   : > { %v9923_v42 = vpop.f32.mrf.mxu0  ;;  %v985_v41 = vrot.slane %v983_v4, 5  ;;  %v1605_v4 = vsel %vm13598_vm13, %v1602_v9, %v1604_v46  ;;  %v9052_v46 = vld [vmem:[#allocation2] sm:$0xf0]  ;;  %vm13607_vm13 = vmmov %vm13602_vm4 }
  0xfe   : > { %v9926_v29 = vpop.f32.mrf.mxu2 }
  0xff   : > { %v1005_v38 = vsel %vm13536_vm1, %v985_v41, %v1004_v3  ;;  %vm13600_vm1 = vmmov %vm13575_vm8 }
 0x100   : > { %v9930_v36 = vpop.f32.mrf.mxu3  ;;  %v1491_v43 = vpop.f32.mrf.mxu1  ;;  %1006 = vst [vmem:[#allocation2 + $0x84] sm:$0x8] %v1005_v38  ;;  %v9053_v38 = vld [vmem:[#allocation2] sm:$0xe]  ;;  %vm13603_vm8 = vmmov %vm13600_vm1 }
 0x101   : > { %13595 = vst [vmem:[#allocation16_spill] sm:$0xff] %v9930_v36  ;;  %v9934_v5 = vadd.f32 %v1491_v43, %v9826_v11  ;;  %v970_v11 = vsel %vm13565_vm11, %v961_v39, %v969_v22  ;;  %v8939_v39 = vld [vmem:[#allocation2 + $0x78] sm:$0xff]  ;;  %vm13599_vm11 = vmmov %vm13578_vm2  ;;  %v8287_v22 = vld [vmem:[#allocation2 + $0x8] sm:$0xc] }
 0x102   : > { %971 = vst [vmem:[#allocation2 + $0x84] sm:$0x7] %v970_v11  ;;  %v1923_v9 = vrot.slane %v8939_v39, 1 }
 0x103   : > { %8146 = vmatmul.msk.bf16.gmra.mxu1 %vm13596_vm9, %v9734_v23  ;;  %v975_v23 = vmul.f32 %v9728_v17, %v973_v18  ;;  %v8941_v17 = vld [vmem:[#allocation2 + $0x8] sm:$0xf0]  ;;  %vm13604_vm9 = vmmov %vm13578_vm2 }
 0x105   : > { %v9940_v52 = vpop.f32.mrf.mxu0  ;;  %8247 = vmatmul.msk.bf16.gmra.mxu3 %vm13597_vm3, %v1922_v10  ;;  %v977_v16 = vadd.f32 %v9740_v7, %v975_v23  ;;  %v9054_v7 = vor.u32 %v9053_v38, %v9052_v46  ;;  %vm13605_vm3 = vcmask 1041408  }
 0x106   : > { %v9945_v25 = vpop.f32.mrf.mxu2 }
 0x107   : > { %v979_v10 = vmax.f32 %v977_v16, 0.0 }
 0x108   : > { %8134 = vmatmul.msk.bf16.gmra.mxu0 %vm13578_vm2, %v1283_v57  ;;  %v9954_v56 = vpop.f32.mrf.mxu3  ;;  %v1493_v43 = vpop.f32.mrf.mxu1  ;;  %v986_v57 = vshrl.u32 %v980_v30, 16  ;;  %v1573_v30 = vrot.slane %v9054_v7, 1  ;;  %vm13606_vm2 = vcmask 27648  }
 0x109   : > { %v9959_v45 = vadd.f32 %v1493_v43, %v9837_v33  ;;  %v981_v11 = vpack.c.bf16 %v979_v10, %v979_v10 }
 0x10a   : > { %v988_v3 = vrot.slane %v986_v57, 4  ;;  %v1924_v57 = vsel %vm13600_vm1, %v1921_v58, %v1923_v9  ;;  %v2309_v58 = vsel %vm13605_vm3, %v8251_v51, 0  ;;  %vm13611_vm3 = vmmov %vm13602_vm4 }
 0x10b   : > { %8169 = vmatmul.msk.bf16.gmra.mxu2 %vm13599_vm11, %v1605_v4  ;;  %v992_v33 = vshll.u32 %v981_v11, 16  ;;  %v8288_v4 = vor.u32 %v8941_v17, %v8287_v22  ;;  %v1575_v22 = vsel %vm13603_vm8, %v1573_v30, %v1574_v37  ;;  %2318 = vmatpush.bf16.msra.mxu0 %v2309_v58  ;;  %vm13608_vm11 = vmmov %vm13602_vm4  ;;  %v8943_v30 = vld [vmem:[#allocation2 + $0x18] sm:$0xff] }
 0x10c   : > { %v989_v23 = vor.u32 %v988_v3, %v985_v41  ;;  %v2678_v3 = vrot.slane %v8942_v8, 2  ;;  %v2680_v58 = vrot.slane %v8943_v30, 2  ;;  %vm13609_vm8 = vmmov %vm13600_vm1 }
 0x10d   : > { %v9962_v49 = vpop.f32.mrf.mxu0  ;;  %v9972_v39 = vrot.slane %v992_v33, 5  ;;  %v2677_v41 = vrot.slane %v8288_v4, 2 }
 0x10e   : > { %v9964_v18 = vpop.f32.mrf.mxu2  ;;  %v990_v34 = vrot.slane %v989_v23, 4 }
 0x10f   : > { %13601 = vst [vmem:[#allocation17_spill] sm:$0xff] %v9972_v39  ;;  %v2679_v17 = vsel %vm13448_vm14, %v2677_v41, %v2678_v3 }
 0x110   : > { %v9966_v43 = vpop.f32.mrf.mxu3  ;;  %v1496_v16 = vpop.f32.mrf.mxu1 }
 0x111   : > { %v9969_v10 = vadd.f32 %v1496_v16, %v9852_v28  ;;  %v995_v28 = vsel %vm9529_vm5, %v990_v34, %v9972_v39  ;;  %v8940_v34 = vld [vmem:[#allocation2 + $0x80] sm:$0xff] }
 0x112   : > { %1007 = vst.msk [vmem:[#allocation2 + $0x88] sm:$0xf] %vm13606_vm2, %v995_v28  ;;  %v1925_v4 = vrot.slane %v8940_v34, 1  ;;  %vm13612_vm2 = vmmov %vm13611_vm3 }
 0x113   : > { %8147 = vmatmul.msk.bf16.gmra.mxu1 %vm13602_vm4, %v9767_v26 }
 0x115   : > { %v9976_v46 = vpop.f32.mrf.mxu0  ;;  %8248 = vmatmul.msk.bf16.gmra.mxu3 %vm13604_vm9, %v1924_v57  ;;  %vm13610_vm9 = vmmov %vm13602_vm4 }
 0x116   : > { %v9988_v8 = vpop.f32.mrf.mxu2 }
 0x118   : > { %8154 = vmatmul.msk.bf16.vlgmr.msrb.gmra.mxu0 %vm13607_vm13, %v1575_v22  ;;  %v9991_v26 = vpop.f32.mrf.mxu3  ;;  %v1498_v38 = vpop.f32.mrf.mxu1  ;;  %v9097_v22 = vld [vmem:[#allocation2 + $0x10] sm:$0xff]  ;;  %vm13613_vm13 = vmmov %vm13600_vm1 }
 0x119   : > { %v9995_v7 = vadd.f32 %v1498_v38, %v9863_v15  ;;  %v1576_v51 = vrot.slane %v9097_v22, 1  ;;  %v1926_v15 = vsel %vm13600_vm1, %v1923_v9, %v1925_v4  ;;  %v1810_v28 = vld [vmem:[#allocation2 + $0x88] sm:$0x1]  ;;  %v996_v38 = vshrl.u32 %v981_v11, 16 }
 0x11b   : > { %8349 = vmatmul.msk.bf16.vlgmr.msrb.gmra.mxu2 %vm13608_vm11, %v2679_v17  ;;  %v1577_v34 = vsel %vm13609_vm8, %v1574_v37, %v1576_v51  ;;  %v10016_v22 = vrot.slane %v996_v38, 4  ;;  %vm13615_vm11 = vmmov %vm13612_vm2 }
 0x11c   : > { %vm13618_vm8 = vmmov %vm13612_vm2 }
 0x11d   : > { %v9998_v23 = vpop.f32.mrf.mxu0 }
 0x11e   : > { %v10000_v33 = vpop.f32.mrf.mxu2 }
 0x120   : > { %v10002_v16 = vpop.f32.mrf.mxu3  ;;  %v1501_v57 = vpop.f32.mrf.mxu1 }
 0x121   : > { %v10005_v41 = vadd.f32 %v1501_v57, %v9877_v19  ;;  %v1878_v19 = vunpack.c.l.b16 %v1810_v28  ;;  %v2681_v57 = vsel %vm13448_vm14, %v2678_v3, %v2680_v58  ;;  %v9098_v3 = vld [vmem:[#allocation2 + $0x18] sm:$0xff] }
 0x122   : > { %v1578_v1 = vrot.slane %v9098_v3, 1 }
 0x123   : > { %8148 = vmatmul.msk.bf16.gmra.mxu1 %vm13602_vm4, %v9795_v24  ;;  %v1895_v37 = vpack.c.b16 %v1878_v19, %v1878_v19  ;;  %vm13616_vm4 = vmmov %vm13612_vm2 }
 0x124   : > { %v1579_v44 = vsel %vm13600_vm1, %v1576_v51, %v1578_v1  ;;  %v8957_v51 = vld [vmem:[#allocation2 + $0x18] sm:$0xff] }
 0x125   : > { %v10010_v17 = vpop.f32.mrf.mxu0  ;;  %8249 = vmatmul.msk.bf16.gmra.mxu3 %vm13610_vm9, %v1926_v15  ;;  %v1927_v28 = vrot.slane %v1895_v37, 1  ;;  %vm13620_vm9 = vmmov %vm13612_vm2 }
 0x126   : > { %v10014_v40 = vpop.f32.mrf.mxu2 }
 0x127   : > { %v1928_v0 = vsel %vm13613_vm13, %v1925_v4, %v1927_v28 }
 0x128   : > { %8155 = vmatmul.msk.bf16.gmra.mxu0 %vm13611_vm3, %v1577_v34  ;;  %v10019_v9 = vpop.f32.mrf.mxu3  ;;  %v1503_v30 = vpop.f32.mrf.mxu1  ;;  %vm13622_vm3 = vmmov %vm13612_vm2 }
 0x129   : > { %v10025_v11 = vadd.f32 %v1503_v30, %v9890_v21  ;;  %v2882_v21 = vld [vmem:[#allocation2 + $0x10] sm:$0xc]  ;;  %v10036_v30 = vld [vmem:[#allocation2 + $0x14] sm:$0xf]  ;;  %vm13625_vm13 = vmmov %vm13622_vm3 }
 0x12a   : > { %13614 = vst [vmem:[#allocation18_spill] sm:$0xff] %v10036_v30 }
 0x12b   : > { %8350 = vmatmul.msk.bf16.gmra.mxu2 %vm13612_vm2, %v2681_v57  ;;  %v2682_v57 = vrot.slane %v8944_v60, 2  ;;  %vm13624_vm2 = vmmov %vm13600_vm1 }
 0x12c   : > { %vm13628_vm1 = vmmov %vm13622_vm3 }
 0x12d   : > { %v10028_v15 = vpop.f32.mrf.mxu0  ;;  %v2683_v60 = vsel %vm13448_vm14, %v2680_v58, %v2682_v57 }
 0x12e   : > { %v10030_v38 = vpop.f32.mrf.mxu2 }
 0x130   : > { %v10032_v34 = vpop.f32.mrf.mxu3  ;;  %v1506_v36 = vpop.f32.mrf.mxu1 }
 0x131   : > { %v1507_v24 = vadd.f32 %v1506_v36, %v9905_v54  ;;  %v2950_v54 = vunpack.c.l.b16 %v2882_v21  ;;  %v13437_v36 = vunpack.c.l.b16 %v10036_v30 }
 0x133   : > { %v1754_v19 = vadd.f32 %v9865_v27, %v1507_v24  ;;  %8149 = vmatmul.msk.bf16.gmra.mxu1 %vm13615_vm11, %v9823_v13  ;;  %vm13627_vm11 = vmmov %vm13622_vm3 }
 0x135   : > { %v10041_v37 = vpop.f32.mrf.mxu0  ;;  %8250 = vmatmul.msk.bf16.gmra.mxu3 %vm13616_vm4, %v1928_v0  ;;  %v10049_v4 = vadd.f32 %v9954_v56, %v1754_v19  ;;  %v10058_v0 = vpack.c.b16 %v13437_v36, %v2950_v54  ;;  %v3001_v19 = vrot.slane %v8957_v51, 2  ;;  %v13623_v51 = vrot.slane %v9596_v62, 1 }
 0x136   : > { %v10045_v3 = vpop.f32.mrf.mxu2  ;;  %v2109_v62 = vshrl.u32 %v9371_v47, 16  ;;  %vm13444_vm4 = vsmask.f32 6400 }
 0x137   : > { %13617 = vst [vmem:[#allocation19_spill] sm:$0xff] %v10049_v4 }
 0x138   : > { %8156 = vmatmul.msk.bf16.gmra.mxu0 %vm13618_vm8, %v1579_v44  ;;  %v10052_v27 = vpop.f32.mrf.mxu3  ;;  %v1508_v13 = vpop.f32.mrf.mxu1  ;;  %13619 = vst [vmem:[#allocation20_spill] sm:$0xff] %v10058_v0  ;;  %v3000_v44 = vrot.slane %v10058_v0, 2  ;;  %vm13630_vm8 = vmmov %vm13628_vm1 }
 0x139   : > { %v1509_v24 = vadd.f32 %v1508_v13, %v9923_v42  ;;  %v8945_v13 = vld [vmem:[#allocation2 + $0x28] sm:$0xff] }
 0x13b   : > { %8351 = vmatmul.msk.bf16.gmra.mxu2 %vm13620_vm9, %v2683_v60  ;;  %v1755_v28 = vadd.f32 %v9881_v32, %v1509_v24  ;;  %v3002_v60 = vsel %vm13448_vm14, %v3000_v44, %v3001_v19  ;;  %v2684_v24 = vrot.slane %v8945_v13, 2  ;;  %v10093_v13 = vld [vmem:[#allocation2 + $0x20] sm:$0xff]  ;;  %vm13631_vm9 = vmmov %vm13628_vm1 }
 0x13d   : > { %v10062_v56 = vpop.f32.mrf.mxu0  ;;  %v10068_v58 = vadd.f32 %v9966_v43, %v1755_v28  ;;  %v1581_v43 = vsel %vm13624_vm2, %v1578_v1, %v13623_v51  ;;  %v2112_v1 = vshll.u32 %v9371_v47, 16 }
 0x13e   : > { %v10064_v21 = vpop.f32.mrf.mxu2 }
 0x13f   : > { %13621 = vst [vmem:[#allocation21_spill] sm:$0xff] %v10068_v58  ;;  %v2114_v0 = vrot.slane %v2112_v1, 2 }
 0x140   : > { %v10070_v42 = vpop.f32.mrf.mxu3  ;;  %v1511_v30 = vpop.f32.mrf.mxu1 }
 0x141   : > { %v1512_v54 = vadd.f32 %v1511_v30, %v9940_v52 }
 0x143   : > { %v1756_v32 = vadd.f32 %v9892_v2, %v1512_v54  ;;  %8150 = vmatmul.msk.bf16.gmra.mxu1 %vm13622_vm3, %v9844_v50  ;;  %v2685_v50 = vsel %vm13448_vm14, %v2682_v57, %v2684_v24  ;;  %v9099_v54 = vld [vmem:[#allocation2 + $0x10] sm:$0xff]  ;;  %v3003_v57 = vrot.slane %v10093_v13, 2  ;;  %vm13632_vm3 = vcmask 1041408  }
 0x144   : > { %v2120_v51 = vshll.u32 %v9099_v54, 16  ;;  %vm13633_vm2 = vmmov %vm13632_vm3 }
 0x145   : > { %v10077_v36 = vpop.f32.mrf.mxu0  ;;  %8426 = vmatmul.msk.bf16.vlgmr.msrb.gmra.mxu3 %vm13625_vm13, %v3002_v60  ;;  %v10086_v52 = vadd.f32 %v9991_v26, %v1756_v32  ;;  %v2117_v60 = vshrl.u32 %v9099_v54, 16  ;;  %v8946_v54 = vld [vmem:[#allocation2 + $0x30] sm:$0xff]  ;;  %vm13635_vm13 = vmmov %vm13628_vm1 }
 0x146   : > { %v10083_v28 = vpop.f32.mrf.mxu2  ;;  %v2122_v47 = vrot.slane %v2120_v51, 2  ;;  %v2686_v1 = vrot.slane %v8946_v54, 2  ;;  %v8959_v54 = vld [vmem:[#allocation2 + $0x28] sm:$0xff] }
 0x147   : > { %13626 = vst [vmem:[#allocation22_spill] sm:$0xff] %v10086_v52  ;;  %v2119_v52 = vrot.slane %v2117_v60, 1 }
 0x148   : > { %8157 = vmatmul.msk.bf16.gmra.mxu0 %vm13627_vm11, %v1581_v43  ;;  %v10089_v2 = vpop.f32.mrf.mxu3  ;;  %v1513_v30 = vpop.f32.mrf.mxu1  ;;  %vm13636_vm11 = vmmov %vm13628_vm1 }
 0x149   : > { %v1514_v44 = vadd.f32 %v1513_v30, %v9962_v49  ;;  %v2111_v30 = vrot.slane %v2109_v62, 1  ;;  %v2123_v39 = vor.u32 %v2122_v47, %v2119_v52  ;;  %v9100_v62 = vld [vmem:[#allocation2 + $0x70] sm:$0xff] }
 0x14b   : > { %8352 = vmatmul.msk.bf16.gmra.mxu2 %vm13628_vm1, %v2685_v50  ;;  %v1757_v26 = vadd.f32 %v9909_v14, %v1514_v44  ;;  %v2115_v50 = vor.u32 %v2114_v0, %v2111_v30  ;;  %v3004_v44 = vsel %vm13448_vm14, %v3001_v19, %v3003_v57  ;;  %v8442_v0 = vld [vmem:[%s13398_s1 + $0xe] sm:$0x3] }
 0x14d   : > { %v10099_v32 = vpop.f32.mrf.mxu0  ;;  %v10105_v49 = vadd.f32 %v10002_v16, %v1757_v26  ;;  %v10112_v13 = vsel %vm13444_vm4, %v2115_v50, %v2123_v39  ;;  %v2687_v26 = vsel %vm13448_vm14, %v2684_v24, %v2686_v1 }
 0x14e   : > { %v10101_v43 = vpop.f32.mrf.mxu2 }
 0x14f   : > { %13629 = vst [vmem:[#allocation23_spill] sm:$0xff] %v10105_v49 }
 0x150   : > { %v10107_v58 = vpop.f32.mrf.mxu3  ;;  %v1516_v4 = vpop.f32.mrf.mxu1 }
 0x151   : > { %v1517_v14 = vadd.f32 %v1516_v4, %v9976_v46  ;;  %v8459_v46 = vld [vmem:[%s13398_s1 + $0x10] sm:$0x3]  ;;  %v3413_v4 = vsel %vm13632_vm3, %v8442_v0, 0  ;;  %v3005_v0 = vrot.slane %v8959_v54, 2  ;;  %vm13641_vm3 = vmmov %vm13628_vm1 }
 0x152   : > { %3422 = vmatpush.bf16.msrb.mxu0 %v3413_v4 }
 0x153   : > { %v1758_v16 = vadd.f32 %v9926_v29, %v1517_v14  ;;  %8151 = vmatmul.msk.bf16.gmra.mxu1 %vm13630_vm8, %v9100_v62  ;;  %v3625_v29 = vsel %vm13633_vm2, %v8459_v46, 0  ;;  %vm13638_vm8 = vmmov %vm13628_vm1 }
 0x154   : > { %3634 = vmatpush.bf16.msrb.mxu1 %v3625_v29 }
 0x155   : > { %v10116_v60 = vpop.f32.mrf.mxu0  ;;  %8427 = vmatmul.msk.bf16.gmra.mxu3 %vm13631_vm9, %v3004_v44  ;;  %v10130_v52 = vadd.f32 %v10019_v9, %v1758_v16  ;;  %v9101_v44 = vld [vmem:[#allocation2 + $0x18] sm:$0xff]  ;;  %vm13640_vm9 = vmmov %vm13628_vm1 }
 0x156   : > { %v10127_v19 = vpop.f32.mrf.mxu2  ;;  %v2126_v9 = vshrl.u32 %v9101_v44, 16  ;;  %v2129_v16 = vshll.u32 %v9101_v44, 16  ;;  %v9102_v44 = vld [vmem:[#allocation2 + $0x78] sm:$0xff] }
 0x157   : > { %13634 = vst [vmem:[#allocation24_spill] sm:$0xff] %v10130_v52 }
 0x158   : > { %8252 = vmatmul.msk.bf16.vlgmr.msra.gmra.mxu0 %vm13635_vm13, %v10112_v13  ;;  %v10134_v51 = vpop.f32.mrf.mxu3  ;;  %v1518_v30 = vpop.f32.mrf.mxu1  ;;  %v2128_v24 = vrot.slane %v2126_v9, 1  ;;  %v2131_v4 = vrot.slane %v2129_v16, 2  ;;  %vm13643_vm13 = vmmov %vm13628_vm1 }
 0x159   : > { %v1519_v47 = vadd.f32 %v1518_v30, %v9998_v23  ;;  %v8947_v23 = vld [vmem:[#allocation2 + $0x38] sm:$0xff] }
 0x15a   : > { %v2688_v54 = vrot.slane %v8947_v23, 2  ;;  %v9103_v23 = vld [vmem:[#allocation2 + $0x20] sm:$0xff] }
 0x15b   : > { %8353 = vmatmul.msk.bf16.gmra.mxu2 %vm13636_vm11, %v2687_v26  ;;  %v1759_v50 = vadd.f32 %v9945_v25, %v1519_v47  ;;  %v2132_v26 = vor.u32 %v2131_v4, %v2128_v24  ;;  %v3006_v47 = vsel %vm13448_vm14, %v3003_v57, %v3005_v0  ;;  %v8960_v24 = vld [vmem:[#allocation2 + $0x30] sm:$0xff]  ;;  %vm13644_vm11 = vmmov %vm13628_vm1 }
 0x15d   : > { %v10140_v14 = vpop.f32.mrf.mxu0  ;;  %v10145_v46 = vadd.f32 %v10032_v34, %v1759_v50  ;;  %v2133_v34 = vsel %vm13444_vm4, %v2123_v39, %v2132_v26 }
 0x15e   : > { %v10142_v62 = vpop.f32.mrf.mxu2 }
 0x15f   : > { %13637 = vst [vmem:[#allocation25_spill] sm:$0xff] %v10145_v46 }
 0x160   : > { %v10147_v29 = vpop.f32.mrf.mxu3  ;;  %v1521_v30 = vpop.f32.mrf.mxu1 }
 0x161   : > { %v1522_v25 = vadd.f32 %v1521_v30, %v10010_v17  ;;  %v2135_v30 = vshrl.u32 %v9103_v23, 16 }
 0x163   : > { %v1760_v52 = vadd.f32 %v9964_v18, %v1522_v25  ;;  %8152 = vmatmul.msk.bf16.gmra.mxu1 %vm13628_vm1, %v9102_v44  ;;  %v2689_v18 = vsel %vm13448_vm14, %v2686_v1, %v2688_v54  ;;  %v2138_v25 = vshll.u32 %v9103_v23, 16  ;;  %v2137_v44 = vrot.slane %v2135_v30, 1 }
 0x165   : > { %v10153_v49 = vpop.f32.mrf.mxu0  ;;  %8428 = vmatmul.msk.bf16.gmra.mxu3 %vm13638_vm8, %v3006_v47  ;;  %v10160_v9 = vadd.f32 %v10052_v27, %v1760_v52  ;;  %v8476_v27 = vld [vmem:[%s13398_s1 + $0x2] sm:$0x3]  ;;  %v3007_v47 = vrot.slane %v8960_v24, 2  ;;  %vm13646_vm8 = vmmov %vm13628_vm1 }
 0x166   : > { %v10157_v50 = vpop.f32.mrf.mxu2  ;;  %v3819_v52 = vsel %vm13633_vm2, %v8476_v27, 0  ;;  %vm13651_vm2 = vmmov %vm13628_vm1 }
 0x167   : > { %13639 = vst [vmem:[#allocation26_spill] sm:$0xff] %v10160_v9  ;;  %3828 = vmatpush.bf16.msra.mxu2 %v3819_v52  ;;  %v3008_v27 = vsel %vm13448_vm14, %v3005_v0, %v3007_v47 }
 0x168   : > { %8253 = vmatmul.msk.bf16.gmra.mxu0 %vm13640_vm9, %v2133_v34  ;;  %v10163_v17 = vpop.f32.mrf.mxu3  ;;  %v1523_v57 = vpop.f32.mrf.mxu1  ;;  %vm13648_vm9 = vmmov %vm13628_vm1 }
 0x169   : > { %v1524_v16 = vadd.f32 %v1523_v57, %v10028_v15  ;;  %v8948_v57 = vld [vmem:[#allocation2 + $0x40] sm:$0xff] }
 0x16a   : > { %v2690_v24 = vrot.slane %v8948_v57, 2 }
 0x16b   : > { %8354 = vmatmul.msk.bf16.gmra.mxu2 %vm13641_vm3, %v2689_v18  ;;  %v1761_v39 = vadd.f32 %v9988_v8, %v1524_v16  ;;  %v2140_v8 = vrot.slane %v2138_v25, 2  ;;  %vm13649_vm3 = vmmov %vm13628_vm1 }
 0x16d   : > { %v10169_v4 = vpop.f32.mrf.mxu0  ;;  %v10178_v15 = vadd.f32 %v10070_v42, %v1761_v39  ;;  %v2141_v9 = vor.u32 %v2140_v8, %v2137_v44  ;;  %v9104_v44 = vld [vmem:[#allocation2 + $0x28] sm:$0xff] }
 0x16e   : > { %v10175_v1 = vpop.f32.mrf.mxu2  ;;  %v2144_v8 = vshrl.u32 %v9104_v44, 16 }
 0x16f   : > { %13642 = vst [vmem:[#allocation27_spill] sm:$0xff] %v10178_v15  ;;  %v2142_v42 = vsel %vm13444_vm4, %v2132_v26, %v2141_v9 }
 0x170   : > { %v10180_v18 = vpop.f32.mrf.mxu3  ;;  %v1526_v16 = vpop.f32.mrf.mxu1 }
 0x171   : > { %v1527_v46 = vadd.f32 %v1526_v16, %v10041_v37 }
 0x173   : > { %v1762_v23 = vadd.f32 %v10000_v33, %v1527_v46  ;;  %8268 = vmatmul.msk.bf16.vlgmr.msra.gmra.mxu1 %vm13643_vm13, %v10112_v13  ;;  %v2691_v33 = vsel %vm13448_vm14, %v2688_v54, %v2690_v24  ;;  %v8961_v46 = vld [vmem:[#allocation2 + $0x38] sm:$0xff]  ;;  %v2146_v54 = vrot.slane %v2144_v8, 1  ;;  %vm13652_vm13 = vmmov %vm13628_vm1 }
 0x174   : > { %v3009_v16 = vrot.slane %v8961_v46, 2 }
 0x175   : > { %v10187_v52 = vpop.f32.mrf.mxu0  ;;  %8429 = vmatmul.msk.bf16.gmra.mxu3 %vm13644_vm11, %v3008_v27  ;;  %v10194_v30 = vadd.f32 %v10089_v2, %v1762_v23  ;;  %v2147_v2 = vshll.u32 %v9104_v44, 16  ;;  %vm13653_vm11 = vmmov %vm13628_vm1 }
 0x176   : > { %v10191_v39 = vpop.f32.mrf.mxu2 }
 0x177   : > { %13645 = vst [vmem:[#allocation28_spill] sm:$0xff] %v10194_v30  ;;  %v2149_v23 = vrot.slane %v2147_v2, 2  ;;  %v8962_v2 = vld [vmem:[#allocation2 + $0x40] sm:$0xff] }
 0x178   : > { %8254 = vmatmul.msk.bf16.gmra.mxu0 %vm13628_vm1, %v2142_v42  ;;  %v10197_v37 = vpop.f32.mrf.mxu3  ;;  %v1528_v0 = vpop.f32.mrf.mxu1 }
 0x179   : > { %v1529_v13 = vadd.f32 %v1528_v0, %v10062_v56  ;;  %v8949_v56 = vld [vmem:[#allocation2 + $0x48] sm:$0xff] }
 0x17a   : > { %v2692_v44 = vrot.slane %v8949_v56, 2 }
 0x17b   : > { %8355 = vmatmul.msk.bf16.gmra.mxu2 %vm13646_vm8, %v2691_v33  ;;  %v1763_v26 = vadd.f32 %v10014_v40, %v1529_v13  ;;  %v2150_v33 = vor.u32 %v2149_v23, %v2146_v54  ;;  %v3010_v13 = vsel %vm13448_vm14, %v3007_v47, %v3009_v16  ;;  %v9105_v23 = vld [vmem:[#allocation2 + $0x30] sm:$0xff]  ;;  %vm13654_vm8 = vmmov %vm13628_vm1 }
 0x17c   : > { %v2153_v56 = vshrl.u32 %v9105_v23, 16 }
 0x17d   : > { %v10203_v25 = vpop.f32.mrf.mxu0  ;;  %v10208_v27 = vadd.f32 %v10107_v58, %v1763_v26  ;;  %v2151_v58 = vsel %vm13444_vm4, %v2141_v9, %v2150_v33 }
 0x17e   : > { %v10205_v57 = vpop.f32.mrf.mxu2 }
 0x17f   : > { %13647 = vst [vmem:[#allocation29_spill] sm:$0xff] %v10208_v27 }
 0x180   : > { %v10210_v30 = vpop.f32.mrf.mxu3  ;;  %v1531_v0 = vpop.f32.mrf.mxu1 }
 0x181   : > { %v1532_v40 = vadd.f32 %v1531_v0, %v10077_v36  ;;  %v3011_v0 = vrot.slane %v8962_v2, 2 }
 0x183   : > { %v1764_v15 = vadd.f32 %v10030_v38, %v1532_v40  ;;  %8269 = vmatmul.msk.bf16.gmra.mxu1 %vm13648_vm9, %v2133_v34  ;;  %v2693_v38 = vsel %vm13448_vm14, %v2690_v24, %v2692_v44  ;;  %v2155_v24 = vrot.slane %v2153_v56, 1  ;;  %vm13655_vm9 = vmmov %vm13628_vm1 }
 0x185   : > { %v10216_v46 = vpop.f32.mrf.mxu0  ;;  %8430 = vmatmul.msk.bf16.gmra.mxu3 %vm13649_vm3, %v3010_v13  ;;  %v10223_v8 = vadd.f32 %v10134_v51, %v1764_v15  ;;  %v2156_v51 = vshll.u32 %v9105_v23, 16  ;;  %vm13656_vm3 = vmmov %vm13628_vm1 }
 0x186   : > { %v10220_v26 = vpop.f32.mrf.mxu2 }
 0x187   : > { %13650 = vst [vmem:[#allocation30_spill] sm:$0xff] %v10223_v8  ;;  %v2158_v13 = vrot.slane %v2156_v51, 2  ;;  %v8963_v51 = vld [vmem:[#allocation2 + $0x48] sm:$0xff] }
 0x188   : > { %8255 = vmatmul.msk.bf16.gmra.mxu0 %vm13651_vm2, %v2151_v58  ;;  %v10226_v36 = vpop.f32.mrf.mxu3  ;;  %v1533_v47 = vpop.f32.mrf.mxu1  ;;  %vm13657_vm2 = vmmov %vm13628_vm1 }
 0x189   : > { %v1534_v34 = vadd.f32 %v1533_v47, %v10099_v32  ;;  %v8950_v32 = vld [vmem:[#allocation2 + $0x50] sm:$0xff] }
 0x18a   : > { %v2694_v23 = vrot.slane %v8950_v32, 2 }
 0x18b   : > { %8356 = vmatmul.msk.bf16.gmra.mxu2 %vm13652_vm13, %v2693_v38  ;;  %v1765_v9 = vadd.f32 %v10045_v3, %v1534_v34  ;;  %v2159_v38 = vor.u32 %v2158_v13, %v2155_v24  ;;  %v3012_v34 = vsel %vm13448_vm14, %v3009_v16, %v3011_v0  ;;  %vm13658_vm13 = vmmov %vm13628_vm1 }
 0x18d   : > { %v10232_v54 = vpop.f32.mrf.mxu0  ;;  %v10237_v40 = vadd.f32 %v10147_v29, %v1765_v9  ;;  %v10246_v29 = vsel %vm13444_vm4, %v2150_v33, %v2159_v38 }
 0x18e   : > { %v10234_v15 = vpop.f32.mrf.mxu2 }
 0x190   : > { %v10239_v8 = vpop.f32.mrf.mxu3  ;;  %v1536_v47 = vpop.f32.mrf.mxu1 }
 0x191   : > { %v1537_v3 = vadd.f32 %v1536_v47, %v10116_v60 }
 0x193   : > { %v1766_v27 = vadd.f32 %v10064_v21, %v1537_v3  ;;  %8270 = vmatmul.msk.bf16.gmra.mxu1 %vm13653_vm11, %v2142_v42  ;;  %v2695_v42 = vsel %vm13448_vm14, %v2692_v44, %v2694_v23  ;;  %v3013_v3 = vrot.slane %v8963_v51, 2  ;;  %vm13659_vm11 = vmmov %vm13628_vm1 }
 0x195   : > { %v1666_v2 = vpop.f32.mrf.mxu0  ;;  %8431 = vmatmul.msk.bf16.gmra.mxu3 %vm13628_vm1, %v3012_v34  ;;  %v10255_v60 = vadd.f32 %v10163_v17, %v1766_v27  ;;  %v9106_v17 = vld [vmem:[#allocation2 + $0x38] sm:$0xff] }
 0x196   : > { %v10250_v9 = vadd.f32 %v1666_v2, %v9899_v59  ;;  %v10252_v56 = vpop.f32.mrf.mxu2  ;;  %v2162_v27 = vshrl.u32 %v9106_v17, 16  ;;  %v2165_v32 = vshll.u32 %v9106_v17, 16 }
 0x198   : > { %8256 = vmatmul.msk.bf16.gmra.mxu0 %vm13654_vm8, %v10246_v29  ;;  %v10259_v21 = vpop.f32.mrf.mxu3  ;;  %v1538_v16 = vpop.f32.mrf.mxu1  ;;  %v2164_v34 = vrot.slane %v2162_v27, 1  ;;  %vm13660_vm8 = vmmov %vm13628_vm1 }
 0x199   : > { %v1539_v33 = vadd.f32 %v1538_v16, %v10140_v14  ;;  %v2167_v14 = vrot.slane %v2165_v32, 2  ;;  %v8964_v32 = vld [vmem:[#allocation2 + $0x50] sm:$0xff] }
 0x19b   : > { %8357 = vmatmul.msk.bf16.gmra.mxu2 %vm13655_vm9, %v2695_v42  ;;  %v1767_v59 = vadd.f32 %v10083_v28, %v1539_v33  ;;  %v8951_v42 = vld [vmem:[#allocation2 + $0x58] sm:$0xff]  ;;  %v2168_v28 = vor.u32 %v2167_v14, %v2164_v34  ;;  %vm13661_vm9 = vmmov %vm13628_vm1 }
 0x19c   : > { %v2696_v17 = vrot.slane %v8951_v42, 2 }
 0x19d   : > { %v1668_v24 = vpop.f32.mrf.mxu0  ;;  %v10271_v44 = vadd.f32 %v10180_v18, %v1767_v59  ;;  %v10280_v18 = vsel %vm13444_vm4, %v2159_v38, %v2168_v28 }
 0x19e   : > { %v10266_v13 = vadd.f32 %v1668_v24, %v9917_v31  ;;  %v10268_v47 = vpop.f32.mrf.mxu2  ;;  %v3014_v31 = vsel %vm13448_vm14, %v3011_v0, %v3013_v3 }
 0x1a0   : > { %v10273_v2 = vpop.f32.mrf.mxu3  ;;  %v1541_v16 = vpop.f32.mrf.mxu1 }
 0x1a1   : > { %v1542_v33 = vadd.f32 %v1541_v16, %v10153_v49 }
 0x1a3   : > { %v1768_v24 = vadd.f32 %v10101_v43, %v1542_v33  ;;  %8271 = vmatmul.msk.bf16.gmra.mxu1 %vm13656_vm3, %v2151_v58  ;;  %v2697_v58 = vsel %vm13448_vm14, %v2694_v23, %v2696_v17  ;;  %vm13662_vm3 = vmmov %vm13628_vm1 }
 0x1a5   : > { %v1671_v51 = vpop.f32.mrf.mxu0  ;;  %8432 = vmatmul.msk.bf16.gmra.mxu3 %vm13657_vm2, %v3014_v31  ;;  %v10289_v49 = vadd.f32 %v10197_v37, %v1768_v24  ;;  %v9107_v37 = vld [vmem:[#allocation2 + $0x40] sm:$0xff]  ;;  %v3015_v31 = vrot.slane %v8964_v32, 2  ;;  %vm13663_vm2 = vcmask 1041408  }
 0x1a6   : > { %v10284_v59 = vadd.f32 %v1671_v51, %v9934_v5  ;;  %v10286_v27 = vpop.f32.mrf.mxu2  ;;  %v2171_v42 = vshrl.u32 %v9107_v37, 16  ;;  %v2174_v16 = vshll.u32 %v9107_v37, 16 }
 0x1a8   : > { %8257 = vmatmul.msk.bf16.gmra.mxu0 %vm13658_vm13, %v10280_v18  ;;  %v10293_v43 = vpop.f32.mrf.mxu3  ;;  %v1543_v0 = vpop.f32.mrf.mxu1  ;;  %v2173_v24 = vrot.slane %v2171_v42, 1  ;;  %vm13664_vm13 = vmmov %vm13628_vm1 }
 0x1a9   : > { %v1544_v38 = vadd.f32 %v1543_v0, %v10169_v4  ;;  %v2176_v4 = vrot.slane %v2174_v16, 2  ;;  %v8965_v16 = vld [vmem:[#allocation2 + $0x58] sm:$0xff] }
 0x1ab   : > { %8358 = vmatmul.msk.bf16.gmra.mxu2 %vm13659_vm11, %v2697_v58  ;;  %v1769_v5 = vadd.f32 %v10127_v19, %v1544_v38  ;;  %v8952_v58 = vld [vmem:[#allocation2 + $0x60] sm:$0xff]  ;;  %v2177_v19 = vor.u32 %v2176_v4, %v2173_v24  ;;  %vm13665_vm11 = vmmov %vm13628_vm1 }
 0x1ac   : > { %v2698_v32 = vrot.slane %v8952_v58, 2 }
 0x1ad   : > { %v1673_v34 = vpop.f32.mrf.mxu0  ;;  %v10305_v23 = vadd.f32 %v10210_v30, %v1769_v5  ;;  %v10315_v30 = vsel %vm13444_vm4, %v2168_v28, %v2177_v19 }
 0x1ae   : > { %v10300_v14 = vadd.f32 %v1673_v34, %v9959_v45  ;;  %v10302_v33 = vpop.f32.mrf.mxu2  ;;  %v3016_v45 = vsel %vm13448_vm14, %v3013_v3, %v3015_v31 }
 0x1b0   : > { %v10307_v51 = vpop.f32.mrf.mxu3  ;;  %v1546_v0 = vpop.f32.mrf.mxu1 }
 0x1b1   : > { %v1547_v38 = vadd.f32 %v1546_v0, %v10187_v52  ;;  %v9108_v0 = vld [vmem:[#allocation2 + $0x48] sm:$0xff] }
 0x1b3   : > { %v1770_v34 = vadd.f32 %v10142_v62, %v1547_v38  ;;  %8272 = vmatmul.msk.bf16.gmra.mxu1 %vm13628_vm1, %v10246_v29  ;;  %v2699_v29 = vsel %vm13448_vm14, %v2696_v17, %v2698_v32  ;;  %v2180_v17 = vshrl.u32 %v9108_v0, 16  ;;  %v2183_v38 = vshll.u32 %v9108_v0, 16 }
 0x1b5   : > { %v1676_v37 = vpop.f32.mrf.mxu0  ;;  %8433 = vmatmul.msk.bf16.gmra.mxu3 %vm13660_vm8, %v3016_v45  ;;  %v10324_v52 = vadd.f32 %v10226_v36, %v1770_v34  ;;  %v3784_v36 = vld [vmem:[%s13398_s1] sm:$0x3]  ;;  %vm13667_vm8 = vmmov %vm13628_vm1 }
 0x1b6   : > { %v10319_v5 = vadd.f32 %v1676_v37, %v9969_v10  ;;  %v10321_v42 = vpop.f32.mrf.mxu2  ;;  %v3849_v58 = vsel %vm13663_vm2, %v3784_v36, 0  ;;  %v2185_v37 = vrot.slane %v2183_v38, 2  ;;  %v8966_v38 = vld [vmem:[#allocation2 + $0x60] sm:$0xff]  ;;  %vm13670_vm2 = vmmov %vm13628_vm1 }
 0x1b7   : > { %3858 = vmatpush.bf16.msra.mxu3 %v3849_v58 }
 0x1b8   : > { %8258 = vmatmul.msk.bf16.gmra.mxu0 %vm13661_vm9, %v10315_v30  ;;  %v10328_v62 = vpop.f32.mrf.mxu3  ;;  %v1548_v3 = vpop.f32.mrf.mxu1  ;;  %vm13668_vm9 = vmmov %vm13628_vm1 }
 0x1b9   : > { %v1549_v28 = vadd.f32 %v1548_v3, %v10203_v25  ;;  %v3017_v25 = vrot.slane %v8965_v16, 2  ;;  %v8953_v3 = vld [vmem:[#allocation2 + $0x68] sm:$0xff] }
 0x1ba   : > { %v2700_v16 = vrot.slane %v8953_v3, 2 }
 0x1bb   : > { %8359 = vmatmul.msk.bf16.gmra.mxu2 %vm13662_vm3, %v2699_v29  ;;  %v1771_v10 = vadd.f32 %v10157_v50, %v1549_v28  ;;  %v2182_v50 = vrot.slane %v2180_v17, 1  ;;  %v3018_v36 = vsel %vm13448_vm14, %v3015_v31, %v3017_v25  ;;  %vm13669_vm3 = vmmov %vm13628_vm1 }
 0x1bd   : > { %v1678_v24 = vpop.f32.mrf.mxu0  ;;  %v10344_v34 = vadd.f32 %v10239_v8, %v1771_v10 }
 0x1be   : > { %v10338_v4 = vadd.f32 %v1678_v24, %v9995_v7  ;;  %v10341_v45 = vpop.f32.mrf.mxu2  ;;  %v2186_v7 = vor.u32 %v2185_v37, %v2182_v50 }
 0x1c0   : > { %v10346_v29 = vpop.f32.mrf.mxu3  ;;  %v1551_v28 = vpop.f32.mrf.mxu1  ;;  %v10354_v8 = vsel %vm13444_vm4, %v2177_v19, %v2186_v7 }
 0x1c1   : > { %v1552_v24 = vadd.f32 %v1551_v28, %v10216_v46 }
 0x1c3   : > { %v1772_v0 = vadd.f32 %v10175_v1, %v1552_v24  ;;  %8273 = vmatmul.msk.bf16.gmra.mxu1 %vm13664_vm13, %v10280_v18  ;;  %v2701_v18 = vsel %vm13448_vm14, %v2698_v32, %v2700_v16  ;;  %vm13671_vm13 = vmmov %vm13628_vm1 }
 0x1c5   : > { %v1681_v58 = vpop.f32.mrf.mxu0  ;;  %8434 = vmatmul.msk.bf16.gmra.mxu3 %vm13665_vm11, %v3018_v36  ;;  %v10363_v46 = vadd.f32 %v10259_v21, %v1772_v0  ;;  %v9109_v21 = vld [vmem:[#allocation2 + $0x50] sm:$0xff]  ;;  %v3019_v36 = vrot.slane %v8966_v38, 2  ;;  %vm13672_vm11 = vmmov %vm13628_vm1 }
 0x1c6   : > { %v10358_v10 = vadd.f32 %v1681_v58, %v10005_v41  ;;  %v10360_v17 = vpop.f32.mrf.mxu2  ;;  %v2189_v3 = vshrl.u32 %v9109_v21, 16  ;;  %v2192_v28 = vshll.u32 %v9109_v21, 16 }
 0x1c7   : > { %13666 = vst [vmem:[#allocation31_spill] sm:$0xff] %v10363_v46 }
 0x1c8   : > { %8259 = vmatmul.msk.bf16.gmra.mxu0 %vm13628_vm1, %v10354_v8  ;;  %v3093_v1 = vpop.f32.mrf.mxu3  ;;  %v1553_v31 = vpop.f32.mrf.mxu1  ;;  %v2191_v0 = vrot.slane %v2189_v3, 1 }
 0x1c9   : > { %v1554_v19 = vadd.f32 %v1553_v31, %v10232_v54  ;;  %v2194_v54 = vrot.slane %v2192_v28, 2  ;;  %v8954_v31 = vld [vmem:[#allocation2 + $0x70] sm:$0xff]  ;;  %v10402_v28 = vld [vmem:[#allocation2 + $0x68] sm:$0xff] }
 0x1cb   : > { %8360 = vmatmul.msk.bf16.gmra.mxu2 %vm13667_vm8, %v2701_v18  ;;  %v1773_v41 = vadd.f32 %v10191_v39, %v1554_v19  ;;  %v2195_v46 = vor.u32 %v2194_v54, %v2191_v0  ;;  %v2069_v19 = vadd.f32 %v9830_v12, %v10250_v9  ;;  %vm13673_vm8 = vmmov %vm13628_vm1 }
 0x1cd   : > { %v1683_v50 = vpop.f32.mrf.mxu0  ;;  %v10377_v32 = vadd.f32 %v10273_v2, %v1773_v41  ;;  %v2702_v2 = vrot.slane %v8954_v31, 2  ;;  %v10387_v41 = vsel %vm13444_vm4, %v2186_v7, %v2195_v46  ;;  %v9110_v31 = vld [vmem:[#allocation2 + $0x58] sm:$0xff] }
 0x1ce   : > { %v10372_v37 = vadd.f32 %v1683_v50, %v10025_v11  ;;  %v10374_v24 = vpop.f32.mrf.mxu2  ;;  %v3020_v11 = vsel %vm13448_vm14, %v3017_v25, %v3019_v36 }
 0x1cf   : > { %v2703_v9 = vsel %vm13448_vm14, %v2700_v16, %v2702_v2 }
 0x1d0   : > { %v3095_v58 = vpop.f32.mrf.mxu3  ;;  %v1556_v18 = vpop.f32.mrf.mxu1 }
 0x1d1   : > { %v1557_v39 = vadd.f32 %v1556_v18, %v9846_v6  ;;  %v2198_v18 = vshrl.u32 %v9110_v31, 16 }
 0x1d3   : > { %v1774_v50 = vadd.f32 %v10205_v57, %v1557_v39  ;;  %8274 = vmatmul.msk.bf16.gmra.mxu1 %vm13668_vm9, %v10315_v30  ;;  %v2201_v39 = vshll.u32 %v9110_v31, 16  ;;  %vm13674_vm9 = vmmov %vm13628_vm1  ;;  %v9111_v31 = vld [vmem:[#allocation2 + $0x60] sm:$0xff] }
 0x1d5   : > { %v2320_v38 = vpop.f32.mrf.mxu0  ;;  %8435 = vmatmul.msk.bf16.gmra.mxu3 %vm13669_vm3, %v3020_v11  ;;  %v10393_v6 = vadd.f32 %v10293_v43, %v1774_v50  ;;  %v2070_v43 = vadd.f32 %v9840_v48, %v10266_v13  ;;  %v2203_v50 = vrot.slane %v2201_v39, 2  ;;  %v8955_v48 = vld [vmem:[#allocation2 + $0x78] sm:$0xff]  ;;  %v2210_v39 = vshll.u32 %v9111_v31, 16 }
 0x1d6   : > { %v2400_v21 = vadd.f32 %v2320_v38, %v2069_v19  ;;  %v10390_v3 = vpop.f32.mrf.mxu2  ;;  %v2200_v19 = vrot.slane %v2198_v18, 1  ;;  %v2207_v18 = vshrl.u32 %v9111_v31, 16  ;;  %vm2525_vm3 = vcmask 64512  }
 0x1d8   : > { %v2850_v12 = vadd.f32 %v10268_v47, %v2400_v21  ;;  %8260 = vmatmul.msk.bf16.gmra.mxu0 %vm13670_vm2, %v10387_v41  ;;  %v3098_v57 = vpop.f32.mrf.mxu3  ;;  %v1558_v30 = vpop.f32.mrf.mxu1  ;;  %vm13675_vm2 = vmmov %vm13628_vm1 }
 0x1d9   : > { %v1559_v7 = vadd.f32 %v1558_v30, %v9860_v35  ;;  %v2071_v30 = vadd.f32 %v9857_v55, %v10284_v59 }
 0x1da   : > { %v10399_v25 = vadd.f32 %v3093_v1, %v2850_v12  ;;  %v3021_v1 = vrot.slane %v10402_v28, 2 }
 0x1db   : > { %8361 = vmatmul.msk.bf16.gmra.mxu2 %vm13671_vm13, %v2703_v9  ;;  %v1775_v47 = vadd.f32 %v10220_v26, %v1559_v7  ;;  %v2204_v26 = vor.u32 %v2203_v50, %v2200_v19  ;;  %v2209_v19 = vrot.slane %v2207_v18, 1  ;;  %v2212_v50 = vrot.slane %v2210_v39, 2  ;;  %vm13676_vm13 = vmmov %vm13628_vm1 }
 0x1dc   : > { %v3022_v9 = vsel %vm13448_vm14, %v3019_v36, %v3021_v1 }
 0x1dd   : > { %v2322_v0 = vpop.f32.mrf.mxu0  ;;  %v10412_v35 = vadd.f32 %v10307_v51, %v1775_v47  ;;  %v10425_v28 = vsel %vm13444_vm4, %v2195_v46, %v2204_v26  ;;  %v10440_v47 = vld [vmem:[#allocation2 + $0x70] sm:$0xff] }
 0x1de   : > { %v2401_v54 = vadd.f32 %v2322_v0, %v2070_v43  ;;  %v10408_v16 = vpop.f32.mrf.mxu2 }
 0x1e0   : > { %v2851_v11 = vadd.f32 %v10286_v27, %v2401_v54  ;;  %v3100_v38 = vpop.f32.mrf.mxu3  ;;  %v1561_v13 = vpop.f32.mrf.mxu1  ;;  %v2704_v27 = vrot.slane %v8955_v48, 2  ;;  %v2213_v48 = vor.u32 %v2212_v50, %v2209_v19 }
 0x1e1   : > { %v1562_v12 = vadd.f32 %v1561_v13, %v9871_v63 }
 0x1e2   : > { %v10415_v21 = vadd.f32 %v3095_v58, %v2851_v11  ;;  %v2705_v59 = vsel %vm13448_vm14, %v2702_v2, %v2704_v27 }
 0x1e3   : > { %v1776_v51 = vadd.f32 %v10234_v15, %v1562_v12  ;;  %8275 = vmatmul.msk.bf16.gmra.mxu1 %vm13672_vm11, %v10354_v8  ;;  %vm13677_vm11 = vmmov %vm13628_vm1 }
 0x1e5   : > { %v2325_v7 = vpop.f32.mrf.mxu0  ;;  %8436 = vmatmul.msk.bf16.gmra.mxu3 %vm13628_vm1, %v3022_v9  ;;  %v10431_v63 = vadd.f32 %v10328_v62, %v1776_v51  ;;  %v2072_v62 = vadd.f32 %v9869_v53, %v10300_v14  ;;  %v10453_v14 = vld [vmem:[#allocation2 + $0x80] sm:$0xff] }
 0x1e6   : > { %v2402_v58 = vadd.f32 %v2325_v7, %v2071_v30  ;;  %v10428_v43 = vpop.f32.mrf.mxu2  ;;  %v10465_v30 = vsel %vm13444_vm4, %v2204_v26, %v2213_v48  ;;  %v2590_v26 = vld [vmem:[#allocation2 + $0x88] sm:$0x3] }
 0x1e8   : > { %v2852_v55 = vadd.f32 %v10302_v33, %v2402_v58  ;;  %8261 = vmatmul.msk.bf16.gmra.mxu0 %vm13673_vm8, %v10425_v28  ;;  %v3103_v15 = vpop.f32.mrf.mxu3  ;;  %v1563_v8 = vpop.f32.mrf.mxu1 }
 0x1e9   : > { %v1564_v46 = vadd.f32 %v1563_v8, %v9887_v61  ;;  %v10480_v8 = vld [vmem:[#allocation2 + $0x78] sm:$0xff] }
 0x1ea   : > { %v10437_v36 = vadd.f32 %v3098_v57, %v2852_v55  ;;  %v3023_v57 = vrot.slane %v10440_v47, 2  ;;  %v3025_v39 = vrot.slane %v10480_v8, 2 }
 0x1eb   : > { %8362 = vmatmul.msk.bf16.gmra.mxu2 %vm13674_vm9, %v2705_v59  ;;  %v1777_v33 = vadd.f32 %v10252_v56, %v1564_v46 }
 0x1ec   : > { %v3024_v12 = vsel %vm13448_vm14, %v3021_v1, %v3023_v57 }
 0x1ed   : > { %v2327_v0 = vpop.f32.mrf.mxu0  ;;  %v10450_v61 = vadd.f32 %v10346_v29, %v1777_v33  ;;  %v2073_v29 = vadd.f32 %v9884_v20, %v10319_v5 }
 0x1ee   : > { %v2403_v54 = vadd.f32 %v2327_v0, %v2072_v62  ;;  %v10446_v2 = vpop.f32.mrf.mxu2  ;;  %v2658_v62 = vunpack.c.l.b16 %v2590_v26  ;;  %v9112_v0 = vld [vmem:[#allocation2 + $0x68] sm:$0xff] }
 0x1f0   : > { %v2853_v11 = vadd.f32 %v10321_v42, %v2403_v54  ;;  %v3105_v53 = vpop.f32.mrf.mxu3  ;;  %v2445_v56 = vpop.f32.mrf.mxu1  ;;  %v2706_v42 = vrot.slane %v10453_v14, 2  ;;  %v2219_v54 = vshll.u32 %v9112_v0, 16  ;;  %v2675_v14 = vpack.c.b16 %v2658_v62, %v2658_v62 }
 0x1f1   : > { %2526 = vst.msk [vmem:[#allocation6] sm:$0xff] %vm2525_vm3, %v2445_v56 }
 0x1f2   : > { %v10455_v13 = vadd.f32 %v3100_v38, %v2853_v11  ;;  %v2707_v5 = vsel %vm13448_vm14, %v2704_v27, %v2706_v42  ;;  %v1008_v27 = vld [vmem:[#allocation2 + $0x8c] sm:$0xf] }
 0x1f3   : > { %8276 = vmatmul.msk.bf16.gmra.mxu1 %vm13675_vm2, %v10387_v41  ;;  %v13678_v41 = vld [vmem:[#allocation17_spill] sm:$0xff] }
 0x1f4   : > { %v13679_v1 = vor.u32 %v10016_v22, %v13678_v41  ;;  %v2216_v22 = vshrl.u32 %v9112_v0, 16 }
 0x1f5   : > { %v2330_v9 = vpop.f32.mrf.mxu0  ;;  %8437 = vmatmul.msk.bf16.gmra.mxu3 %vm13676_vm13, %v3024_v12 }
 0x1f6   : > { %v2404_v38 = vadd.f32 %v2330_v9, %v2073_v29  ;;  %v10468_v51 = vpop.f32.mrf.mxu2  ;;  %v1000_v58 = vrot.slane %v13679_v1, 4  ;;  %v2218_v19 = vrot.slane %v2216_v22, 1  ;;  %v3026_v9 = vsel %vm13448_vm14, %v3023_v57, %v3025_v39  ;;  %v1011_v1 = vld [vmem:[%s9234_s16 + $0xf0] sm:$0xff] }
 0x1f8   : > { %v2854_v7 = vadd.f32 %v10341_v45, %v2404_v38  ;;  %8262 = vmatmul.msk.bf16.gmra.mxu0 %vm13677_vm11, %v10465_v30  ;;  %v3108_v20 = vpop.f32.mrf.mxu3  ;;  %v2447_v55 = vpop.f32.mrf.mxu1  ;;  %v13680_v45 = vld [vmem:[#allocation14_spill] sm:$0xff]  ;;  %v13682_v38 = vld [vmem:[#allocation15_spill] sm:$0xff] }
 0x1f9   : > { %2527 = vst.msk [vmem:[#allocation6 + $0x8] sm:$0xff] %vm2525_vm3, %v2447_v55  ;;  %v2074_v46 = vadd.f32 %v13680_v45, %v10338_v4  ;;  %v2221_v4 = vrot.slane %v2219_v54, 2  ;;  %v10522_v55 = vld [vmem:[%s13402_s5] ss:$0 sm:$0xff] }
 0x1fa   : > { %v10477_v59 = vadd.f32 %v3103_v15, %v2854_v7  ;;  %v1009_v15 = vsel %vm9538_vm0, %v1000_v58, %v1008_v27  ;;  %v2075_v7 = vadd.f32 %v13682_v38, %v10358_v10  ;;  %vm13683_vm0 = vmmov %vm13628_vm1  ;;  %v10509_v58 = vld [vmem:[%s13401_s4] ss:$0 sm:$0xff]  ;;  %v13687_v27 = vld [vmem:[#allocation16_spill] sm:$0xff] }
 0x1fb   : > { %8363 = vmatmul.msk.bf16.gmra.mxu2 %vm13628_vm1, %v2707_v5  ;;  %1010 = vst [vmem:[#allocation2 + $0x8c] sm:$0xf] %v1009_v15  ;;  %v2222_v12 = vor.u32 %v2221_v4, %v2218_v19  ;;  %vm13684_vm8 = vmmov %vm13683_vm0  ;;  %v1013_v57 = vmul.f32 %v10509_v58, %v1011_v1 }
 0x1fc   : > { %vm13685_vm9 = vmmov %vm13683_vm0 }
 0x1fd   : > { %v2332_v47 = vpop.f32.mrf.mxu0  ;;  %v10502_v41 = vsel %vm13444_vm4, %v2213_v48, %v2222_v12  ;;  %v10517_v48 = vld [vmem:[#allocation2 + $0x80] sm:$0xff]   ;;  %v1015_v26 = vadd.f32 %v10522_v55, %v1013_v57  ;;  %vm13686_vm2 = vmmov %vm13683_vm0 }
 0x1fe   : > { %v2405_v33 = vadd.f32 %v2332_v47, %v2074_v46  ;;  %v10487_v18 = vpop.f32.mrf.mxu2  ;;  %v3800_v62 = vshll.u32 %v10517_v48, 16  ;;  %vm13688_vm13 = vmmov %vm13683_vm0 }
 0x1ff   : > { %v1017_v47 = vmax.f32 %v1015_v26, 0.0  ;;  %vm13690_vm11 = vmmov %vm13683_vm0 }
 0x200   : > { %v2855_v11 = vadd.f32 %v10360_v17, %v2405_v33  ;;  %v10491_v50 = vpop.f32.mrf.mxu3  ;;  %v2450_v56 = vpop.f32.mrf.mxu1  ;;  %v2708_v17 = vrot.slane %v2675_v14, 2  ;;  %v2076_v33 = vadd.f32 %v13687_v27, %v10372_v37  ;;  %v3802_v38 = vrot.slane %v3800_v62, 1  ;;  %vm13692_vm1 = vmmov %vm13683_vm0 }
 0x201   : > { %2528 = vst.msk [vmem:[#allocation6 + $0x10] sm:$0xff] %vm2525_vm3, %v2450_v56  ;;  %v1019_v0 = vpack.c.bf16 %v1017_v47, %v1017_v47 }
 0x202   : > { %v10493_v29 = vadd.f32 %v3105_v53, %v2855_v11  ;;  %v2709_v45 = vsel %vm13448_vm14, %v2706_v42, %v2708_v17  ;;  %v10535_v15 = vld [vmem:[#allocation2 + $0x88] sm:$0xff]   ;;  %v9115_v42 = vld [vmem:[#allocation2 + $0x70] sm:$0xff] }
 0x203   : > { %8277 = vmatmul.msk.bf16.gmra.mxu1 %vm13683_vm0, %v10425_v28  ;;  %v2225_v11 = vshrl.u32 %v9115_v42, 16  ;;  %v2228_v19 = vshll.u32 %v9115_v42, 16  ;;  %v1022_v4 = vshrl.u32 %v1019_v0, 16  ;;  %v3805_v1 = vshll.u32 %v10535_v15, 16 }
 0x204   : > { %vm13693_vm0 = vsmask.f32 7424 }
 0x205   : > { %v2335_v5 = vpop.f32.mrf.mxu0  ;;  %8438 = vmatmul.msk.bf16.gmra.mxu3 %vm13684_vm8, %v3026_v9  ;;  %v3798_v9 = vshrl.u32 %v10517_v48, 16  ;;  %v2230_v17 = vrot.slane %v2228_v19, 2  ;;  %vm13696_vm8 = vmmov %vm13692_vm1 }
 0x206   : > { %v2406_v53 = vadd.f32 %v2335_v5, %v2075_v7  ;;  %v10512_v10 = vpop.f32.mrf.mxu2  ;;  %v2227_v7 = vrot.slane %v2225_v11, 1 }
 0x207   : > { %v3803_v47 = vor.u32 %v3802_v38, %v3798_v9  ;;  %v13695_v9 = vld [vmem:[#allocation21_spill] sm:$0xff] }
 0x208   : > { %v2856_v28 = vadd.f32 %v10374_v24, %v2406_v53  ;;  %8263 = vmatmul.msk.bf16.gmra.mxu0 %vm13685_vm9, %v10502_v41  ;;  %v3113_v8 = vpop.f32.mrf.mxu3  ;;  %v2452_v46 = vpop.f32.mrf.mxu1  ;;  %v10527_v24 = vld [vmem:[#allocation2 + $0x80] sm:$0xff]  ;;  %v1025_v53 = vshll.u32 %v1019_v0, 16  ;;  %vm13697_vm9 = vmmov %vm13692_vm1 }
 0x209   : > { %2529 = vst.msk [vmem:[#allocation6 + $0x18] sm:$0xff] %vm2525_vm3, %v2452_v46  ;;  %v3027_v56 = vrot.slane %v10527_v24, 2  ;;  %v1041_v46 = vld [vmem:[#allocation2 + $0x90] sm:$0xf] }
 0x20a   : > { %v10533_v54 = vadd.f32 %v3108_v20, %v2856_v28  ;;  %v10542_v20 = vrot.slane %v1022_v4, 7  ;;  %v2231_v28 = vor.u32 %v2230_v17, %v2227_v7 }
 0x20b   : > { %8364 = vmatmul.msk.bf16.gmra.mxu2 %vm13686_vm2, %v2709_v45  ;;  %v3028_v26 = vsel %vm13448_vm14, %v3025_v39, %v3027_v56  ;;  %v13691_v39 = vld [vmem:[#allocation19_spill] sm:$0xff]  ;;  %vm13699_vm2 = vmmov %vm13692_vm1 }
 0x20c   : > { %v1027_v45 = vor.u32 %v1025_v53, %v10542_v20  ;;  %v10551_v62 = vsel %vm13444_vm4, %v2222_v12, %v2231_v28 }
 0x20d   : > { %v2337_v22 = vpop.f32.mrf.mxu0 }
 0x20e   : > { %v2407_v31 = vadd.f32 %v2337_v22, %v2076_v33  ;;  %v10537_v14 = vpop.f32.mrf.mxu2  ;;  %v1042_v33 = vsel %vm9554_vm7, %v1027_v45, %v1041_v46  ;;  %vm13694_vm7 = vmmov %vm13692_vm1 }
 0x20f   : > { %1043 = vst [vmem:[#allocation2 + $0x90] sm:$0xf] %v1042_v33 }
 0x210   : > { %v2857_v37 = vadd.f32 %v10390_v3, %v2407_v31  ;;  %v3115_v5 = vpop.f32.mrf.mxu3  ;;  %v2455_v57 = vpop.f32.mrf.mxu1  ;;  %v3807_v3 = vrot.slane %v3805_v1, 1 }
 0x211   : > { %2530 = vst.msk [vmem:[#allocation6 + $0x20] sm:$0xff] %vm2525_vm3, %v2455_v57 }
 0x212   : > { %v10556_v0 = vadd.f32 %v10491_v50, %v2857_v37  ;;  %v3808_v42 = vsel %vm13693_vm0, %v3803_v47, %v3807_v3  ;;  %v10567_v50 = vld [vmem:[#allocation2 + $0x88] sm:$0xff]  ;;  %v9116_v37 = vld [vmem:[#allocation2 + $0x78] sm:$0xff]  ;;  %vm13703_vm0 = vmmov %vm13692_vm1 }
 0x213   : > { %8278 = vmatmul.msk.bf16.gmra.mxu1 %vm13688_vm13, %v10465_v30  ;;  %v2237_v7 = vshll.u32 %v9116_v37, 16  ;;  %v3029_v1 = vrot.slane %v10567_v50, 2  ;;  %vm13700_vm13 = vcmask 1041408  }
 0x215   : > { %v2340_v24 = vpop.f32.mrf.mxu0  ;;  %8439 = vmatmul.msk.bf16.gmra.mxu3 %vm13690_vm11, %v3028_v26  ;;  %v2239_v26 = vrot.slane %v2237_v7, 2  ;;  %vm13701_vm11 = vmmov %vm13692_vm1  ;;  %v9062_v7 = vld [vmem:[#allocation2 + $0x80] sm:$0xe] }
 0x216   : > { %v2408_v22 = vadd.f32 %v2340_v24, %v13691_v39  ;;  %v10560_v31 = vpop.f32.mrf.mxu2  ;;  %v3809_v24 = vshrl.u32 %v10535_v15, 16  ;;  %v2914_v27 = vld [vmem:[#allocation2 + $0x90] sm:$0x3] }
 0x218   : > { %v2858_v30 = vadd.f32 %v10408_v16, %v2408_v22  ;;  %8264 = vmatmul.msk.bf16.gmra.mxu0 %vm13692_vm1, %v10551_v62  ;;  %v3118_v12 = vpop.f32.mrf.mxu3  ;;  %v2457_v11 = vpop.f32.mrf.mxu1  ;;  %v2234_v16 = vshrl.u32 %v9116_v37, 16  ;;  %v13698_v22 = vld [vmem:[#allocation22_spill] sm:$0xff]  ;;  %v3811_v50 = vor.u32 %v3809_v24, %v3807_v3 }
 0x219   : > { %2531 = vst.msk [vmem:[#allocation6 + $0x28] sm:$0xff] %vm2525_vm3, %v2457_v11  ;;  %v8481_v11 = vld [vmem:[%s13398_s1 + $0x4] sm:$0x3] }
 0x21a   : > { %v10570_v4 = vadd.f32 %v3113_v8, %v2858_v30  ;;  %v2236_v57 = vrot.slane %v2234_v16, 1  ;;  %v3030_v8 = vsel %vm13448_vm14, %v3027_v56, %v3029_v1  ;;  %v2982_v56 = vunpack.c.l.b16 %v2914_v27  ;;  %v9061_v16 = vld [vmem:[#allocation2 + $0x80] sm:$0xf0] }
 0x21b   : > { %8477 = vmatmul.msk.bf16.vlgmr.msra.gmra.mxu2 %vm13694_vm7, %v3808_v42  ;;  %vm13705_vm7 = vmmov %vm13703_vm0 }
 0x21c   : > { %v2240_v47 = vor.u32 %v2239_v26, %v2236_v57  ;;  %v9117_v26 = vld [vmem:[#allocation2 + $0x80] sm:$0xff] }
 0x21d   : > { %v2342_v19 = vpop.f32.mrf.mxu0 }
 0x21e   : > { %v2409_v38 = vadd.f32 %v2342_v19, %v13695_v9  ;;  %v10573_v17 = vpop.f32.mrf.mxu2  ;;  %v10583_v39 = vsel %vm13444_vm4, %v2231_v28, %v2240_v47  ;;  %v2999_v9 = vpack.c.b16 %v2982_v56, %v2982_v56 }
 0x220   : > { %v2859_v53 = vadd.f32 %v10428_v43, %v2409_v38  ;;  %v3120_v45 = vpop.f32.mrf.mxu3  ;;  %v2460_v46 = vpop.f32.mrf.mxu1  ;;  %v1012_v38 = vld [vmem:[%s9234_s16 + $0xf8] sm:$0xff]  ;;  %v3031_v27 = vrot.slane %v2999_v9, 2 }
 0x221   : > { %2532 = vst.msk [vmem:[#allocation6 + $0x30] sm:$0xff] %vm2525_vm3, %v2460_v46  ;;  %v1014_v3 = vmul.f32 %v10509_v58, %v1012_v38  ;;  %v2243_v46 = vshrl.u32 %v9117_v26, 16 }
 0x222   : > { %v10585_v43 = vadd.f32 %v3115_v5, %v2859_v53  ;;  %v3885_v5 = vsel %vm13700_vm13, %v8481_v11, 0  ;;  %v13702_v53 = vld [vmem:[#allocation23_spill] sm:$0xff]  ;;  %vm13711_vm13 = vmmov %vm13703_vm0 }
 0x223   : > { %8279 = vmatmul.msk.bf16.gmra.mxu1 %vm13696_vm8, %v10502_v41  ;;  %3894 = vmatpush.bf16.msrb.mxu2 %v3885_v5  ;;  %v2245_v56 = vrot.slane %v2243_v46, 1  ;;  %vm13706_vm8 = vcmask 1046528  }
 0x225   : > { %v2345_v33 = vpop.f32.mrf.mxu0  ;;  %8440 = vmatmul.msk.bf16.gmra.mxu3 %vm13697_vm9, %v3030_v8  ;;  %v2246_v8 = vshll.u32 %v9117_v26, 16  ;;  %vm13708_vm9 = vmmov %vm13703_vm0 }
 0x226   : > { %v2410_v30 = vadd.f32 %v2345_v33, %v13698_v22  ;;  %v10589_v42 = vpop.f32.mrf.mxu2  ;;  %v1016_v33 = vadd.f32 %v10522_v55, %v1014_v3  ;;  %v3876_v55 = vrot.slane %v10535_v15, 1 }
 0x227   : > { %v2248_v11 = vrot.slane %v2246_v8, 2 }
 0x228   : > { %v2860_v41 = vadd.f32 %v10446_v2, %v2410_v30  ;;  %8265 = vmatmul.msk.bf16.gmra.mxu0 %vm13699_vm2, %v10583_v39  ;;  %v3123_v28 = vpop.f32.mrf.mxu3  ;;  %v2462_v19 = vpop.f32.mrf.mxu1  ;;  %v9063_v30 = vor.u32 %v9062_v7, %v9061_v16  ;;  %v1018_v5 = vmax.f32 %v1016_v33, 0.0  ;;  %v13704_v7 = vld [vmem:[#allocation24_spill] sm:$0xff]  ;;  %vm13709_vm2 = vcmask 27648  }
 0x229   : > { %2533 = vst.msk [vmem:[#allocation6 + $0x38] sm:$0xff] %vm2525_vm3, %v2462_v19 }
 0x22a   : > { %v10602_v2 = vadd.f32 %v3118_v12, %v2860_v41  ;;  %v2249_v12 = vor.u32 %v2248_v11, %v2245_v56  ;;  %v3032_v41 = vsel %vm13448_vm14, %v3029_v1, %v3031_v27  ;;  %v1020_v19 = vpack.c.bf16 %v1018_v5, %v1018_v5  ;;  %v13710_v56 = vld [vmem:[#allocation25_spill] sm:$0xff] }
 0x22b   : > { %8478 = vmatmul.msk.bf16.gmra.mxu2 %vm13701_vm11, %v3811_v50  ;;  %v3875_v38 = vrot.slane %v9063_v30, 1  ;;  %v1028_v1 = vrot.slane %v10542_v20, 4  ;;  %vm13712_vm11 = vmmov %vm13703_vm0 }
 0x22c   : > { %v1033_v26 = vshll.u32 %v1020_v19, 16 }
 0x22d   : > { %v2347_v37 = vpop.f32.mrf.mxu0 }
 0x22e   : > { %v2411_v57 = vadd.f32 %v2347_v37, %v13702_v53  ;;  %v10605_v24 = vpop.f32.mrf.mxu2  ;;  %v1030_v37 = vshrl.u32 %v1020_v19, 16 }
 0x230   : > { %v2861_v22 = vadd.f32 %v10468_v51, %v2411_v57  ;;  %v3125_v50 = vpop.f32.mrf.mxu3  ;;  %v2465_v58 = vpop.f32.mrf.mxu1  ;;  %v10615_v51 = vsel %vm13444_vm4, %v2240_v47, %v2249_v12  ;;  %v1032_v57 = vrot.slane %v1030_v37, 7  ;;  %v3877_v47 = vsel %vm13706_vm8, %v3875_v38, %v3876_v55 }
 0x231   : > { %2534 = vst.msk [vmem:[#allocation6 + $0x40] sm:$0xff] %vm2525_vm3, %v2465_v58  ;;  %vm13457_vm8 = vsmask.f32 5376 }
 0x232   : > { %v10617_v16 = vadd.f32 %v3120_v45, %v2861_v22  ;;  %v2101_v45 = vld [vmem:[#allocation2 + $0x88] sm:$0x3]  ;;  %v1035_v46 = vor.u32 %v1033_v26, %v1032_v57  ;;  %v8974_v26 = vld [vmem:[#allocation2 + $0x88] sm:$0xf0] }
 0x233   : > { %8280 = vmatmul.msk.bf16.gmra.mxu1 %vm13692_vm1, %v10551_v62  ;;  %v2105_v27 = vunpack.c.l.b16 %v2101_v45  ;;  %vm13715_vm1 = vmmov %vm13703_vm0 }
 0x234   : > { %v1036_v20 = vsel %vm9436_vm6, %v1028_v1, %v1035_v46  ;;  %v8498_v1 = vld [vmem:[#allocation2 + $0x88] sm:$0xe] }
 0x235   : > { %v2350_v9 = vpop.f32.mrf.mxu0  ;;  %8441 = vmatmul.msk.bf16.gmra.mxu3 %vm13703_vm0, %v3032_v41  ;;  %v2106_v22 = vpack.c.b16 %v2105_v27, %v2105_v27  ;;  %1044 = vst.msk [vmem:[#allocation2 + $0x94] sm:$0xf] %vm13709_vm2, %v1036_v20  ;;  %v8499_v27 = vor.u32 %v8974_v26, %v8498_v1  ;;  %vm13716_vm0 = vcmask 1041408   ;;  %v1037_v20 = vrot.slane %v1032_v57, 4  ;;  %v13721_v26 = vld [vmem:[#allocation20_spill] sm:$0xff]  ;;  %vm13724_vm2 = vmmov %vm13715_vm1 }
 0x236   : > { %v2412_v3 = vadd.f32 %v2350_v9, %v13704_v7  ;;  %v10622_v53 = vpop.f32.mrf.mxu2 }
 0x237   : > { %v2252_v5 = vshrl.u32 %v2106_v22, 16  ;;  %v2255_v58 = vshll.u32 %v2106_v22, 16  ;;  %v1045_v22 = vld [vmem:[#allocation2 + $0x98] sm:$0x1] }
 0x238   : > { %v2862_v62 = vadd.f32 %v10487_v18, %v2412_v3  ;;  %8266 = vmatmul.msk.bf16.gmra.mxu0 %vm13705_vm7, %v10615_v51  ;;  %v3128_v15 = vpop.f32.mrf.mxu3  ;;  %v2467_v8 = vpop.f32.mrf.mxu1  ;;  %vm13718_vm7 = vmmov %vm13715_vm1 }
 0x239   : > { %2535 = vst.msk [vmem:[#allocation6 + $0x48] sm:$0xff] %vm2525_vm3, %v2467_v8  ;;  %v2254_v38 = vrot.slane %v2252_v5, 1  ;;  %v2257_v9 = vrot.slane %v2255_v58, 2  ;;  %v8495_v8 = vld [vmem:[%s13398_s1 + $0x8] sm:$0x3]  ;;  %v3980_v5 = vshrl.u32 %v8499_v27, 16 }
 0x23a   : > { %v10633_v30 = vadd.f32 %v3123_v28, %v2862_v62  ;;  %v3983_v58 = vshll.u32 %v8499_v27, 16 }
 0x23b   : > { %8482 = vmatmul.msk.bf16.vlgmr.msrb.gmra.mxu2 %vm13708_vm9, %v3877_v47  ;;  %v2258_v3 = vor.u32 %v2257_v9, %v2254_v38  ;;  %v9059_v9 = vld [vmem:[#allocation2 + $0x88] sm:$0xf]   ;;  %vm13723_vm9 = vmmov %vm13715_vm1 }
 0x23c   : > { %v3985_v27 = vrot.slane %v3983_v58, 2 }
 0x23d   : > { %v2352_v18 = vpop.f32.mrf.mxu0  ;;  %v10645_v62 = vsel %vm13444_vm4, %v2249_v12, %v2258_v3  ;;  %v4008_v12 = vsel %vm13716_vm0, %v8495_v8, 0  ;;  %v13720_v3 = vld [vmem:[#allocation27_spill] sm:$0xff]  ;;  %v3982_v8 = vrot.slane %v3980_v5, 1 }
 0x23e   : > { %v2413_v11 = vadd.f32 %v2352_v18, %v13710_v56  ;;  %v10636_v41 = vpop.f32.mrf.mxu2  ;;  %4017 = vmatpush.bf16.msra.mxu2 %v4008_v12  ;;  %v10677_v12 = vld [vmem:[#allocation2 + $0x18] sm:$0xff] }
 0x240   : > { %v2863_v19 = vadd.f32 %v10512_v10, %v2413_v11  ;;  %v10639_v37 = vpop.f32.mrf.mxu3  ;;  %v2470_v7 = vpop.f32.mrf.mxu1  ;;  %v13713_v10 = vld [vmem:[#allocation26_spill] sm:$0xff]  ;;  %v1046_v11 = vsel %vm9446_vm10, %v1037_v20, %v1045_v22  ;;  %vm13722_vm10 = vmmov %vm13716_vm0 }
 0x241   : > { %2536 = vst.msk [vmem:[#allocation6 + $0x50] sm:$0xff] %vm2525_vm3, %v2470_v7  ;;  %v9076_v7 = vld [vmem:[#allocation2 + $0x88] sm:$0x70]  ;;  %vm13730_vm0 = vmmov %vm13724_vm2 }
 0x242   : > { %v10650_v45 = vadd.f32 %v3125_v50, %v2863_v19  ;;  %v8975_v50 = vld [vmem:[#allocation2 + $0x90] sm:$0xff]  ;;  %1047 = vst [vmem:[#allocation2 + $0x98] sm:$0x1] %v1046_v11 }
 0x243   : > { %8281 = vmatmul.msk.bf16.gmra.mxu1 %vm13711_vm13, %v10583_v39  ;;  %v3988_v19 = vshrl.u32 %v8975_v50, 16  ;;  %v3991_v38 = vshll.u32 %v8975_v50, 16  ;;  %vm13726_vm13 = vmmov %vm13715_vm1 }
 0x244   : > { %13714 = vst [vmem:[#allocation17_spill] sm:$0xff] %v10650_v45 }
 0x245   : > { %v2355_v28 = vpop.f32.mrf.mxu0  ;;  %8479 = vmatmul.msk.bf16.vlgmr.msra.gmra.mxu3 %vm13712_vm11, %v10517_v48  ;;  %v3990_v11 = vrot.slane %v3988_v19, 1  ;;  %v3993_v5 = vrot.slane %v3991_v38, 2  ;;  %v13725_v38 = vld [vmem:[#allocation28_spill] sm:$0xff]  ;;  %vm13727_vm11 = vmmov %vm13715_vm1 }
 0x246   : > { %v2414_v47 = vadd.f32 %v2355_v28, %v13713_v10  ;;  %v10652_v46 = vpop.f32.mrf.mxu2  ;;  %v3213_v28 = vshrl.u32 %v13721_v26, 16  ;;  %v3216_v10 = vshll.u32 %v13721_v26, 16  ;;  %v9060_v26 = vor.u32 %v9076_v7, %v9059_v9 }
 0x248   : > { %v2864_v39 = vadd.f32 %v10537_v14, %v2414_v47  ;;  %8267 = vmatmul.msk.bf16.gmra.mxu0 %vm13715_vm1, %v10645_v62  ;;  %v10661_v48 = vpop.f32.mrf.mxu3  ;;  %v2472_v18 = vpop.f32.mrf.mxu1  ;;  %v3215_v22 = vrot.slane %v3213_v28, 2  ;;  %vm13729_vm1 = vcmask 1046528  }
 0x249   : > { %2537 = vst.msk [vmem:[#allocation6 + $0x58] sm:$0xff] %vm2525_vm3, %v2472_v18  ;;  %v3218_v18 = vrot.slane %v3216_v10, 3  ;;  %v3964_v7 = vld [vmem:[#allocation2 + $0x98] sm:$0x1] }
 0x24a   : > { %v10667_v57 = vadd.f32 %v3128_v15, %v2864_v39  ;;  %v3221_v15 = vshrl.u32 %v10677_v12, 16  ;;  %v3224_v39 = vshll.u32 %v10677_v12, 16 }
 0x24b   : > { %8483 = vmatmul.msk.bf16.gmra.mxu2 %vm13718_vm7, %v3876_v55  ;;  %v8484_v55 = vld [vmem:[%s13398_s1 + $0x6] sm:$0x3]  ;;  %vm13732_vm7 = vmmov %vm13730_vm0 }
 0x24c   : > { %13719 = vst [vmem:[#allocation14_spill] sm:$0xff] %v10667_v57  ;;  %v3935_v50 = vsel %vm13722_vm10, %v8484_v55, 0  ;;  %v3223_v58 = vrot.slane %v3221_v15, 2  ;;  %v3219_v57 = vor.u32 %v3218_v18, %v3215_v22  ;;  %vm13734_vm10 = vmmov %vm13730_vm0 }
 0x24d   : > { %v2357_v14 = vpop.f32.mrf.mxu0  ;;  %3944 = vmatpush.bf16.msrb.mxu3 %v3935_v50  ;;  %v8972_v50 = vld [vmem:[#allocation2 + $0x88] sm:$0xf0] }
 0x24e   : > { %v2415_v1 = vadd.f32 %v2357_v14, %v13720_v3  ;;  %v10672_v47 = vpop.f32.mrf.mxu2  ;;  %v3226_v14 = vrot.slane %v3224_v39, 3  ;;  %v8487_v39 = vld [vmem:[#allocation2 + $0x88] sm:$0xe] }
 0x250   : > { %v2865_v20 = vadd.f32 %v10560_v31, %v2415_v1  ;;  %v3135_v56 = vpop.f32.mrf.mxu3  ;;  %v2475_v3 = vpop.f32.mrf.mxu1  ;;  %v3227_v45 = vor.u32 %v3226_v14, %v3223_v58  ;;  %v3986_v31 = vor.u32 %v3985_v27, %v3982_v8  ;;  %v3994_v1 = vor.u32 %v3993_v5, %v3990_v11  ;;  %v10700_v27 = vld [vmem:[#allocation2 + $0x90] sm:$0xff]  ;;  %v13728_v11 = vld [vmem:[#allocation29_spill] sm:$0xff]  ;;  %v10708_v58 = vld [vmem:[#allocation2 + $0x20] sm:$0xff] }
 0x251   : > { %2538 = vst.msk [vmem:[#allocation6 + $0x60] sm:$0xff] %vm2525_vm3, %v2475_v3  ;;  %v3230_v14 = vshrl.u32 %v10708_v58, 16  ;;  %v3233_v3 = vshll.u32 %v10708_v58, 16 }
 0x252   : > { %v3228_v10 = vsel %vm13457_vm8, %v3219_v57, %v3227_v45  ;;  %v10688_v19 = vadd.f32 %v10639_v37, %v2865_v20  ;;  %v10697_v8 = vsel %vm13444_vm4, %v3986_v31, %v3994_v1  ;;  %v3975_v57 = vunpack.c.l.b16 %v3964_v7 }
 0x253   : > { %8282 = vmatmul.msk.bf16.gmra.mxu1 %vm13723_vm9, %v10615_v51  ;;  %v8488_v20 = vor.u32 %v8972_v50, %v8487_v39  ;;  %v3536_v39 = vld [vmem:[#allocation2 + $0x10] sm:$0x8]  ;;  %vm13735_vm9 = vcmask 1041408  }
 0x255   : > { %v2360_v28 = vpop.f32.mrf.mxu0  ;;  %8480 = vmatmul.msk.bf16.gmra.mxu3 %vm13724_vm2, %v9060_v26  ;;  %v3925_v31 = vrot.slane %v8488_v20, 1  ;;  %vm13738_vm2 = vmmov %vm13730_vm0 }
 0x256   : > { %v2416_v9 = vadd.f32 %v2360_v28, %v13725_v38  ;;  %v10692_v55 = vpop.f32.mrf.mxu2  ;;  %v3926_v28 = vrot.slane %v10700_v27, 1  ;;  %v3232_v38 = vrot.slane %v3230_v14, 2  ;;  %v8508_v14 = vld [vmem:[%s13398_s1 + $0xa] sm:$0x3] }
 0x258   : > { %v2866_v15 = vadd.f32 %v10573_v17, %v2416_v9  ;;  %8443 = vmatmul.msk.bf16.vlgmr.msrb.gmra.mxu0 %vm13726_vm13, %v3228_v10  ;;  %v3138_v51 = vpop.f32.mrf.mxu3  ;;  %v2477_v37 = vpop.f32.mrf.mxu1  ;;  %v3978_v17 = vpack.c.b16 %v3975_v57, %v3975_v57  ;;  %v3235_v9 = vrot.slane %v3233_v3, 3  ;;  %v3927_v57 = vsel %vm13729_vm1, %v3925_v31, %v3926_v28  ;;  %v13736_v31 = vld [vmem:[#allocation18_spill] sm:$0xff]  ;;  %vm13741_vm1 = vmmov %vm13730_vm0 }
 0x259   : > { %2539 = vst.msk [vmem:[#allocation6 + $0x68] sm:$0xff] %vm2525_vm3, %v2477_v37  ;;  %v3540_v37 = vunpack.c.l.b16 %v3536_v39  ;;  %vm13454_vm13 = vcmask 1044480  }
 0x25a   : > { %v10705_v18 = vadd.f32 %v10661_v48, %v2866_v15  ;;  %v3997_v48 = vshll.u32 %v3978_v17, 16  ;;  %v3236_v50 = vor.u32 %v3235_v9, %v3232_v38  ;;  %v13733_v17 = vld [vmem:[#allocation30_spill] sm:$0xff] }
 0x25b   : > { %8504 = vmatmul.msk.bf16.vlgmr.msra.gmra.mxu2 %vm13727_vm11, %v10697_v8  ;;  %vm13740_vm11 = vmmov %vm13735_vm9 }
 0x25c   : > { %v3999_v20 = vrot.slane %v3997_v48, 2  ;;  %v3237_v27 = vsel %vm13457_vm8, %v3227_v45, %v3236_v50  ;;  %v13737_v45 = vunpack.c.l.b16 %v13736_v31 }
 0x25d   : > { %v2362_v22 = vpop.f32.mrf.mxu0 }
 0x25e   : > { %v2417_v5 = vadd.f32 %v2362_v22, %v13728_v11  ;;  %v10712_v26 = vpop.f32.mrf.mxu2  ;;  %v10736_v38 = vsel %vm13444_vm4, %v3994_v1, %v3999_v20 }
 0x260   : > { %v2867_v10 = vadd.f32 %v10589_v42, %v2417_v5  ;;  %v3140_v7 = vpop.f32.mrf.mxu3  ;;  %v2480_v15 = vpop.f32.mrf.mxu1 }
 0x261   : > { %2540 = vst.msk [vmem:[#allocation6 + $0x70] sm:$0xff] %vm2525_vm3, %v2480_v15 }
 0x262   : > { %v10721_v42 = vadd.f32 %v3135_v56, %v2867_v10  ;;  %v3541_v56 = vpack.c.b16 %v13737_v45, %v3540_v37  ;;  %v8511_v37 = vld [vmem:[#allocation2 + $0x88] sm:$0xc] }
 0x263   : > { %8283 = vmatmul.msk.bf16.gmra.mxu1 %vm13730_vm0, %v10645_v62  ;;  %v4092_v62 = vsel %vm13735_vm9, %v8508_v14, 0  ;;  %vm13746_vm9 = vmmov %vm13730_vm0 }
 0x264   : > { %13731 = vst [vmem:[#allocation12_spill] sm:$0xff] %v10721_v42  ;;  %4101 = vmatpush.bf16.msrb.mxu2 %v4092_v62  ;;  %v3543_v48 = vrot.slane %v3541_v56, 3  ;;  %v8977_v62 = vld [vmem:[#allocation2 + $0x90] sm:$0xff] }
 0x265   : > { %v2365_v22 = vpop.f32.mrf.mxu0  ;;  %8493 = vmatmul.msk.bf16.vlgmr.msrb.gmra.mxu3 %vm13732_vm7, %v3927_v57  ;;  %vm13743_vm7 = vmmov %vm13730_vm0 }
 0x266   : > { %v2418_v11 = vadd.f32 %v2365_v22, %v13733_v17  ;;  %v10725_v5 = vpop.f32.mrf.mxu2  ;;  %v8976_v22 = vld [vmem:[#allocation2 + $0x88] sm:$0xf0] }
 0x267   : > { %v8512_v31 = vor.u32 %v8976_v22, %v8511_v37 }
 0x268   : > { %v2868_v3 = vadd.f32 %v10605_v24, %v2418_v11  ;;  %8444 = vmatmul.msk.bf16.gmra.mxu0 %vm13734_vm10, %v3237_v27  ;;  %v3143_v10 = vpop.f32.mrf.mxu3  ;;  %v2482_v9 = vpop.f32.mrf.mxu1  ;;  %v3544_v24 = vrot.slane %v10677_v12, 3  ;;  %v10745_v27 = vld [vmem:[#allocation2 + $0x28] sm:$0xff]  ;;  %v4033_v12 = vld [vmem:[%s13400_s3] sm:$0x3]  ;;  %vm13744_vm10 = vmmov %vm13730_vm0 }
 0x269   : > { %2541 = vst.msk [vmem:[#allocation6 + $0x78] sm:$0xff] %vm2525_vm3, %v2482_v9  ;;  %v3239_v1 = vshrl.u32 %v10745_v27, 16  ;;  %v3242_v20 = vshll.u32 %v10745_v27, 16  ;;  %v4035_v11 = vsel %vm13740_vm11, %v4033_v12, 0  ;;  %vm13749_vm11 = vmmov %vm13730_vm0 }
 0x26a   : > { %v10742_v39 = vadd.f32 %v3138_v51, %v2868_v3  ;;  %4044 = vmatpush.bf16.msra.mxu3 %v4035_v11  ;;  %v3545_v56 = vsel %vm13454_vm13, %v3543_v48, %v3544_v24  ;;  %v4065_v11 = vld [vmem:[#allocation2 + $0x98] sm:$0x1] }
 0x26b   : > { %8505 = vmatmul.msk.bf16.gmra.mxu2 %vm13738_vm2, %v10736_v38  ;;  %v3244_v14 = vrot.slane %v3242_v20, 3  ;;  %vm13748_vm2 = vmmov %vm13730_vm0 }
 0x26c   : > { %13739 = vst [vmem:[#allocation15_spill] sm:$0xff] %v10742_v39  ;;  %v4081_v39 = vrot.slane %v8977_v62, 2 }
 0x26d   : > { %v2367_v15 = vpop.f32.mrf.mxu0 }
 0x26e   : > { %v2419_v57 = vadd.f32 %v2367_v15, %v10237_v40  ;;  %v10749_v17 = vpop.f32.mrf.mxu2  ;;  %v3241_v40 = vrot.slane %v3239_v1, 2  ;;  %v4080_v15 = vrot.slane %v8512_v31, 2 }
 0x270   : > { %v2869_v51 = vadd.f32 %v10622_v53, %v2419_v57  ;;  %v3145_v3 = vpop.f32.mrf.mxu3  ;;  %v2485_v45 = vpop.f32.mrf.mxu1  ;;  %v3245_v9 = vor.u32 %v3244_v14, %v3241_v40  ;;  %v4082_v20 = vsel %vm13448_vm14, %v4080_v15, %v4081_v39 }
 0x271   : > { %2542 = vst.msk [vmem:[#allocation6 + $0x80] sm:$0xff] %vm2525_vm3, %v2485_v45 }
 0x272   : > { %v3246_v53 = vsel %vm13457_vm8, %v3236_v50, %v3245_v9  ;;  %v10760_v57 = vadd.f32 %v3140_v7, %v2869_v51  ;;  %v4076_v50 = vunpack.c.l.b16 %v4065_v11 }
 0x273   : > { %8460 = vmatmul.msk.bf16.vlgmr.msrb.gmra.mxu1 %vm13741_vm1, %v3545_v56  ;;  %vm13750_vm1 = vmmov %vm13730_vm0 }
 0x274   : > { %13742 = vst [vmem:[#allocation16_spill] sm:$0xff] %v10760_v57  ;;  %v4079_v15 = vpack.c.b16 %v4076_v50, %v4076_v50 }
 0x275   : > { %v2370_v42 = vpop.f32.mrf.mxu0  ;;  %8494 = vmatmul.msk.bf16.gmra.mxu3 %vm13730_vm0, %v3926_v28  ;;  %vm13752_vm0 = vcmask 1041408  }
 0x276   : > { %v2420_v37 = vadd.f32 %v2370_v42, %v10255_v60  ;;  %v10764_v22 = vpop.f32.mrf.mxu2  ;;  %v3546_v60 = vrot.slane %v10708_v58, 3 }
 0x278   : > { %v2870_v48 = vadd.f32 %v10636_v41, %v2420_v37  ;;  %8445 = vmatmul.msk.bf16.gmra.mxu0 %vm13743_vm7, %v3246_v53  ;;  %v3148_v1 = vpop.f32.mrf.mxu3  ;;  %v2487_v12 = vpop.f32.mrf.mxu1  ;;  %v10775_v41 = vld [vmem:[#allocation2 + $0x30] sm:$0xff]  ;;  %v3547_v53 = vsel %vm13454_vm13, %v3544_v24, %v3546_v60  ;;  %vm13753_vm7 = vmmov %vm13752_vm0 }
 0x279   : > { %2543 = vst.msk [vmem:[#allocation6 + $0x88] sm:$0xff] %vm2525_vm3, %v2487_v12  ;;  %v3248_v51 = vshrl.u32 %v10775_v41, 16  ;;  %v3251_v40 = vshll.u32 %v10775_v41, 16 }
 0x27a   : > { %v10771_v28 = vadd.f32 %v3143_v10, %v2870_v48 }
 0x27b   : > { %8517 = vmatmul.msk.bf16.vlgmr.msrb.gmra.mxu2 %vm13744_vm10, %v4082_v20  ;;  %v3250_v31 = vrot.slane %v3248_v51, 2  ;;  %v3253_v45 = vrot.slane %v3251_v40, 3  ;;  %v10796_v51 = vld [vmem:[#allocation2 + $0x94] sm:$0xf]  ;;  %vm13754_vm10 = vmmov %vm13750_vm1 }
 0x27c   : > { %13745 = vst [vmem:[#allocation13_spill] sm:$0xff] %v10771_v28 }
 0x27d   : > { %v2372_v7 = vpop.f32.mrf.mxu0  ;;  %v3254_v58 = vor.u32 %v3253_v45, %v3250_v31  ;;  %v10811_v31 = vld [vmem:[#allocation2 + $0x38] sm:$0xff] }
 0x27e   : > { %v2421_v42 = vadd.f32 %v2372_v7, %v10271_v44  ;;  %v10779_v14 = vpop.f32.mrf.mxu2  ;;  %v4083_v44 = vrot.slane %v4079_v15, 2  ;;  %v3257_v45 = vshrl.u32 %v10811_v31, 16  ;;  %v3260_v15 = vshll.u32 %v10811_v31, 16 }
 0x27f   : > { %v3255_v48 = vsel %vm13457_vm8, %v3245_v9, %v3254_v58  ;;  %v10801_v9 = vld [vmem:[#allocation2 + $0x98] sm:$0xff] }
 0x280   : > { %v2871_v62 = vadd.f32 %v10652_v46, %v2421_v42  ;;  %v3150_v56 = vpop.f32.mrf.mxu3  ;;  %v2490_v10 = vpop.f32.mrf.mxu1  ;;  %v4084_v7 = vsel %vm13448_vm14, %v4081_v39, %v4083_v44  ;;  %v4117_v42 = vld [vmem:[#allocation2 + $0x90] sm:$0xc]  ;;  %v3548_v39 = vrot.slane %v10745_v27, 3 }
 0x281   : > { %2544 = vst.msk [vmem:[#allocation6 + $0x90] sm:$0xff] %vm2525_vm3, %v2490_v10 }
 0x282   : > { %v10786_v20 = vadd.f32 %v3145_v3, %v2871_v62  ;;  %v4128_v3 = vunpack.c.l.b16 %v4117_v42  ;;  %v8526_v42 = vld [vmem:[%s13398_s1 + $0xe] sm:$0x3] }
 0x283   : > { %8461 = vmatmul.msk.bf16.gmra.mxu1 %vm13746_vm9, %v3547_v53  ;;  %v8519_v53 = vld [vmem:[%s13398_s1 + $0xc] sm:$0x3]  ;;  %vm13756_vm9 = vmmov %vm13750_vm1 }
 0x284   : > { %13747 = vst [vmem:[#allocation19_spill] sm:$0xff] %v10786_v20  ;;  %v4211_v20 = vsel %vm13753_vm7, %v8526_v42, 0 }
 0x285   : > { %v2375_v37 = vpop.f32.mrf.mxu0  ;;  %8506 = vmatmul.msk.bf16.vlgmr.msra.gmra.mxu3 %vm13748_vm2, %v10697_v8  ;;  %v13441_v8 = vunpack.c.l.b16 %v10796_v51  ;;  %4220 = vmatpush.bf16.msra.mxu2 %v4211_v20  ;;  %vm13758_vm2 = vmmov %vm13750_vm1 }
 0x286   : > { %v2422_v46 = vadd.f32 %v2375_v37, %v10289_v49  ;;  %v10791_v12 = vpop.f32.mrf.mxu2  ;;  %v4187_v37 = vshrl.u32 %v10801_v9, 16 }
 0x288   : > { %v2872_v24 = vadd.f32 %v10672_v47, %v2422_v46  ;;  %8446 = vmatmul.msk.bf16.gmra.mxu0 %vm13749_vm11, %v3255_v48  ;;  %v3153_v11 = vpop.f32.mrf.mxu3  ;;  %v2492_v50 = vpop.f32.mrf.mxu1  ;;  %v10805_v47 = vpack.c.b16 %v13441_v8, %v4128_v3  ;;  %v4148_v46 = vsel %vm13752_vm0, %v8519_v53, 0  ;;  %vm13759_vm11 = vmmov %vm13750_vm1 }
 0x289   : > { %2545 = vst.msk [vmem:[#allocation6 + $0x98] sm:$0xff] %vm2525_vm3, %v2492_v50  ;;  %4157 = vmatpush.bf16.msrb.mxu3 %v4148_v46  ;;  %vm13762_vm0 = vmmov %vm13750_vm1 }
 0x28a   : > { %v10807_v40 = vadd.f32 %v3148_v1, %v2872_v24  ;;  %v4179_v44 = vshrl.u32 %v10805_v47, 16  ;;  %v4182_v1 = vshll.u32 %v10805_v47, 16  ;;  %v3259_v24 = vrot.slane %v3257_v45, 2  ;;  %vm13764_vm7 = vmmov %vm13762_vm0 }
 0x28b   : > { %8518 = vmatmul.msk.bf16.gmra.mxu2 %vm13750_vm1, %v4084_v7  ;;  %v3262_v7 = vrot.slane %v3260_v15, 3 }
 0x28c   : > { %13751 = vst [vmem:[#allocation21_spill] sm:$0xff] %v10807_v40  ;;  %v4181_v3 = vrot.slane %v4179_v44, 2  ;;  %v3549_v40 = vsel %vm13454_vm13, %v3546_v60, %v3548_v39 }
 0x28d   : > { %v2377_v49 = vpop.f32.mrf.mxu0 }
 0x28e   : > { %v2423_v62 = vadd.f32 %v2377_v49, %v10305_v23  ;;  %v10815_v10 = vpop.f32.mrf.mxu2  ;;  %v4190_v23 = vshll.u32 %v10801_v9, 16  ;;  %v4184_v49 = vrot.slane %v4182_v1, 3 }
 0x290   : > { %v2873_v48 = vadd.f32 %v10692_v55, %v2423_v62  ;;  %v3155_v50 = vpop.f32.mrf.mxu3  ;;  %v2495_v8 = vpop.f32.mrf.mxu1  ;;  %v3263_v55 = vor.u32 %v3262_v7, %v3259_v24  ;;  %v4189_v62 = vrot.slane %v4187_v37, 2  ;;  %v4192_v45 = vrot.slane %v4190_v23, 3  ;;  %v10854_v7 = vld [vmem:[#allocation2 + $0x40] sm:$0xff] }
 0x291   : > { %2546 = vst.msk [vmem:[#allocation6 + $0xa0] sm:$0xff] %vm2525_vm3, %v2495_v8  ;;  %v4185_v44 = vor.u32 %v4184_v49, %v4181_v3  ;;  %v3266_v42 = vshrl.u32 %v10854_v7, 16  ;;  %v3269_v3 = vshll.u32 %v10854_v7, 16  ;;  %v4136_v49 = vrot.slane %v10805_v47, 2 }
 0x292   : > { %v3264_v53 = vsel %vm13457_vm8, %v3254_v58, %v3263_v55  ;;  %v4193_v1 = vor.u32 %v4192_v45, %v4189_v62  ;;  %v10836_v46 = vadd.f32 %v3150_v56, %v2873_v48  ;;  %v4173_v58 = vld [vmem:[#allocation2 + $0xa0] sm:$0x3]  ;;  %v3550_v48 = vrot.slane %v10775_v41, 3 }
 0x293   : > { %8462 = vmatmul.msk.bf16.gmra.mxu1 %vm13754_vm10, %v3549_v40  ;;  %v4176_v56 = vunpack.c.l.b16 %v4173_v58  ;;  %v4137_v62 = vrot.slane %v10801_v9, 2  ;;  %v3271_v41 = vrot.slane %v3269_v3, 3  ;;  %v13763_v3 = vld [vmem:[#allocation31_spill] sm:$0xff]  ;;  %vm13765_vm10 = vmmov %vm13762_vm0 }
 0x294   : > { %13755 = vst [vmem:[#allocation22_spill] sm:$0xff] %v10836_v46  ;;  %v4194_v40 = vsel %vm13457_vm8, %v4185_v44, %v4193_v1  ;;  %v3551_v47 = vsel %vm13454_vm13, %v3548_v39, %v3550_v48 }
 0x295   : > { %v2380_v15 = vpop.f32.mrf.mxu0  ;;  %8507 = vmatmul.msk.bf16.gmra.mxu3 %vm13756_vm9, %v10736_v38  ;;  %v10848_v38 = vpack.c.b16 %v4176_v56, %v4176_v56  ;;  %v4138_v58 = vsel %vm13448_vm14, %v4136_v49, %v4137_v62  ;;  %v4121_v56 = vld [vmem:[#allocation2 + $0xa0] sm:$0x1]  ;;  %vm13767_vm9 = vcmask 1041408  }
 0x296   : > { %v2424_v60 = vadd.f32 %v2380_v15, %v10324_v52  ;;  %v10841_v24 = vpop.f32.mrf.mxu2 }
 0x297   : > { %13757 = vst [vmem:[#allocation23_spill] sm:$0xff] %v10841_v24  ;;  %v4196_v45 = vshrl.u32 %v10848_v38, 16  ;;  %v4199_v15 = vshll.u32 %v10848_v38, 16 }
 0x298   : > { %v2874_v8 = vadd.f32 %v10712_v26, %v2424_v60  ;;  %8447 = vmatmul.msk.bf16.gmra.mxu0 %vm13758_vm2, %v3264_v53  ;;  %v3158_v20 = vpop.f32.mrf.mxu3  ;;  %v2497_v37 = vpop.f32.mrf.mxu1  ;;  %v3268_v53 = vrot.slane %v3266_v42, 2  ;;  %vm13768_vm2 = vmmov %vm13762_vm0 }
 0x299   : > { %2547 = vst.msk [vmem:[#allocation6 + $0xa8] sm:$0xff] %vm2525_vm3, %v2497_v37  ;;  %v4198_v60 = vrot.slane %v4196_v45, 2  ;;  %v4132_v45 = vunpack.c.l.b16 %v4121_v56 }
 0x29a   : > { %v10850_v52 = vadd.f32 %v3153_v11, %v2874_v8  ;;  %v4201_v8 = vrot.slane %v4199_v15, 3  ;;  %v3272_v37 = vor.u32 %v3271_v41, %v3268_v53 }
 0x29b   : > { %8527 = vmatmul.msk.bf16.vlgmr.msra.gmra.mxu2 %vm13759_vm11, %v4194_v40  ;;  %vm13770_vm11 = vmmov %vm13762_vm0 }
 0x29c   : > { %13760 = vst [vmem:[#allocation24_spill] sm:$0xff] %v10850_v52 }
 0x29d   : > { %v2382_v23 = vpop.f32.mrf.mxu0 }
 0x29e   : > { %v2425_v26 = vadd.f32 %v2382_v23, %v10344_v34  ;;  %v10863_v34 = vpop.f32.mrf.mxu2  ;;  %v3273_v23 = vsel %vm13457_vm8, %v3263_v55, %v3272_v37  ;;  %v4135_v55 = vpack.c.b16 %v4132_v45, %v4132_v45  ;;  %v4236_v45 = vld [vmem:[#allocation2 + $0x90] sm:$0x8] }
 0x2a0   : > { %v2875_v11 = vadd.f32 %v10725_v5, %v2425_v26  ;;  %v3160_v44 = vpop.f32.mrf.mxu3  ;;  %v2500_v40 = vpop.f32.mrf.mxu1  ;;  %v4202_v26 = vor.u32 %v4201_v8, %v4198_v60  ;;  %v3552_v60 = vrot.slane %v10811_v31, 3  ;;  %v10887_v8 = vld [vmem:[#allocation2 + $0x48] sm:$0xff] }
 0x2a1   : > { %2548 = vst.msk [vmem:[#allocation6 + $0xb0] sm:$0xff] %vm2525_vm3, %v2500_v40  ;;  %v3275_v40 = vshrl.u32 %v10887_v8, 16 }
 0x2a2   : > { %v10872_v42 = vadd.f32 %v3155_v50, %v2875_v11  ;;  %v4203_v49 = vsel %vm13457_vm8, %v4193_v1, %v4202_v26  ;;  %v3278_v1 = vshll.u32 %v10887_v8, 16  ;;  %v3553_v26 = vsel %vm13454_vm13, %v3550_v48, %v3552_v60 }
 0x2a3   : > { %8463 = vmatmul.msk.bf16.gmra.mxu1 %vm13750_vm1, %v3551_v47  ;;  %v4139_v47 = vrot.slane %v4135_v55, 2  ;;  %v4239_v48 = vunpack.c.l.b16 %v4236_v45  ;;  %vm13771_vm1 = vmmov %vm13762_vm0 }
 0x2a4   : > { %13761 = vst [vmem:[#allocation9_spill] sm:$0xff] %v10872_v42 }
 0x2a5   : > { %v2385_v5 = vpop.f32.mrf.mxu0  ;;  %8524 = vmatmul.msk.bf16.vlgmr.msrb.gmra.mxu3 %vm13762_vm0, %v4138_v58  ;;  %v8529_v58 = vld [vmem:[%s13398_s1 + $0x10] sm:$0x3] }
 0x2a6   : > { %v2426_v27 = vadd.f32 %v2385_v5, %v13763_v3  ;;  %v10880_v41 = vpop.f32.mrf.mxu2  ;;  %v3277_v5 = vrot.slane %v3275_v40, 2  ;;  %v13772_v40 = vunpack.c.l.b16 %v10796_v51 }
 0x2a8   : > { %v2876_v39 = vadd.f32 %v10749_v17, %v2426_v27  ;;  %8448 = vmatmul.msk.bf16.gmra.mxu0 %vm13764_vm7, %v3273_v23  ;;  %v3163_v15 = vpop.f32.mrf.mxu3  ;;  %v2502_v53 = vpop.f32.mrf.mxu1  ;;  %v3280_v23 = vrot.slane %v3278_v1, 3  ;;  %v4140_v27 = vsel %vm13448_vm14, %v4137_v62, %v4139_v47  ;;  %v4240_v1 = vpack.c.b16 %v13772_v40, %v4239_v48  ;;  %vm13776_vm7 = vmmov %vm13762_vm0 }
 0x2a9   : > { %2549 = vst.msk [vmem:[#allocation6 + $0xb8] sm:$0xff] %vm2525_vm3, %v2502_v53  ;;  %vm13810_vm14 = vcmask 31744  }
 0x2aa   : > { %v10883_v11 = vadd.f32 %v3158_v20, %v2876_v39  ;;  %v4253_v20 = vsel %vm13767_vm9, %v8529_v58, 0  ;;  %v3281_v3 = vor.u32 %v3280_v23, %v3277_v5  ;;  %v4241_v5 = vrot.slane %v4240_v1, 3 }
 0x2ab   : > { %8528 = vmatmul.msk.bf16.gmra.mxu2 %vm13765_vm10, %v4203_v49  ;;  %4262 = vmatpush.bf16.msra.mxu3 %v4253_v20  ;;  %v4242_v23 = vrot.slane %v10801_v9, 3  ;;  %vm13777_vm10 = vmmov %vm13762_vm0  ;;  %vm13446_vm9 = vcmask 1043456  }
 0x2ac   : > { %13766 = vst [vmem:[#allocation25_spill] sm:$0xff] %v10883_v11  ;;  %v3282_v49 = vsel %vm13457_vm8, %v3272_v37, %v3281_v3 }
 0x2ad   : > { %v2387_v50 = vpop.f32.mrf.mxu0  ;;  %v4243_v45 = vsel %vm13454_vm13, %v4241_v5, %v4242_v23 }
 0x2ae   : > { %v2427_v17 = vadd.f32 %v2387_v50, %v10377_v32  ;;  %v10900_v39 = vpop.f32.mrf.mxu2 }
 0x2b0   : > { %v2877_v56 = vadd.f32 %v10764_v22, %v2427_v17  ;;  %v3165_v31 = vpop.f32.mrf.mxu3  ;;  %v2505_v32 = vpop.f32.mrf.mxu1 }
 0x2b1   : > { %2550 = vst.msk [vmem:[#allocation6 + $0xc0] sm:$0xff] %vm2525_vm3, %v2505_v32 }
 0x2b2   : > { %v10903_v53 = vadd.f32 %v3160_v44, %v2877_v56  ;;  %v3554_v44 = vrot.slane %v10854_v7, 3 }
 0x2b3   : > { %8464 = vmatmul.msk.bf16.gmra.mxu1 %vm13768_vm2, %v3553_v26  ;;  %vm13780_vm2 = vmmov %vm13762_vm0 }
 0x2b4   : > { %13769 = vst [vmem:[#allocation26_spill] sm:$0xff] %v10903_v53 }
 0x2b5   : > { %v2390_v22 = vpop.f32.mrf.mxu0  ;;  %8525 = vmatmul.msk.bf16.gmra.mxu3 %vm13770_vm11, %v4140_v27  ;;  %vm13781_vm11 = vmmov %vm13762_vm0 }
 0x2b6   : > { %v2428_v55 = vadd.f32 %v2390_v22, %v10393_v6  ;;  %v10916_v6 = vld [vmem:[#allocation2 + $0x50] sm:$0xff]  ;;  %v10920_v20 = vpop.f32.mrf.mxu2 }
 0x2b7   : > { %v3287_v56 = vshll.u32 %v10916_v6, 16 }
 0x2b8   : > { %v2878_v50 = vadd.f32 %v10779_v14, %v2428_v55  ;;  %8449 = vmatmul.msk.bf16.gmra.mxu0 %vm13771_vm1, %v3282_v49  ;;  %v3168_v62 = vpop.f32.mrf.mxu3  ;;  %v2507_v17 = vpop.f32.mrf.mxu1  ;;  %v3284_v14 = vshrl.u32 %v10916_v6, 16  ;;  %vm13782_vm1 = vmmov %vm13762_vm0 }
 0x2b9   : > { %2551 = vst.msk [vmem:[#allocation6 + $0xc8] sm:$0xff] %vm2525_vm3, %v2507_v17  ;;  %v3289_v32 = vrot.slane %v3287_v56, 3 }
 0x2ba   : > { %v10912_v37 = vadd.f32 %v3163_v15, %v2878_v50  ;;  %v3286_v51 = vrot.slane %v3284_v14, 2 }
 0x2bc   : > { %13773 = vst [vmem:[#allocation10_spill] sm:$0xff] %v10912_v37  ;;  %v3290_v27 = vor.u32 %v3289_v32, %v3286_v51  ;;  %v11257_v37 = vld [vmem:[#allocation2 + $0x80] sm:$0xff] }
 0x2bd   : > { %v2392_v47 = vpop.f32.mrf.mxu0 }
 0x2be   : > { %v2429_v58 = vadd.f32 %v2392_v47, %v10412_v35  ;;  %v3555_v35 = vsel %vm13454_vm13, %v3552_v60, %v3554_v44  ;;  %v3291_v49 = vsel %vm13457_vm8, %v3281_v3, %v3290_v27  ;;  %v10937_v60 = vpop.f32.mrf.mxu2 }
 0x2c0   : > { %v10923_v26 = vpop.f32.mrf.mxu3  ;;  %v2879_v15 = vadd.f32 %v10791_v12, %v2429_v58  ;;  %v2510_v7 = vpop.f32.mrf.mxu1  ;;  %v4244_v58 = vrot.slane %v10848_v38, 3 }
 0x2c1   : > { %13774 = vst [vmem:[#allocation27_spill] sm:$0xff] %v10923_v26 }
 0x2c2   : > { %2552 = vst.msk [vmem:[#allocation6 + $0xd0] sm:$0xff] %vm2525_vm3, %v2510_v7  ;;  %v10931_v9 = vadd.f32 %v3165_v31, %v2879_v15  ;;  %v3556_v31 = vrot.slane %v10887_v8, 3  ;;  %v4245_v32 = vsel %vm13454_vm13, %v4242_v23, %v4244_v58 }
 0x2c3   : > { %8465 = vmatmul.msk.bf16.gmra.mxu1 %vm13762_vm0, %v3555_v35  ;;  %vm13456_vm0 = vcmask 60416  }
 0x2c4   : > { %13775 = vst [vmem:[#allocation20_spill] sm:$0xff] %v10931_v9 }
 0x2c5   : > { %v2395_v22 = vpop.f32.mrf.mxu0  ;;  %8530 = vmatmul.msk.bf16.vlgmr.msra.gmra.mxu3 %vm13776_vm7, %v4243_v45  ;;  %vm13783_vm7 = vmmov %vm13782_vm1 }
 0x2c6   : > { %v2430_v55 = vadd.f32 %v2395_v22, %v10431_v63  ;;  %v10947_v63 = vld [vmem:[#allocation2 + $0x58] sm:$0xff]  ;;  %v10959_v51 = vpop.f32.mrf.mxu2 }
 0x2c7   : > { %v3296_v47 = vshll.u32 %v10947_v63, 16 }
 0x2c8   : > { %v2880_v12 = vadd.f32 %v10815_v10, %v2430_v55  ;;  %8450 = vmatmul.msk.bf16.gmra.mxu0 %vm13777_vm10, %v3291_v49  ;;  %v3860_v48 = vpop.f32.mrf.mxu3  ;;  %v2512_v50 = vpop.f32.mrf.mxu1  ;;  %v3293_v10 = vshrl.u32 %v10947_v63, 16  ;;  %v3558_v49 = vrot.slane %v10916_v6, 3  ;;  %v10972_v55 = vld [vmem:[#allocation2 + $0x60] sm:$0xff]  ;;  %vm13785_vm10 = vmmov %vm13782_vm1 }
 0x2c9   : > { %v3861_v17 = vadd.f32 %v3860_v48, %v10863_v34  ;;  %2553 = vst.msk [vmem:[#allocation6 + $0xd8] sm:$0xff] %vm2525_vm3, %v2512_v50  ;;  %v3298_v34 = vrot.slane %v3296_v47, 3 }
 0x2ca   : > { %v10941_v3 = vadd.f32 %v3168_v62, %v2880_v12  ;;  %v3295_v14 = vrot.slane %v3293_v10, 2  ;;  %v3557_v62 = vsel %vm13454_vm13, %v3554_v44, %v3556_v31  ;;  %v3302_v12 = vshrl.u32 %v10972_v55, 16 }
 0x2cc   : > { %13778 = vst [vmem:[#allocation28_spill] sm:$0xff] %v10941_v3  ;;  %v3299_v8 = vor.u32 %v3298_v34, %v3295_v14  ;;  %v3304_v48 = vrot.slane %v3302_v12, 2  ;;  %v13784_v14 = vmov 0  }
 0x2cd   : > { %v2397_v40 = vpop.f32.mrf.mxu0  ;;  %351 = vst.msk [vmem:[#allocation4] sm:$0xf] %vm13456_vm0, %v13784_v14 }
 0x2ce   : > { %v10945_v1 = vadd.f32 %v2397_v40, %v10450_v61  ;;  %v8642_v61 = vld [vmem:[%s13399_s2 + $0xc] sm:$0xf]  ;;  %v3300_v44 = vsel %vm13457_vm8, %v3290_v27, %v3299_v8  ;;  %v3901_v22 = vpop.f32.mrf.mxu2  ;;  %v3305_v27 = vshll.u32 %v10972_v55, 16  ;;  %352 = vst.msk [vmem:[#allocation4 + $0x4] sm:$0xf] %vm13456_vm0, %v13784_v14 }
 0x2cf   : > { %v5848_v38 = vsel %vm13446_vm9, %v8642_v61, 0  ;;  %353 = vst.msk [vmem:[#allocation4 + $0x8] sm:$0xf] %vm13456_vm0, %v13784_v14  ;;  %v3906_v61 = vadd.f32 %v10937_v60, %v3861_v17  ;;  %v11018_v60 = vld [vmem:[#allocation2 + $0x68] sm:$0xff] }
 0x2d0   : > { %13779 = vst [vmem:[#allocation29_spill] sm:$0xff] %v10945_v1  ;;  %v10952_v56 = vpop.f32.mrf.mxu3  ;;  %v2515_v5 = vpop.f32.mrf.mxu1  ;;  %5857 = vmatpush.bf16.msra.mxu1 %v5848_v38  ;;  %v3307_v50 = vrot.slane %v3305_v27, 3  ;;  %v3311_v17 = vshrl.u32 %v11018_v60, 16 }
 0x2d1   : > { %2554 = vst.msk [vmem:[#allocation6 + $0xe0] sm:$0xff] %vm2525_vm3, %v2515_v5 }
 0x2d2   : > { %v3308_v47 = vor.u32 %v3307_v50, %v3304_v48  ;;  %354 = vst.msk [vmem:[#allocation4 + $0xc] sm:$0xf] %vm13456_vm0, %v13784_v14  ;;  %v3313_v27 = vrot.slane %v3311_v17, 2 }
 0x2d3   : > { %8466 = vmatmul.msk.bf16.gmra.mxu1 %vm13780_vm2, %v3557_v62  ;;  %355 = vst.msk [vmem:[#allocation4 + $0x10] sm:$0xf] %vm13456_vm0, %v13784_v14  ;;  %v4953_v62 = vld [vmem:[%s13399_s2] sm:$0xf]  ;;  %vm13786_vm2 = vmmov %vm13782_vm1 }
 0x2d4   : > { %v3309_v58 = vsel %vm13457_vm8, %v3299_v8, %v3308_v47  ;;  %356 = vst.msk [vmem:[#allocation4 + $0x14] sm:$0xf] %vm13456_vm0, %v13784_v14  ;;  %v5346_v8 = vsel %vm13446_vm9, %v4953_v62, 0 }
 0x2d5   : > { %v3424_v15 = vpop.f32.mrf.mxu0  ;;  %8531 = vmatmul.msk.bf16.gmra.mxu3 %vm13781_vm11, %v4245_v32  ;;  %357 = vst.msk [vmem:[#allocation4 + $0x18] sm:$0xf] %vm13456_vm0, %v13784_v14  ;;  %vm13787_vm11 = vmmov %vm13782_vm1 }
 0x2d6   : > { %v10988_v34 = vpop.f32.mrf.mxu2  ;;  %5355 = vmatpush.bf16.msrb.mxu3 %v5346_v8  ;;  %358 = vst.msk [vmem:[#allocation4 + $0x1c] sm:$0xf] %vm13456_vm0, %v13784_v14  ;;  %v3504_v12 = vadd.f32 %v3424_v15, %v10399_v25 }
 0x2d7   : > { %359 = vst.msk [vmem:[#allocation4 + $0x20] sm:$0xf] %vm13456_vm0, %v13784_v14 }
 0x2d8   : > { %8451 = vmatmul.msk.bf16.gmra.mxu0 %vm13782_vm1, %v3300_v44  ;;  %v3865_v7 = vpop.f32.mrf.mxu3  ;;  %v2517_v35 = vpop.f32.mrf.mxu1  ;;  %v3560_v44 = vrot.slane %v10947_v63, 3  ;;  %360 = vst.msk [vmem:[#allocation4 + $0x24] sm:$0xf] %vm13456_vm0, %v13784_v14 }
 0x2d9   : > { %v3866_v45 = vadd.f32 %v3865_v7, %v10900_v39  ;;  %2555 = vst.msk [vmem:[#allocation6 + $0xe8] sm:$0xff] %vm2525_vm3, %v2517_v35  ;;  %v3559_v39 = vsel %vm13454_vm13, %v3556_v31, %v3558_v49  ;;  %v11014_v7 = vld [vmem:[#allocation4] sm:$0xff]   ;;  %v3314_v35 = vshll.u32 %v11018_v60, 16 }
 0x2da   : > { %361 = vst.msk [vmem:[#allocation4 + $0x28] sm:$0xf] %vm13456_vm0, %v13784_v14  ;;  %v3561_v25 = vsel %vm13454_vm13, %v3558_v49, %v3560_v44 }
 0x2db   : > { %v3316_v48 = vrot.slane %v3314_v35, 3  ;;  %362 = vst.msk [vmem:[#allocation4 + $0x2c] sm:$0xf] %vm13456_vm0, %v13784_v14 }
 0x2dc   : > { %363 = vst.msk [vmem:[#allocation4 + $0x30] sm:$0xf] %vm13456_vm0, %v13784_v14 }
 0x2dd   : > { %v10969_v23 = vpop.f32.mrf.mxu0  ;;  %v11040_v15 = vor.u32 %v3316_v48, %v3313_v27  ;;  %364 = vst.msk [vmem:[#allocation4 + $0x34] sm:$0xf] %vm13456_vm0, %v13784_v14  ;;  %v13442_v48 = vrot.slane %v10972_v55, 3 }
 0x2de   : > { %v11029_v50 = vpop.f32.mrf.mxu2  ;;  %365 = vst.msk [vmem:[#allocation4 + $0x38] sm:$0xf] %vm13456_vm0, %v13784_v14 }
 0x2df   : > { %366 = vst.msk [vmem:[#allocation4 + $0x3c] sm:$0xf] %vm13456_vm0, %v13784_v14 }
 0x2e0   : > { %v10976_v40 = vpop.f32.mrf.mxu3  ;;  %v2520_v10 = vpop.f32.mrf.mxu1  ;;  %367 = vst.msk [vmem:[#allocation4 + $0x40] sm:$0xf] %vm13456_vm0, %v13784_v14 }
 0x2e1   : > { %2556 = vst.msk [vmem:[#allocation6 + $0xf0] sm:$0xff] %vm2525_vm3, %v2520_v10 }
 0x2e2   : > { %368 = vst.msk [vmem:[#allocation4 + $0x44] sm:$0xf] %vm13456_vm0, %v13784_v14 }
 0x2e3   : > { %8467 = vmatmul.msk.bf16.gmra.mxu1 %vm13783_vm7, %v3559_v39  ;;  %369 = vst.msk [vmem:[#allocation4 + $0x48] sm:$0xf] %vm13456_vm0, %v13784_v14  ;;  %vm4322_vm7 = vcmask 60417  }
 0x2e4   : > { %370 = vst.msk [vmem:[#allocation4 + $0x4c] sm:$0xf] %vm13456_vm0, %v13784_v14 }
 0x2e5   : > { %v10981_v6 = vpop.f32.mrf.mxu0  ;;  %8609 = vmatmul.msk.bf16.vlgmr.msrb.gmra.mxu3 %vm2525_vm3, %v11014_v7  ;;  %371 = vst.msk [vmem:[#allocation4 + $0x50] sm:$0xf] %vm13456_vm0, %v13784_v14 }
 0x2e6   : > { %372 = vst.msk [vmem:[#allocation4 + $0x54] sm:$0xf] %vm13456_vm0, %v13784_v14 }
 0x2e7   : > { %373 = vst.msk [vmem:[#allocation4 + $0x58] sm:$0xf] %vm13456_vm0, %v13784_v14 }
 0x2e8   : > { %8452 = vmatmul.msk.bf16.gmra.mxu0 %vm13785_vm10, %v3309_v58  ;;  %v3946_v31 = vpop.f32.mrf.mxu3  ;;  %v2522_v5 = vpop.f32.mrf.mxu1  ;;  %374 = vst.msk [vmem:[#allocation4 + $0x5c] sm:$0xf] %vm13456_vm0, %v13784_v14  ;;  %vm13788_vm10 = vmmov %vm13782_vm1 }
 0x2e9   : > { %2557 = vst.msk [vmem:[#allocation6 + $0xf8] sm:$0xff] %vm2525_vm3, %v2522_v5  ;;  %v11007_v32 = vadd.f32 %v3946_v31, %v3906_v61  ;;  %v8625_v31 = vld [vmem:[%s13399_s2 + $0x8] sm:$0xf]  ;;  %v3908_v5 = vadd.f32 %v3901_v22, %v3866_v45  ;;  %v3318_v61 = vsel %vm13457_vm8, %v3308_v47, %v11040_v15  ;;  %v3505_v45 = vadd.f32 %v10969_v23, %v10415_v21  ;;  %v11068_v22 = vld [vmem:[%s13403_s6] ss:$0 sm:$0xff]  ;;  %v11081_v23 = vpop.f32.mrf.mxu2 }
 0x2ea   : > { %v5525_v62 = vsel %vm13446_vm9, %v8625_v31, 0  ;;  %v11079_v21 = vld [vmem:[%s13404_s7] ss:$0 sm:$0xff]  ;;  %v8532_v31 = vld [vmem:[%s13399_s2 + $0x4] sm:$0xf] }
 0x2eb   : > { %5534 = vmatpush.bf16.msra.mxu0 %v5525_v62  ;;  %375 = vst.msk [vmem:[#allocation4 + $0x60] sm:$0xf] %vm13456_vm0, %v13784_v14 }
 0x2ec   : > { %376 = vst.msk [vmem:[#allocation4 + $0x64] sm:$0xf] %vm13456_vm0, %v13784_v14 }
 0x2ed   : > { %v11009_v38 = vpop.f32.mrf.mxu0  ;;  %377 = vst.msk [vmem:[#allocation4 + $0x68] sm:$0xf] %vm13456_vm0, %v13784_v14 }
 0x2ee   : > { %378 = vst.msk [vmem:[#allocation4 + $0x6c] sm:$0xf] %vm13456_vm0, %v13784_v14 }
 0x2ef   : > { %379 = vst.msk [vmem:[#allocation4 + $0x70] sm:$0xf] %vm13456_vm0, %v13784_v14 }
 0x2f0   : > { %v11031_v10 = vpop.f32.mrf.mxu3  ;;  %v3636_v39 = vpop.f32.mrf.mxu1  ;;  %380 = vst.msk [vmem:[#allocation4 + $0x74] sm:$0xf] %vm13456_vm0, %v13784_v14 }
 0x2f1   : > { %v3716_v58 = vadd.f32 %v3636_v39, %v3504_v12  ;;  %381 = vst.msk [vmem:[#allocation4 + $0x78] sm:$0xf] %vm13456_vm0, %v13784_v14 }
 0x2f2   : > { %382 = vst.msk [vmem:[#allocation4 + $0x7c] sm:$0xf] %vm13456_vm0, %v13784_v14 }
 0x2f3   : > { %3748 = vst.msk [vmem:[#allocation3] sm:$0xff] %vm2525_vm3, %v3716_v58  ;;  %8468 = vmatmul.msk.bf16.gmra.mxu1 %vm13786_vm2, %v3561_v25  ;;  %v3506_v58 = vadd.f32 %v10981_v6, %v10437_v36  ;;  %v3563_v6 = vsel %vm13454_vm13, %v3560_v44, %v13442_v48  ;;  %vm13789_vm2 = vsmask.f32 7942 }
 0x2f4   : > { %383 = vst.msk [vmem:[#allocation4 + $0x80] sm:$0xf] %vm13456_vm0, %v13784_v14 }
 0x2f5   : > { %v11052_v49 = vpop.f32.mrf.mxu0  ;;  %384 = vst.msk [vmem:[#allocation4 + $0x84] sm:$0xf] %vm13456_vm0, %v13784_v14 }
 0x2f6   : > { %385 = vst.msk [vmem:[#allocation4 + $0x88] sm:$0xf] %vm13456_vm0, %v13784_v14 }
 0x2f7   : > { %386 = vst.msk [vmem:[#allocation4 + $0x8c] sm:$0xf] %vm13456_vm0, %v13784_v14 }
 0x2f8   : > { %8453 = vmatmul.msk.bf16.gmra.mxu0 %vm13787_vm11, %v3318_v61  ;;  %v3951_v47 = vpop.f32.mrf.mxu3  ;;  %v3638_v8 = vpop.f32.mrf.mxu1  ;;  %387 = vst.msk [vmem:[#allocation4 + $0x90] sm:$0xf] %vm13456_vm0, %v13784_v14  ;;  %vm11159_vm11 = vmand %vm4322_vm7, %vm13789_vm2  ;;  %vm13793_vm7 = vsmask.f32 1280  ;;  %vm13797_vm2 = vcmask 31744  }
 0x2f9   : > { %v11072_v17 = vadd.f32 %v3951_v47, %v3908_v5  ;;  %v3717_v35 = vadd.f32 %v3638_v8, %v3505_v45  ;;  %v5222_v5 = vsel %vm13446_vm9, %v8532_v31, 0  ;;  %v11125_v31 = vpop.f32.mrf.mxu2  ;;  %388 = vst.msk [vmem:[#allocation4 + $0x94] sm:$0xf] %vm13456_vm0, %v13784_v14 }
 0x2fa   : > { %v4290_v12 = vld [vmem:[#allocation3] sm:$0xff]  ;;  %5231 = vmatpush.bf16.msrb.mxu2 %v5222_v5  ;;  %389 = vst.msk [vmem:[#allocation4 + $0x98] sm:$0xf] %vm13456_vm0, %v13784_v14 }
 0x2fb   : > { %v4292_v27 = vmul.f32 %v11068_v22, %v4290_v12  ;;  %3749 = vst.msk [vmem:[#allocation3 + $0x8] sm:$0xff] %vm2525_vm3, %v3717_v35  ;;  %v11120_v35 = vld [vmem:[#allocation2 + $0x70] sm:$0xff] }
 0x2fc   : > { %v3320_v12 = vshrl.u32 %v11120_v35, 16  ;;  %v3323_v63 = vshll.u32 %v11120_v35, 16  ;;  %390 = vst.msk [vmem:[#allocation4 + $0x9c] sm:$0xf] %vm13456_vm0, %v13784_v14  ;;  %v13816_v52 = vrot.slane %v11120_v35, 3 }
 0x2fd   : > { %v11092_v39 = vpop.f32.mrf.mxu0  ;;  %v4294_v25 = vadd.f32 %v11079_v21, %v4292_v27 }
 0x2fe   : > { %v3325_v5 = vrot.slane %v3323_v63, 3 }
 0x2ff   : > { %v4296_v62 = vmax.f32 %v4294_v25, 0.0 }
 0x300   : > { %v11105_v61 = vpop.f32.mrf.mxu3  ;;  %v3641_v36 = vpop.f32.mrf.mxu1 }
 0x301   : > { %v4298_v45 = vpack.c.bf16 %v4296_v62, %v4296_v62  ;;  %v3718_v47 = vadd.f32 %v3641_v36, %v3506_v58  ;;  %v3322_v58 = vrot.slane %v3320_v12, 2  ;;  %v3507_v36 = vadd.f32 %v11009_v38, %v10455_v13 }
 0x302   : > { %v4291_v8 = vld [vmem:[#allocation3 + $0x8] sm:$0xff] }
 0x303   : > { %v4301_v27 = vshrl.u32 %v4298_v45, 16  ;;  %v4304_v44 = vshll.u32 %v4298_v45, 16  ;;  %v4293_v25 = vmul.f32 %v11068_v22, %v4291_v8  ;;  %3750 = vst.msk [vmem:[#allocation3 + $0x10] sm:$0xff] %vm2525_vm3, %v3718_v47  ;;  %8469 = vmatmul.msk.bf16.gmra.mxu1 %vm13782_vm1, %v3563_v6  ;;  %v11140_v47 = vor.u32 %v3325_v5, %v3322_v58  ;;  %v4324_v5 = vld [vmem:[#allocation4 + $0x8] sm:$0xe] }
 0x304   : > { %vm391_vm1 = vcmask 58368  }
 0x305   : > { %v4295_v62 = vadd.f32 %v11079_v21, %v4293_v25  ;;  %v11138_v45 = vpop.f32.mrf.mxu0  ;;  %v4303_v6 = vrot.slane %v4301_v27, 6  ;;  %v4306_v8 = vrot.slane %v4304_v44, 7  ;;  %v3327_v13 = vsel %vm13457_vm8, %v11040_v15, %v11140_v47  ;;  %392 = vst.msk [vmem:[#allocation4 + $0xa0] sm:$0x3] %vm391_vm1, %v13784_v14 }
 0x306   : > { %v13443_v15 = vrot.slane %v11018_v60, 3 }
 0x307   : > { %v4297_v48 = vmax.f32 %v4295_v62, 0.0  ;;  %v4307_v27 = vor.u32 %v4306_v8, %v4303_v6  ;;  %v3508_v6 = vadd.f32 %v11052_v49, %v10477_v59  ;;  %v13792_v59 = vrot.slane %v10972_v55, 3  ;;  %v11192_v55 = vld [vmem:[#allocation2 + $0x78] sm:$0xff] }
 0x308   : > { %v4046_v12 = vpop.f32.mrf.mxu3  ;;  %v3643_v63 = vpop.f32.mrf.mxu1  ;;  %8454 = vmatmul.msk.bf16.gmra.mxu0 %vm13788_vm10, %v3327_v13  ;;  %vm11185_vm10 = vmand %vm391_vm1, %vm13793_vm7  ;;  %vm4365_vm1 = vcmask 60418  }
 0x309   : > { %v4299_v38 = vpack.c.bf16 %v4297_v48, %v4297_v48  ;;  %v3719_v25 = vadd.f32 %v3643_v63, %v3507_v36  ;;  %v11163_v63 = vpop.f32.mrf.mxu2  ;;  %v4308_v13 = vrot.slane %v4307_v27, 4  ;;  %v3565_v49 = vsel %vm13454_vm13, %v13792_v59, %v13443_v15  ;;  %4056 = vst.msk [vmem:[#allocation6 + $0x100] sm:$0xff] %vm2525_vm3, %v4046_v12  ;;  %vm13798_vm7 = vmmov %vm13797_vm2 }
 0x30a   : > { %v3329_v12 = vshrl.u32 %v11192_v55, 16  ;;  %v3332_v59 = vshll.u32 %v11192_v55, 16 }
 0x30b   : > { %v4310_v44 = vshrl.u32 %v4299_v38, 16  ;;  %v4313_v58 = vshll.u32 %v4299_v38, 16  ;;  %3751 = vst.msk [vmem:[#allocation3 + $0x18] sm:$0xff] %vm2525_vm3, %v3719_v25 }
 0x30d   : > { %v4312_v62 = vrot.slane %v4310_v44, 6  ;;  %v4315_v36 = vrot.slane %v4313_v58, 7  ;;  %v11171_v8 = vpop.f32.mrf.mxu0  ;;  %v4325_v44 = vsel %vm11159_vm11, %v4307_v27, %v4324_v5 }
 0x30e   : > { %4326 = vst [vmem:[#allocation4 + $0x8] sm:$0xe] %v4325_v44 }
 0x30f   : > { %v4316_v38 = vor.u32 %v4315_v36, %v4312_v62  ;;  %v4330_v36 = vld [vmem:[#allocation4 + $0x10] sm:$0x3] }
 0x310   : > { %v4048_v25 = vpop.f32.mrf.mxu3  ;;  %v3646_v58 = vpop.f32.mrf.mxu1 }
 0x311   : > { %v4318_v26 = vrot.slane %v4316_v38, 4  ;;  %v3720_v3 = vadd.f32 %v3646_v58, %v3508_v6  ;;  %4057 = vst.msk [vmem:[#allocation6 + $0x108] sm:$0xff] %vm2525_vm3, %v4048_v25  ;;  %v4317_v5 = vsel %vm9290_vm12, %v4308_v13, %v4316_v38  ;;  %v5043_v25 = vshll.u32 %v11014_v7, 16 }
 0x312   : > { %v4333_v24 = vld [vmem:[#allocation3 + $0x12] sm:$0xff]  ;;  %4327 = vst.msk [vmem:[#allocation4 + $0xc] sm:$0xf] %vm13456_vm0, %v4317_v5  ;;  %v3331_v13 = vrot.slane %v3329_v12, 2  ;;  %v3334_v38 = vrot.slane %v3332_v59, 3  ;;  %v3509_v58 = vadd.f32 %v11092_v39, %v10493_v29  ;;  %v5041_v5 = vshrl.u32 %v11014_v7, 16 }
 0x313   : > { %v4335_v15 = vmul.f32 %v11068_v22, %v4333_v24  ;;  %3752 = vst.msk [vmem:[#allocation3 + $0x20] sm:$0xff] %vm2525_vm3, %v3720_v3  ;;  %8470 = vmatmul.msk.bf16.gmra.mxu1 %vm13797_vm2, %v3565_v49  ;;  %v4331_v6 = vsel %vm11185_vm10, %v4318_v26, %v4330_v36  ;;  %v11212_v49 = vpop.f32.mrf.mxu2  ;;  %v5045_v12 = vrot.slane %v5043_v25, 1  ;;  %vm13447_vm2 = vcmask 62464  }
 0x314   : > { %4332 = vst [vmem:[#allocation4 + $0x10] sm:$0x3] %v4331_v6  ;;  %v11208_v3 = vor.u32 %v3334_v38, %v3331_v13 }
 0x315   : > { %v4337_v44 = vadd.f32 %v11079_v21, %v4335_v15  ;;  %v11206_v24 = vpop.f32.mrf.mxu0  ;;  %v5046_v25 = vor.u32 %v5045_v12, %v5041_v5 }
 0x316   : > { %v3336_v29 = vsel %vm13457_vm8, %v11140_v47, %v11208_v3 }
 0x317   : > { %v4339_v26 = vmax.f32 %v4337_v44, 0.0  ;;  %v3510_v44 = vadd.f32 %v11138_v45, %v10533_v54  ;;  %v8719_v54 = vld [vmem:[%s13399_s2 + $0x10] sm:$0xf] }
 0x318   : > { %v4051_v36 = vpop.f32.mrf.mxu3  ;;  %v3648_v59 = vpop.f32.mrf.mxu1  ;;  %8455 = vmatmul.msk.bf16.gmra.mxu0 %vm13798_vm7, %v3336_v29  ;;  %v4367_v29 = vld [vmem:[#allocation4 + $0x10] sm:$0xc]  ;;  %vm13799_vm7 = vsmask.f32 7946 }
 0x319   : > { %4058 = vst.msk [vmem:[#allocation6 + $0x110] sm:$0xff] %vm2525_vm3, %v4051_v36  ;;  %v4341_v39 = vpack.c.bf16 %v4339_v26, %v4339_v26  ;;  %v3721_v15 = vadd.f32 %v3648_v59, %v3509_v58  ;;  %v11222_v7 = vld [vmem:[#allocation4 + $0x8] sm:$0xff]  ;;  %v13445_v36 = vrot.slane %v11120_v35, 3  ;;  %vm11239_vm4 = vmand %vm4365_vm1, %vm13799_vm7  ;;  %vm13803_vm1 = vsmask.f32 7424 }
 0x31a   : > { %v4334_v6 = vld [vmem:[#allocation3 + $0x1a] sm:$0xff]  ;;  %8610 = vmatmul.msk.bf16.gmra.mxu3 %vm2525_vm3, %v11222_v7  ;;  %v5048_v59 = vshll.u32 %v11222_v7, 16  ;;  %vm13804_vm7 = vcmask 31744   ;;  %v5052_v28 = vshrl.u32 %v11222_v7, 16 }
 0x31b   : > { %v4344_v14 = vshrl.u32 %v4341_v39, 16  ;;  %v4347_v13 = vshll.u32 %v4341_v39, 16  ;;  %v4336_v38 = vmul.f32 %v11068_v22, %v4334_v6  ;;  %3753 = vst.msk [vmem:[#allocation3 + $0x28] sm:$0xff] %vm2525_vm3, %v3721_v15 }
 0x31c   : > { %v11233_v12 = vrot.slane %v5048_v59, 1 }
 0x31d   : > { %v4346_v47 = vrot.slane %v4344_v14, 5  ;;  %v4349_v58 = vrot.slane %v4347_v13, 6  ;;  %v4338_v26 = vadd.f32 %v11079_v21, %v4336_v38  ;;  %v11231_v39 = vpop.f32.mrf.mxu0  ;;  %v13802_v13 = vrot.slane %v11018_v60, 3 }
 0x31e   : > { %v5051_v1 = vsel %vm13803_vm1, %v5046_v25, %v11233_v12  ;;  %vm4371_vm1 = vcmask 59392  }
 0x31f   : > { %v4350_v15 = vor.u32 %v4349_v58, %v4346_v47  ;;  %v4340_v5 = vmax.f32 %v4338_v26, 0.0  ;;  %v3567_v38 = vsel %vm13454_vm13, %v13802_v13, %v13445_v36  ;;  %v6178_v47 = vsel %vm13446_vm9, %v8719_v54, 0  ;;  %v11250_v26 = vpop.f32.mrf.mxu2  ;;  %8593 = vmatmul.msk.bf16.vlgmr.msrb.gmra.mxu2 %vm2525_vm3, %v5051_v1 }
 0x320   : > { %v4053_v45 = vpop.f32.mrf.mxu3  ;;  %v3651_v14 = vpop.f32.mrf.mxu1  ;;  %6187 = vmatpush.bf16.msra.mxu2 %v6178_v47  ;;  %v3338_v54 = vshrl.u32 %v11257_v37, 16  ;;  %v3511_v1 = vadd.f32 %v11171_v8, %v10556_v0  ;;  %v13806_v8 = vmov 0 }
 0x321   : > { %4060 = vst.msk [vmem:[#allocation6 + $0x118] sm:$0x3f] %vm13447_vm2, %v4053_v45  ;;  %v4342_v58 = vpack.c.bf16 %v4340_v5, %v4340_v5  ;;  %v3722_v59 = vadd.f32 %v3651_v14, %v3510_v44  ;;  %v4368_v60 = vsel %vm11239_vm4, %v4350_v15, %v4367_v29  ;;  %v3341_v45 = vshll.u32 %v11257_v37, 16 }
 0x322   : > { %v4376_v9 = vld [vmem:[#allocation3 + $0x24] sm:$0xff]  ;;  %4369 = vst [vmem:[#allocation4 + $0x10] sm:$0xc] %v4368_v60  ;;  %v3340_v25 = vrot.slane %v3338_v54, 2  ;;  %v4373_v60 = vld [vmem:[#allocation4 + $0x18] sm:$0x7] }
 0x323   : > { %v4353_v5 = vshrl.u32 %v4342_v58, 16  ;;  %v4356_v13 = vshll.u32 %v4342_v58, 16  ;;  %v4378_v44 = vmul.f32 %v11068_v22, %v4376_v9  ;;  %3754 = vst.msk [vmem:[#allocation3 + $0x30] sm:$0xff] %vm2525_vm3, %v3722_v59  ;;  %8471 = vmatmul.msk.bf16.gmra.mxu1 %vm13804_vm7, %v3567_v38  ;;  %v3343_v29 = vrot.slane %v3341_v45, 3 }
 0x324   : > { %v4351_v9 = vrot.slane %v4350_v15, 4  ;;  %vm13805_vm7 = vsmask.f32 2304  ;;  %vm4408_vm2 = vcmask 60419  }
 0x325   : > { %v4355_v14 = vrot.slane %v4353_v5, 5  ;;  %v4358_v47 = vrot.slane %v4356_v13, 6  ;;  %v4380_v36 = vadd.f32 %v11079_v21, %v4378_v44  ;;  %v11267_v53 = vpop.f32.mrf.mxu0  ;;  %v11269_v58 = vor.u32 %v3343_v29, %v3340_v25  ;;  %vm11277_vm9 = vmand %vm4371_vm1, %vm13805_vm7 }
 0x326   : > { %v13807_v8 = vsel %vm11277_vm9, 4294967295, %v13806_v8  ;;  %vm13818_vm7 = vsmask.f32 7424 }
 0x327   : > { %v4359_v11 = vor.u32 %v4358_v47, %v4355_v14  ;;  %v4382_v59 = vmax.f32 %v4380_v36, 0.0  ;;  %v3345_v0 = vsel %vm13457_vm8, %v11208_v3, %v11269_v58  ;;  %13808 = vst [vmem:[#allocation30_spill] sm:$0xff] %v13807_v8  ;;  %v11285_v25 = vpop.f32.mrf.mxu2 }
 0x328   : > { %v11271_v42 = vpop.f32.mrf.mxu3  ;;  %v3653_v38 = vpop.f32.mrf.mxu1  ;;  %8456 = vmatmul.msk.bf16.gmra.mxu0 %vm13810_vm14, %v3345_v0  ;;  %vm13811_vm14 = vsmask.f32 7950 }
 0x329   : > { %v4361_v54 = vrot.slane %v4359_v11, 4  ;;  %v4384_v45 = vpack.c.bf16 %v4382_v59, %v4382_v59  ;;  %v3723_v5 = vadd.f32 %v3653_v38, %v3511_v1  ;;  %v4360_v36 = vsel %vm9319_vm15, %v4351_v9, %v4359_v11  ;;  %v5649_v1 = vld [vmem:[#allocation4 + $0xc] sm:$0xf]  ;;  %vm11296_vm1 = vmand %vm4408_vm2, %vm13811_vm14  ;;  %v4410_v59 = vld [vmem:[#allocation4 + $0x18] sm:$0x8] }
 0x32a   : > { %v4377_v13 = vld [vmem:[#allocation3 + $0x2c] sm:$0xff]  ;;  %4370 = vst.msk [vmem:[#allocation4 + $0x14] sm:$0xf] %vm13456_vm0, %v4360_v36  ;;  %v3863_v11 = vadd.f32 %v10952_v56, %v10880_v41  ;;  %v13812_v9 = vmov 0  ;;  %v5648_v41 = vld [vmem:[#allocation4 + $0x8] sm:$0xe]  ;;  %v5717_v56 = vunpack.c.l.b16 %v5649_v1 }
 0x32b   : > { %v4387_v44 = vshll.u32 %v4384_v45, 16  ;;  %v4390_v3 = vshrl.u32 %v4384_v45, 16  ;;  %v4379_v29 = vmul.f32 %v11068_v22, %v4377_v13  ;;  %3755 = vst.msk [vmem:[#allocation3 + $0x38] sm:$0xff] %vm2525_vm3, %v3723_v5  ;;  %v4374_v14 = vsel %vm11277_vm9, %v4361_v54, %v4373_v60  ;;  %v6301_v54 = vld [vmem:[#allocation4 + $0x8] sm:$0xc] }
 0x32c   : > { %4375 = vst [vmem:[#allocation4 + $0x18] sm:$0x7] %v4374_v14  ;;  %v13813_v9 = vsel %vm11296_vm1, 4294967295, %v13812_v9  ;;  %v3512_v60 = vadd.f32 %v11206_v24, %v10570_v4  ;;  %v3907_v47 = vadd.f32 %v10959_v51, %v3863_v11  ;;  %v6305_v24 = vunpack.c.l.b16 %v6301_v54  ;;  %v11320_v11 = vld [vmem:[#allocation2 + $0x88] sm:$0xff] }
 0x32d   : > { %13814 = vst [vmem:[#allocation18_spill] sm:$0xff] %v13813_v9  ;;  %v4389_v38 = vrot.slane %v4387_v44, 5  ;;  %v4392_v0 = vrot.slane %v4390_v3, 4  ;;  %v4381_v45 = vadd.f32 %v11079_v21, %v4379_v29  ;;  %v11303_v5 = vpop.f32.mrf.mxu0  ;;  %v13815_v29 = vrot.slane %v11192_v55, 3 }
 0x32e   : > { %v5716_v57 = vunpack.c.l.b16 %v5648_v41  ;;  %v3513_v51 = vadd.f32 %v11231_v39, %v10585_v43  ;;  %v3350_v35 = vshll.u32 %v11320_v11, 16  ;;  %vm13817_vm2 = vcmask 31744  }
 0x32f   : > { %v4383_v36 = vmax.f32 %v4381_v45, 0.0  ;;  %v4411_v14 = vsel %vm11296_vm1, %v4389_v38, %v4410_v59  ;;  %v4393_v44 = vor.u32 %v4392_v0, %v4389_v38  ;;  %v3569_v4 = vsel %vm13454_vm13, %v13816_v52, %v13815_v29 }
 0x330   : > { %v11305_v13 = vpop.f32.mrf.mxu3  ;;  %v3656_v3 = vpop.f32.mrf.mxu1  ;;  %4412 = vst [vmem:[#allocation4 + $0x18] sm:$0x8] %v4411_v14  ;;  %v3347_v38 = vshrl.u32 %v11320_v11, 16  ;;  %v6306_v52 = vpack.c.b16 %v5717_v56, %v6305_v24  ;;  %v5054_v41 = vor.u32 %v5052_v28, %v11233_v12  ;;  %v3352_v14 = vrot.slane %v3350_v35, 3 }
 0x331   : > { %v4385_v46 = vpack.c.bf16 %v4383_v36, %v4383_v36  ;;  %v3724_v1 = vadd.f32 %v3656_v3, %v3512_v60  ;;  %v11315_v45 = vld [vmem:[#allocation4 + $0x10] sm:$0xff]  ;;  %v4394_v39 = vrot.slane %v4393_v44, 4  ;;  %v11333_v24 = vpop.f32.mrf.mxu2  ;;  %v11343_v44 = vpack.c.b16 %v5717_v56, %v5716_v57 }
 0x332   : > { %v4419_v59 = vld [vmem:[#allocation3 + $0x36] sm:$0xff]  ;;  %8611 = vmatmul.msk.bf16.gmra.mxu3 %vm2525_vm3, %v11315_v45  ;;  %v5056_v43 = vshll.u32 %v11315_v45, 16  ;;  %v3349_v36 = vrot.slane %v3347_v38, 2  ;;  %vm13820_vm14 = vsmask.f32 3328 }
 0x333   : > { %v4396_v0 = vshll.u32 %v4385_v46, 16  ;;  %v4400_v54 = vshrl.u32 %v4385_v46, 16  ;;  %v4421_v60 = vmul.f32 %v11068_v22, %v4419_v59  ;;  %3756 = vst.msk [vmem:[#allocation3 + $0x40] sm:$0xff] %vm2525_vm3, %v3724_v1  ;;  %8472 = vmatmul.msk.bf16.gmra.mxu1 %vm13817_vm2, %v3569_v4  ;;  %v11331_v3 = vld [vmem:[#allocation4 + $0x10] sm:$0xff]  ;;  %v3957_v4 = vadd.f32 %v11031_v10, %v3907_v47  ;;  %vm11355_vm2 = vmand %vm13456_vm0, %vm13820_vm14  ;;  %v4416_v10 = vld [vmem:[#allocation4 + $0x20] sm:$0xf] }
 0x334   : > { %v11336_v59 = vrot.slane %v5056_v43, 1  ;;  %v11341_v8 = vor.u32 %v3352_v14, %v3349_v36  ;;  %v6307_v47 = vrot.slane %v6306_v52, 2  ;;  %v13453_v56 = vrot.slane %v11331_v3, 2 }
 0x335   : > { %v4398_v29 = vrot.slane %v4396_v0, 5  ;;  %v4402_v46 = vrot.slane %v4400_v54, 4  ;;  %v4423_v1 = vadd.f32 %v11079_v21, %v4421_v60  ;;  %v11339_v9 = vpop.f32.mrf.mxu0  ;;  %v3868_v14 = vadd.f32 %v10976_v40, %v10920_v20 }
 0x336   : > { %v5059_v38 = vsel %vm13818_vm7, %v5054_v41, %v11336_v59  ;;  %vm13823_vm7 = vcmask 31744   ;;  %vm13824_vm14 = vcmask 1045504   ;;  %v5978_v40 = vshrl.u32 %v11343_v44, 16 }
 0x337   : > { %v4403_v28 = vor.u32 %v4402_v46, %v4398_v29  ;;  %v4425_v12 = vmax.f32 %v4423_v1, 0.0  ;;  %v4399_v54 = vsel %vm9529_vm5, %v4394_v39, %v4398_v29  ;;  %8594 = vmatmul.msk.bf16.gmra.mxu2 %vm2525_vm3, %v5059_v38  ;;  %v3354_v39 = vsel %vm13457_vm8, %v11269_v58, %v11341_v8 }
 0x338   : > { %v11347_v35 = vpop.f32.mrf.mxu3  ;;  %v3658_v60 = vpop.f32.mrf.mxu1  ;;  %4413 = vst.msk [vmem:[#allocation4 + $0x1c] sm:$0xf] %vm13456_vm0, %v4399_v54  ;;  %v4029_v29 = vadd.f32 %v11029_v50, %v11007_v32  ;;  %v4030_v46 = vadd.f32 %v11081_v23, %v3957_v4  ;;  %8457 = vmatmul.msk.bf16.gmra.mxu0 %vm13823_vm7, %v3354_v39  ;;  %v11372_v52 = vsel %vm13824_vm14, %v6307_v47, %v13453_v56  ;;  %v13455_v32 = vrot.slane %v11257_v37, 3 }
 0x339   : > { %v4404_v43 = vrot.slane %v4403_v28, 4  ;;  %v4427_v41 = vpack.c.bf16 %v4425_v12, %v4425_v12  ;;  %v3725_v36 = vadd.f32 %v3658_v60, %v3513_v51  ;;  %13825 = vst [vmem:[#allocation31_spill] sm:$0xff] %v11372_v52  ;;  %v5981_v50 = vshll.u32 %v11343_v44, 16  ;;  %v4222_v38 = vpop.f32.mrf.mxu2  ;;  %v3205_v60 = vld [vmem:[#allocation2 + $0x90] sm:$0x7] }
 0x33a   : > { %v4420_v1 = vld [vmem:[#allocation3 + $0x3e] sm:$0xff]  ;;  %v5986_v23 = vshrl.u32 %v11331_v3, 16  ;;  %v3514_v54 = vadd.f32 %v11267_v53, %v10602_v2  ;;  %v4113_v47 = vadd.f32 %v11212_v49, %v4029_v29  ;;  %vm13826_vm7 = vsmask.f32 7938 }
 0x33b   : > { %v4430_v51 = vshrl.u32 %v4427_v41, 16  ;;  %v4422_v28 = vmul.f32 %v11068_v22, %v4420_v1  ;;  %3757 = vst.msk [vmem:[#allocation3 + $0x48] sm:$0xff] %vm2525_vm3, %v3725_v36  ;;  %v4417_v20 = vsel %vm11355_vm2, %v4404_v43, %v4416_v10  ;;  %v4433_v4 = vshll.u32 %v4427_v41, 16  ;;  %vm11393_vm14 = vmand %vm13456_vm0, %vm13826_vm7  ;;  %v4450_v36 = vld [vmem:[#allocation4 + $0x24] sm:$0xf] }
 0x33c   : > { %4418 = vst [vmem:[#allocation4 + $0x20] sm:$0xf] %v4417_v20  ;;  %v11388_v10 = vadd.f32 %v10988_v34, %v3868_v14  ;;  %v13827_v43 = vmov 0  ;;  %v3209_v39 = vunpack.c.l.b16 %v3205_v60  ;;  %v5989_v1 = vshll.u32 %v11331_v3, 16 }
 0x33d   : > { %v11382_v58 = vrot.slane %v4430_v51, 7  ;;  %v4424_v12 = vadd.f32 %v11079_v21, %v4422_v28  ;;  %v13828_v43 = vsel %vm11393_vm14, 4294967295, %v13827_v43  ;;  %v11397_v41 = vpop.f32.mrf.mxu0  ;;  %v4114_v2 = vadd.f32 %v11250_v26, %v4030_v46 }
 0x33e   : > { %v11406_v29 = vrot.slane %v5978_v40, 1  ;;  %v13829_v28 = vrot.slane %v11192_v55, 3  ;;  %v11413_v60 = vpack.c.b16 %v3209_v39, %v3209_v39  ;;  %v5983_v56 = vrot.slane %v5981_v50, 2 }
 0x33f   : > { %v4435_v53 = vor.u32 %v4433_v4, %v11382_v58  ;;  %v4426_v34 = vmax.f32 %v4424_v12, 0.0  ;;  %v11402_v14 = vld [vmem:[#allocation4 + $0x18] sm:$0xff]  ;;  %v5988_v26 = vrot.slane %v5986_v23, 1  ;;  %v4169_v40 = vadd.f32 %v11271_v42, %v4113_v47 }
 0x340   : > { %v11404_v49 = vpop.f32.mrf.mxu3  ;;  %v3661_v51 = vpop.f32.mrf.mxu1  ;;  %v3571_v20 = vsel %vm13454_vm13, %v13829_v28, %v13455_v32  ;;  %v5064_v12 = vshll.u32 %v11402_v14, 16  ;;  %v3356_v15 = vshrl.u32 %v11413_v60, 16  ;;  %v3359_v55 = vshll.u32 %v11413_v60, 16 }
 0x341   : > { %v4428_v46 = vpack.c.bf16 %v4426_v34, %v4426_v34  ;;  %v3726_v4 = vadd.f32 %v3661_v51, %v3514_v54  ;;  %v4451_v52 = vsel %vm11393_vm14, %v4435_v53, %v4450_v36  ;;  %v5991_v28 = vrot.slane %v5989_v1, 2  ;;  %v11431_v36 = vld [vmem:[#allocation4 + $0x18] sm:$0xff] }
 0x342   : > { %v4459_v0 = vld [vmem:[#allocation3 + $0x48] sm:$0xff]  ;;  %4452 = vst [vmem:[#allocation4 + $0x24] sm:$0xf] %v4451_v52  ;;  %vm13830_vm7 = vcmask 31744   ;;  %8612 = vmatmul.msk.bf16.gmra.mxu3 %vm2525_vm3, %v11402_v14  ;;  %v5060_v23 = vshrl.u32 %v11315_v45, 16  ;;  %v11427_v42 = vrot.slane %v5064_v12, 1  ;;  %v3515_v52 = vadd.f32 %v11303_v5, %v10617_v16 }
 0x343   : > { %v4438_v39 = vshrl.u32 %v4428_v46, 16  ;;  %v4461_v50 = vmul.f32 %v11068_v22, %v4459_v0  ;;  %3758 = vst.msk [vmem:[#allocation3 + $0x50] sm:$0xff] %vm2525_vm3, %v3726_v4  ;;  %8473 = vmatmul.msk.bf16.gmra.mxu1 %vm13830_vm7, %v3571_v20  ;;  %v3358_v54 = vrot.slane %v3356_v15, 2  ;;  %v3361_v47 = vrot.slane %v3359_v55, 3  ;;  %v4224_v55 = vpop.f32.mrf.mxu2 }
 0x344   : > { %vm4454_vm13 = vcmask 57344   ;;  %v4441_v1 = vshll.u32 %v4428_v46, 16  ;;  %v5062_v34 = vor.u32 %v5060_v23, %v11336_v59  ;;  %v4436_v51 = vrot.slane %v11382_v58, 4  ;;  %v4456_v58 = vld [vmem:[#allocation4 + $0x2c] sm:$0x1]  ;;  %v13977_v59 = vld [vmem:[#allocation29_spill] sm:$0xff] }
 0x345   : > { %v4440_v0 = vrot.slane %v4438_v39, 7  ;;  %v4463_v53 = vadd.f32 %v11079_v21, %v4461_v50  ;;  %v4232_v20 = vadd.f32 %v4222_v38, %v4169_v40  ;;  %v11436_v4 = vpop.f32.mrf.mxu0  ;;  %v3362_v12 = vor.u32 %v3361_v47, %v3358_v54 }
 0x346   : > { %v11438_v32 = vor.u32 %v5991_v28, %v5988_v26  ;;  %vm13831_vm7 = vsmask.f32 7424  ;;  %vm13832_vm0 = vsmask.f32 256  ;;  %vm13835_vm14 = vsmask.f32 5376 }
 0x347   : > { %v4443_v16 = vor.u32 %v4441_v1, %v4440_v0  ;;  %v4445_v15 = vrot.slane %v4440_v0, 4  ;;  %v4465_v5 = vmax.f32 %v4463_v53, 0.0  ;;  %v5067_v39 = vsel %vm13831_vm7, %v5062_v34, %v11427_v42  ;;  %vm11444_vm8 = vmand %vm4454_vm13, %vm13832_vm0  ;;  %v9064_v1 = vld [vmem:[#allocation4] sm:$0xf0]  ;;  %v9065_v53 = vld [vmem:[#allocation4] sm:$0xe] }
 0x348   : > { %v4264_v46 = vpop.f32.mrf.mxu3  ;;  %v3663_v38 = vpop.f32.mrf.mxu1  ;;  %8595 = vmatmul.msk.bf16.gmra.mxu2 %vm2525_vm3, %v5067_v39  ;;  %v3363_v40 = vsel %vm13835_vm14, %v11341_v8, %v3362_v12  ;;  %v6310_v28 = vrot.slane %v11431_v36, 2  ;;  %v5984_v50 = vor.u32 %v5983_v56, %v11406_v29  ;;  %v4170_v54 = vadd.f32 %v11305_v13, %v4114_v2 }
 0x349   : > { %v4274_v26 = vadd.f32 %v4264_v46, %v4232_v20  ;;  %v4467_v23 = vpack.c.bf16 %v4465_v5, %v4465_v5  ;;  %v3727_v47 = vadd.f32 %v3663_v38, %v3515_v52  ;;  %v4444_v0 = vsel %vm9436_vm6, %v4436_v51, %v4443_v16  ;;  %v11456_v34 = vld [vmem:[#allocation4 + $0x20] sm:$0xff] }
 0x34a   : > { %v4460_v39 = vld [vmem:[#allocation3 + $0x50] sm:$0xff]  ;;  %vm13836_vm13 = vcmask 31744   ;;  %v4457_v8 = vsel %vm11444_vm8, %v4445_v15, %v4456_v58  ;;  %v13837_v56 = vrot.slane %v11331_v3, 2  ;;  %vm13838_vm0 = vcmask 1045504   ;;  %v11476_v16 = vld [vmem:[#allocation4 + $0x20] sm:$0xff] }
 0x34b   : > { %4278 = vst.msk [vmem:[#allocation3 + $0x100] sm:$0xff] %vm2525_vm3, %v4274_v26  ;;  %8458 = vmatmul.msk.bf16.gmra.mxu0 %vm13836_vm13, %v3363_v40  ;;  %vm13839_vm14 = vsmask.f32 6400  ;;  %v5995_v29 = vshrl.u32 %v11431_v36, 16  ;;  %v4031_v52 = vadd.f32 %v11125_v31, %v11072_v17  ;;  %v4470_v51 = vshrl.u32 %v4467_v23, 16  ;;  %vm13841_vm13 = vmmov %vm13838_vm0 }
 0x34c   : > { %v11465_v13 = vsel %vm13838_vm0, %v13837_v56, %v6310_v28  ;;  %v11469_v2 = vsel %vm13839_vm14, %v5984_v50, %v11438_v32  ;;  %v4473_v20 = vshll.u32 %v4467_v23, 16  ;;  %v4462_v12 = vmul.f32 %v11068_v22, %v4460_v39  ;;  %3759 = vst.msk [vmem:[#allocation3 + $0x58] sm:$0xff] %vm2525_vm3, %v3727_v47  ;;  %v4491_v23 = vld [vmem:[#allocation4 + $0x2c] sm:$0xe] }
 0x34d   : > { %v3572_v15 = vrot.slane %v11320_v11, 3  ;;  %vm13840_vm7 = vcmask 60416   ;;  %v9066_v5 = vor.u32 %v9065_v53, %v9064_v1  ;;  %v6312_v46 = vrot.slane %v11456_v34, 2  ;;  %4458 = vst [vmem:[#allocation4 + $0x2c] sm:$0x1] %v4457_v8  ;;  %v11487_v47 = vpop.f32.mrf.mxu0 }
 0x34e   : > { %4453 = vst.msk [vmem:[#allocation4 + $0x28] sm:$0xf] %vm13840_vm7, %v4444_v0  ;;  %v5998_v58 = vshll.u32 %v11431_v36, 16  ;;  %v4472_v38 = vrot.slane %v4470_v51, 6  ;;  %v4475_v26 = vrot.slane %v4473_v20, 7  ;;  %v4464_v17 = vadd.f32 %v11079_v21, %v4462_v12 }
 0x34f   : > { %v3516_v31 = vadd.f32 %v11339_v9, %v10633_v30  ;;  %v3959_v40 = vadd.f32 %v11105_v61, %v11388_v10  ;;  %v4233_v50 = vadd.f32 %v4224_v55, %v4170_v54  ;;  %v11492_v0 = vsel %vm13841_vm13, %v6310_v28, %v6312_v46 }
 0x350   : > { %v5997_v1 = vrot.slane %v5995_v29, 1  ;;  %v4115_v53 = vadd.f32 %v11285_v25, %v4031_v52  ;;  %v4476_v39 = vor.u32 %v4475_v26, %v4472_v38  ;;  %v4466_v56 = vmax.f32 %v4464_v17, 0.0  ;;  %v4266_v9 = vpop.f32.mrf.mxu3  ;;  %v3666_v8 = vpop.f32.mrf.mxu1 }
 0x351   : > { %v5072_v30 = vshll.u32 %v11476_v16, 16  ;;  %v13842_v61 = vrot.slane %v11257_v37, 3  ;;  %vm13843_vm0 = vcmask 1044480   ;;  %v4275_v55 = vadd.f32 %v4266_v9, %v4233_v50  ;;  %v4227_v29 = vpop.f32.mrf.mxu2  ;;  %v13846_v9 = vld [vmem:[#allocation17_spill] sm:$0xff] }
 0x352   : > { %v6000_v54 = vrot.slane %v5998_v58, 2  ;;  %v6004_v28 = vshrl.u32 %v11456_v34, 16  ;;  %v4468_v51 = vpack.c.bf16 %v4466_v56, %v4466_v56  ;;  %v3728_v20 = vadd.f32 %v3666_v8, %v3516_v31  ;;  %8613 = vmatmul.msk.bf16.gmra.mxu3 %vm2525_vm3, %v11476_v16 }
 0x353   : > { %v3573_v10 = vsel %vm13843_vm0, %v13842_v61, %v3572_v15  ;;  %v4492_v25 = vsel %vm11159_vm11, %v4476_v39, %v4491_v23  ;;  %v5443_v52 = vrot.slane %v9066_v5, 1  ;;  %v4171_v12 = vadd.f32 %v11347_v35, %v4115_v53  ;;  %4279 = vst.msk [vmem:[#allocation3 + $0x108] sm:$0xff] %vm2525_vm3, %v4275_v55 }
 0x354   : > { %v6001_v38 = vor.u32 %v6000_v54, %v5997_v1  ;;  %v6006_v26 = vrot.slane %v6004_v28, 1  ;;  %v6007_v37 = vshll.u32 %v11456_v34, 16  ;;  %v4479_v17 = vshrl.u32 %v4468_v51, 16  ;;  %3760 = vst.msk [vmem:[#allocation3 + $0x60] sm:$0xff] %vm2525_vm3, %v3728_v20 }
 0x355   : > { %v4482_v50 = vshll.u32 %v4468_v51, 16  ;;  %vm13844_vm14 = vcmask 31744   ;;  %v5068_v58 = vshrl.u32 %v11402_v14, 16  ;;  %v11512_v5 = vrot.slane %v5072_v30, 1  ;;  %4493 = vst [vmem:[#allocation4 + $0x2c] sm:$0xe] %v4492_v25  ;;  %v11523_v30 = vpop.f32.mrf.mxu0 }
 0x356   : > { %8474 = vmatmul.msk.bf16.gmra.mxu1 %vm13844_vm14, %v3573_v10  ;;  %v4032_v35 = vadd.f32 %v11163_v63, %v3959_v40  ;;  %v5444_v31 = vrot.slane %v11222_v7, 1  ;;  %vm13845_vm7 = vsmask.f32 6400  ;;  %v6009_v1 = vrot.slane %v6007_v37, 2  ;;  %v11626_v7 = vld [vmem:[%s13403_s6] ss:$0 sm:$0xff] }
 0x357   : > { %v11518_v23 = vsel %vm13845_vm7, %v11438_v32, %v6001_v38  ;;  %v4481_v53 = vrot.slane %v4479_v17, 6  ;;  %v4484_v56 = vrot.slane %v4482_v50, 7  ;;  %v3517_v8 = vadd.f32 %v11397_v41, %v13846_v9  ;;  %v4495_v41 = vld [vmem:[#allocation4 + $0x34] sm:$0x3]  ;;  %vm13848_vm0 = vmmov %vm13845_vm7 }
 0x358   : > { %v5070_v61 = vor.u32 %v5068_v58, %v11427_v42  ;;  %v4234_v10 = vadd.f32 %v4227_v29, %v4171_v12  ;;  %v11525_v55 = vor.u32 %v6009_v1, %v6006_v26  ;;  %v4477_v63 = vrot.slane %v4476_v39, 4  ;;  %v4269_v32 = vpop.f32.mrf.mxu3  ;;  %v3668_v51 = vpop.f32.mrf.mxu1 }
 0x359   : > { %v4485_v40 = vor.u32 %v4484_v56, %v4481_v53  ;;  %vm13847_vm13 = vsmask.f32 7424  ;;  %v4116_v28 = vadd.f32 %v11333_v24, %v4032_v35  ;;  %v3729_v25 = vadd.f32 %v3668_v51, %v3517_v8  ;;  %v4229_v50 = vpop.f32.mrf.mxu2  ;;  %v11557_v56 = vld [vmem:[#allocation4 + $0x14] sm:$0xf]  ;;  %v13853_v8 = vld [vmem:[#allocation14_spill] sm:$0xff] }
 0x35a   : > { %v5075_v54 = vsel %vm13847_vm13, %v5070_v61, %v11512_v5  ;;  %v4276_v20 = vadd.f32 %v4269_v32, %v4234_v10  ;;  %v11533_v42 = vsel %vm13848_vm0, %v6001_v38, %v11525_v55  ;;  %v4846_v12 = vld [vmem:[#allocation3 + $0x104] sm:$0xff]  ;;  %vm13850_vm14 = vcmask 1046528   ;;  %v11544_v38 = vld [vmem:[#allocation4 + $0x10] sm:$0x8]  ;;  %13852 = vst [vmem:[#allocation17_spill] sm:$0xff] %v11557_v56 }
 0x35b   : > { %8596 = vmatmul.msk.bf16.gmra.mxu2 %vm2525_vm3, %v5075_v54  ;;  %13849 = vst [vmem:[#allocation7_spill] sm:$0xff] %v11533_v42  ;;  %v4487_v29 = vrot.slane %v4485_v40, 4  ;;  %v5445_v39 = vsel %vm13850_vm14, %v5443_v52, %v5444_v31  ;;  %v4486_v26 = vsel %vm9290_vm12, %v4477_v63, %v4485_v40  ;;  %v4172_v24 = vadd.f32 %v11404_v49, %v4116_v28  ;;  %v4498_v37 = vld [vmem:[#allocation3 + $0x5a] sm:$0xff] }
 0x35c   : > { %v4848_v17 = vmul.f32 %v11068_v22, %v4846_v12  ;;  %4280 = vst.msk [vmem:[#allocation3 + $0x110] sm:$0xff] %vm2525_vm3, %v4276_v20  ;;  %8626 = vmatmul.msk.bf16.vlgmr.msra.gmra.mxu0 %vm2525_vm3, %v5445_v39  ;;  %v4500_v58 = vmul.f32 %v11068_v22, %v4498_v37  ;;  %v3574_v52 = vrot.slane %v11413_v60, 3  ;;  %v11549_v35 = vld [vmem:[#allocation4 + $0x28] sm:$0xff]  ;;  %vm13851_vm7 = vcmask 60416  }
 0x35d   : > { %3761 = vst.msk [vmem:[#allocation3 + $0x68] sm:$0xff] %vm2525_vm3, %v3729_v25  ;;  %v4496_v49 = vsel %vm11185_vm10, %v4487_v29, %v4495_v41  ;;  %v11553_v1 = vld [vmem:[#allocation4 + $0x28] sm:$0xff]  ;;  %v3518_v61 = vadd.f32 %v11436_v4, %v13853_v8  ;;  %v5080_v60 = vshll.u32 %v11549_v35, 16  ;;  %v7169_v10 = vunpack.c.l.b16 %v11544_v38  ;;  %v11564_v54 = vpop.f32.mrf.mxu0 }
 0x35e   : > { %v4850_v53 = vadd.f32 %v11079_v21, %v4848_v17  ;;  %4494 = vst.msk [vmem:[#allocation4 + $0x30] sm:$0xf] %vm13851_vm7, %v4486_v26  ;;  %v4502_v9 = vadd.f32 %v11079_v21, %v4500_v58  ;;  %v4235_v63 = vadd.f32 %v4229_v50, %v4172_v24  ;;  %v13463_v32 = vrot.slane %v11553_v1, 2 }
 0x35f   : > { %4497 = vst [vmem:[#allocation4 + $0x34] sm:$0x3] %v4496_v49  ;;  %v6013_v28 = vshrl.u32 %v11553_v1, 16  ;;  %vm13854_vm13 = vcmask 1044480   ;;  %v5446_v4 = vrot.slane %v11315_v45, 1  ;;  %v13460_v29 = vunpack.c.l.b16 %v11557_v56 }
 0x360   : > { %v4852_v40 = vmax.f32 %v4850_v53, 0.0  ;;  %v4504_v51 = vmax.f32 %v4502_v9, 0.0  ;;  %v3575_v20 = vsel %vm13854_vm13, %v3572_v15, %v3574_v52  ;;  %v4271_v41 = vpop.f32.mrf.mxu3  ;;  %v3671_v12 = vpop.f32.mrf.mxu1  ;;  %v5076_v39 = vshrl.u32 %v11476_v16, 16 }
 0x361   : > { %v4277_v26 = vadd.f32 %v4271_v41, %v4235_v63  ;;  %vm13855_vm0 = vcmask 1045504   ;;  %v3730_v37 = vadd.f32 %v3671_v12, %v3518_v61  ;;  %v3519_v17 = vadd.f32 %v11487_v47, %v10688_v19 }
 0x362   : > { %v4854_v25 = vpack.c.bf16 %v4852_v40, %v4852_v40  ;;  %v11579_v24 = vsel %vm13855_vm0, %v6312_v46, %v13463_v32  ;;  %v4506_v11 = vpack.c.bf16 %v4504_v51, %v4504_v51  ;;  %v11583_v38 = vrot.slane %v5080_v60, 1  ;;  %8614 = vmatmul.msk.bf16.gmra.mxu3 %vm2525_vm3, %v11549_v35  ;;  %v9009_v40 = vld [vmem:[#allocation4 + $0x18] sm:$0xff] }
 0x363   : > { %v4884_v15 = vld [vmem:[#allocation3 + $0x10e] sm:$0xff]  ;;  %vm13856_vm14 = vcmask 62464   ;;  %v6015_v53 = vrot.slane %v6013_v28, 1  ;;  %3762 = vst.msk [vmem:[#allocation3 + $0x70] sm:$0xff] %vm2525_vm3, %v3730_v37  ;;  %vm13857_vm7 = vcmask 31744   ;;  %v6016_v19 = vshll.u32 %v11553_v1, 16 }
 0x364   : > { %v4499_v50 = vld [vmem:[#allocation3 + $0x62] sm:$0xff]  ;;  %v4865_v58 = vshll.u32 %v4854_v25, 16  ;;  %v4869_v52 = vshrl.u32 %v4854_v25, 16  ;;  %v4886_v49 = vmul.f32 %v11068_v22, %v4884_v15  ;;  %4281 = vst.msk [vmem:[#allocation3 + $0x118] sm:$0x3f] %vm13856_vm14, %v4277_v26  ;;  %v4509_v9 = vshrl.u32 %v4506_v11, 16 }
 0x365   : > { %v4512_v8 = vshll.u32 %v4506_v11, 16  ;;  %v4501_v46 = vmul.f32 %v11068_v22, %v4499_v50  ;;  %v5078_v63 = vor.u32 %v5076_v39, %v11512_v5  ;;  %v6018_v41 = vrot.slane %v6016_v19, 2  ;;  %v11598_v25 = vld [vmem:[#allocation4 + $0x20] sm:$0xff]  ;;  %v4530_v26 = vld [vmem:[#allocation4 + $0x34] sm:$0xc]  ;;  %v11601_v11 = vpop.f32.mrf.mxu0 }
 0x366   : > { %8475 = vmatmul.msk.bf16.gmra.mxu1 %vm13857_vm7, %v3575_v20  ;;  %v11593_v47 = vrot.slane %v4865_v58, 5  ;;  %v4871_v61 = vrot.slane %v4869_v52, 4  ;;  %v4888_v60 = vadd.f32 %v11079_v21, %v4886_v49  ;;  %v4511_v28 = vrot.slane %v4509_v9, 5  ;;  %v4881_v5 = vld [vmem:[#allocation4 + $0x8c] sm:$0xf] }
 0x367   : > { %v4514_v51 = vrot.slane %v4512_v8, 6  ;;  %v4503_v22 = vadd.f32 %v11079_v21, %v4501_v46  ;;  %v7170_v37 = vpack.c.b16 %v13460_v29, %v7169_v10  ;;  %vm13858_vm13 = vsmask.f32 7424  ;;  %v13873_v29 = vld [vmem:[#allocation12_spill] sm:$0xff] }
 0x368   : > { %v4872_v20 = vor.u32 %v4871_v61, %v11593_v47  ;;  %v4890_v12 = vmax.f32 %v4888_v60, 0.0  ;;  %v5083_v39 = vsel %vm13858_vm13, %v5078_v63, %v11583_v38  ;;  %v11607_v58 = vor.u32 %v6018_v41, %v6015_v53  ;;  %v3673_v52 = vpop.f32.mrf.mxu1 }
 0x369   : > { %v4515_v15 = vor.u32 %v4514_v51, %v4511_v28  ;;  %v4505_v50 = vmax.f32 %v4503_v22, 0.0  ;;  %v13461_v49 = vrot.slane %v11331_v3, 1  ;;  %vm13859_vm0 = vcmask 1046528  }
 0x36a   : > { %v4873_v21 = vrot.slane %v4872_v20, 4  ;;  %v5447_v10 = vsel %vm13859_vm0, %v5444_v31, %v5446_v4  ;;  %v7172_v9 = vrot.slane %v9009_v40, 3  ;;  %v3731_v46 = vadd.f32 %v3673_v52, %v3519_v17  ;;  %v4537_v63 = vld [vmem:[#allocation3 + $0x6c] sm:$0xff]  ;;  %vm13864_vm13 = vmmov %vm13859_vm0 }
 0x36b   : > { %8597 = vmatmul.msk.bf16.gmra.mxu2 %vm2525_vm3, %v5083_v39  ;;  %v4507_v8 = vpack.c.bf16 %v4505_v50, %v4505_v50  ;;  %v4885_v19 = vld [vmem:[#allocation3 + $0x116] sm:$0xff]  ;;  %v4531_v53 = vsel %vm11239_vm4, %v4515_v15, %v4530_v26  ;;  %v7174_v61 = vrot.slane %v11598_v25, 3  ;;  %v11621_v28 = vpack.c.bf16 %v4890_v12, %v4890_v12 }
 0x36c   : > { %v4882_v60 = vsel %vm11355_vm2, %v4873_v21, %v4881_v5  ;;  %v4887_v31 = vmul.f32 %v11626_v7, %v4885_v19  ;;  %4532 = vst [vmem:[#allocation4 + $0x34] sm:$0xc] %v4531_v53  ;;  %8627 = vmatmul.msk.bf16.gmra.mxu0 %vm2525_vm3, %v5447_v10  ;;  %v7171_v17 = vrot.slane %v7170_v37, 3  ;;  %v4539_v22 = vmul.f32 %v11626_v7, %v4537_v63  ;;  %v11640_v25 = vld [vmem:[%s13404_s7] ss:$0 sm:$0xff]  ;;  %v11646_v37 = vld [vmem:[#allocation4 + $0x28] sm:$0xff] }
 0x36d   : > { %v4518_v40 = vshrl.u32 %v4507_v8, 16  ;;  %v4521_v51 = vshll.u32 %v4507_v8, 16  ;;  %4883 = vst [vmem:[#allocation4 + $0x8c] sm:$0xf] %v4882_v60  ;;  %vm13860_vm14 = vsmask.f32 6400  ;;  %v3520_v12 = vadd.f32 %v11523_v30, %v10705_v18  ;;  %v11656_v8 = vpop.f32.mrf.mxu0 }
 0x36e   : > { %v11634_v41 = vsel %vm13860_vm14, %v11525_v55, %v11607_v58  ;;  %3763 = vst.msk [vmem:[#allocation3 + $0x78] sm:$0xff] %vm2525_vm3, %v3731_v46  ;;  %v4889_v20 = vadd.f32 %v11640_v25, %v4887_v31  ;;  %v5766_v26 = vrot.slane %v11343_v44, 1  ;;  %v4541_v55 = vadd.f32 %v11640_v25, %v4539_v22  ;;  %v8736_v46 = vld [vmem:[%s13399_s2 + $0x14] sm:$0xf]  ;;  %v4534_v31 = vld [vmem:[#allocation4 + $0x3c] sm:$0x7] }
 0x36f   : > { %13861 = vst [vmem:[#allocation14_spill] sm:$0xff] %v11634_v41  ;;  %v4520_v50 = vrot.slane %v4518_v40, 5  ;;  %v4523_v5 = vrot.slane %v4521_v51, 6  ;;  %vm13862_vm7 = vcmask 1044480   ;;  %v4895_v21 = vshrl.u32 %v11621_v28, 16 }
 0x370   : > { %v11650_v39 = vsel %vm13862_vm7, %v7171_v17, %v7172_v9  ;;  %v4891_v52 = vmax.f32 %v4889_v20, 0.0  ;;  %v5768_v10 = vsel %vm13864_vm13, %v5766_v26, %v13461_v49  ;;  %v4516_v18 = vrot.slane %v4515_v15, 4  ;;  %vm13865_vm0 = vmmov %vm13862_vm7  ;;  %v3676_v60 = vpop.f32.mrf.mxu1 }
 0x371   : > { %13863 = vst [vmem:[#allocation32_spill] sm:$0xff] %v11650_v39  ;;  %v4524_v44 = vor.u32 %v4523_v5, %v4520_v50  ;;  %v4543_v30 = vmax.f32 %v4541_v55, 0.0  ;;  %v11662_v19 = vsel %vm13865_vm0, %v7172_v9, %v7174_v61  ;;  %vm13867_vm14 = vcmask 1043456   ;;  %vm13870_vm13 = vmmov %vm13865_vm0 }
 0x372   : > { %13866 = vst [vmem:[#allocation33_spill] sm:$0xff] %v11662_v19  ;;  %v4893_v53 = vpack.c.bf16 %v4891_v52, %v4891_v52  ;;  %v6389_v63 = vsel %vm13867_vm14, %v8736_v46, 0  ;;  %v13464_v17 = vrot.slane %v11402_v14, 1  ;;  %v13462_v40 = vrot.slane %v11646_v37, 3 }
 0x373   : > { %v4526_v51 = vrot.slane %v4524_v44, 4  ;;  %v4545_v15 = vpack.c.bf16 %v4543_v30, %v4543_v30  ;;  %v3732_v22 = vadd.f32 %v3676_v60, %v3520_v12  ;;  %v11667_v20 = vld [vmem:[#allocation4 + $0x30] sm:$0xff]  ;;  %6398 = vmatpush.bf16.msra.mxu3 %v6389_v63  ;;  %v4525_v50 = vsel %vm9319_vm15, %v4516_v18, %v4524_v44 }
 0x374   : > { %v11671_v9 = vrot.slane %v4895_v21, 7  ;;  %v4903_v5 = vshrl.u32 %v4893_v53, 16  ;;  %v5084_v55 = vshrl.u32 %v11549_v35, 16  ;;  %vm13869_vm7 = vcmask 60416   ;;  %8615 = vmatmul.msk.bf16.gmra.mxu3 %vm2525_vm3, %v11667_v20 }
 0x375   : > { %4533 = vst.msk [vmem:[#allocation4 + $0x38] sm:$0xf] %vm13869_vm7, %v4525_v50  ;;  %v11678_v52 = vsel %vm13870_vm13, %v7174_v61, %v13462_v40  ;;  %v4548_v30 = vshll.u32 %v4545_v15, 16  ;;  %v4551_v12 = vshrl.u32 %v4545_v15, 16  ;;  %v4538_v46 = vld [vmem:[#allocation3 + $0x74] sm:$0xff]  ;;  %v5088_v21 = vshll.u32 %v11667_v20, 16  ;;  %vm13876_vm14 = vmmov %vm13869_vm7 }
 0x376   : > { %13871 = vst [vmem:[#allocation8_spill] sm:$0xff] %v11678_v52  ;;  %8703 = vmatmul.msk.bf16.vlgmr.msra.gmra.mxu1 %vm2525_vm3, %v5768_v10  ;;  %v4535_v44 = vsel %vm11277_vm9, %v4526_v51, %v4534_v31  ;;  %v4540_v60 = vmul.f32 %v11626_v7, %v4538_v46  ;;  %v11688_v63 = vrot.slane %v4903_v5, 7  ;;  %v4906_v61 = vshll.u32 %v4893_v53, 16  ;;  %v4569_v15 = vld [vmem:[#allocation4 + $0x3c] sm:$0x8]  ;;  %v11695_v40 = vld [vmem:[#allocation4 + $0x30] sm:$0xff]  ;;  %v11700_v53 = vpop.f32.mrf.mxu0 }
 0x377   : > { %3764 = vst.msk [vmem:[#allocation3 + $0x80] sm:$0xff] %vm2525_vm3, %v3732_v22  ;;  %v4550_v50 = vrot.slane %v4548_v30, 5  ;;  %v3521_v22 = vadd.f32 %v11564_v54, %v13873_v29  ;;  %v5086_v10 = vor.u32 %v5084_v55, %v11583_v38  ;;  %v11693_v49 = vrot.slane %v5088_v21, 1 }
 0x378   : > { %4536 = vst [vmem:[#allocation4 + $0x3c] sm:$0x7] %v4535_v44  ;;  %v4553_v32 = vrot.slane %v4551_v12, 4  ;;  %v4901_v31 = vrot.slane %v11671_v9, 4  ;;  %v4542_v51 = vadd.f32 %v11640_v25, %v4540_v60  ;;  %v4908_v5 = vor.u32 %v4906_v61, %v11688_v63  ;;  %v3678_v55 = vpop.f32.mrf.mxu1  ;;  %v11717_v61 = vld [vmem:[#allocation4 + $0x30] sm:$0xff] }
 0x379   : > { %vm13874_vm0 = vsmask.f32 7424  ;;  %v4570_v54 = vsel %vm11296_vm1, %v4550_v50, %v4569_v15  ;;  %v3733_v12 = vadd.f32 %v3678_v55, %v3521_v22  ;;  %vm13877_vm7 = vcmask 1046528  }
 0x37a   : > { %v5091_v30 = vsel %vm13874_vm0, %v5086_v10, %v11693_v49  ;;  %v4544_v29 = vmax.f32 %v4542_v51, 0.0  ;;  %v4909_v38 = vsel %vm9436_vm6, %v4901_v31, %v4908_v5  ;;  %4571 = vst [vmem:[#allocation4 + $0x3c] sm:$0x8] %v4570_v54  ;;  %v5449_v21 = vsel %vm13877_vm7, %v5446_v4, %v13464_v17 }
 0x37b   : > { %8598 = vmatmul.msk.bf16.gmra.mxu2 %vm2525_vm3, %v5091_v30  ;;  %4917 = vst.msk [vmem:[#allocation4 + $0x94] sm:$0xf] %vm13876_vm14, %v4909_v38  ;;  %v6316_v44 = vrot.slane %v11695_v40, 2  ;;  %v6022_v60 = vshrl.u32 %v11695_v40, 16  ;;  %v4554_v15 = vor.u32 %v4553_v32, %v4550_v50  ;;  %v6025_v51 = vshll.u32 %v11695_v40, 16  ;;  %v13881_v50 = vld [vmem:[#allocation15_spill] sm:$0xff] }
 0x37c   : > { %v4546_v10 = vpack.c.bf16 %v4544_v29, %v4544_v29  ;;  %8628 = vmatmul.msk.bf16.gmra.mxu0 %vm2525_vm3, %v5449_v21  ;;  %3765 = vst.msk [vmem:[#allocation3 + $0x88] sm:$0xff] %vm2525_vm3, %v3733_v12  ;;  %v13878_v45 = vrot.slane %v11553_v1, 2  ;;  %vm13879_vm13 = vcmask 1045504   ;;  %v3522_v29 = vadd.f32 %v11601_v11, %v13881_v50 }
 0x37d   : > { %v6024_v5 = vrot.slane %v6022_v60, 1  ;;  %v6027_v38 = vrot.slane %v6025_v51, 2  ;;  %v13465_v21 = vrot.slane %v11717_v61, 3  ;;  %v13882_v11 = vrot.slane %v11646_v37, 3  ;;  %v4573_v37 = vld [vmem:[#allocation4 + $0x44] sm:$0xf] }
 0x37e   : > { %v4576_v31 = vld [vmem:[#allocation3 + $0x7e] sm:$0xff]  ;;  %v11726_v4 = vsel %vm13879_vm13, %v13878_v45, %v6316_v44  ;;  %v4557_v30 = vshll.u32 %v4546_v10, 16  ;;  %v4561_v54 = vshrl.u32 %v4546_v10, 16  ;;  %v11733_v52 = vpop.f32.mrf.mxu0  ;;  %vm13883_vm0 = vcmask 1044480  }
 0x37f   : > { %v4578_v22 = vmul.f32 %v11626_v7, %v4576_v31  ;;  %13880 = vst [vmem:[#allocation30_spill] sm:$0xff] %v11726_v4  ;;  %v4555_v31 = vrot.slane %v4554_v15, 4  ;;  %v11735_v45 = vor.u32 %v6027_v38, %v6024_v5  ;;  %v11746_v51 = vsel %vm13883_vm0, %v13882_v11, %v13465_v21 }
 0x380   : > { %v4559_v12 = vrot.slane %v4557_v30, 5  ;;  %v4563_v17 = vrot.slane %v4561_v54, 4  ;;  %13884 = vst [vmem:[#allocation12_spill] sm:$0xff] %v11746_v51  ;;  %v3681_v15 = vpop.f32.mrf.mxu1  ;;  %vm13886_vm14 = vsmask.f32 6400  ;;  %vm13888_vm7 = vcmask 60416  }
 0x381   : > { %v4580_v32 = vadd.f32 %v11640_v25, %v4578_v22  ;;  %v11737_v19 = vld [vmem:[#allocation4 + $0x38] sm:$0xff]  ;;  %v11753_v5 = vsel %vm13886_vm14, %v11607_v58, %v11735_v45  ;;  %v13890_v21 = vrot.slane %v11331_v3, 1  ;;  %vm13891_vm13 = vcmask 1046528  }
 0x382   : > { %v11739_v10 = vld [vmem:[#allocation4 + $0x38] sm:$0xff]  ;;  %v4564_v22 = vor.u32 %v4563_v17, %v4559_v12  ;;  %v4560_v54 = vsel %vm9529_vm5, %v4555_v31, %v4559_v12  ;;  %13887 = vst [vmem:[#allocation18_spill] sm:$0xff] %v11753_v5  ;;  %v5096_v50 = vshll.u32 %v11737_v19, 16  ;;  %v13889_v17 = vrot.slane %v11431_v36, 1 }
 0x383   : > { %v4582_v60 = vmax.f32 %v4580_v32, 0.0  ;;  %v3734_v32 = vadd.f32 %v3681_v15, %v3522_v29  ;;  %4572 = vst.msk [vmem:[#allocation4 + $0x40] sm:$0xf] %vm13888_vm7, %v4560_v54  ;;  %v4577_v11 = vld [vmem:[#allocation3 + $0x86] sm:$0xff]  ;;  %v13466_v58 = vrot.slane %v11739_v10, 2  ;;  %v4898_v3 = vshll.u32 %v11621_v28, 16  ;;  %vm13898_vm7 = vmmov %vm13891_vm13 }
 0x384   : > { %v4565_v55 = vrot.slane %v4564_v22, 4  ;;  %v5770_v31 = vsel %vm13891_vm13, %v13890_v21, %v13889_v17  ;;  %v4579_v29 = vmul.f32 %v11626_v7, %v4577_v11  ;;  %8616 = vmatmul.msk.bf16.gmra.mxu3 %vm2525_vm3, %v11737_v19  ;;  %v11770_v22 = vrot.slane %v5096_v50, 1  ;;  %v13892_v21 = vld [vmem:[#allocation16_spill] sm:$0xff] }
 0x385   : > { %v4584_v38 = vpack.c.bf16 %v4582_v60, %v4582_v60  ;;  %3766 = vst.msk [vmem:[#allocation3 + $0x90] sm:$0xff] %vm2525_vm3, %v3734_v32  ;;  %v5092_v60 = vshrl.u32 %v11667_v20, 16  ;;  %v3523_v15 = vadd.f32 %v11656_v8, %v13892_v21  ;;  %vm13893_vm0 = vcmask 1045504   ;;  %v4606_v8 = vld [vmem:[#allocation4 + $0x48] sm:$0xf] }
 0x386   : > { %8704 = vmatmul.msk.bf16.gmra.mxu1 %vm2525_vm3, %v5770_v31  ;;  %v4574_v54 = vsel %vm11355_vm2, %v4565_v55, %v4573_v37  ;;  %v11780_v32 = vsel %vm13893_vm0, %v6316_v44, %v13466_v58  ;;  %v4581_v31 = vadd.f32 %v11640_v25, %v4579_v29  ;;  %v4900_v28 = vor.u32 %v4898_v3, %v11671_v9  ;;  %v11785_v12 = vpop.f32.mrf.mxu0 }
 0x387   : > { %v4587_v51 = vshrl.u32 %v4584_v38, 16  ;;  %13894 = vst [vmem:[#allocation15_spill] sm:$0xff] %v11780_v32  ;;  %v4590_v17 = vshll.u32 %v4584_v38, 16  ;;  %v5094_v50 = vor.u32 %v5092_v60, %v11693_v49  ;;  %v6031_v21 = vshrl.u32 %v11739_v10, 16 }
 0x388   : > { %4575 = vst [vmem:[#allocation4 + $0x44] sm:$0xf] %v4574_v54  ;;  %v6034_v55 = vshll.u32 %v11739_v10, 16  ;;  %v4583_v39 = vmax.f32 %v4581_v31, 0.0  ;;  %vm13895_vm14 = vsmask.f32 7424  ;;  %v3683_v38 = vpop.f32.mrf.mxu1  ;;  %vm13899_vm13 = vnez %v13828_v43 }
 0x389   : > { %v4589_v11 = vrot.slane %v4587_v51, 7  ;;  %v5099_v44 = vsel %vm13895_vm14, %v5094_v50, %v11770_v22  ;;  %v4914_v51 = vld [vmem:[#allocation4 + $0x90] sm:$0xf]  ;;  %v6033_v49 = vrot.slane %v6031_v21, 1  ;;  %v3735_v9 = vadd.f32 %v3683_v38, %v3523_v15  ;;  %vm13905_vm14 = vmmov %vm13898_vm7 }
 0x38a   : > { %v6036_v29 = vrot.slane %v6034_v55, 2  ;;  %v4585_v60 = vpack.c.bf16 %v4583_v39, %v4583_v39  ;;  %v13896_v3 = vrot.slane %v11476_v16, 1  ;;  %v13897_v54 = vrot.slane %v11402_v14, 1 }
 0x38b   : > { %v4592_v37 = vor.u32 %v4590_v17, %v4589_v11  ;;  %8599 = vmatmul.msk.bf16.gmra.mxu2 %vm2525_vm3, %v5099_v44  ;;  %v4915_v21 = vsel %vm13899_vm13, %v4900_v28, %v4914_v51  ;;  %3767 = vst.msk [vmem:[#allocation3 + $0x98] sm:$0xff] %vm2525_vm3, %v3735_v9  ;;  %vm13900_vm0 = vsmask.f32 6400  ;;  %v13902_v51 = vld [vmem:[#allocation13_spill] sm:$0xff]  ;;  %v4610_v9 = vld [vmem:[#allocation4 + $0x50] sm:$0x1] }
 0x38c   : > { %v5451_v58 = vsel %vm13898_vm7, %v13897_v54, %v13896_v3  ;;  %v4613_v31 = vld [vmem:[#allocation3 + $0x90] sm:$0xff]  ;;  %v11800_v50 = vor.u32 %v6036_v29, %v6033_v49  ;;  %v4595_v39 = vshrl.u32 %v4585_v60, 16  ;;  %4916 = vst [vmem:[#allocation4 + $0x90] sm:$0xf] %v4915_v21  ;;  %v3524_v38 = vadd.f32 %v11700_v53, %v13902_v51  ;;  %v11831_v51 = vld [vmem:[#allocation4 + $0x38] sm:$0xff] }
 0x38d   : > { %v4607_v17 = vsel %vm13899_vm13, %v4592_v37, %v4606_v8  ;;  %8629 = vmatmul.msk.bf16.gmra.mxu0 %vm2525_vm3, %v5451_v58  ;;  %v4615_v15 = vmul.f32 %v11626_v7, %v4613_v31  ;;  %v4598_v37 = vshll.u32 %v4585_v60, 16  ;;  %v4593_v3 = vrot.slane %v4589_v11, 4 }
 0x38e   : > { %4608 = vst [vmem:[#allocation4 + $0x48] sm:$0xf] %v4607_v17  ;;  %v11814_v58 = vsel %vm13900_vm0, %v11735_v45, %v11800_v50  ;;  %v4597_v8 = vrot.slane %v4595_v39, 7  ;;  %v11820_v29 = vpop.f32.mrf.mxu0  ;;  %v11822_v45 = vpop.f32.mrf.mxu3  ;;  %v13903_v21 = vrot.slane %v11456_v34, 1  ;;  %v13904_v60 = vrot.slane %v11431_v36, 1 }
 0x38f   : > { %v11807_v55 = vld [vmem:[#allocation4 + $0x40] sm:$0xff]  ;;  %13901 = vst [vmem:[#allocation11_spill] sm:$0xff] %v11814_v58  ;;  %v4617_v28 = vadd.f32 %v11640_v25, %v4615_v15  ;;  %v5100_v5 = vshrl.u32 %v11737_v19, 16  ;;  %vm13906_vm7 = vcmask 60416   ;;  %vm13908_vm0 = vcmask 1045504  }
 0x390   : > { %v11809_v44 = vld [vmem:[#allocation4 + $0x40] sm:$0xff]  ;;  %v5104_v49 = vshll.u32 %v11807_v55, 16  ;;  %v4600_v54 = vor.u32 %v4598_v37, %v4597_v8  ;;  %v4602_v17 = vrot.slane %v4597_v8, 4  ;;  %v3686_v14 = vpop.f32.mrf.mxu1  ;;  %v5772_v39 = vsel %vm13905_vm14, %v13904_v60, %v13903_v21 }
 0x391   : > { %v4619_v31 = vmax.f32 %v4617_v28, 0.0  ;;  %v6320_v15 = vrot.slane %v11809_v44, 2  ;;  %v3736_v11 = vadd.f32 %v3686_v14, %v3524_v38  ;;  %v13907_v21 = vrot.slane %v11739_v10, 2 }
 0x392   : > { %v4601_v8 = vsel %vm9436_vm6, %v4593_v3, %v4600_v54  ;;  %v4611_v37 = vsel %vm11444_vm8, %v4602_v17, %v4610_v9  ;;  %v4614_v28 = vld [vmem:[#allocation3 + $0x98] sm:$0xff]  ;;  %v11838_v36 = vrot.slane %v5104_v49, 1  ;;  %v6040_v14 = vshrl.u32 %v11809_v44, 16  ;;  %v13910_v9 = vld [vmem:[#allocation19_spill] sm:$0xff] }
 0x393   : > { %v4621_v58 = vpack.c.bf16 %v4619_v31, %v4619_v31  ;;  %4609 = vst.msk [vmem:[#allocation4 + $0x4c] sm:$0xf] %vm13906_vm7, %v4601_v8  ;;  %v11844_v60 = vsel %vm13908_vm0, %v13907_v21, %v6320_v15  ;;  %v4616_v3 = vmul.f32 %v11626_v7, %v4614_v28  ;;  %v6043_v49 = vshll.u32 %v11809_v44, 16 }
 0x394   : > { %13909 = vst [vmem:[#allocation16_spill] sm:$0xff] %v11844_v60  ;;  %8617 = vmatmul.msk.bf16.gmra.mxu3 %vm2525_vm3, %v11807_v55  ;;  %v3525_v54 = vadd.f32 %v11733_v52, %v13910_v9  ;;  %v5102_v17 = vor.u32 %v5100_v5, %v11770_v22  ;;  %v6042_v8 = vrot.slane %v6040_v14, 1  ;;  %v4645_v60 = vld [vmem:[#allocation4 + $0x50] sm:$0xe]  ;;  %vm13911_vm14 = vsmask.f32 7424 }
 0x395   : > { %v4624_v38 = vshrl.u32 %v4621_v58, 16  ;;  %v4627_v31 = vshll.u32 %v4621_v58, 16  ;;  %3768 = vst.msk [vmem:[#allocation3 + $0xa0] sm:$0xff] %vm2525_vm3, %v3736_v11  ;;  %v13467_v58 = vrot.slane %v11831_v51, 3  ;;  %v4618_v11 = vadd.f32 %v11640_v25, %v4616_v3 }
 0x396   : > { %8705 = vmatmul.msk.bf16.gmra.mxu1 %vm2525_vm3, %v5772_v39  ;;  %4612 = vst [vmem:[#allocation4 + $0x50] sm:$0x1] %v4611_v37  ;;  %v6045_v53 = vrot.slane %v6043_v49, 2  ;;  %v11858_v39 = vpop.f32.mrf.mxu0  ;;  %v5107_v4 = vsel %vm13911_vm14, %v5102_v17, %v11838_v36  ;;  %v13912_v5 = vrot.slane %v11717_v61, 3  ;;  %vm13913_vm7 = vcmask 1044480  }
 0x397   : > { %v4626_v21 = vrot.slane %v4624_v38, 6  ;;  %v4629_v28 = vrot.slane %v4627_v31, 7  ;;  %v4620_v41 = vmax.f32 %v4618_v11, 0.0  ;;  %v13915_v38 = vrot.slane %v11549_v35, 1 }
 0x398   : > { %v6046_v52 = vor.u32 %v6045_v53, %v6042_v8  ;;  %v3688_v9 = vpop.f32.mrf.mxu1  ;;  %v11868_v22 = vsel %vm13913_vm7, %v13912_v5, %v13467_v58  ;;  %v13916_v31 = vrot.slane %v11476_v16, 1  ;;  %vm13917_vm0 = vcmask 1046528  }
 0x399   : > { %v4630_v32 = vor.u32 %v4629_v28, %v4626_v21  ;;  %13914 = vst [vmem:[#allocation13_spill] sm:$0xff] %v11868_v22  ;;  %v4622_v37 = vpack.c.bf16 %v4620_v41, %v4620_v41  ;;  %v3737_v14 = vadd.f32 %v3688_v9, %v3525_v54  ;;  %vm13918_vm14 = vsmask.f32 6400  ;;  %v13920_v28 = vld [vmem:[#allocation21_spill] sm:$0xff] }
 0x39a   : > { %v5453_v3 = vsel %vm13917_vm0, %v13916_v31, %v13915_v38  ;;  %v11877_v49 = vld [vmem:[#allocation4 + $0x48] sm:$0xff]  ;;  %v11884_v41 = vsel %vm13918_vm14, %v11800_v50, %v6046_v52  ;;  %v3526_v11 = vadd.f32 %v11785_v12, %v13920_v28  ;;  %v4910_v50 = vrot.slane %v11688_v63, 4 }
 0x39b   : > { %8600 = vmatmul.msk.bf16.gmra.mxu2 %vm2525_vm3, %v5107_v4  ;;  %v4646_v53 = vsel %vm11159_vm11, %v4630_v32, %v4645_v60  ;;  %v11879_v4 = vpop.f32.mrf.mxu3  ;;  %13919 = vst [vmem:[#allocation19_spill] sm:$0xff] %v11884_v41  ;;  %v4633_v61 = vshrl.u32 %v4622_v37, 16  ;;  %v4636_v54 = vshll.u32 %v4622_v37, 16  ;;  %v11887_v16 = vld [vmem:[#allocation4 + $0x48] sm:$0xff]  ;;  %v6322_v17 = vrot.slane %v11877_v49, 2 }
 0x39c   : > { %4647 = vst [vmem:[#allocation4 + $0x50] sm:$0xe] %v4646_v53  ;;  %v6049_v60 = vshrl.u32 %v11877_v49, 16  ;;  %v6052_v9 = vshll.u32 %v11877_v49, 16  ;;  %vm13921_vm7 = vcmask 1045504   ;;  %v4631_v31 = vrot.slane %v4630_v32, 4 }
 0x39d   : > { %8630 = vmatmul.msk.bf16.gmra.mxu0 %vm2525_vm3, %v5453_v3  ;;  %3769 = vst.msk [vmem:[#allocation3 + $0xa8] sm:$0xff] %vm2525_vm3, %v3737_v14  ;;  %v4635_v8 = vrot.slane %v4633_v61, 6  ;;  %v4638_v21 = vrot.slane %v4636_v54, 7  ;;  %v11901_v14 = vsel %vm13921_vm7, %v6320_v15, %v6322_v17  ;;  %v5112_v53 = vshll.u32 %v11887_v16, 16  ;;  %v4918_v61 = vld [vmem:[#allocation4 + $0x98] sm:$0x1] }
 0x39e   : > { %v11896_v37 = vpop.f32.mrf.mxu0  ;;  %13922 = vst [vmem:[#allocation21_spill] sm:$0xff] %v11901_v14  ;;  %v6051_v38 = vrot.slane %v6049_v60, 1  ;;  %v4649_v54 = vld [vmem:[#allocation4 + $0x58] sm:$0x3]  ;;  %v6054_v28 = vrot.slane %v6052_v9, 2  ;;  %v13923_v41 = vrot.slane %v11553_v1, 1 }
 0x39f   : > { %v4639_v3 = vor.u32 %v4638_v21, %v4635_v8  ;;  %v13924_v15 = vrot.slane %v11456_v34, 1  ;;  %vm13925_vm14 = vcmask 60416   ;;  %v11914_v8 = vld [vmem:[#allocation4 + $0x40] sm:$0xff]  ;;  %v4919_v21 = vsel %vm11444_vm8, %v4910_v50, %v4918_v61 }
 0x3a0   : > { %v3691_v12 = vpop.f32.mrf.mxu1  ;;  %v11912_v32 = vor.u32 %v6054_v28, %v6051_v38  ;;  %v5108_v34 = vshrl.u32 %v11807_v55, 16  ;;  %vm13926_vm7 = vsmask.f32 6400  ;;  %4920 = vst [vmem:[#allocation4 + $0x98] sm:$0x1] %v4919_v21 }
 0x3a1   : > { %v4641_v58 = vrot.slane %v4639_v3, 4  ;;  %v3738_v63 = vadd.f32 %v3691_v12, %v3526_v11  ;;  %v4640_v5 = vsel %vm9290_vm12, %v4631_v31, %v4639_v3  ;;  %v5774_v60 = vsel %vm13917_vm0, %v13924_v15, %v13923_v41  ;;  %v13928_v31 = vld [vmem:[#allocation22_spill] sm:$0xff] }
 0x3a2   : > { %4648 = vst.msk [vmem:[#allocation4 + $0x54] sm:$0xf] %vm13925_vm14, %v4640_v5  ;;  %v11924_v41 = vrot.slane %v5112_v53, 1  ;;  %v5233_v38 = vpop.f32.mrf.mxu2  ;;  %v3527_v3 = vadd.f32 %v11820_v29, %v13928_v31  ;;  %v5110_v61 = vor.u32 %v5108_v34, %v11838_v36  ;;  %v13468_v53 = vrot.slane %v11667_v20, 1 }
 0x3a3   : > { %3770 = vst.msk [vmem:[#allocation3 + $0xb0] sm:$0xff] %vm2525_vm3, %v3738_v63  ;;  %v4650_v9 = vsel %vm11185_vm10, %v4641_v58, %v4649_v54  ;;  %v11928_v5 = vpop.f32.mrf.mxu3  ;;  %v11940_v58 = vadd.f32 %v11822_v45, %v5233_v38  ;;  %v7182_v54 = vrot.slane %v11914_v8, 3  ;;  %vm13929_vm0 = vsmask.f32 7424 }
 0x3a4   : > { %v4652_v22 = vld [vmem:[#allocation3 + $0xa2] sm:$0xff]  ;;  %8618 = vmatmul.msk.bf16.gmra.mxu3 %vm2525_vm3, %v11887_v16  ;;  %4651 = vst [vmem:[#allocation4 + $0x58] sm:$0x3] %v4650_v9  ;;  %v5115_v28 = vsel %vm13929_vm0, %v5110_v61, %v11924_v41  ;;  %v13930_v29 = vrot.slane %v11831_v51, 3  ;;  %vm13931_vm14 = vcmask 1044480   ;;  %v13933_v45 = vrot.slane %v11549_v35, 1 }
 0x3a5   : > { %v4654_v11 = vmul.f32 %v11626_v7, %v4652_v22  ;;  %v11932_v22 = vsel %vm13926_vm7, %v6046_v52, %v11912_v32  ;;  %vm13934_vm7 = vcmask 1046528   ;;  %v11963_v9 = vld [vmem:[#allocation4 + $0x48] sm:$0xff]  ;;  %vm13936_vm0 = vcmask 1045504  }
 0x3a6   : > { %8706 = vmatmul.msk.bf16.gmra.mxu1 %vm2525_vm3, %v5774_v60  ;;  %13927 = vst [vmem:[#allocation34_spill] sm:$0xff] %v11932_v22  ;;  %v11942_v12 = vpop.f32.mrf.mxu0  ;;  %v11951_v36 = vsel %vm13931_vm14, %v13930_v29, %v7182_v54  ;;  %v5455_v8 = vsel %vm13934_vm7, %v13933_v45, %v13468_v53  ;;  %v13939_v22 = vrot.slane %v11553_v1, 1  ;;  %vm13940_vm14 = vmmov %vm13934_vm7  ;;  %vm13941_vm7 = vcmask 1044480  }
 0x3a7   : > { %v4656_v50 = vadd.f32 %v11640_v25, %v4654_v11  ;;  %13932 = vst [vmem:[#allocation22_spill] sm:$0xff] %v11951_v36  ;;  %v13938_v36 = vrot.slane %v11695_v40, 1 }
 0x3a8   : > { %v3693_v63 = vpop.f32.mrf.mxu1 }
 0x3a9   : > { %v4658_v52 = vmax.f32 %v4656_v50, 0.0  ;;  %v3739_v60 = vadd.f32 %v3693_v63, %v3527_v3  ;;  %v11958_v21 = vld [vmem:[#allocation4 + $0x50] sm:$0xff]  ;;  %v5776_v14 = vsel %vm13940_vm14, %v13939_v22, %v13938_v36  ;;  %vm13945_vm14 = vsmask.f32 6400 }
 0x3aa   : > { %v4653_v11 = vld [vmem:[#allocation3 + $0xaa] sm:$0xff]  ;;  %v13469_v35 = vrot.slane %v11958_v21, 2  ;;  %v13943_v36 = vld [vmem:[#allocation9_spill] sm:$0xff]  ;;  %v5783_v62 = vrot.slane %v11958_v21, 1 }
 0x3ab   : > { %8601 = vmatmul.msk.bf16.gmra.mxu2 %vm2525_vm3, %v5115_v28  ;;  %v4660_v15 = vpack.c.bf16 %v4658_v52, %v4658_v52  ;;  %v11960_v34 = vld [vmem:[#allocation4 + $0x50] sm:$0xff]  ;;  %v4655_v38 = vmul.f32 %v11626_v7, %v4653_v11  ;;  %3771 = vst.msk [vmem:[#allocation3 + $0xb8] sm:$0xff] %vm2525_vm3, %v3739_v60  ;;  %v5235_v28 = vpop.f32.mrf.mxu2  ;;  %v11972_v45 = vpop.f32.mrf.mxu3  ;;  %v4684_v60 = vld [vmem:[#allocation4 + $0x58] sm:$0xc] }
 0x3ac   : > { %v13935_v63 = vld [vmem:[#allocation24_spill] sm:$0xff] }
 0x3ad   : > { %8631 = vmatmul.msk.bf16.gmra.mxu0 %vm2525_vm3, %v5455_v8  ;;  %v4663_v51 = vshrl.u32 %v4660_v15, 16  ;;  %v4666_v50 = vshll.u32 %v4660_v15, 16  ;;  %v4657_v52 = vadd.f32 %v11640_v25, %v4655_v38  ;;  %v3528_v29 = vadd.f32 %v11858_v39, %v13935_v63 }
 0x3ae   : > { %v11975_v15 = vadd.f32 %v11879_v4, %v5235_v28  ;;  %v5120_v8 = vshll.u32 %v11960_v34, 16  ;;  %v11978_v11 = vpop.f32.mrf.mxu0  ;;  %v6058_v4 = vshrl.u32 %v11958_v21, 16  ;;  %v6061_v28 = vshll.u32 %v11958_v21, 16 }
 0x3af   : > { %v4665_v3 = vrot.slane %v4663_v51, 5  ;;  %v4668_v61 = vrot.slane %v4666_v50, 6  ;;  %v11985_v51 = vsel %vm13936_vm0, %v6322_v17, %v13469_v35  ;;  %v13470_v50 = vrot.slane %v11963_v9, 3 }
 0x3b0   : > { %13937 = vst [vmem:[#allocation24_spill] sm:$0xff] %v11985_v51  ;;  %v4659_v38 = vmax.f32 %v4657_v52, 0.0  ;;  %v3696_v63 = vpop.f32.mrf.mxu1  ;;  %v6060_v52 = vrot.slane %v6058_v4, 1  ;;  %v6063_v22 = vrot.slane %v6061_v28, 2  ;;  %vm13944_vm0 = vsmask.f32 7424 }
 0x3b1   : > { %v4669_v39 = vor.u32 %v4668_v61, %v4665_v3  ;;  %v3740_v31 = vadd.f32 %v3696_v63, %v3528_v29  ;;  %v5116_v3 = vshrl.u32 %v11887_v16, 16  ;;  %v11998_v61 = vrot.slane %v5120_v8, 1 }
 0x3b2   : > { %v4661_v53 = vpack.c.bf16 %v4659_v38, %v4659_v38  ;;  %v4691_v35 = vld [vmem:[#allocation3 + $0xb4] sm:$0xff]  ;;  %v12003_v29 = vsel %vm13941_vm7, %v7182_v54, %v13470_v50  ;;  %v3529_v8 = vadd.f32 %v11896_v37, %v13943_v36  ;;  %v13473_v54 = vrot.slane %v11737_v19, 1 }
 0x3b3   : > { %v4685_v17 = vsel %vm11239_vm4, %v4669_v39, %v4684_v60  ;;  %13942 = vst [vmem:[#allocation35_spill] sm:$0xff] %v12003_v29  ;;  %v4693_v1 = vmul.f32 %v11626_v7, %v4691_v35  ;;  %v5118_v60 = vor.u32 %v5116_v3, %v11924_v41  ;;  %v12015_v35 = vor.u32 %v6063_v22, %v6060_v52 }
 0x3b4   : > { %4686 = vst [vmem:[#allocation4 + $0x58] sm:$0xc] %v4685_v17  ;;  %v4672_v38 = vshrl.u32 %v4661_v53, 16  ;;  %v4675_v63 = vshll.u32 %v4661_v53, 16  ;;  %8619 = vmatmul.msk.bf16.gmra.mxu3 %vm2525_vm3, %v11960_v34  ;;  %v4670_v50 = vrot.slane %v4669_v39, 4  ;;  %v13947_v3 = vrot.slane %v11667_v20, 1 }
 0x3b5   : > { %3772 = vst.msk [vmem:[#allocation3 + $0xc0] sm:$0xff] %vm2525_vm3, %v3740_v31  ;;  %v4695_v53 = vadd.f32 %v11640_v25, %v4693_v1  ;;  %v12017_v31 = vpop.f32.mrf.mxu3  ;;  %v12026_v37 = vsel %vm13945_vm14, %v11912_v32, %v12015_v35  ;;  %vm13948_vm7 = vcmask 1046528   ;;  %v12038_v32 = vld [vmem:[#allocation4 + $0x50] sm:$0xff]  ;;  %vm13952_vm14 = vcmask 1044480  }
 0x3b6   : > { %8707 = vmatmul.msk.bf16.gmra.mxu1 %vm2525_vm3, %v5776_v14  ;;  %v4674_v4 = vrot.slane %v4672_v38, 5  ;;  %v4677_v17 = vrot.slane %v4675_v63, 6  ;;  %v5123_v14 = vsel %vm13944_vm0, %v5118_v60, %v11998_v61  ;;  %v12021_v51 = vpop.f32.mrf.mxu0  ;;  %13946 = vst [vmem:[#allocation9_spill] sm:$0xff] %v12026_v37  ;;  %v5457_v52 = vsel %vm13948_vm7, %v13947_v3, %v13473_v54  ;;  %v4688_v38 = vld [vmem:[#allocation4 + $0x60] sm:$0x7] }
 0x3b7   : > { %v4697_v29 = vmax.f32 %v4695_v53, 0.0  ;;  %vm13949_vm0 = vcmask 60416  }
 0x3b8   : > { %v4678_v28 = vor.u32 %v4677_v17, %v4674_v4  ;;  %v3698_v41 = vpop.f32.mrf.mxu1 }
 0x3b9   : > { %v4699_v63 = vpack.c.bf16 %v4697_v29, %v4697_v29  ;;  %v3741_v1 = vadd.f32 %v3698_v41, %v3529_v8  ;;  %v13950_v41 = vld [vmem:[#allocation25_spill] sm:$0xff] }
 0x3ba   : > { %v4680_v39 = vrot.slane %v4678_v28, 4  ;;  %v4679_v22 = vsel %vm9319_vm15, %v4670_v50, %v4678_v28  ;;  %v5238_v17 = vpop.f32.mrf.mxu2  ;;  %v4723_v50 = vld [vmem:[#allocation4 + $0x60] sm:$0x8]  ;;  %v3530_v3 = vadd.f32 %v11942_v12, %v13950_v41  ;;  %v13951_v12 = vrot.slane %v11963_v9, 3 }
 0x3bb   : > { %8602 = vmatmul.msk.bf16.gmra.mxu2 %vm2525_vm3, %v5123_v14  ;;  %4687 = vst.msk [vmem:[#allocation4 + $0x5c] sm:$0xf] %vm13949_vm0, %v4679_v22  ;;  %v4702_v60 = vshll.u32 %v4699_v63, 16  ;;  %v4705_v4 = vshrl.u32 %v4699_v63, 16  ;;  %v12045_v8 = vadd.f32 %v11928_v5, %v5238_v17  ;;  %v13472_v63 = vrot.slane %v11739_v10, 1 }
 0x3bc   : > { %v4692_v36 = vld [vmem:[#allocation3 + $0xbc] sm:$0xff]  ;;  %3773 = vst.msk [vmem:[#allocation3 + $0xc8] sm:$0xff] %vm2525_vm3, %v3741_v1  ;;  %v4689_v29 = vsel %vm11277_vm9, %v4680_v39, %v4688_v38  ;;  %v13471_v1 = vrot.slane %v12038_v32, 3  ;;  %vm13956_vm0 = vsmask.f32 7424 }
 0x3bd   : > { %8632 = vmatmul.msk.bf16.gmra.mxu0 %vm2525_vm3, %v5457_v52  ;;  %v4694_v20 = vmul.f32 %v11626_v7, %v4692_v36  ;;  %4690 = vst [vmem:[#allocation4 + $0x60] sm:$0x7] %v4689_v29  ;;  %v4704_v53 = vrot.slane %v4702_v60, 5  ;;  %v4707_v14 = vrot.slane %v4705_v4, 4  ;;  %v12050_v52 = vpop.f32.mrf.mxu3 }
 0x3be   : > { %v12056_v38 = vpop.f32.mrf.mxu0  ;;  %v12065_v17 = vsel %vm13952_vm14, %v13951_v12, %v13471_v1  ;;  %vm13957_vm14 = vcmask 60416  }
 0x3bf   : > { %v4696_v28 = vadd.f32 %v11640_v25, %v4694_v20  ;;  %v4724_v5 = vsel %vm11296_vm1, %v4704_v53, %v4723_v50  ;;  %v4708_v39 = vor.u32 %v4707_v14, %v4704_v53  ;;  %13953 = vst [vmem:[#allocation25_spill] sm:$0xff] %v12065_v17  ;;  %v13954_v50 = vrot.slane %v11695_v40, 1 }
 0x3c0   : > { %v3701_v36 = vpop.f32.mrf.mxu1  ;;  %4725 = vst [vmem:[#allocation4 + $0x60] sm:$0x8] %v4724_v5  ;;  %v5124_v14 = vshrl.u32 %v11960_v34, 16 }
 0x3c1   : > { %v4698_v22 = vmax.f32 %v4696_v28, 0.0  ;;  %v3742_v4 = vadd.f32 %v3701_v36, %v3530_v3  ;;  %v5778_v53 = vsel %vm13948_vm7, %v13954_v50, %v13472_v63  ;;  %v4709_v36 = vrot.slane %v4708_v39, 4  ;;  %v13955_v50 = vld [vmem:[#allocation26_spill] sm:$0xff] }
 0x3c2   : > { %v12058_v20 = vld [vmem:[#allocation4 + $0x58] sm:$0xff]  ;;  %v5240_v5 = vpop.f32.mrf.mxu2  ;;  %v3531_v1 = vadd.f32 %v11978_v11, %v13955_v50 }
 0x3c3   : > { %v4700_v60 = vpack.c.bf16 %v4698_v22, %v4698_v22  ;;  %v4730_v29 = vld [vmem:[#allocation3 + $0xc6] sm:$0xff]  ;;  %v12074_v41 = vld [vmem:[#allocation4 + $0x58] sm:$0xff]  ;;  %3774 = vst.msk [vmem:[#allocation3 + $0xd0] sm:$0xff] %vm2525_vm3, %v3742_v4  ;;  %v5128_v40 = vshll.u32 %v12058_v20, 16  ;;  %v12083_v12 = vadd.f32 %v11972_v45, %v5240_v5 }
 0x3c4   : > { %v4732_v9 = vmul.f32 %v11626_v7, %v4730_v29  ;;  %8620 = vmatmul.msk.bf16.gmra.mxu3 %vm2525_vm3, %v12058_v20  ;;  %v13474_v28 = vrot.slane %v12074_v41, 2  ;;  %v6067_v17 = vshrl.u32 %v12074_v41, 16 }
 0x3c5   : > { %v4711_v3 = vshll.u32 %v4700_v60, 16  ;;  %v4715_v22 = vshrl.u32 %v4700_v60, 16  ;;  %v5126_v60 = vor.u32 %v5124_v14, %v11998_v61  ;;  %v12089_v54 = vpop.f32.mrf.mxu3  ;;  %v13958_v14 = vrot.slane %v11807_v55, 1 }
 0x3c6   : > { %8708 = vmatmul.msk.bf16.gmra.mxu1 %vm2525_vm3, %v5778_v53  ;;  %v4734_v4 = vadd.f32 %v11640_v25, %v4732_v9  ;;  %v5130_v53 = vrot.slane %v5128_v40, 1  ;;  %v13960_v9 = vrot.slane %v11958_v21, 2 }
 0x3c7   : > { %v4713_v29 = vrot.slane %v4711_v3, 5  ;;  %v4717_v63 = vrot.slane %v4715_v22, 4  ;;  %v13959_v3 = vrot.slane %v11737_v19, 1 }
 0x3c8   : > { %v4736_v37 = vmax.f32 %v4734_v4, 0.0  ;;  %v5131_v45 = vsel %vm13956_vm0, %v5126_v60, %v5130_v53  ;;  %v12096_v5 = vpop.f32.mrf.mxu0  ;;  %v3703_v61 = vpop.f32.mrf.mxu1  ;;  %vm13961_vm0 = vcmask 1045504  }
 0x3c9   : > { %v4718_v39 = vor.u32 %v4717_v63, %v4713_v29  ;;  %v4714_v11 = vsel %vm9529_vm5, %v4709_v36, %v4713_v29  ;;  %v5459_v22 = vsel %vm13948_vm7, %v13959_v3, %v13958_v14  ;;  %v4727_v63 = vld [vmem:[#allocation4 + $0x68] sm:$0xf]  ;;  %v12110_v40 = vsel %vm13961_vm0, %v13960_v9, %v13474_v28 }
 0x3ca   : > { %4726 = vst.msk [vmem:[#allocation4 + $0x64] sm:$0xf] %vm13957_vm14, %v4714_v11  ;;  %v4738_v50 = vpack.c.bf16 %v4736_v37, %v4736_v37  ;;  %v3743_v60 = vadd.f32 %v3703_v61, %v3531_v1  ;;  %v6070_v29 = vshll.u32 %v12074_v41, 16  ;;  %v4731_v4 = vld [vmem:[#allocation3 + $0xce] sm:$0xff]  ;;  %vm13967_vm14 = vmmov %vm13948_vm7 }
 0x3cb   : > { %8603 = vmatmul.msk.bf16.gmra.mxu2 %vm2525_vm3, %v5131_v45  ;;  %13962 = vst [vmem:[#allocation26_spill] sm:$0xff] %v12110_v40  ;;  %v4719_v36 = vrot.slane %v4718_v39, 4  ;;  %v6069_v45 = vrot.slane %v6067_v17, 1  ;;  %v4733_v11 = vmul.f32 %v11626_v7, %v4731_v4  ;;  %v5243_v14 = vpop.f32.mrf.mxu2  ;;  %v4760_v4 = vld [vmem:[#allocation4 + $0x6c] sm:$0xf]  ;;  %vm13971_vm7 = vmmov %vm13961_vm0 }
 0x3cc   : > { %v4741_v19 = vshrl.u32 %v4738_v50, 16  ;;  %3775 = vst.msk [vmem:[#allocation3 + $0xd8] sm:$0xff] %vm2525_vm3, %v3743_v60  ;;  %v12119_v9 = vadd.f32 %v12017_v31, %v5243_v14  ;;  %v6072_v37 = vrot.slane %v6070_v29, 2  ;;  %v4744_v39 = vshll.u32 %v4738_v50, 16  ;;  %vm13975_vm0 = vmmov %vm13967_vm14 }
 0x3cd   : > { %8633 = vmatmul.msk.bf16.gmra.mxu0 %vm2525_vm3, %v5459_v22  ;;  %v4728_v3 = vsel %vm11355_vm2, %v4719_v36, %v4727_v63  ;;  %v4735_v61 = vadd.f32 %v11640_v25, %v4733_v11  ;;  %v13963_v22 = vld [vmem:[#allocation10_spill] sm:$0xff]  ;;  %v12124_v28 = vpop.f32.mrf.mxu3  ;;  %v13475_v60 = vrot.slane %v11809_v44, 1  ;;  %vm13964_vm2 = vsmask.f32 6400 }
 0x3ce   : > { %4729 = vst [vmem:[#allocation4 + $0x68] sm:$0xf] %v4728_v3  ;;  %v4743_v1 = vrot.slane %v4741_v19, 7  ;;  %v3532_v17 = vadd.f32 %v12021_v51, %v13963_v22  ;;  %v12127_v40 = vor.u32 %v6072_v37, %v6069_v45  ;;  %v13966_v37 = vrot.slane %v11739_v10, 1 }
 0x3cf   : > { %v4737_v63 = vmax.f32 %v4735_v61, 0.0  ;;  %v5132_v61 = vshrl.u32 %v12058_v20, 16 }
 0x3d0   : > { %v4746_v57 = vor.u32 %v4744_v39, %v4743_v1  ;;  %v12131_v36 = vpop.f32.mrf.mxu0  ;;  %v12138_v51 = vsel %vm13964_vm2, %v12015_v35, %v12127_v40  ;;  %v5780_v39 = vsel %vm13967_vm14, %v13966_v37, %v13475_v60  ;;  %vm13976_vm2 = vcmask 60416   ;;  %vm13984_vm14 = vmmov %vm13975_vm0 }
 0x3d1   : > { %v12129_v31 = vld [vmem:[#allocation4 + $0x60] sm:$0xff]  ;;  %13965 = vst [vmem:[#allocation10_spill] sm:$0xff] %v12138_v51  ;;  %v4739_v19 = vpack.c.bf16 %v4737_v63, %v4737_v63  ;;  %v13974_v51 = vrot.slane %v11807_v55, 1 }
 0x3d2   : > { %v12133_v50 = vld [vmem:[#allocation4 + $0x60] sm:$0xff]  ;;  %v5136_v14 = vshll.u32 %v12129_v31, 16  ;;  %v4761_v45 = vsel %vm13899_vm13, %v4746_v57, %v4760_v4  ;;  %v5134_v4 = vor.u32 %v5132_v61, %v5130_v53  ;;  %vm13969_vm13 = vsmask.f32 7424 }
 0x3d3   : > { %v3706_v29 = vpop.f32.mrf.mxu1  ;;  %v4767_v3 = vld [vmem:[#allocation3 + $0xd8] sm:$0xff]  ;;  %4762 = vst [vmem:[#allocation4 + $0x6c] sm:$0xf] %v4761_v45  ;;  %v4749_v22 = vshrl.u32 %v4739_v19, 16  ;;  %v6328_v63 = vrot.slane %v12133_v50, 2  ;;  %v4752_v45 = vshll.u32 %v4739_v19, 16 }
 0x3d4   : > { %v3744_v11 = vadd.f32 %v3706_v29, %v3532_v17  ;;  %v4769_v35 = vmul.f32 %v11626_v7, %v4767_v3  ;;  %v5245_v17 = vpop.f32.mrf.mxu2  ;;  %8621 = vmatmul.msk.bf16.gmra.mxu3 %vm2525_vm3, %v12129_v31  ;;  %v12154_v43 = vrot.slane %v5136_v14, 1  ;;  %v13968_v3 = vld [vmem:[#allocation20_spill] sm:$0xff]  ;;  %v13970_v53 = vrot.slane %v12074_v41, 2 }
 0x3d5   : > { %v12157_v10 = vadd.f32 %v12050_v52, %v5245_v17  ;;  %v4751_v29 = vrot.slane %v4749_v22, 7  ;;  %v3533_v37 = vadd.f32 %v12056_v38, %v13968_v3  ;;  %v12164_v60 = vpop.f32.mrf.mxu3  ;;  %v4764_v52 = vld [vmem:[#allocation4 + $0x74] sm:$0x1]  ;;  %v6076_v22 = vshrl.u32 %v12133_v50, 16 }
 0x3d6   : > { %3776 = vst.msk [vmem:[#allocation3 + $0xe0] sm:$0xff] %vm2525_vm3, %v3744_v11  ;;  %8709 = vmatmul.msk.bf16.gmra.mxu1 %vm2525_vm3, %v5780_v39  ;;  %v4771_v11 = vadd.f32 %v11640_v25, %v4769_v35  ;;  %v4747_v39 = vrot.slane %v4743_v1, 4  ;;  %v5139_v14 = vsel %vm13969_vm13, %v5134_v4, %v12154_v43  ;;  %v12171_v61 = vsel %vm13971_vm7, %v13970_v53, %v6328_v63 }
 0x3d7   : > { %13972 = vst [vmem:[#allocation20_spill] sm:$0xff] %v12171_v61  ;;  %v4754_v19 = vor.u32 %v4752_v45, %v4751_v29  ;;  %v4756_v17 = vrot.slane %v4751_v29, 4  ;;  %v6079_v38 = vshll.u32 %v12133_v50, 16  ;;  %v13973_v4 = vrot.slane %v11887_v16, 1 }
 0x3d8   : > { %v4773_v35 = vmax.f32 %v4771_v11, 0.0  ;;  %v5466_v18 = vrot.slane %v12129_v31, 1 }
 0x3d9   : > { %v5536_v57 = vpop.f32.mrf.mxu0  ;;  %v5461_v53 = vsel %vm13975_vm0, %v13974_v51, %v13973_v4  ;;  %v4755_v29 = vsel %vm9436_vm6, %v4747_v39, %v4754_v19  ;;  %v4765_v45 = vsel %vm11444_vm8, %v4756_v17, %v4764_v52  ;;  %v13978_v39 = vld [vmem:[#allocation23_spill] sm:$0xff]  ;;  %vm13980_vm6 = vmmov %vm13971_vm7  ;;  %vm13981_vm8 = vsmask.f32 6400 }
 0x3da   : > { %v12177_v3 = vadd.f32 %v5536_v57, %v11940_v58  ;;  %v4775_v61 = vpack.c.bf16 %v4773_v35, %v4773_v35  ;;  %4763 = vst.msk [vmem:[#allocation4 + $0x70] sm:$0xf] %vm13976_vm2, %v4755_v29  ;;  %v12190_v58 = vld [vmem:[#allocation4 + $0x68] sm:$0xff]  ;;  %v6078_v57 = vrot.slane %v6076_v22, 1  ;;  %v2881_v52 = vadd.f32 %v13978_v39, %v13977_v59  ;;  %vm13988_vm0 = vmmov %vm13981_vm8 }
 0x3db   : > { %v3708_v1 = vpop.f32.mrf.mxu1  ;;  %8604 = vmatmul.msk.bf16.gmra.mxu2 %vm2525_vm3, %v5139_v14  ;;  %v6081_v14 = vrot.slane %v6079_v38, 2  ;;  %4766 = vst [vmem:[#allocation4 + $0x74] sm:$0x1] %v4765_v45  ;;  %v13979_v38 = vld [vmem:[#allocation28_spill] sm:$0xff]  ;;  %v6330_v4 = vrot.slane %v12190_v58, 2  ;;  %vm13990_vm2 = vmmov %vm13984_vm14 }
 0x3dc   : > { %v3745_v56 = vadd.f32 %v3708_v1, %v3533_v37  ;;  %v4778_v55 = vshrl.u32 %v4775_v61, 16  ;;  %v4781_v42 = vshll.u32 %v4775_v61, 16  ;;  %v12194_v37 = vld [vmem:[#allocation4 + $0x68] sm:$0xff]  ;;  %v3534_v61 = vadd.f32 %v12096_v5, %v13979_v38  ;;  %v4799_v1 = vld [vmem:[#allocation4 + $0x74] sm:$0xe] }
 0x3dd   : > { %v4768_v11 = vld [vmem:[#allocation3 + $0xe0] sm:$0xff]  ;;  %8634 = vmatmul.msk.bf16.gmra.mxu0 %vm2525_vm3, %v5461_v53  ;;  %v6082_v53 = vor.u32 %v6081_v14, %v6078_v57  ;;  %v6085_v57 = vshrl.u32 %v12190_v58, 16  ;;  %vm13987_vm7 = vsmask.f32 7424 }
 0x3de   : > { %v4770_v51 = vmul.f32 %v11626_v7, %v4768_v11  ;;  %3777 = vst.msk [vmem:[#allocation3 + $0xe8] sm:$0xff] %vm2525_vm3, %v3745_v56  ;;  %v5248_v33 = vpop.f32.mrf.mxu2  ;;  %v4780_v17 = vrot.slane %v4778_v55, 6  ;;  %v4783_v35 = vrot.slane %v4781_v42, 7  ;;  %v12204_v7 = vpop.f32.mrf.mxu3  ;;  %v5781_v56 = vrot.slane %v11877_v49, 1 }
 0x3df   : > { %v12199_v19 = vadd.f32 %v12089_v54, %v5248_v33  ;;  %v5144_v54 = vshll.u32 %v12194_v37, 16  ;;  %v12219_v5 = vsel %vm13981_vm8, %v12127_v40, %v6082_v53  ;;  %v13982_v33 = vld [vmem:[#allocation27_spill] sm:$0xff]  ;;  %v6087_v40 = vrot.slane %v6085_v57, 1  ;;  %vm13994_vm8 = vmmov %vm13988_vm0 }
 0x3e0   : > { %v4772_v22 = vadd.f32 %v11640_v25, %v4770_v51  ;;  %v4784_v29 = vor.u32 %v4783_v35, %v4780_v17  ;;  %v12215_v25 = vsel %vm13980_vm6, %v6328_v63, %v6330_v4  ;;  %v3204_v59 = vadd.f32 %v13982_v33, %v2881_v52 }
 0x3e1   : > { %v5538_v45 = vpop.f32.mrf.mxu0  ;;  %v5140_v17 = vshrl.u32 %v12129_v31, 16  ;;  %v6088_v35 = vshll.u32 %v12190_v58, 16  ;;  %v12236_v52 = vrot.slane %v5144_v54, 1  ;;  %vm13991_vm6 = vcmask 60416  }
 0x3e2   : > { %v4774_v11 = vmax.f32 %v4772_v22, 0.0  ;;  %v12210_v42 = vadd.f32 %v5538_v45, %v11975_v15  ;;  %v4800_v39 = vsel %vm11159_vm11, %v4784_v29, %v4799_v1  ;;  %v13983_v15 = vrot.slane %v11809_v44, 1  ;;  %v8830_v45 = vld [vmem:[%s13399_s2 + $0x1c] sm:$0xf] }
 0x3e3   : > { %v3711_v55 = vpop.f32.mrf.mxu1  ;;  %4801 = vst [vmem:[#allocation4 + $0x74] sm:$0xe] %v4800_v39  ;;  %v5462_v44 = vrot.slane %v11960_v34, 1  ;;  %v3535_v1 = vadd.f32 %v12131_v36, %v3204_v59  ;;  %v6090_v57 = vrot.slane %v6088_v35, 2  ;;  %vm13985_vm11 = vcmask 1043456  }
 0x3e4   : > { %v4776_v14 = vpack.c.bf16 %v4774_v11, %v4774_v11  ;;  %v3746_v51 = vadd.f32 %v3711_v55, %v3534_v61  ;;  %v5782_v63 = vsel %vm13984_vm14, %v13983_v15, %v5781_v56  ;;  %8622 = vmatmul.msk.bf16.gmra.mxu3 %vm2525_vm3, %v12194_v37  ;;  %v5142_v11 = vor.u32 %v5140_v17, %v12154_v43  ;;  %v8753_v55 = vld [vmem:[%s13399_s2 + $0x18] sm:$0xf]  ;;  %vm13986_vm13 = vmmov %vm13985_vm11  ;;  %v4803_v35 = vld [vmem:[#allocation4 + $0x7c] sm:$0x3] }
 0x3e5   : > { %v6091_v36 = vor.u32 %v6090_v57, %v6087_v40  ;;  %v4785_v43 = vrot.slane %v4784_v29, 4  ;;  %v13989_v29 = vrot.slane %v11887_v16, 1  ;;  %vm13995_vm14 = vmmov %vm13987_vm7  ;;  %v13997_v34 = vrot.slane %v12038_v32, 3 }
 0x3e6   : > { %v4787_v22 = vshrl.u32 %v4776_v14, 16  ;;  %v4790_v38 = vshll.u32 %v4776_v14, 16  ;;  %3778 = vst.msk [vmem:[#allocation3 + $0xf0] sm:$0xff] %vm2525_vm3, %v3746_v51  ;;  %8710 = vmatmul.msk.bf16.gmra.mxu1 %vm2525_vm3, %v5782_v63  ;;  %v5250_v48 = vpop.f32.mrf.mxu2  ;;  %v7042_v51 = vsel %vm13985_vm11, %v8830_v45, 0  ;;  %v12252_v33 = vpop.f32.mrf.mxu3  ;;  %v5147_v39 = vsel %vm13987_vm7, %v5142_v11, %v12236_v52  ;;  %vm13996_vm11 = vmmov %vm13990_vm2 }
 0x3e7   : > { %v12240_v61 = vadd.f32 %v12124_v28, %v5250_v48  ;;  %v6712_v28 = vsel %vm13986_vm13, %v8753_v55, 0  ;;  %7051 = vmatpush.bf16.msrb.mxu1 %v7042_v51  ;;  %v5463_v40 = vsel %vm13990_vm2, %v13989_v29, %v5462_v44  ;;  %vm13998_vm13 = vcmask 1044480  }
 0x3e8   : > { %v4789_v54 = vrot.slane %v4787_v22, 6  ;;  %v4792_v14 = vrot.slane %v4790_v38, 7  ;;  %6721 = vmatpush.bf16.msrb.mxu0 %v6712_v28  ;;  %v12261_v22 = vsel %vm13988_vm0, %v6082_v53, %v6091_v36  ;;  %v9135_v53 = vld [vmem:[%s13403_s6] ss:$0 sm:$0xff]  ;;  %vm14007_vm0 = vcmask 1043456  }
 0x3e9   : > { %v5541_v15 = vpop.f32.mrf.mxu0 }
 0x3ea   : > { %v4793_v59 = vor.u32 %v4792_v14, %v4789_v54  ;;  %v12258_v17 = vadd.f32 %v5541_v15, %v12045_v8  ;;  %v12270_v45 = vld [vmem:[#allocation4 + $0x70] sm:$0xff]  ;;  %v9136_v14 = vld [vmem:[%s13404_s7] ss:$0 sm:$0xff] }
 0x3eb   : > { %v3713_v63 = vpop.f32.mrf.mxu1  ;;  %8605 = vmatmul.msk.bf16.gmra.mxu2 %vm2525_vm3, %v5147_v39  ;;  %v12272_v8 = vld [vmem:[#allocation4 + $0x70] sm:$0xff]  ;;  %v13477_v54 = vrot.slane %v12270_v45, 2  ;;  %v6094_v28 = vshrl.u32 %v12270_v45, 16 }
 0x3ec   : > { %v4795_v38 = vrot.slane %v4793_v59, 4  ;;  %v3747_v48 = vadd.f32 %v3713_v63, %v3535_v1  ;;  %v4794_v11 = vsel %vm9290_vm12, %v4785_v43, %v4793_v59  ;;  %v6097_v43 = vshll.u32 %v12270_v45, 16 }
 0x3ed   : > { %v4806_v55 = vld [vmem:[#allocation3 + $0xea] sm:$0xff]  ;;  %8635 = vmatmul.msk.bf16.gmra.mxu0 %vm2525_vm3, %v5463_v40  ;;  %4802 = vst.msk [vmem:[#allocation4 + $0x78] sm:$0xf] %vm13991_vm6, %v4794_v11  ;;  %v5152_v39 = vshll.u32 %v12272_v8, 16  ;;  %vm13992_vm12 = vcmask 1045504  }
 0x3ee   : > { %v4808_v1 = vmul.f32 %v9135_v53, %v4806_v55  ;;  %3779 = vst.msk [vmem:[#allocation3 + $0xf8] sm:$0xff] %vm2525_vm3, %v3747_v48  ;;  %v5253_v16 = vpop.f32.mrf.mxu2  ;;  %v4804_v27 = vsel %vm11185_vm10, %v4795_v38, %v4803_v35  ;;  %v12291_v59 = vpop.f32.mrf.mxu3  ;;  %v6096_v35 = vrot.slane %v6094_v28, 1  ;;  %v6099_v29 = vrot.slane %v6097_v43, 2  ;;  %vm13993_vm10 = vmmov %vm13990_vm2 }
 0x3ef   : > { %v12283_v57 = vadd.f32 %v12164_v60, %v5253_v16  ;;  %4805 = vst [vmem:[#allocation4 + $0x7c] sm:$0x3] %v4804_v27  ;;  %v12300_v60 = vsel %vm13992_vm12, %v6330_v4, %v13477_v54  ;;  %v5784_v4 = vsel %vm13993_vm10, %v5781_v56, %v5783_v62  ;;  %v5148_v16 = vshrl.u32 %v12194_v37, 16 }
 0x3f0   : > { %v4810_v51 = vadd.f32 %v9136_v14, %v4808_v1  ;;  %v12314_v27 = vrot.slane %v5152_v39, 1  ;;  %v5464_v39 = vrot.slane %v12058_v20, 1 }
 0x3f1   : > { %v5543_v63 = vpop.f32.mrf.mxu0  ;;  %v5150_v56 = vor.u32 %v5148_v16, %v12236_v52  ;;  %v4838_v16 = vld [vmem:[#allocation4 + $0x7c] sm:$0xc] }
 0x3f2   : > { %v4812_v15 = vmax.f32 %v4810_v51, 0.0  ;;  %v12303_v48 = vadd.f32 %v5543_v63, %v12083_v12  ;;  %v12316_v51 = vor.u32 %v6099_v29, %v6096_v35 }
 0x3f3   : > { %v5859_v38 = vpop.f32.mrf.mxu1  ;;  %v5155_v52 = vsel %vm13995_vm14, %v5150_v56, %v12314_v27 }
 0x3f4   : > { %v4814_v40 = vpack.c.bf16 %v4812_v15, %v4812_v15  ;;  %v12306_v11 = vadd.f32 %v5859_v38, %v12177_v3  ;;  %8623 = vmatmul.msk.bf16.gmra.mxu3 %vm2525_vm3, %v12272_v8  ;;  %v12328_v63 = vsel %vm13994_vm8, %v6091_v36, %v12316_v51 }
 0x3f5   : > { %v4807_v55 = vld [vmem:[#allocation3 + $0xf2] sm:$0xff]  ;;  %v4845_v1 = vld [vmem:[#allocation3 + $0xfc] sm:$0xff] }
 0x3f6   : > { %v4817_v12 = vshrl.u32 %v4814_v40, 16  ;;  %v4820_v28 = vshll.u32 %v4814_v40, 16  ;;  %v4809_v43 = vmul.f32 %v9135_v53, %v4807_v55  ;;  %v4847_v15 = vmul.f32 %v9135_v53, %v4845_v1  ;;  %8711 = vmatmul.msk.bf16.gmra.mxu1 %vm2525_vm3, %v5784_v4  ;;  %v5255_v3 = vpop.f32.mrf.mxu2  ;;  %v12332_v55 = vld [vmem:[#allocation4 + $0x58] sm:$0xff] }
 0x3f7   : > { %v12322_v49 = vadd.f32 %v12204_v7, %v5255_v3  ;;  %v12330_v40 = vpop.f32.mrf.mxu3  ;;  %v7188_v56 = vrot.slane %v12332_v55, 3 }
 0x3f8   : > { %v4819_v35 = vrot.slane %v4817_v12, 5  ;;  %v4822_v38 = vrot.slane %v4820_v28, 6  ;;  %v4811_v53 = vadd.f32 %v9136_v14, %v4809_v43  ;;  %v4849_v29 = vadd.f32 %v9136_v14, %v4847_v15 }
 0x3f9   : > { %v5546_v3 = vpop.f32.mrf.mxu0  ;;  %v5465_v43 = vsel %vm13996_vm11, %v5462_v44, %v5464_v39  ;;  %v12360_v6 = vsel %vm13998_vm13, %v13997_v34, %v7188_v56  ;;  %vm14015_vm11 = vmmov %vm13998_vm13 }
 0x3fa   : > { %v4823_v1 = vor.u32 %v4822_v38, %v4819_v35  ;;  %v4813_v4 = vmax.f32 %v4811_v53, 0.0  ;;  %v4851_v7 = vmax.f32 %v4849_v29, 0.0  ;;  %v12338_v36 = vadd.f32 %v5546_v3, %v12119_v9  ;;  %13999 = vst [vmem:[#allocation29_spill] sm:$0xff] %v12360_v6 }
 0x3fb   : > { %v5861_v54 = vpop.f32.mrf.mxu1  ;;  %8606 = vmatmul.msk.bf16.gmra.mxu2 %vm2525_vm3, %v5155_v52  ;;  %v5785_v3 = vrot.slane %v12074_v41, 1 }
 0x3fc   : > { %v4815_v12 = vpack.c.bf16 %v4813_v4, %v4813_v4  ;;  %v4853_v14 = vpack.c.bf16 %v4851_v7, %v4851_v7  ;;  %v12341_v28 = vadd.f32 %v5861_v54, %v12210_v42  ;;  %v4839_v15 = vsel %vm11239_vm4, %v4823_v1, %v4838_v16  ;;  %v4877_v42 = vld [vmem:[#allocation4 + $0x84] sm:$0x8]  ;;  %vm14000_vm4 = vmmov %vm13990_vm2 }
 0x3fd   : > { %8636 = vmatmul.msk.bf16.gmra.mxu0 %vm2525_vm3, %v5465_v43  ;;  %4840 = vst [vmem:[#allocation4 + $0x7c] sm:$0xc] %v4839_v15  ;;  %v5786_v46 = vsel %vm14000_vm4, %v5783_v62, %v5785_v3  ;;  %v5156_v62 = vshrl.u32 %v12272_v8, 16  ;;  %vm14014_vm14 = vmmov %vm14000_vm4 }
 0x3fe   : > { %v4826_v9 = vshrl.u32 %v4815_v12, 16  ;;  %v4829_v35 = vshll.u32 %v4815_v12, 16  ;;  %v4856_v38 = vshll.u32 %v4853_v14, 16  ;;  %v4859_v53 = vshrl.u32 %v4853_v14, 16  ;;  %v5258_v29 = vpop.f32.mrf.mxu2  ;;  %vm14017_vm13 = vmmov %vm14000_vm4 }
 0x3ff   : > { %v12353_v54 = vadd.f32 %v12252_v33, %v5258_v29  ;;  %v12362_v16 = vpop.f32.mrf.mxu3  ;;  %v4824_v12 = vrot.slane %v4823_v1, 4  ;;  %v4842_v29 = vld [vmem:[#allocation4 + $0x84] sm:$0x7] }
 0x400   : > { %v4828_v44 = vrot.slane %v4826_v9, 5  ;;  %v4831_v4 = vrot.slane %v4829_v35, 6  ;;  %v4858_v7 = vrot.slane %v4856_v38, 5  ;;  %v4861_v52 = vrot.slane %v4859_v53, 4 }
 0x401   : > { %v5548_v15 = vpop.f32.mrf.mxu0 }
 0x402   : > { %v4832_v14 = vor.u32 %v4831_v4, %v4828_v44  ;;  %v4862_v43 = vor.u32 %v4861_v52, %v4858_v7  ;;  %v4878_v33 = vsel %vm11296_vm1, %v4858_v7, %v4877_v42  ;;  %v12368_v34 = vadd.f32 %v5548_v15, %v12157_v10  ;;  %vm14001_vm1 = vmmov %vm13991_vm6 }
 0x403   : > { %4879 = vst [vmem:[#allocation4 + $0x84] sm:$0x8] %v4878_v33  ;;  %v5864_v32 = vpop.f32.mrf.mxu1 }
 0x404   : > { %v4834_v9 = vrot.slane %v4832_v14, 4  ;;  %v4863_v35 = vrot.slane %v4862_v43, 4  ;;  %v12371_v38 = vadd.f32 %v5864_v32, %v12258_v17  ;;  %v4833_v1 = vsel %vm9319_vm15, %v4824_v12, %v4832_v14  ;;  %v12380_v53 = vld [vmem:[#allocation4 + $0x78] sm:$0xff]  ;;  %vm14002_vm15 = vmmov %vm14001_vm1 }
 0x405   : > { %4841 = vst.msk [vmem:[#allocation4 + $0x80] sm:$0xf] %vm14001_vm1, %v4833_v1  ;;  %v12383_v10 = vld [vmem:[#allocation4 + $0x78] sm:$0xff]  ;;  %8624 = vmatmul.msk.bf16.gmra.mxu3 %vm2525_vm3, %v12380_v53  ;;  %v5160_v44 = vshll.u32 %v12380_v53, 16  ;;  %v14003_v14 = vrot.slane %v12270_v45, 2 }
 0x406   : > { %v4843_v42 = vsel %vm11277_vm9, %v4834_v9, %v4842_v29  ;;  %8712 = vmatmul.msk.bf16.gmra.mxu1 %vm2525_vm3, %v5786_v46  ;;  %v5260_v17 = vpop.f32.mrf.mxu2  ;;  %v4868_v26 = vsel %vm9529_vm5, %v4863_v35, %v11593_v47  ;;  %v6334_v4 = vrot.slane %v12383_v10, 2  ;;  %v6103_v30 = vshrl.u32 %v12383_v10, 16  ;;  %vm14004_vm5 = vmmov %vm13992_vm12  ;;  %v8847_v46 = vld [vmem:[%s13399_s2 + $0x20] sm:$0xf] }
 0x407   : > { %4844 = vst [vmem:[#allocation4 + $0x84] sm:$0x7] %v4843_v42  ;;  %v12392_v21 = vadd.f32 %v12291_v59, %v5260_v17  ;;  %v6106_v47 = vshll.u32 %v12383_v10, 16  ;;  %v5392_v7 = vpop.f32.mrf.mxu3  ;;  %v5158_v59 = vor.u32 %v5156_v62, %v12314_v27  ;;  %v5162_v52 = vrot.slane %v5160_v44, 1  ;;  %vm14005_vm9 = vmmov %vm13987_vm7 }
 0x408   : > { %4880 = vst.msk [vmem:[#allocation4 + $0x88] sm:$0xf] %vm14002_vm15, %v4868_v26  ;;  %v12407_v43 = vsel %vm14004_vm5, %v14003_v14, %v6334_v4  ;;  %v6105_v33 = vrot.slane %v6103_v30, 1  ;;  %vm14006_vm7 = vmmov %vm13990_vm2 }
 0x409   : > { %v6108_v15 = vrot.slane %v6106_v47, 2  ;;  %v5163_v32 = vsel %vm14005_vm9, %v5158_v59, %v5162_v52  ;;  %v5467_v1 = vsel %vm14006_vm7, %v5464_v39, %v5466_v18  ;;  %vm14008_vm2 = vmmov %vm13994_vm8  ;;  %v5787_v47 = vrot.slane %v12133_v50, 1 }
 0x40a   : > { %v5551_v12 = vpop.f32.mrf.mxu0  ;;  %vm14009_vm6 = vmmov %vm14004_vm5 }
 0x40b   : > { %v5866_v29 = vpop.f32.mrf.mxu1  ;;  %v5622_v9 = vadd.f32 %v5551_v12, %v12199_v19  ;;  %8607 = vmatmul.msk.bf16.gmra.mxu2 %vm2525_vm3, %v5163_v32  ;;  %v6109_v42 = vor.u32 %v6108_v15, %v6105_v33  ;;  %v7253_v19 = vsel %vm14007_vm0, %v8847_v46, 0  ;;  %vm14010_vm12 = vmmov %vm14000_vm4 }
 0x40c   : > { %v12412_v35 = vadd.f32 %v5866_v29, %v12303_v48  ;;  %v4954_v27 = vld [vmem:[#allocation4 + $0x80] sm:$0x1]  ;;  %7262 = vmatpush.bf16.msrb.mxu2 %v7253_v19  ;;  %v5468_v19 = vrot.slane %v12194_v37, 1  ;;  %vm14012_vm10 = vmmov %vm14008_vm2 }
 0x40d   : > { %v5022_v17 = vunpack.c.l.b16 %v4954_v27  ;;  %8637 = vmatmul.msk.bf16.gmra.mxu0 %vm2525_vm3, %v5467_v1  ;;  %v12429_v62 = vsel %vm14008_vm2, %v12316_v51, %v6109_v42  ;;  %v5788_v27 = vsel %vm14010_vm12, %v5785_v3, %v5787_v47  ;;  %vm14013_vm8 = vmmov %vm14005_vm9 }
 0x40e   : > { %v5263_v48 = vpop.f32.mrf.mxu2  ;;  %v12425_v26 = vld [vmem:[#allocation4 + $0x80] sm:$0xff]  ;;  %v5469_v37 = vsel %vm14014_vm14, %v5466_v18, %v5468_v19  ;;  %vm14018_vm4 = vmmov %vm14015_vm11  ;;  %vm14042_vm14 = vcmask 1043456  }
 0x40f   : > { %v12432_v20 = vadd.f32 %v12330_v40, %v5263_v48  ;;  %v12434_v39 = vpack.c.b16 %v5022_v17, %v5022_v17  ;;  %v13479_v44 = vrot.slane %v12425_v26, 2  ;;  %v5394_v30 = vpop.f32.mrf.mxu3  ;;  %v6112_v59 = vshrl.u32 %v12425_v26, 16  ;;  %v14011_v17 = vld [vmem:[#allocation31_spill] sm:$0xff]  ;;  %vm14020_vm1 = vmmov %vm14018_vm4 }
 0x410   : > { %v6115_v12 = vshll.u32 %v12425_v26, 16  ;;  %vm14022_vm15 = vmmov %vm14006_vm7 }
 0x411   : > { %v12443_v51 = vsel %vm14009_vm6, %v6334_v4, %v13479_v44  ;;  %v5168_v40 = vshll.u32 %v12434_v39, 16  ;;  %v6114_v29 = vrot.slane %v6112_v59, 1  ;;  %vm14023_vm5 = vmmov %vm14006_vm7 }
 0x412   : > { %v5553_v14 = vpop.f32.mrf.mxu0  ;;  %v6117_v50 = vrot.slane %v6115_v12, 2  ;;  %v12467_v12 = vld [vmem:[#allocation4 + $0x60] sm:$0xff]  ;;  %vm14024_vm9 = vmmov %vm14023_vm5 }
 0x413   : > { %v5869_v33 = vpop.f32.mrf.mxu1  ;;  %v5623_v15 = vadd.f32 %v5553_v14, %v12240_v61  ;;  %v5164_v61 = vshrl.u32 %v12380_v53, 16  ;;  %vm14025_vm7 = vmmov %vm14020_vm1 }
 0x414   : > { %v12448_v32 = vadd.f32 %v5869_v33, %v12338_v36  ;;  %v12454_v46 = vor.u32 %v6117_v50, %v6114_v29  ;;  %v5170_v36 = vrot.slane %v5168_v40, 1  ;;  %v7190_v40 = vrot.slane %v12467_v12, 3  ;;  %vm14027_vm0 = vmmov %vm14023_vm5 }
 0x415   : > { %8737 = vmatmul.msk.bf16.vlgmr.msra.gmra.mxu3 %vm2525_vm3, %v14011_v17  ;;  %v5166_v48 = vor.u32 %v5164_v61, %v5162_v52  ;;  %vm14031_vm2 = vmmov %vm14027_vm0 }
 0x416   : > { %8713 = vmatmul.msk.bf16.gmra.mxu1 %vm2525_vm3, %v5788_v27  ;;  %v5265_v1 = vpop.f32.mrf.mxu2  ;;  %v12465_v41 = vsel %vm14012_vm10, %v6109_v42, %v12454_v46  ;;  %v12479_v42 = vld [vmem:[#allocation4 + $0x68] sm:$0xff]  ;;  %vm14032_vm6 = vmmov %vm14020_vm1 }
 0x417   : > { %v12457_v4 = vadd.f32 %v12362_v16, %v5265_v1  ;;  %v5397_v3 = vpop.f32.mrf.mxu3  ;;  %v5171_v16 = vsel %vm14013_vm8, %v5166_v48, %v5170_v36  ;;  %v12488_v1 = vsel %vm14015_vm11, %v7188_v56, %v7190_v40  ;;  %v7192_v31 = vrot.slane %v12479_v42, 3  ;;  %v12494_v36 = vld [vmem:[#allocation4 + $0x70] sm:$0xff]  ;;  %vm14034_vm12 = vmmov %vm14020_vm1 }
 0x418   : > { %14016 = vst [vmem:[#allocation23_spill] sm:$0xff] %v12488_v1  ;;  %v5470_v56 = vrot.slane %v12272_v8, 1  ;;  %vm14036_vm10 = vmmov %vm14027_vm0  ;;  %vm14041_vm8 = vcmask 1045504  }
 0x419   : > { %v12498_v48 = vsel %vm14018_vm4, %v7190_v40, %v7192_v31  ;;  %vm14044_vm11 = vmmov %vm14027_vm0  ;;  %vm14048_vm4 = vsmask.f32 5376 }
 0x41a   : > { %v5556_v59 = vpop.f32.mrf.mxu0  ;;  %14019 = vst [vmem:[#allocation28_spill] sm:$0xff] %v12498_v48 }
 0x41b   : > { %v5871_v14 = vpop.f32.mrf.mxu1  ;;  %v5624_v33 = vadd.f32 %v5556_v59, %v12283_v57  ;;  %8608 = vmatmul.msk.bf16.gmra.mxu2 %vm2525_vm3, %v5171_v16  ;;  %v5789_v57 = vrot.slane %v12190_v58, 1 }
 0x41c   : > { %v12472_v29 = vadd.f32 %v5871_v14, %v12368_v34 }
 0x41d   : > { %8638 = vmatmul.msk.bf16.gmra.mxu0 %vm2525_vm3, %v5469_v37 }
 0x41e   : > { %v5268_v52 = vpop.f32.mrf.mxu2 }
 0x41f   : > { %v12482_v50 = vadd.f32 %v5392_v7, %v5268_v52  ;;  %v5399_v27 = vpop.f32.mrf.mxu3  ;;  %v5790_v7 = vsel %vm14017_vm13, %v5787_v47, %v5789_v57  ;;  %vm14047_vm13 = vmmov %vm14041_vm8 }
 0x422   : > { %v5558_v34 = vpop.f32.mrf.mxu0 }
 0x423   : > { %v5874_v18 = vpop.f32.mrf.mxu1  ;;  %v5625_v17 = vadd.f32 %v5558_v34, %v12322_v49  ;;  %v7194_v49 = vrot.slane %v12494_v36, 3  ;;  %v5791_v34 = vrot.slane %v12270_v45, 1 }
 0x424   : > { %v12492_v61 = vadd.f32 %v5874_v18, %v5622_v9 }
 0x425   : > { %8738 = vmatmul.msk.bf16.gmra.mxu3 %vm2525_vm3, %v11465_v13  ;;  %v12508_v16 = vsel %vm14020_vm1, %v7192_v31, %v7194_v49  ;;  %vm14052_vm1 = vmmov %vm14041_vm8 }
 0x426   : > { %8714 = vmatmul.msk.bf16.gmra.mxu1 %vm2525_vm3, %v5790_v7  ;;  %v5270_v58 = vpop.f32.mrf.mxu2  ;;  %14021 = vst [vmem:[#allocation27_spill] sm:$0xff] %v12508_v16  ;;  %v14040_v16 = vld [vmem:[#allocation14_spill] sm:$0xff] }
 0x427   : > { %v12501_v59 = vadd.f32 %v5394_v30, %v5270_v58  ;;  %v5402_v9 = vpop.f32.mrf.mxu3  ;;  %v5471_v30 = vsel %vm14022_vm15, %v5468_v19, %v5470_v56  ;;  %vm14054_vm15 = vmmov %vm14048_vm4 }
 0x42a   : > { %v5561_v14 = vpop.f32.mrf.mxu0 }
 0x42b   : > { %v5876_v47 = vpop.f32.mrf.mxu1  ;;  %v5626_v37 = vadd.f32 %v5561_v14, %v12353_v54  ;;  %8720 = vmatmul.msk.bf16.vlgmr.msra.gmra.mxu2 %vm2525_vm3, %v11469_v2 }
 0x42c   : > { %v12511_v52 = vadd.f32 %v5876_v47, %v5623_v15  ;;  %v5792_v15 = vsel %vm14023_vm5, %v5789_v57, %v5791_v34  ;;  %v12536_v57 = vld [vmem:[#allocation4 + $0x78] sm:$0xff]  ;;  %vm14058_vm5 = vmmov %vm14052_vm1 }
 0x42d   : > { %8639 = vmatmul.msk.bf16.gmra.mxu0 %vm2525_vm3, %v5471_v30 }
 0x42e   : > { %v5273_v13 = vpop.f32.mrf.mxu2 }
 0x42f   : > { %v12517_v8 = vadd.f32 %v5397_v3, %v5273_v13  ;;  %v5404_v40 = vpop.f32.mrf.mxu3  ;;  %v5472_v3 = vrot.slane %v12380_v53, 1  ;;  %v7196_v53 = vrot.slane %v12536_v57, 3  ;;  %v5793_v13 = vrot.slane %v12383_v10, 1 }
 0x430   : > { %v5474_v10 = vrot.slane %v12434_v39, 1 }
 0x432   : > { %v5563_v31 = vpop.f32.mrf.mxu0 }
 0x433   : > { %v5879_v18 = vpop.f32.mrf.mxu1  ;;  %v5627_v7 = vadd.f32 %v5563_v31, %v12392_v21 }
 0x434   : > { %v12521_v54 = vadd.f32 %v5879_v18, %v5624_v33  ;;  %v5473_v33 = vsel %vm14024_vm9, %v5470_v56, %v5472_v3  ;;  %v5794_v18 = vsel %vm14027_vm0, %v5791_v34, %v5793_v13  ;;  %vm14060_vm9 = vmmov %vm14048_vm4 }
 0x435   : > { %8739 = vmatmul.msk.bf16.gmra.mxu3 %vm2525_vm3, %v11492_v0  ;;  %vm14066_vm0 = vmmov %vm14048_vm4 }
 0x436   : > { %8715 = vmatmul.msk.bf16.gmra.mxu1 %vm2525_vm3, %v5792_v15  ;;  %v5275_v2 = vpop.f32.mrf.mxu2  ;;  %v12551_v15 = vld [vmem:[#allocation4 + $0x80] sm:$0xff] }
 0x437   : > { %v12525_v19 = vadd.f32 %v5399_v27, %v5275_v2  ;;  %v5407_v58 = vpop.f32.mrf.mxu3  ;;  %14028 = vst [vmem:[#allocation36_spill] sm:$0xff] %v12551_v15  ;;  %v12553_v2 = vld [vmem:[#allocation4 + $0x88] sm:$0xff] }
 0x438   : > { %14029 = vst [vmem:[#allocation37_spill] sm:$0xff] %v12553_v2  ;;  %v13478_v34 = vrot.slane %v12553_v2, 3 }
 0x43a   : > { %v5566_v45 = vpop.f32.mrf.mxu0 }
 0x43b   : > { %v5881_v14 = vpop.f32.mrf.mxu1  ;;  %v5628_v47 = vadd.f32 %v5566_v45, %v12432_v20  ;;  %8721 = vmatmul.msk.bf16.gmra.mxu2 %vm2525_vm3, %v11518_v23 }
 0x43c   : > { %v12531_v21 = vadd.f32 %v5881_v14, %v5625_v17  ;;  %v12544_v17 = vsel %vm14025_vm7, %v7194_v49, %v7196_v53  ;;  %vm14064_vm7 = vmmov %vm14052_vm1 }
 0x43d   : > { %8640 = vmatmul.msk.bf16.gmra.mxu0 %vm2525_vm3, %v5473_v33  ;;  %14026 = vst [vmem:[#allocation31_spill] sm:$0xff] %v12544_v17 }
 0x43e   : > { %v5278_v27 = vpop.f32.mrf.mxu2 }
 0x43f   : > { %v12539_v0 = vadd.f32 %v5402_v9, %v5278_v27  ;;  %v5409_v30 = vpop.f32.mrf.mxu3 }
 0x442   : > { %v5568_v20 = vpop.f32.mrf.mxu0 }
 0x443   : > { %v5884_v31 = vpop.f32.mrf.mxu1  ;;  %v5629_v23 = vadd.f32 %v5568_v20, %v12457_v4  ;;  %v14030_v20 = vld [vmem:[#allocation7_spill] sm:$0xff] }
 0x444   : > { %v12547_v56 = vadd.f32 %v5884_v31, %v5626_v37  ;;  %v7198_v37 = vrot.slane %v12551_v15, 3 }
 0x445   : > { %8740 = vmatmul.msk.bf16.gmra.mxu3 %vm2525_vm3, %v11579_v24 }
 0x446   : > { %8716 = vmatmul.msk.bf16.gmra.mxu1 %vm2525_vm3, %v5794_v18  ;;  %v5280_v9 = vpop.f32.mrf.mxu2  ;;  %v12569_v24 = vsel %vm14032_vm6, %v7196_v53, %v7198_v37  ;;  %v12574_v39 = vsel %vm14034_vm12, %v7198_v37, %v13478_v34  ;;  %v14037_v34 = vld [vmem:[#allocation17_spill] sm:$0xff]  ;;  %vm14070_vm6 = vmmov %vm14066_vm0 }
 0x447   : > { %v12555_v45 = vadd.f32 %v5404_v40, %v5280_v9  ;;  %v5412_v49 = vpop.f32.mrf.mxu3  ;;  %v5475_v40 = vsel %vm14031_vm2, %v5472_v3, %v5474_v10  ;;  %14033 = vst [vmem:[#allocation7_spill] sm:$0xff] %v12569_v24  ;;  %v6512_v9 = vld [vmem:[#allocation4 + $0x10] sm:$0xc]  ;;  %v9137_v24 = vld [vmem:[#allocation4 + $0x18] sm:$0xff]  ;;  %vm14069_vm2 = vmmov %vm14052_vm1 }
 0x448   : > { %14035 = vst [vmem:[#allocation38_spill] sm:$0xff] %v12574_v39  ;;  %v6580_v10 = vunpack.c.l.b16 %v6512_v9  ;;  %v14039_v39 = vld [vmem:[#allocation30_spill] sm:$0xff]  ;;  %v6631_v17 = vrot.slane %v9137_v24, 2  ;;  %v6853_v48 = vshll.u32 %v9137_v24, 16  ;;  %vm14073_vm12 = vmmov %vm14052_vm1 }
 0x44a   : > { %v5571_v4 = vpop.f32.mrf.mxu0 }
 0x44b   : > { %v5886_v14 = vpop.f32.mrf.mxu1  ;;  %v5630_v33 = vadd.f32 %v5571_v4, %v12482_v50  ;;  %8722 = vmatmul.msk.bf16.gmra.mxu2 %vm2525_vm3, %v14030_v20 }
 0x44c   : > { %v12563_v27 = vadd.f32 %v5886_v14, %v5627_v7  ;;  %v5795_v7 = vrot.slane %v12425_v26, 1 }
 0x44d   : > { %8641 = vmatmul.msk.bf16.gmra.mxu0 %vm2525_vm3, %v5475_v40  ;;  %v5680_v40 = vld [vmem:[#allocation4 + $0x88] sm:$0x1] }
 0x44e   : > { %v5283_v31 = vpop.f32.mrf.mxu2  ;;  %v5796_v20 = vsel %vm14036_vm10, %v5793_v13, %v5795_v7  ;;  %vm14074_vm10 = vmmov %vm14066_vm0 }
 0x44f   : > { %v12577_v18 = vadd.f32 %v5407_v58, %v5283_v31  ;;  %v5414_v50 = vpop.f32.mrf.mxu3  ;;  %v14038_v58 = vunpack.c.l.b16 %v14037_v34  ;;  %v8864_v34 = vld [vmem:[%s13399_s2 + $0x4] sm:$0xf] }
 0x451   : > { %v6613_v31 = vpack.c.b16 %v14038_v58, %v6580_v10  ;;  %v7447_v10 = vsel %vm14042_vm14, %v8864_v34, 0  ;;  %v14045_v34 = vld [vmem:[#allocation15_spill] sm:$0xff] }
 0x452   : > { %v5573_v4 = vpop.f32.mrf.mxu0  ;;  %7456 = vmatpush.bf16.msrb.mxu3 %v7447_v10 }
 0x453   : > { %v5889_v14 = vpop.f32.mrf.mxu1  ;;  %v5631_v3 = vadd.f32 %v5573_v4, %v12501_v59  ;;  %v6630_v9 = vrot.slane %v6613_v31, 2 }
 0x454   : > { %v12581_v53 = vadd.f32 %v5889_v14, %v5628_v47  ;;  %v5748_v47 = vunpack.c.l.b16 %v5680_v40 }
 0x455   : > { %8741 = vmatmul.msk.bf16.gmra.mxu3 %vm2525_vm3, %v14039_v39 }
 0x456   : > { %8717 = vmatmul.msk.bf16.gmra.mxu1 %vm2525_vm3, %v5796_v20  ;;  %v5285_v37 = vpop.f32.mrf.mxu2  ;;  %v5765_v39 = vpack.c.b16 %v5748_v47, %v5748_v47 }
 0x457   : > { %v12587_v44 = vadd.f32 %v5409_v30, %v5285_v37  ;;  %v5417_v59 = vpop.f32.mrf.mxu3  ;;  %v6632_v30 = vsel %vm14041_vm8, %v6630_v9, %v6631_v17  ;;  %vm14075_vm8 = vmmov %vm14052_vm1 }
 0x45a   : > { %v5576_v4 = vpop.f32.mrf.mxu0 }
 0x45b   : > { %v5891_v14 = vpop.f32.mrf.mxu1  ;;  %v5632_v13 = vadd.f32 %v5576_v4, %v12517_v8  ;;  %8723 = vmatmul.msk.bf16.gmra.mxu2 %vm2525_vm3, %v14040_v16 }
 0x45c   : > { %v12592_v20 = vadd.f32 %v5891_v14, %v5629_v23  ;;  %v5797_v23 = vrot.slane %v5765_v39, 1  ;;  %v6850_v39 = vshrl.u32 %v9137_v24, 16 }
 0x45d   : > { %8814 = vmatmul.msk.bf16.vlgmr.msrb.gmra.mxu0 %vm2525_vm3, %v6632_v30 }
 0x45e   : > { %v5288_v37 = vpop.f32.mrf.mxu2  ;;  %v5798_v14 = vsel %vm14044_vm11, %v5795_v7, %v5797_v23  ;;  %v14046_v23 = vld [vmem:[#allocation18_spill] sm:$0xff]  ;;  %vm14076_vm11 = vmmov %vm14066_vm0 }
 0x45f   : > { %v12602_v40 = vadd.f32 %v5412_v49, %v5288_v37  ;;  %v5419_v8 = vpop.f32.mrf.mxu3  ;;  %v9138_v49 = vld [vmem:[#allocation4 + $0x20] sm:$0xff] }
 0x460   : > { %v6633_v10 = vrot.slane %v9138_v49, 2 }
 0x462   : > { %v5578_v58 = vpop.f32.mrf.mxu0 }
 0x463   : > { %v5894_v4 = vpop.f32.mrf.mxu1  ;;  %v5633_v16 = vadd.f32 %v5578_v58, %v12525_v19  ;;  %v6842_v19 = vshrl.u32 %v6613_v31, 16 }
 0x464   : > { %v12605_v9 = vadd.f32 %v5894_v4, %v5630_v33  ;;  %v6845_v33 = vshll.u32 %v6613_v31, 16  ;;  %v6852_v4 = vrot.slane %v6850_v39, 2 }
 0x465   : > { %8742 = vmatmul.msk.bf16.gmra.mxu3 %vm2525_vm3, %v14045_v34  ;;  %v6844_v24 = vrot.slane %v6842_v19, 2  ;;  %v9139_v19 = vld [vmem:[#allocation4 + $0x28] sm:$0xff] }
 0x466   : > { %14043 = vst [vmem:[#allocation17_spill] sm:$0xff] %v12605_v9  ;;  %8718 = vmatmul.msk.bf16.gmra.mxu1 %vm2525_vm3, %v5798_v14  ;;  %v5290_v47 = vpop.f32.mrf.mxu2  ;;  %v6855_v14 = vrot.slane %v6853_v48, 3  ;;  %v6847_v2 = vrot.slane %v6845_v33, 3  ;;  %v6635_v33 = vrot.slane %v9139_v19, 2 }
 0x467   : > { %v12609_v30 = vadd.f32 %v5414_v50, %v5290_v47  ;;  %v5422_v37 = vpop.f32.mrf.mxu3  ;;  %v6634_v50 = vsel %vm14047_vm13, %v6631_v17, %v6633_v10  ;;  %vm14077_vm13 = vmmov %vm14052_vm1 }
 0x468   : > { %v6856_v31 = vor.u32 %v6855_v14, %v6852_v4  ;;  %v6862_v4 = vshll.u32 %v9138_v49, 16 }
 0x46a   : > { %v5581_v1 = vpop.f32.mrf.mxu0 }
 0x46b   : > { %v5896_v6 = vpop.f32.mrf.mxu1  ;;  %v5634_v58 = vadd.f32 %v5581_v1, %v12539_v0  ;;  %8724 = vmatmul.msk.bf16.gmra.mxu2 %vm2525_vm3, %v14046_v23 }
 0x46c   : > { %v12614_v7 = vadd.f32 %v5896_v6, %v5631_v3  ;;  %v6848_v6 = vor.u32 %v6847_v2, %v6844_v24  ;;  %v6864_v24 = vrot.slane %v6862_v4, 3  ;;  %v14055_v4 = vld [vmem:[#allocation21_spill] sm:$0xff] }
 0x46d   : > { %8815 = vmatmul.msk.bf16.gmra.mxu0 %vm2525_vm3, %v6634_v50  ;;  %v6859_v50 = vshrl.u32 %v9138_v49, 16 }
 0x46e   : > { %v5293_v47 = vpop.f32.mrf.mxu2  ;;  %v6857_v17 = vsel %vm14048_vm4, %v6848_v6, %v6856_v31  ;;  %vm14078_vm4 = vmmov %vm14042_vm14 }
 0x46f   : > { %v12620_v34 = vadd.f32 %v5417_v59, %v5293_v47  ;;  %v5424_v15 = vpop.f32.mrf.mxu3  ;;  %v14049_v59 = vld [vmem:[#allocation16_spill] sm:$0xff]  ;;  %v6861_v47 = vrot.slane %v6859_v50, 2 }
 0x471   : > { %v6865_v49 = vor.u32 %v6864_v24, %v6861_v47 }
 0x472   : > { %v5583_v9 = vpop.f32.mrf.mxu0 }
 0x473   : > { %v5899_v1 = vpop.f32.mrf.mxu1  ;;  %v5635_v0 = vadd.f32 %v5583_v9, %v12555_v45  ;;  %v14051_v9 = vld [vmem:[#allocation11_spill] sm:$0xff] }
 0x474   : > { %v12623_v3 = vadd.f32 %v5899_v1, %v5632_v13 }
 0x475   : > { %8743 = vmatmul.msk.bf16.gmra.mxu3 %vm2525_vm3, %v14049_v59 }
 0x476   : > { %8831 = vmatmul.msk.bf16.vlgmr.msrb.gmra.mxu1 %vm2525_vm3, %v6857_v17  ;;  %v5295_v48 = vpop.f32.mrf.mxu2 }
 0x477   : > { %v12627_v39 = vadd.f32 %v5419_v8, %v5295_v48  ;;  %v5427_v23 = vpop.f32.mrf.mxu3  ;;  %v6636_v8 = vsel %vm14052_vm1, %v6633_v10, %v6635_v33  ;;  %vm14079_vm1 = vmmov %vm14066_vm0 }
 0x47a   : > { %v5586_v2 = vpop.f32.mrf.mxu0 }
 0x47b   : > { %v5901_v14 = vpop.f32.mrf.mxu1  ;;  %v5636_v45 = vadd.f32 %v5586_v2, %v12577_v18  ;;  %8725 = vmatmul.msk.bf16.gmra.mxu2 %vm2525_vm3, %v14051_v9  ;;  %v6866_v2 = vsel %vm14054_vm15, %v6856_v31, %v6865_v49  ;;  %v6868_v9 = vshrl.u32 %v9139_v19, 16  ;;  %v14057_v31 = vld [vmem:[#allocation19_spill] sm:$0xff]  ;;  %vm14080_vm15 = vmmov %vm14069_vm2 }
 0x47c   : > { %v12632_v13 = vadd.f32 %v5901_v14, %v5633_v16 }
 0x47d   : > { %8816 = vmatmul.msk.bf16.gmra.mxu0 %vm2525_vm3, %v6636_v8  ;;  %v6871_v8 = vshll.u32 %v9139_v19, 16 }
 0x47e   : > { %14050 = vst [vmem:[#allocation30_spill] sm:$0xff] %v12632_v13  ;;  %v5298_v1 = vpop.f32.mrf.mxu2 }
 0x47f   : > { %v12638_v6 = vadd.f32 %v5422_v37, %v5298_v1  ;;  %v5429_v17 = vpop.f32.mrf.mxu3  ;;  %v9140_v37 = vld [vmem:[#allocation4 + $0x30] sm:$0xff] }
 0x480   : > { %v6637_v14 = vrot.slane %v9140_v37, 2 }
 0x482   : > { %v5588_v48 = vpop.f32.mrf.mxu0 }
 0x483   : > { %v5904_v59 = vpop.f32.mrf.mxu1  ;;  %v5637_v18 = vadd.f32 %v5588_v48, %v12587_v44  ;;  %v6870_v48 = vrot.slane %v6868_v9, 2  ;;  %v14061_v9 = vld [vmem:[#allocation24_spill] sm:$0xff] }
 0x484   : > { %v12641_v16 = vadd.f32 %v5904_v59, %v5634_v58  ;;  %v6873_v59 = vrot.slane %v6871_v8, 3 }
 0x485   : > { %8744 = vmatmul.msk.bf16.gmra.mxu3 %vm2525_vm3, %v14055_v4 }
 0x486   : > { %14053 = vst [vmem:[#allocation14_spill] sm:$0xff] %v12641_v16  ;;  %8832 = vmatmul.msk.bf16.gmra.mxu1 %vm2525_vm3, %v6866_v2  ;;  %v5300_v10 = vpop.f32.mrf.mxu2  ;;  %v6874_v19 = vor.u32 %v6873_v59, %v6870_v48 }
 0x487   : > { %v12645_v50 = vadd.f32 %v5424_v15, %v5300_v10  ;;  %v6638_v15 = vsel %vm14058_vm5, %v6635_v33, %v6637_v14  ;;  %vm14081_vm5 = vmmov %vm14066_vm0 }
 0x488   : > { %v5432_v47 = vpop.f32.mrf.mxu3 }
 0x48a   : > { %v5591_v24 = vpop.f32.mrf.mxu0 }
 0x48b   : > { %v5906_v1 = vpop.f32.mrf.mxu1  ;;  %v5638_v44 = vadd.f32 %v5591_v24, %v12602_v40  ;;  %8726 = vmatmul.msk.bf16.gmra.mxu2 %vm2525_vm3, %v14057_v31  ;;  %v6875_v24 = vsel %vm14060_vm9, %v6865_v49, %v6874_v19  ;;  %v6877_v31 = vshrl.u32 %v9140_v37, 16  ;;  %vm14082_vm9 = vmmov %vm14069_vm2 }
 0x48c   : > { %v12650_v58 = vadd.f32 %v5906_v1, %v5635_v0 }
 0x48d   : > { %8817 = vmatmul.msk.bf16.gmra.mxu0 %vm2525_vm3, %v6638_v15  ;;  %v6880_v15 = vshll.u32 %v9140_v37, 16 }
 0x48e   : > { %14056 = vst [vmem:[#allocation15_spill] sm:$0xff] %v12650_v58  ;;  %v5303_v2 = vpop.f32.mrf.mxu2 }
 0x48f   : > { %v12656_v10 = vadd.f32 %v5427_v23, %v5303_v2  ;;  %v9141_v23 = vld [vmem:[#allocation4 + $0x38] sm:$0xff] }
 0x490   : > { %v5434_v4 = vpop.f32.mrf.mxu3  ;;  %v6639_v1 = vrot.slane %v9141_v23, 2 }
 0x492   : > { %v5593_v16 = vpop.f32.mrf.mxu0  ;;  %v6640_v49 = vsel %vm14064_vm7, %v6637_v14, %v6639_v1  ;;  %vm14083_vm7 = vmmov %vm14066_vm0 }
 0x493   : > { %v5909_v13 = vpop.f32.mrf.mxu1  ;;  %v5639_v40 = vadd.f32 %v5593_v16, %v12609_v30  ;;  %v6879_v16 = vrot.slane %v6877_v31, 2  ;;  %v14067_v31 = vld [vmem:[#allocation26_spill] sm:$0xff] }
 0x494   : > { %v12659_v0 = vadd.f32 %v5909_v13, %v5636_v45  ;;  %v14063_v13 = vld [vmem:[#allocation34_spill] sm:$0xff] }
 0x495   : > { %8745 = vmatmul.msk.bf16.gmra.mxu3 %vm2525_vm3, %v14061_v9 }
 0x496   : > { %14059 = vst [vmem:[#allocation18_spill] sm:$0xff] %v12659_v0  ;;  %8833 = vmatmul.msk.bf16.gmra.mxu1 %vm2525_vm3, %v6875_v24  ;;  %v5305_v33 = vpop.f32.mrf.mxu2  ;;  %v6882_v24 = vrot.slane %v6880_v15, 3 }
 0x497   : > { %v12665_v8 = vadd.f32 %v5429_v17, %v5305_v33 }
 0x498   : > { %v6400_v48 = vpop.f32.mrf.mxu3  ;;  %v6883_v37 = vor.u32 %v6882_v24, %v6879_v16 }
 0x49a   : > { %v5596_v59 = vpop.f32.mrf.mxu0 }
 0x49b   : > { %v5911_v2 = vpop.f32.mrf.mxu1  ;;  %v5640_v30 = vadd.f32 %v5596_v59, %v12620_v34  ;;  %8727 = vmatmul.msk.bf16.gmra.mxu2 %vm2525_vm3, %v14063_v13  ;;  %v6884_v59 = vsel %vm14066_vm0, %v6874_v19, %v6883_v37  ;;  %v6886_v13 = vshrl.u32 %v9141_v23, 16  ;;  %vm14085_vm0 = vmmov %vm14069_vm2 }
 0x49c   : > { %v12668_v45 = vadd.f32 %v5911_v2, %v5637_v18 }
 0x49d   : > { %8818 = vmatmul.msk.bf16.gmra.mxu0 %vm2525_vm3, %v6640_v49  ;;  %v6889_v49 = vshll.u32 %v9141_v23, 16 }
 0x49e   : > { %14062 = vst [vmem:[#allocation16_spill] sm:$0xff] %v12668_v45  ;;  %v5308_v17 = vpop.f32.mrf.mxu2 }
 0x49f   : > { %v12674_v33 = vadd.f32 %v5432_v47, %v5308_v17  ;;  %v9142_v47 = vld [vmem:[#allocation4 + $0x40] sm:$0xff] }
 0x4a0   : > { %v6402_v9 = vpop.f32.mrf.mxu3  ;;  %v6641_v2 = vrot.slane %v9142_v47, 2 }
 0x4a2   : > { %v5598_v0 = vpop.f32.mrf.mxu0  ;;  %v6642_v19 = vsel %vm14069_vm2, %v6639_v1, %v6641_v2  ;;  %vm14086_vm2 = vmmov %vm14085_vm0 }
 0x4a3   : > { %v5914_v58 = vpop.f32.mrf.mxu1  ;;  %v5641_v34 = vadd.f32 %v5598_v0, %v12627_v39  ;;  %v6888_v0 = vrot.slane %v6886_v13, 2  ;;  %v14071_v13 = vld [vmem:[#allocation20_spill] sm:$0xff] }
 0x4a4   : > { %v12677_v18 = vadd.f32 %v5914_v58, %v5638_v44  ;;  %v14068_v58 = vld [vmem:[#allocation9_spill] sm:$0xff] }
 0x4a5   : > { %8746 = vmatmul.msk.bf16.gmra.mxu3 %vm2525_vm3, %v14067_v31 }
 0x4a6   : > { %14065 = vst [vmem:[#allocation11_spill] sm:$0xff] %v12677_v18  ;;  %8834 = vmatmul.msk.bf16.gmra.mxu1 %vm2525_vm3, %v6884_v59  ;;  %v5310_v14 = vpop.f32.mrf.mxu2  ;;  %v6891_v59 = vrot.slane %v6889_v49, 3  ;;  %v9143_v49 = vld [vmem:[#allocation4 + $0x48] sm:$0xff] }
 0x4a7   : > { %v12683_v15 = vadd.f32 %v5434_v4, %v5310_v14 }
 0x4a8   : > { %v6405_v16 = vpop.f32.mrf.mxu3  ;;  %v6892_v23 = vor.u32 %v6891_v59, %v6888_v0 }
 0x4aa   : > { %v5601_v24 = vpop.f32.mrf.mxu0 }
 0x4ab   : > { %v5916_v17 = vpop.f32.mrf.mxu1  ;;  %v5642_v39 = vadd.f32 %v5601_v24, %v12638_v6  ;;  %8728 = vmatmul.msk.bf16.gmra.mxu2 %vm2525_vm3, %v14068_v58  ;;  %v6643_v58 = vrot.slane %v9143_v49, 2 }
 0x4ac   : > { %v12686_v44 = vadd.f32 %v5916_v17, %v5639_v40  ;;  %v6893_v17 = vsel %vm14070_vm6, %v6883_v37, %v6892_v23  ;;  %vm14087_vm6 = vmmov %vm14079_vm1 }
 0x4ad   : > { %8819 = vmatmul.msk.bf16.gmra.mxu0 %vm2525_vm3, %v6642_v19  ;;  %v6895_v19 = vshrl.u32 %v9142_v47, 16 }
 0x4ae   : > { %v6189_v4 = vpop.f32.mrf.mxu2 }
 0x4af   : > { %v6269_v14 = vadd.f32 %v6189_v4, %v12306_v11 }
 0x4b0   : > { %v6407_v31 = vpop.f32.mrf.mxu3 }
 0x4b1   : > { %v12693_v45 = vadd.f32 %v6400_v48, %v6269_v14  ;;  %v6898_v48 = vshll.u32 %v9142_v47, 16  ;;  %v6644_v14 = vsel %vm14073_vm12, %v6641_v2, %v6643_v58  ;;  %vm14088_vm12 = vsmask.f32 7424 }
 0x4b2   : > { %v5603_v18 = vpop.f32.mrf.mxu0 }
 0x4b3   : > { %v5919_v6 = vpop.f32.mrf.mxu1  ;;  %v5643_v40 = vadd.f32 %v5603_v18, %v12645_v50  ;;  %v14072_v18 = vld [vmem:[#allocation10_spill] sm:$0xff] }
 0x4b4   : > { %v12696_v24 = vadd.f32 %v5919_v6, %v5640_v30  ;;  %v6897_v6 = vrot.slane %v6895_v19, 2  ;;  %v9144_v19 = vld [vmem:[#allocation4 + $0x50] sm:$0xff] }
 0x4b5   : > { %8747 = vmatmul.msk.bf16.gmra.mxu3 %vm2525_vm3, %v14071_v13 }
 0x4b6   : > { %8835 = vmatmul.msk.bf16.gmra.mxu1 %vm2525_vm3, %v6893_v17  ;;  %v6191_v1 = vpop.f32.mrf.mxu2 }
 0x4b7   : > { %v6270_v11 = vadd.f32 %v6191_v1, %v12341_v28  ;;  %v6900_v28 = vrot.slane %v6898_v48, 3  ;;  %v6645_v48 = vrot.slane %v9144_v19, 2 }
 0x4b8   : > { %v6410_v0 = vpop.f32.mrf.mxu3 }
 0x4b9   : > { %v12703_v4 = vadd.f32 %v6402_v9, %v6270_v11  ;;  %v6901_v1 = vor.u32 %v6900_v28, %v6897_v6 }
 0x4ba   : > { %v5606_v59 = vpop.f32.mrf.mxu0 }
 0x4bb   : > { %v5921_v50 = vpop.f32.mrf.mxu1  ;;  %v5644_v30 = vadd.f32 %v5606_v59, %v12656_v10  ;;  %8729 = vmatmul.msk.bf16.gmra.mxu2 %vm2525_vm3, %v14072_v18  ;;  %v6904_v18 = vshrl.u32 %v9143_v49, 16 }
 0x4bc   : > { %v12706_v37 = vadd.f32 %v5921_v50, %v5641_v34  ;;  %v6902_v50 = vsel %vm14074_vm10, %v6892_v23, %v6901_v1  ;;  %vm14089_vm10 = vmmov %vm14078_vm4 }
 0x4bd   : > { %8820 = vmatmul.msk.bf16.gmra.mxu0 %vm2525_vm3, %v6644_v14 }
 0x4be   : > { %v6194_v17 = vpop.f32.mrf.mxu2 }
 0x4bf   : > { %v6271_v47 = vadd.f32 %v6194_v17, %v12371_v38  ;;  %v6906_v17 = vrot.slane %v6904_v18, 2 }
 0x4c0   : > { %v6412_v9 = vpop.f32.mrf.mxu3 }
 0x4c1   : > { %v12713_v11 = vadd.f32 %v6405_v16, %v6271_v47  ;;  %v6907_v16 = vshll.u32 %v9143_v49, 16 }
 0x4c2   : > { %v5608_v13 = vpop.f32.mrf.mxu0 }
 0x4c3   : > { %v5924_v10 = vpop.f32.mrf.mxu1  ;;  %v5645_v34 = vadd.f32 %v5608_v13, %v12665_v8 }
 0x4c4   : > { %v12716_v59 = vadd.f32 %v5924_v10, %v5642_v39 }
 0x4c5   : > { %8748 = vmatmul.msk.bf16.gmra.mxu3 %vm2525_vm3, %v12215_v25  ;;  %v6646_v25 = vsel %vm14075_vm8, %v6643_v58, %v6645_v48  ;;  %vm14090_vm8 = vsmask.f32 6400 }
 0x4c6   : > { %8836 = vmatmul.msk.bf16.gmra.mxu1 %vm2525_vm3, %v6902_v50  ;;  %v6196_v2 = vpop.f32.mrf.mxu2 }
 0x4c7   : > { %v6272_v38 = vadd.f32 %v6196_v2, %v12412_v35  ;;  %v6909_v35 = vrot.slane %v6907_v16, 3  ;;  %v6647_v16 = vrot.slane %v12332_v55, 2 }
 0x4c8   : > { %v6415_v14 = vpop.f32.mrf.mxu3 }
 0x4c9   : > { %v12723_v28 = vadd.f32 %v6407_v31, %v6272_v38  ;;  %v8883_v31 = vld [vmem:[%s13399_s2 + $0x10] sm:$0xf]  ;;  %v6910_v13 = vor.u32 %v6909_v35, %v6906_v17 }
 0x4ca   : > { %v5611_v6 = vpop.f32.mrf.mxu0 }
 0x4cb   : > { %v5926_v8 = vpop.f32.mrf.mxu1  ;;  %v5646_v39 = vadd.f32 %v5611_v6, %v12674_v33  ;;  %8730 = vmatmul.msk.bf16.gmra.mxu2 %vm2525_vm3, %v12219_v5  ;;  %v7636_v33 = vsel %vm14042_vm14, %v8883_v31, 0  ;;  %v6911_v38 = vsel %vm14076_vm11, %v6901_v1, %v6910_v13  ;;  %v6913_v6 = vshrl.u32 %v9144_v19, 16  ;;  %vm14091_vm14 = vmmov %vm14085_vm0 }
 0x4cc   : > { %v12726_v23 = vadd.f32 %v5926_v8, %v5643_v40  ;;  %7645 = vmatpush.bf16.msra.mxu1 %v7636_v33  ;;  %vm14093_vm11 = vmmov %vm14079_vm1 }
 0x4cd   : > { %8821 = vmatmul.msk.bf16.gmra.mxu0 %vm2525_vm3, %v6646_v25 }
 0x4ce   : > { %v6199_v47 = vpop.f32.mrf.mxu2 }
 0x4cf   : > { %v6273_v49 = vadd.f32 %v6199_v47, %v12448_v32 }
 0x4d0   : > { %v6417_v40 = vpop.f32.mrf.mxu3 }
 0x4d1   : > { %v12737_v5 = vadd.f32 %v6410_v0, %v6273_v49  ;;  %v6916_v0 = vshll.u32 %v9144_v19, 16  ;;  %v6915_v19 = vrot.slane %v6913_v6, 2 }
 0x4d2   : > { %v5613_v10 = vpop.f32.mrf.mxu0 }
 0x4d3   : > { %v5929_v58 = vpop.f32.mrf.mxu1  ;;  %v5647_v50 = vadd.f32 %v5613_v10, %v12683_v15  ;;  %v6918_v35 = vrot.slane %v6916_v0, 3 }
 0x4d4   : > { %v12740_v2 = vadd.f32 %v5929_v58, %v5644_v30 }
 0x4d5   : > { %8749 = vmatmul.msk.bf16.gmra.mxu3 %vm2525_vm3, %v12300_v60  ;;  %v6648_v60 = vsel %vm14077_vm13, %v6645_v48, %v6647_v16  ;;  %v6919_v47 = vor.u32 %v6918_v35, %v6915_v19  ;;  %vm14096_vm13 = vmmov %vm14085_vm0 }
 0x4d6   : > { %8837 = vmatmul.msk.bf16.gmra.mxu1 %vm2525_vm3, %v6911_v38  ;;  %v6201_v32 = vpop.f32.mrf.mxu2 }
 0x4d7   : > { %v6274_v18 = vadd.f32 %v6201_v32, %v12472_v29  ;;  %v8872_v29 = vld [vmem:[%s13399_s2 + $0xc] sm:$0xf]  ;;  %v6920_v58 = vsel %vm14079_vm1, %v6910_v13, %v6919_v47  ;;  %v6649_v32 = vrot.slane %v12467_v12, 2 }
 0x4d8   : > { %v12748_v8 = vpop.f32.mrf.mxu3 }
 0x4d9   : > { %v12750_v15 = vadd.f32 %v6412_v9, %v6274_v18  ;;  %v12763_v9 = vsel %vm14078_vm4, %v8872_v29, 0  ;;  %v6925_v18 = vshll.u32 %v12332_v55, 16  ;;  %vm14097_vm4 = vmmov %vm14079_vm1 }
 0x4da   : > { %v6723_v25 = vpop.f32.mrf.mxu0  ;;  %7572 = vmatpush.bf16.msra.mxu0 %v12763_v9  ;;  %vm14098_vm1 = vmmov %vm14089_vm10 }
 0x4db   : > { %v5931_v30 = vpop.f32.mrf.mxu1  ;;  %v6803_v1 = vadd.f32 %v6723_v25, %v12693_v45  ;;  %8731 = vmatmul.msk.bf16.gmra.mxu2 %vm2525_vm3, %v12261_v22 }
 0x4dc   : > { %v12753_v17 = vadd.f32 %v5931_v30, %v5645_v34  ;;  %v6927_v30 = vrot.slane %v6925_v18, 3 }
 0x4dd   : > { %8822 = vmatmul.msk.bf16.gmra.mxu0 %vm2525_vm3, %v6648_v60 }
 0x4de   : > { %v6204_v45 = vpop.f32.mrf.mxu2 }
 0x4df   : > { %v6275_v34 = vadd.f32 %v6204_v45, %v12492_v61  ;;  %v5971_v45 = vld [vmem:[#allocation4 + $0x88] sm:$0x3] }
 0x4e0   : > { %v12767_v22 = vpop.f32.mrf.mxu3 }
 0x4e1   : > { %v12769_v49 = vadd.f32 %v6415_v14, %v6275_v34  ;;  %v6922_v14 = vshrl.u32 %v12332_v55, 16  ;;  %v6651_v34 = vrot.slane %v12479_v42, 2 }
 0x4e2   : > { %v6725_v48 = vpop.f32.mrf.mxu0 }
 0x4e3   : > { %v5934_v31 = vpop.f32.mrf.mxu1  ;;  %v6804_v33 = vadd.f32 %v6725_v48, %v12703_v4  ;;  %v6931_v48 = vshrl.u32 %v12467_v12, 16 }
 0x4e4   : > { %v12772_v10 = vadd.f32 %v5934_v31, %v5646_v39  ;;  %v6934_v31 = vshll.u32 %v12467_v12, 16 }
 0x4e5   : > { %8750 = vmatmul.msk.bf16.gmra.mxu3 %vm2525_vm3, %v12407_v43  ;;  %v6650_v43 = vsel %vm14080_vm15, %v6647_v16, %v6649_v32  ;;  %vm14102_vm15 = vmmov %vm14085_vm0 }
 0x4e6   : > { %8838 = vmatmul.msk.bf16.gmra.mxu1 %vm2525_vm3, %v6920_v58  ;;  %v6206_v38 = vpop.f32.mrf.mxu2  ;;  %v6936_v18 = vrot.slane %v6934_v31, 3 }
 0x4e7   : > { %v6276_v61 = vadd.f32 %v6206_v38, %v12511_v52  ;;  %v6924_v52 = vrot.slane %v6922_v14, 2  ;;  %v6933_v14 = vrot.slane %v6931_v48, 2 }
 0x4e8   : > { %v12782_v6 = vpop.f32.mrf.mxu3 }
 0x4e9   : > { %v12784_v39 = vadd.f32 %v6417_v40, %v6276_v61  ;;  %v6928_v29 = vor.u32 %v6927_v30, %v6924_v52 }
 0x4ea   : > { %v6728_v4 = vpop.f32.mrf.mxu0 }
 0x4eb   : > { %v5936_v13 = vpop.f32.mrf.mxu1  ;;  %v6805_v0 = vadd.f32 %v6728_v4, %v12713_v11  ;;  %8732 = vmatmul.msk.bf16.gmra.mxu2 %vm2525_vm3, %v12328_v63  ;;  %v6929_v63 = vsel %vm14081_vm5, %v6919_v47, %v6928_v29  ;;  %vm14104_vm5 = vmmov %vm14097_vm4 }
 0x4ec   : > { %v12787_v25 = vadd.f32 %v5936_v13, %v5647_v50 }
 0x4ed   : > { %8823 = vmatmul.msk.bf16.gmra.mxu0 %vm2525_vm3, %v6650_v43  ;;  %v6937_v43 = vor.u32 %v6936_v18, %v6933_v14 }
 0x4ee   : > { %v6209_v55 = vpop.f32.mrf.mxu2 }
 0x4ef   : > { %v6277_v60 = vadd.f32 %v6209_v55, %v12521_v54  ;;  %v6938_v55 = vsel %vm14083_vm7, %v6928_v29, %v6937_v43  ;;  %vm14109_vm7 = vmmov %vm14097_vm4 }
 0x4f0   : > { %v12794_v40 = vpop.f32.mrf.mxu3 }
 0x4f1   : > { %v12811_v61 = vadd.f32 %v12748_v8, %v6277_v60 }
 0x4f2   : > { %v6730_v19 = vpop.f32.mrf.mxu0 }
 0x4f3   : > { %v7053_v35 = vpop.f32.mrf.mxu1  ;;  %v6806_v11 = vadd.f32 %v6730_v19, %v12723_v28 }
 0x4f4   : > { %v12797_v50 = vadd.f32 %v7053_v35, %v6803_v1  ;;  %v5975_v1 = vunpack.c.l.b16 %v5971_v45  ;;  %v12836_v35 = vld [vmem:[#allocation4 + $0x80] sm:$0xff]  }
 0x4f5   : > { %8751 = vmatmul.msk.bf16.gmra.mxu3 %vm2525_vm3, %v12443_v51 }
 0x4f6   : > { %8839 = vmatmul.msk.bf16.gmra.mxu1 %vm2525_vm3, %v6929_v63  ;;  %v6211_v16 = vpop.f32.mrf.mxu2  ;;  %v5976_v12 = vpack.c.b16 %v5975_v1, %v5975_v1  ;;  %v6943_v63 = vshll.u32 %v12479_v42, 16 }
 0x4f7   : > { %v6278_v54 = vadd.f32 %v6211_v16, %v12531_v21  ;;  %v6652_v21 = vsel %vm14082_vm9, %v6649_v32, %v6651_v34  ;;  %v7428_v16 = vshll.u32 %v12836_v35, 16  ;;  %vm14107_vm9 = vmmov %vm14085_vm0 }
 0x4f8   : > { %v12807_v28 = vpop.f32.mrf.mxu3  ;;  %v6338_v8 = vrot.slane %v5976_v12, 2  ;;  %v6121_v14 = vshrl.u32 %v5976_v12, 16 }
 0x4fa   : > { %v6733_v58 = vpop.f32.mrf.mxu0 }
 0x4fb   : > { %v7055_v47 = vpop.f32.mrf.mxu1  ;;  %v6807_v38 = vadd.f32 %v6733_v58, %v12737_v5  ;;  %8733 = vmatmul.msk.bf16.gmra.mxu2 %vm2525_vm3, %v12429_v62  ;;  %v12826_v62 = vadd.f32 %v12767_v22, %v6278_v54  ;;  %v6653_v22 = vrot.slane %v12494_v36, 2  ;;  %v12854_v58 = vld [vmem:[#allocation4 + $0x88] sm:$0xff]  }
 0x4fc   : > { %v12813_v51 = vadd.f32 %v7055_v47, %v6804_v33  ;;  %v7430_v47 = vrot.slane %v7428_v16, 1  ;;  %v7433_v18 = vshll.u32 %v12854_v58, 16  ;;  %v6952_v16 = vshll.u32 %v12494_v36, 16 }
 0x4fd   : > { %8824 = vmatmul.msk.bf16.gmra.mxu0 %vm2525_vm3, %v6652_v21 }
 0x4fe   : > { %v6214_v4 = vpop.f32.mrf.mxu2 }
 0x4ff   : > { %v6279_v13 = vadd.f32 %v6214_v4, %v12547_v56  ;;  %v14084_v56 = vrot.slane %v12425_v26, 2 }
 0x500   : > { %v12820_v5 = vpop.f32.mrf.mxu3 }
 0x501   : > { %v6339_v60 = vsel %vm14085_vm0, %v14084_v56, %v6338_v8  ;;  %v12847_v48 = vadd.f32 %v12782_v6, %v6279_v13  ;;  %vm14110_vm0 = vcmask 1046528  }
 0x502   : > { %v6735_v52 = vpop.f32.mrf.mxu0 }
 0x503   : > { %v7058_v33 = vpop.f32.mrf.mxu1  ;;  %v12823_v30 = vadd.f32 %v6735_v52, %v12750_v15  ;;  %v6123_v52 = vrot.slane %v6121_v14, 1 }
 0x504   : > { %v12828_v32 = vadd.f32 %v7058_v33, %v6805_v0  ;;  %v6940_v0 = vshrl.u32 %v12479_v42, 16  ;;  %v6945_v42 = vrot.slane %v6943_v63, 3 }
 0x505   : > { %8752 = vmatmul.msk.bf16.gmra.mxu3 %vm2525_vm3, %v6339_v60 }
 0x506   : > { %8840 = vmatmul.msk.bf16.gmra.mxu1 %vm2525_vm3, %v6938_v55  ;;  %v6216_v19 = vpop.f32.mrf.mxu2  ;;  %v6942_v1 = vrot.slane %v6940_v0, 2  ;;  %v7412_v0 = vld [vmem:[%s13399_s2] sm:$0xf] }
 0x507   : > { %v6280_v15 = vadd.f32 %v6216_v19, %v12563_v27  ;;  %v6654_v27 = vsel %vm14086_vm2, %v6651_v34, %v6653_v22  ;;  %vm14113_vm2 = vmmov %vm14110_vm0 }
 0x508   : > { %v12842_v29 = vpop.f32.mrf.mxu3  ;;  %v6946_v4 = vor.u32 %v6945_v42, %v6942_v1 }
 0x509   : > { %v12864_v56 = vadd.f32 %v12794_v40, %v6280_v15  ;;  %v7477_v40 = vsel %vm14089_vm10, %v7412_v0, 0  ;;  %v6655_v15 = vrot.slane %v12536_v57, 2  ;;  %vm14118_vm10 = vmmov %vm14098_vm1 }
 0x50a   : > { %v6738_v26 = vpop.f32.mrf.mxu0  ;;  %v6947_v60 = vsel %vm14087_vm6, %v6937_v43, %v6946_v4  ;;  %7486 = vmatpush.bf16.msra.mxu3 %v7477_v40  ;;  %v6949_v43 = vshrl.u32 %v12494_v36, 16  ;;  %v6954_v36 = vrot.slane %v6952_v16, 3  ;;  %vm14116_vm6 = vmmov %vm14097_vm4 }
 0x50b   : > { %v7060_v45 = vpop.f32.mrf.mxu1  ;;  %v6809_v54 = vadd.f32 %v6738_v26, %v12769_v49  ;;  %8734 = vmatmul.msk.bf16.gmra.mxu2 %vm2525_vm3, %v12465_v41  ;;  %v6124_v49 = vshll.u32 %v5976_v12, 16 }
 0x50c   : > { %v12849_v31 = vadd.f32 %v7060_v45, %v6806_v11  ;;  %v7426_v11 = vshrl.u32 %v12836_v35, 16  ;;  %v6951_v14 = vrot.slane %v6949_v43, 2 }
 0x50d   : > { %8825 = vmatmul.msk.bf16.gmra.mxu0 %vm2525_vm3, %v6654_v27  ;;  %v6126_v33 = vrot.slane %v6124_v49, 2 }
 0x50e   : > { %v6219_v21 = vpop.f32.mrf.mxu2  ;;  %v7431_v34 = vor.u32 %v7430_v47, %v7426_v11  ;;  %v14092_v11 = vld [vmem:[#allocation17_spill] sm:$0xff] }
 0x50f   : > { %v6281_v6 = vadd.f32 %v6219_v21, %v12581_v53  ;;  %v7435_v53 = vrot.slane %v7433_v18, 1  ;;  %v6656_v21 = vsel %vm14091_vm14, %v6653_v22, %v6655_v15  ;;  %vm14122_vm14 = vsmask.f32 6400 }
 0x510   : > { %v12860_v41 = vpop.f32.mrf.mxu3 }
 0x511   : > { %v7436_v19 = vsel %vm14088_vm12, %v7431_v34, %v7435_v53  ;;  %v6492_v47 = vadd.f32 %v12807_v28, %v6281_v6  ;;  %v6955_v34 = vor.u32 %v6954_v36, %v6951_v14  ;;  %v7437_v28 = vshrl.u32 %v12854_v58, 16  ;;  %vm14117_vm12 = vmmov %vm14098_vm1 }
 0x512   : > { %v6740_v13 = vpop.f32.mrf.mxu0 }
 0x513   : > { %v7063_v8 = vpop.f32.mrf.mxu1  ;;  %v6810_v55 = vadd.f32 %v6740_v13, %v12784_v39  ;;  %v6127_v39 = vor.u32 %v6126_v33, %v6123_v52  ;;  %v7439_v52 = vor.u32 %v7437_v28, %v7435_v53 }
 0x514   : > { %v12866_v12 = vadd.f32 %v7063_v8, %v6807_v38  ;;  %v6956_v8 = vsel %vm14093_vm11, %v6946_v4, %v6955_v34  ;;  %vm14123_vm11 = vmmov %vm14098_vm1 }
 0x515   : > { %8865 = vmatmul.msk.bf16.vlgmr.msrb.gmra.mxu3 %vm2525_vm3, %v7436_v19  ;;  %v6128_v1 = vsel %vm14090_vm8, %v12454_v46, %v6127_v39  ;;  %v14094_v19 = vld [vmem:[#allocation36_spill] sm:$0xff]  ;;  %vm14121_vm8 = vmmov %vm14107_vm9 }
 0x516   : > { %8841 = vmatmul.msk.bf16.gmra.mxu1 %vm2525_vm3, %v6947_v60  ;;  %v6221_v63 = vpop.f32.mrf.mxu2  ;;  %v6657_v0 = vrot.slane %v14094_v19, 2 }
 0x517   : > { %v6282_v38 = vadd.f32 %v6221_v63, %v12592_v20  ;;  %v6958_v63 = vshrl.u32 %v12536_v57, 16 }
 0x518   : > { %v12880_v26 = vpop.f32.mrf.mxu3 }
 0x519   : > { %v12898_v6 = vadd.f32 %v12820_v5, %v6282_v38  ;;  %v14095_v38 = vld [vmem:[#allocation32_spill] sm:$0xff]  ;;  %v6960_v43 = vrot.slane %v6958_v63, 2 }
 0x51a   : > { %v6743_v45 = vpop.f32.mrf.mxu0 }
 0x51b   : > { %v7065_v27 = vpop.f32.mrf.mxu1  ;;  %v6811_v42 = vadd.f32 %v6743_v45, %v12811_v61  ;;  %8735 = vmatmul.msk.bf16.gmra.mxu2 %vm2525_vm3, %v6128_v1 }
 0x51c   : > { %v12887_v20 = vadd.f32 %v7065_v27, %v12823_v30 }
 0x51d   : > { %8826 = vmatmul.msk.bf16.gmra.mxu0 %vm2525_vm3, %v6656_v21 }
 0x51e   : > { %v6224_v49 = vpop.f32.mrf.mxu2 }
 0x51f   : > { %v6283_v18 = vadd.f32 %v6224_v49, %v14092_v11 }
 0x520   : > { %v12893_v46 = vpop.f32.mrf.mxu3 }
 0x521   : > { %v12913_v53 = vadd.f32 %v12842_v29, %v6283_v18 }
 0x522   : > { %v6745_v61 = vpop.f32.mrf.mxu0 }
 0x523   : > { %v7068_v13 = vpop.f32.mrf.mxu1  ;;  %v6812_v30 = vadd.f32 %v6745_v61, %v12826_v62  ;;  %v6961_v62 = vshll.u32 %v12536_v57, 16 }
 0x524   : > { %v12900_v22 = vadd.f32 %v7068_v13, %v6809_v54 }
 0x525   : > { %8866 = vmatmul.msk.bf16.gmra.mxu3 %vm2525_vm3, %v7439_v52  ;;  %v6963_v16 = vrot.slane %v6961_v62, 3 }
 0x526   : > { %8842 = vmatmul.msk.bf16.gmra.mxu1 %vm2525_vm3, %v6956_v8  ;;  %v6226_v33 = vpop.f32.mrf.mxu2 }
 0x527   : > { %v6284_v60 = vadd.f32 %v6226_v33, %v12614_v7  ;;  %v6658_v7 = vsel %vm14096_vm13, %v6655_v15, %v6657_v0  ;;  %v6964_v27 = vor.u32 %v6963_v16, %v6960_v43  ;;  %v14101_v33 = vld [vmem:[#allocation33_spill] sm:$0xff]  ;;  %vm14126_vm13 = vmmov %vm14121_vm8 }
 0x528   : > { %v12909_v5 = vpop.f32.mrf.mxu3 }
 0x529   : > { %v12926_v21 = vadd.f32 %v12860_v41, %v6284_v60  ;;  %v6965_v15 = vsel %vm14097_vm4, %v6955_v34, %v6964_v27  ;;  %v14100_v41 = vld [vmem:[#allocation37_spill] sm:$0xff]  ;;  %v6970_v34 = vshll.u32 %v14094_v19, 16  ;;  %vm14128_vm4 = vmmov %vm14122_vm14 }
 0x52a   : > { %v6748_v54 = vpop.f32.mrf.mxu0  ;;  %v6659_v18 = vrot.slane %v14100_v41, 2 }
 0x52b   : > { %v7070_v39 = vpop.f32.mrf.mxu1  ;;  %v6813_v4 = vadd.f32 %v6748_v54, %v12847_v48  ;;  %8848 = vmatmul.msk.bf16.vlgmr.msrb.gmra.mxu2 %vm2525_vm3, %v14095_v38  ;;  %v6972_v62 = vrot.slane %v6970_v34, 3  ;;  %v14103_v54 = vld [vmem:[#allocation14_spill] sm:$0xff]  ;;  %v9073_v34 = vld [vmem:[#allocation4 + $0x80] sm:$0xf0] }
 0x52c   : > { %v12915_v40 = vadd.f32 %v7070_v39, %v6810_v55  ;;  %v6660_v60 = vsel %vm14102_vm15, %v6657_v0, %v6659_v18  ;;  %vm14130_vm15 = vmmov %vm14118_vm10 }
 0x52d   : > { %8827 = vmatmul.msk.bf16.gmra.mxu0 %vm2525_vm3, %v6658_v7 }
 0x52e   : > { %v6229_v57 = vpop.f32.mrf.mxu2 }
 0x52f   : > { %v6285_v45 = vadd.f32 %v6229_v57, %v12623_v3  ;;  %v8869_v3 = vld [vmem:[%s13399_s2 + $0x8] sm:$0xf] }
 0x530   : > { %v12922_v1 = vpop.f32.mrf.mxu3  ;;  %v7513_v49 = vsel %vm14098_vm1, %v8869_v3, 0  ;;  %vm14129_vm1 = vmmov %vm14121_vm8 }
 0x531   : > { %7522 = vmatpush.bf16.msrb.mxu3 %v7513_v49 }
 0x532   : > { %v6750_v48 = vpop.f32.mrf.mxu0 }
 0x533   : > { %v7073_v29 = vpop.f32.mrf.mxu1  ;;  %v6814_v55 = vadd.f32 %v6750_v48, %v12864_v56  ;;  %v14099_v56 = vld [vmem:[#allocation30_spill] sm:$0xff] }
 0x534   : > { %v12928_v14 = vadd.f32 %v7073_v29, %v6811_v42  ;;  %v6967_v42 = vshrl.u32 %v14094_v19, 16  ;;  %v6544_v19 = vld [vmem:[#allocation4 + $0x90] sm:$0x3] }
 0x535   : > { %8867 = vmatmul.msk.bf16.vlgmr.msra.gmra.mxu3 %vm2525_vm3, %v12836_v35  ;;  %v12946_v35 = vadd.f32 %v12880_v26, %v6285_v45  ;;  %v9071_v26 = vld [vmem:[#allocation4 + $0x88] sm:$0xf]   ;;  %v9077_v45 = vld [vmem:[#allocation4 + $0x88] sm:$0x70] }
 0x536   : > { %8843 = vmatmul.msk.bf16.gmra.mxu1 %vm2525_vm3, %v6965_v15  ;;  %v6231_v36 = vpop.f32.mrf.mxu2  ;;  %9080 = vmatpush.bf16.msra.mxu3 %v12763_v9  ;;  %v6969_v63 = vrot.slane %v6967_v42, 2  ;;  %v9072_v29 = vor.u32 %v9077_v45, %v9071_v26  ;;  %v14108_v26 = vld [vmem:[#allocation18_spill] sm:$0xff] }
 0x537   : > { %v6286_v11 = vadd.f32 %v6231_v36, %v14099_v56  ;;  %v14105_v36 = vld [vmem:[#allocation15_spill] sm:$0xff]  ;;  %v6976_v56 = vshrl.u32 %v14100_v41, 16 }
 0x538   : > { %v12943_v61 = vpop.f32.mrf.mxu3  ;;  %v6973_v38 = vor.u32 %v6972_v62, %v6969_v63 }
 0x539   : > { %v12959_v57 = vadd.f32 %v12893_v46, %v6286_v11  ;;  %v6978_v63 = vrot.slane %v6976_v56, 2 }
 0x53a   : > { %v6753_v13 = vpop.f32.mrf.mxu0  ;;  %v6974_v48 = vsel %vm14104_vm5, %v6964_v27, %v6973_v38 }
 0x53b   : > { %v7075_v28 = vpop.f32.mrf.mxu1  ;;  %v6815_v8 = vadd.f32 %v6753_v13, %v6492_v47  ;;  %8849 = vmatmul.msk.bf16.gmra.mxu2 %vm2525_vm3, %v14101_v33  ;;  %v14106_v33 = vld [vmem:[#allocation8_spill] sm:$0xff] }
 0x53c   : > { %v12948_v52 = vadd.f32 %v7075_v28, %v6812_v30  ;;  %v6612_v30 = vunpack.c.l.b16 %v6544_v19 }
 0x53d   : > { %8828 = vmatmul.msk.bf16.gmra.mxu0 %vm2525_vm3, %v6660_v60 }
 0x53e   : > { %v6234_v9 = vpop.f32.mrf.mxu2  ;;  %v6629_v15 = vpack.c.b16 %v6612_v30, %v6612_v30 }
 0x53f   : > { %v6287_v39 = vadd.f32 %v6234_v9, %v14103_v54  ;;  %v9074_v9 = vld [vmem:[#allocation4 + $0x80] sm:$0xe] }
 0x540   : > { %v12955_v47 = vpop.f32.mrf.mxu3  ;;  %v6661_v11 = vrot.slane %v6629_v15, 2  ;;  %v9075_v19 = vor.u32 %v9074_v9, %v9073_v34 }
 0x541   : > { %v12975_v13 = vadd.f32 %v12909_v5, %v6287_v39  ;;  %v8875_v5 = vld [vmem:[#allocation4 + $0x88] sm:$0xe] }
 0x542   : > { %v6755_v7 = vpop.f32.mrf.mxu0  ;;  %v6662_v60 = vsel %vm14107_vm9, %v6659_v18, %v6661_v11  ;;  %v12998_v11 = vld [vmem:[#allocation4 + $0x90] sm:$0xff]  ;;  %vm14132_vm9 = vmmov %vm14129_vm1 }
 0x543   : > { %v7078_v43 = vpop.f32.mrf.mxu1  ;;  %v6816_v16 = vadd.f32 %v6755_v7, %v12898_v6  ;;  %v6979_v6 = vshll.u32 %v14100_v41, 16  ;;  %v6835_v7 = vld [vmem:[#allocation4 + $0x90] sm:$0x7] }
 0x544   : > { %v12961_v0 = vadd.f32 %v7078_v43, %v6813_v4 }
 0x545   : > { %8868 = vmatmul.msk.bf16.gmra.mxu3 %vm2525_vm3, %v9072_v29  ;;  %v6981_v62 = vrot.slane %v6979_v6, 3  ;;  %v9024_v29 = vld [vmem:[#allocation4 + $0x88] sm:$0xf0] }
 0x546   : > { %8844 = vmatmul.msk.bf16.gmra.mxu1 %vm2525_vm3, %v6974_v48  ;;  %v6236_v3 = vpop.f32.mrf.mxu2  ;;  %v6839_v48 = vunpack.c.l.b16 %v6835_v7  ;;  %v8876_v56 = vor.u32 %v9024_v29, %v8875_v5  ;;  %v13023_v7 = vld [vmem:[#allocation4 + $0x94] sm:$0xf]  ;;  %v7588_v5 = vld [vmem:[#allocation4 + $0x88] sm:$0xe] }
 0x547   : > { %v6288_v49 = vadd.f32 %v6236_v3, %v14105_v36  ;;  %v6982_v30 = vor.u32 %v6981_v62, %v6978_v63  ;;  %v7504_v36 = vrot.slane %v12854_v58, 1  ;;  %v7599_v29 = vunpack.c.l.b16 %v7588_v5 }
 0x548   : > { %v12969_v46 = vpop.f32.mrf.mxu3 }
 0x549   : > { %v12990_v15 = vadd.f32 %v12922_v1, %v6288_v49  ;;  %v6983_v6 = vsel %vm14109_vm7, %v6973_v38, %v6982_v30  ;;  %v14111_v1 = vld [vmem:[#allocation16_spill] sm:$0xff]  ;;  %vm14135_vm7 = vmmov %vm14104_vm5 }
 0x54a   : > { %v6758_v4 = vpop.f32.mrf.mxu0 }
 0x54b   : > { %v7080_v42 = vpop.f32.mrf.mxu1  ;;  %v12972_v27 = vadd.f32 %v6758_v4, %v12913_v53  ;;  %8850 = vmatmul.msk.bf16.gmra.mxu2 %vm2525_vm3, %v14106_v33  ;;  %v13486_v33 = vrot.slane %v12998_v11, 1 }
 0x54c   : > { %v12977_v28 = vadd.f32 %v7080_v42, %v6814_v55  ;;  %v7503_v55 = vrot.slane %v9075_v19, 1 }
 0x54d   : > { %8829 = vmatmul.msk.bf16.gmra.mxu0 %vm2525_vm3, %v6662_v60 }
 0x54e   : > { %v6239_v54 = vpop.f32.mrf.mxu2  ;;  %v7505_v4 = vsel %vm14110_vm0, %v7503_v55, %v7504_v36  ;;  %vm14136_vm0 = vcmask 1044480  }
 0x54f   : > { %v6289_v53 = vadd.f32 %v6239_v54, %v14108_v26  ;;  %v14112_v54 = vld [vmem:[#allocation12_spill] sm:$0xff] }
 0x550   : > { %v12984_v39 = vpop.f32.mrf.mxu3 }
 0x551   : > { %v13013_v9 = vadd.f32 %v12943_v61, %v6289_v53  ;;  %v14114_v61 = vld [vmem:[#allocation11_spill] sm:$0xff] }
 0x552   : > { %v6760_v43 = vpop.f32.mrf.mxu0 }
 0x553   : > { %v7083_v45 = vpop.f32.mrf.mxu1  ;;  %v12987_v18 = vadd.f32 %v6760_v43, %v12926_v21  ;;  %v13001_v21 = vpack.c.b16 %v6839_v48, %v6839_v48  ;;  %v13484_v48 = vunpack.c.l.b16 %v13023_v7 }
 0x554   : > { %v12992_v3 = vadd.f32 %v7083_v45, %v6815_v8  ;;  %v7553_v8 = vrot.slane %v8876_v56, 1  ;;  %v7703_v45 = vld [vmem:[#allocation4 + $0x90] sm:$0xc] }
 0x555   : > { %8870 = vmatmul.msk.bf16.vlgmr.msrb.gmra.mxu3 %vm2525_vm3, %v7505_v4  ;;  %v6985_v60 = vshrl.u32 %v13001_v21, 16  ;;  %v6988_v63 = vshll.u32 %v13001_v21, 16  ;;  %v7714_v4 = vunpack.c.l.b16 %v7703_v45 }
 0x556   : > { %8845 = vmatmul.msk.bf16.gmra.mxu1 %vm2525_vm3, %v6983_v6  ;;  %v6241_v42 = vpop.f32.mrf.mxu2  ;;  %v7555_v26 = vsel %vm14113_vm2, %v7553_v8, %v13486_v33  ;;  %vm14138_vm2 = vmmov %vm14136_vm0 }
 0x557   : > { %v6290_v49 = vadd.f32 %v6241_v42, %v14111_v1  ;;  %v6990_v43 = vrot.slane %v6988_v63, 3  ;;  %v13043_v63 = vpack.c.b16 %v13484_v48, %v7714_v4  ;;  %v7707_v48 = vld [vmem:[#allocation4 + $0xa0] sm:$0x1] }
 0x558   : > { %v13004_v34 = vpop.f32.mrf.mxu3 }
 0x559   : > { %v7722_v45 = vrot.slane %v13043_v63, 2 }
 0x55a   : > { %v6763_v58 = vpop.f32.mrf.mxu0 }
 0x55b   : > { %v7085_v38 = vpop.f32.mrf.mxu1  ;;  %v13010_v62 = vadd.f32 %v6763_v58, %v12946_v35  ;;  %8851 = vmatmul.msk.bf16.gmra.mxu2 %vm2525_vm3, %v14112_v54  ;;  %v6987_v35 = vrot.slane %v6985_v60, 2  ;;  %v8893_v60 = vld [vmem:[%s13399_s2 + $0x18] sm:$0xf] }
 0x55c   : > { %v13015_v19 = vadd.f32 %v7085_v38, %v6816_v16  ;;  %v13026_v16 = vld [vmem:[#allocation4 + $0x8c] sm:$0xf]  ;;  %v7734_v5 = vsel %vm14117_vm12, %v8893_v60, 0  ;;  %vm14150_vm12 = vcmask 62464  }
 0x55d   : > { %8881 = vmatmul.msk.bf16.vlgmr.msra.gmra.mxu0 %vm2525_vm3, %v7555_v26  ;;  %v6991_v1 = vor.u32 %v6990_v43, %v6987_v35  ;;  %v13485_v8 = vunpack.c.l.b16 %v13026_v16  ;;  %v13056_v35 = vld [vmem:[#allocation4 + $0x90] sm:$0xff] }
 0x55e   : > { %v6244_v55 = vpop.f32.mrf.mxu2  ;;  %7743 = vmatpush.bf16.msrb.mxu0 %v7734_v5  ;;  %v7619_v60 = vshll.u32 %v13056_v35, 16  ;;  %v14120_v5 = vld [vmem:[#allocation13_spill] sm:$0xff] }
 0x55f   : > { %v6291_v53 = vadd.f32 %v6244_v55, %v14114_v61  ;;  %v6992_v54 = vsel %vm14116_vm6, %v6982_v30, %v6991_v1  ;;  %v7604_v26 = vpack.c.b16 %v13485_v8, %v7599_v29  ;;  %vm14147_vm6 = vmmov %vm14136_vm0 }
 0x560   : > { %v13029_v56 = vpop.f32.mrf.mxu3 }
 0x561   : > { %v7608_v61 = vshrl.u32 %v7604_v26, 16  ;;  %v7611_v29 = vshll.u32 %v7604_v26, 16 }
 0x562   : > { %v6765_v6 = vpop.f32.mrf.mxu0 }
 0x563   : > { %v7088_v42 = vpop.f32.mrf.mxu1  ;;  %v13033_v58 = vadd.f32 %v6765_v6, %v12959_v57  ;;  %v8890_v57 = vld [vmem:[%s13399_s2 + $0x14] sm:$0xf] }
 0x564   : > { %v13036_v38 = vadd.f32 %v7088_v42, %v12972_v27  ;;  %v13053_v27 = vld [vmem:[#allocation4 + $0x98] sm:$0xff]  ;;  %v7678_v30 = vsel %vm14118_vm10, %v8890_v57, 0  ;;  %v6501_v57 = vadd.f32 %v12955_v47, %v6290_v49 }
 0x565   : > { %8871 = vmatmul.msk.bf16.gmra.mxu3 %vm2525_vm3, %v7504_v36  ;;  %v7723_v42 = vrot.slane %v13053_v27, 2  ;;  %v7616_v36 = vshrl.u32 %v13056_v35, 16 }
 0x566   : > { %14115 = vst [vmem:[#allocation21_spill] sm:$0xff] %v13036_v38  ;;  %8846 = vmatmul.msk.bf16.gmra.mxu1 %vm2525_vm3, %v6992_v54  ;;  %v6246_v55 = vpop.f32.mrf.mxu2  ;;  %7687 = vmatpush.bf16.msrb.mxu3 %v7678_v30  ;;  %v7613_v30 = vrot.slane %v7611_v29, 2  ;;  %v7621_v38 = vrot.slane %v7619_v60, 2 }
 0x567   : > { %v13060_v43 = vadd.f32 %v6246_v55, %v12686_v44  ;;  %v7724_v26 = vsel %vm14121_vm8, %v7722_v45, %v7723_v42  ;;  %v7610_v55 = vrot.slane %v7608_v61, 1  ;;  %v7618_v33 = vrot.slane %v7616_v36, 1  ;;  %v8900_v61 = vld [vmem:[%s13399_s2 + $0x1c] sm:$0xf] }
 0x568   : > { %v13063_v6 = vpop.f32.mrf.mxu3  ;;  %v7797_v36 = vsel %vm14123_vm11, %v8900_v61, 0 }
 0x569   : > { %v7622_v41 = vor.u32 %v7621_v38, %v7618_v33  ;;  %7806 = vmatpush.bf16.msrb.mxu1 %v7797_v36 }
 0x56a   : > { %v6768_v4 = vpop.f32.mrf.mxu0 }
 0x56b   : > { %v7090_v1 = vpop.f32.mrf.mxu1  ;;  %v6821_v54 = vadd.f32 %v6768_v4, %v12975_v13  ;;  %8852 = vmatmul.msk.bf16.gmra.mxu2 %vm2525_vm3, %v14120_v5  ;;  %v7614_v4 = vor.u32 %v7613_v30, %v7610_v55  ;;  %v7592_v5 = vld [vmem:[#allocation4 + $0x98] sm:$0x1] }
 0x56c   : > { %v13070_v44 = vadd.f32 %v7090_v1, %v12987_v18  ;;  %v7718_v18 = vunpack.c.l.b16 %v7707_v48 }
 0x56d   : > { %8898 = vmatmul.msk.bf16.vlgmr.msrb.gmra.mxu0 %vm2525_vm3, %v7724_v26  ;;  %v7623_v48 = vsel %vm14122_vm14, %v7614_v4, %v7622_v41 }
 0x56e   : > { %14119 = vst [vmem:[#allocation19_spill] sm:$0xff] %v13070_v44  ;;  %v6249_v8 = vpop.f32.mrf.mxu2  ;;  %v7721_v29 = vpack.c.b16 %v7718_v18, %v7718_v18 }
 0x56f   : > { %v13078_v13 = vadd.f32 %v6249_v8, %v12696_v24  ;;  %v6502_v24 = vadd.f32 %v12969_v46, %v6291_v53  ;;  %v7603_v8 = vunpack.c.l.b16 %v7592_v5  ;;  %v14127_v5 = vunpack.c.l.b16 %v13026_v16 }
 0x570   : > { %v13080_v1 = vpop.f32.mrf.mxu3  ;;  %v7725_v60 = vrot.slane %v7721_v29, 2 }
 0x572   : > { %v6770_v44 = vpop.f32.mrf.mxu0  ;;  %v7726_v4 = vsel %vm14126_vm13, %v7723_v42, %v7725_v60  ;;  %v7667_v42 = vrot.slane %v13056_v35, 2  ;;  %v7765_v35 = vshrl.u32 %v13043_v63, 16 }
 0x573   : > { %v7093_v45 = vpop.f32.mrf.mxu1  ;;  %v6822_v47 = vadd.f32 %v6770_v44, %v12990_v15  ;;  %v14124_v15 = vrot.slane %v12998_v11, 1  ;;  %v13099_v44 = vpack.c.b16 %v7603_v8, %v7603_v8  ;;  %v14125_v11 = vld [vmem:[#allocation22_spill] sm:$0xff] }
 0x574   : > { %v13084_v49 = vadd.f32 %v7093_v45, %v13010_v62  ;;  %v7661_v62 = vld [vmem:[#allocation4 + $0x88] sm:$0xc] }
 0x575   : > { %8882 = vmatmul.msk.bf16.vlgmr.msra.gmra.mxu3 %vm2525_vm3, %v14124_v15  ;;  %v7664_v53 = vunpack.c.l.b16 %v7661_v62 }
 0x576   : > { %8888 = vmatmul.msk.bf16.vlgmr.msra.gmra.mxu1 %vm2525_vm3, %v7623_v48  ;;  %v6251_v33 = vpop.f32.mrf.mxu2 }
 0x577   : > { %v13097_v38 = vadd.f32 %v6251_v33, %v12706_v37  ;;  %v7625_v37 = vshll.u32 %v13099_v44, 16  ;;  %v7665_v45 = vpack.c.b16 %v14127_v5, %v7664_v53 }
 0x578   : > { %v13101_v46 = vpop.f32.mrf.mxu3 }
 0x57a   : > { %v6773_v26 = vpop.f32.mrf.mxu0 }
 0x57b   : > { %v7095_v55 = vpop.f32.mrf.mxu1  ;;  %v6823_v30 = vadd.f32 %v6773_v26, %v13013_v9  ;;  %8853 = vmatmul.msk.bf16.gmra.mxu2 %vm2525_vm3, %v14125_v11  ;;  %v7627_v9 = vrot.slane %v7625_v37, 2  ;;  %v7776_v37 = vshll.u32 %v13053_v27, 16 }
 0x57c   : > { %v13105_v18 = vadd.f32 %v7095_v55, %v13033_v58  ;;  %v7666_v58 = vrot.slane %v7665_v45, 2 }
 0x57d   : > { %8899 = vmatmul.msk.bf16.gmra.mxu0 %vm2525_vm3, %v7726_v4  ;;  %v7628_v62 = vsel %vm14128_vm4, %v7622_v41, %v7627_v9  ;;  %v6503_v41 = vadd.f32 %v12984_v39, %v13060_v43  ;;  %v7773_v4 = vshrl.u32 %v13053_v27, 16  ;;  %v7759_v43 = vld [vmem:[#allocation4 + $0xa0] sm:$0x3] }
 0x57e   : > { %v6254_v61 = vpop.f32.mrf.mxu2  ;;  %v7668_v16 = vsel %vm14129_vm1, %v7666_v58, %v7667_v42 }
 0x57f   : > { %v13115_v29 = vadd.f32 %v6254_v61, %v12716_v59  ;;  %v8903_v59 = vld [vmem:[%s13399_s2 + $0x20] sm:$0xf]  ;;  %v7767_v61 = vrot.slane %v7765_v35, 2  ;;  %v7775_v58 = vrot.slane %v7773_v4, 2 }
 0x580   : > { %v13117_v48 = vpop.f32.mrf.mxu3  ;;  %v7839_v53 = vsel %vm14130_vm15, %v8903_v59, 0 }
 0x581   : > { %7848 = vmatpush.bf16.msra.mxu3 %v7839_v53 }
 0x582   : > { %v6775_v8 = vpop.f32.mrf.mxu0 }
 0x583   : > { %v7098_v36 = vpop.f32.mrf.mxu1  ;;  %v6824_v33 = vadd.f32 %v6775_v8, %v6501_v57  ;;  %v7768_v57 = vshll.u32 %v13043_v63, 16  ;;  %v7778_v63 = vrot.slane %v7776_v37, 3 }
 0x584   : > { %v13119_v15 = vadd.f32 %v7098_v36, %v6821_v54 }
 0x585   : > { %8891 = vmatmul.msk.bf16.vlgmr.msrb.gmra.mxu3 %vm2525_vm3, %v7668_v16  ;;  %v7770_v39 = vrot.slane %v7768_v57, 3 }
 0x586   : > { %8889 = vmatmul.msk.bf16.gmra.mxu1 %vm2525_vm3, %v7628_v62  ;;  %v6256_v60 = vpop.f32.mrf.mxu2  ;;  %v7762_v62 = vunpack.c.l.b16 %v7759_v43 }
 0x587   : > { %v13131_v54 = vadd.f32 %v6256_v60, %v12726_v23  ;;  %v14131_v23 = vld [vmem:[#allocation35_spill] sm:$0xff]  ;;  %v7771_v36 = vor.u32 %v7770_v39, %v7767_v61  ;;  %v7779_v60 = vor.u32 %v7778_v63, %v7775_v58  ;;  %v14133_v39 = vld [vmem:[#allocation25_spill] sm:$0xff] }
 0x588   : > { %v13137_v26 = vpop.f32.mrf.mxu3  ;;  %v7763_v57 = vpack.c.b16 %v7762_v62, %v7762_v62 }
 0x589   : > { %v7780_v35 = vsel %vm14104_vm5, %v7771_v36, %v7779_v60 }
 0x58a   : > { %v6778_v55 = vpop.f32.mrf.mxu0  ;;  %v7785_v37 = vshll.u32 %v7763_v57, 16 }
 0x58b   : > { %v7100_v11 = vpop.f32.mrf.mxu1  ;;  %v6825_v5 = vadd.f32 %v6778_v55, %v6502_v24  ;;  %8854 = vmatmul.msk.bf16.gmra.mxu2 %vm2525_vm3, %v14131_v23  ;;  %v7669_v24 = vrot.slane %v13099_v44, 2  ;;  %v7782_v44 = vshrl.u32 %v7763_v57, 16  ;;  %v7822_v23 = vld [vmem:[#allocation4 + $0x90] sm:$0x8] }
 0x58c   : > { %v13141_v45 = vadd.f32 %v7100_v11, %v6822_v47  ;;  %v7825_v43 = vunpack.c.l.b16 %v7822_v23  ;;  %v7787_v63 = vrot.slane %v7785_v37, 3  ;;  %v7828_v23 = vrot.slane %v13053_v27, 3 }
 0x58d   : > { %v7784_v58 = vrot.slane %v7782_v44, 2 }
 0x58e   : > { %v6259_v9 = vpop.f32.mrf.mxu2 }
 0x58f   : > { %v13146_v8 = vadd.f32 %v6259_v9, %v12740_v2  ;;  %v7670_v2 = vsel %vm14132_vm9, %v7667_v42, %v7669_v24  ;;  %v6504_v42 = vadd.f32 %v13004_v34, %v13078_v13  ;;  %v6505_v34 = vadd.f32 %v13029_v56, %v13097_v38  ;;  %v14137_v38 = vld [vmem:[#allocation29_spill] sm:$0xff] }
 0x590   : > { %v13148_v16 = vpop.f32.mrf.mxu3 }
 0x592   : > { %v6780_v47 = vpop.f32.mrf.mxu0 }
 0x593   : > { %v7103_v59 = vpop.f32.mrf.mxu1  ;;  %v6826_v53 = vadd.f32 %v6780_v47, %v6503_v41 }
 0x594   : > { %v13151_v55 = vadd.f32 %v7103_v59, %v6823_v30 }
 0x595   : > { %8892 = vmatmul.msk.bf16.gmra.mxu3 %vm2525_vm3, %v7670_v2 }
 0x596   : > { %8901 = vmatmul.msk.bf16.vlgmr.msrb.gmra.mxu1 %vm2525_vm3, %v7780_v35  ;;  %v6261_v11 = vpop.f32.mrf.mxu2 }
 0x597   : > { %v13158_v4 = vadd.f32 %v6261_v11, %v12753_v17  ;;  %v14134_v17 = vunpack.c.l.b16 %v13023_v7  ;;  %v6506_v7 = vadd.f32 %v13063_v6, %v13115_v29 }
 0x598   : > { %v7458_v61 = vpop.f32.mrf.mxu3 }
 0x599   : > { %v7826_v36 = vpack.c.b16 %v14134_v17, %v7825_v43 }
 0x59a   : > { %v6783_v9 = vpop.f32.mrf.mxu0 }
 0x59b   : > { %v7105_v41 = vpop.f32.mrf.mxu1  ;;  %8855 = vmatmul.msk.bf16.gmra.mxu2 %vm2525_vm3, %v14133_v39  ;;  %v6827_v62 = vadd.f32 %v6783_v9, %v6504_v42  ;;  %v7827_v35 = vrot.slane %v7826_v36, 3  ;;  %v7830_v9 = vrot.slane %v7763_v57, 3 }
 0x59c   : > { %v13160_v30 = vadd.f32 %v7105_v41, %v6824_v33  ;;  %v7788_v33 = vor.u32 %v7787_v63, %v7784_v58 }
 0x59d   : > { %v7831_v17 = vsel %vm14138_vm2, %v7828_v23, %v7830_v9 }
 0x59e   : > { %v6264_v24 = vpop.f32.mrf.mxu2  ;;  %v7789_v44 = vsel %vm14135_vm7, %v7779_v60, %v7788_v33 }
 0x59f   : > { %v13169_v47 = vadd.f32 %v6264_v24, %v12772_v10  ;;  %v7829_v10 = vsel %vm14136_vm0, %v7827_v35, %v7828_v23  ;;  %v6508_v23 = vadd.f32 %v13101_v46, %v13146_v8  ;;  %v6509_v46 = vadd.f32 %v13117_v48, %v13158_v4 }
 0x5a0   : > { %v7460_v59 = vpop.f32.mrf.mxu3 }
 0x5a2   : > { %v6785_v13 = vpop.f32.mrf.mxu0 }
 0x5a3   : > { %v7108_v2 = vpop.f32.mrf.mxu1  ;;  %v6828_v37 = vadd.f32 %v6785_v13, %v6505_v34 }
 0x5a4   : > { %v13171_v11 = vadd.f32 %v7108_v2, %v6825_v5 }
 0x5a5   : > { %8904 = vmatmul.msk.bf16.vlgmr.msra.gmra.mxu3 %vm2525_vm3, %v7829_v10  ;;  %v7871_v10 = vld [vmem:[#allocation6 + $0x8] sm:$0xff] }
 0x5a6   : > { %8902 = vmatmul.msk.bf16.gmra.mxu1 %vm2525_vm3, %v7789_v44  ;;  %v6266_v41 = vpop.f32.mrf.mxu2 }
 0x5a7   : > { %v13183_v5 = vadd.f32 %v6266_v41, %v12787_v25 }
 0x5a8   : > { %v7463_v27 = vpop.f32.mrf.mxu3 }
 0x5aa   : > { %v6788_v6 = vpop.f32.mrf.mxu0 }
 0x5ab   : > { %v7110_v39 = vpop.f32.mrf.mxu1  ;;  %8856 = vmatmul.msk.bf16.gmra.mxu2 %vm2525_vm3, %v14137_v38  ;;  %v6829_v29 = vadd.f32 %v6788_v6, %v6506_v7 }
 0x5ac   : > { %v13185_v56 = vadd.f32 %v7110_v39, %v6826_v53  ;;  %v6507_v53 = vadd.f32 %v13080_v1, %v13131_v54 }
 0x5ae   : > { %v7264_v60 = vpop.f32.mrf.mxu2 }
 0x5af   : > { %v7344_v43 = vadd.f32 %v7264_v60, %v12797_v50  ;;  %v7870_v50 = vld [vmem:[#allocation6] sm:$0xff] }
 0x5b0   : > { %v7465_v42 = vpop.f32.mrf.mxu3 }
 0x5b1   : > { %7376 = vst.msk [vmem:[#allocation5] sm:$0xff] %vm2525_vm3, %v7344_v43 }
 0x5b2   : > { %v6790_v63 = vpop.f32.mrf.mxu0 }
 0x5b3   : > { %v7113_v58 = vpop.f32.mrf.mxu1  ;;  %v6830_v36 = vadd.f32 %v6790_v63, %v6507_v53 }
 0x5b4   : > { %v13191_v25 = vadd.f32 %v7113_v58, %v6827_v62 }
 0x5b5   : > { %8905 = vmatmul.msk.bf16.gmra.mxu3 %vm2525_vm3, %v7831_v17 }
 0x5b6   : > { %v7266_v24 = vpop.f32.mrf.mxu2 }
 0x5b7   : > { %v7345_v33 = vadd.f32 %v7266_v24, %v12813_v51  ;;  %v14139_v51 = vld [vmem:[#allocation23_spill] sm:$0xff] }
 0x5b8   : > { %v7868_v57 = vld [vmem:[#allocation5] sm:$0xff]  ;;  %v7488_v1 = vpop.f32.mrf.mxu3 }
 0x5b9   : > { %v7872_v62 = vadd.f32 %v7870_v50, %v7868_v57  ;;  %7377 = vst.msk [vmem:[#allocation5 + $0x8] sm:$0xff] %vm2525_vm3, %v7345_v33  ;;  %v7489_v35 = vadd.f32 %v7488_v1, %v7458_v61 }
 0x5ba   : > { %v6793_v34 = vpop.f32.mrf.mxu0 }
 0x5bb   : > { %v7115_v54 = vpop.f32.mrf.mxu1  ;;  %7874 = vst.msk [vmem:[%s13203_s19] sm:$0xff] %vm2525_vm3, %v7872_v62  ;;  %8857 = vmatmul.msk.bf16.gmra.mxu2 %vm2525_vm3, %v14139_v51  ;;  %v6831_v13 = vadd.f32 %v6793_v34, %v6508_v23  ;;  %v7879_v51 = vld [vmem:[#allocation6 + $0x1a] sm:$0xff] }
 0x5bc   : > { %v13208_v2 = vadd.f32 %v7115_v54, %v6828_v37 }
 0x5be   : > { %v7269_v7 = vpop.f32.mrf.mxu2 }
 0x5bf   : > { %v7346_v44 = vadd.f32 %v7269_v7, %v12828_v32 }
 0x5c0   : > { %v7869_v41 = vld [vmem:[#allocation5 + $0x8] sm:$0xff]  ;;  %v7490_v61 = vpop.f32.mrf.mxu3 }
 0x5c1   : > { %v7873_v39 = vadd.f32 %v7871_v10, %v7869_v41  ;;  %7378 = vst.msk [vmem:[#allocation5 + $0x10] sm:$0xff] %vm2525_vm3, %v7346_v44  ;;  %v7491_v37 = vadd.f32 %v7490_v61, %v7460_v59  ;;  %v14140_v59 = vld [vmem:[#allocation28_spill] sm:$0xff] }
 0x5c2   : > { %v6795_v8 = vpop.f32.mrf.mxu0  ;;  %v7886_v10 = vld [vmem:[#allocation6 + $0x24] sm:$0xff] }
 0x5c3   : > { %v7118_v38 = vpop.f32.mrf.mxu1  ;;  %7875 = vst.msk [vmem:[%s13203_s19 + $0x8] sm:$0xff] %vm2525_vm3, %v7873_v39  ;;  %v6832_v60 = vadd.f32 %v6795_v8, %v6509_v46 }
 0x5c4   : > { %v13218_v6 = vadd.f32 %v7118_v38, %v6829_v29  ;;  %v6510_v29 = vadd.f32 %v13137_v26, %v13169_v47  ;;  %v6511_v26 = vadd.f32 %v13148_v16, %v13183_v5  ;;  %v14141_v16 = vld [vmem:[#allocation27_spill] sm:$0xff] }
 0x5c6   : > { %v7271_v43 = vpop.f32.mrf.mxu2 }
 0x5c7   : > { %v7347_v32 = vadd.f32 %v7271_v43, %v12849_v31  ;;  %v7878_v31 = vld [vmem:[#allocation6 + $0x12] sm:$0xff] }
 0x5c8   : > { %v7493_v9 = vpop.f32.mrf.mxu3  ;;  %v7887_v43 = vld [vmem:[#allocation6 + $0x2c] sm:$0xff] }
 0x5c9   : > { %7379 = vst.msk [vmem:[#allocation5 + $0x18] sm:$0xff] %vm2525_vm3, %v7347_v32  ;;  %v7494_v53 = vadd.f32 %v7493_v9, %v7463_v27 }
 0x5ca   : > { %v6798_v48 = vpop.f32.mrf.mxu0 }
 0x5cb   : > { %v7120_v58 = vpop.f32.mrf.mxu1  ;;  %8858 = vmatmul.msk.bf16.gmra.mxu2 %vm2525_vm3, %v14140_v59  ;;  %v6833_v4 = vadd.f32 %v6798_v48, %v6510_v29  ;;  %v14142_v29 = vld [vmem:[#allocation31_spill] sm:$0xff] }
 0x5cc   : > { %v13224_v63 = vadd.f32 %v7120_v58, %v6830_v36 }
 0x5ce   : > { %v7274_v17 = vpop.f32.mrf.mxu2 }
 0x5cf   : > { %v7348_v24 = vadd.f32 %v7274_v17, %v12866_v12 }
 0x5d0   : > { %v7876_v33 = vld [vmem:[#allocation5 + $0x12] sm:$0xff]  ;;  %v7495_v57 = vpop.f32.mrf.mxu3 }
 0x5d1   : > { %v7880_v50 = vadd.f32 %v7878_v31, %v7876_v33  ;;  %7380 = vst.msk [vmem:[#allocation5 + $0x20] sm:$0xff] %vm2525_vm3, %v7348_v24  ;;  %v7496_v36 = vadd.f32 %v7495_v57, %v7465_v42 }
 0x5d2   : > { %v6800_v47 = vpop.f32.mrf.mxu0 }
 0x5d3   : > { %v7123_v27 = vpop.f32.mrf.mxu1  ;;  %7882 = vst.msk [vmem:[%s13203_s19 + $0x10] sm:$0xff] %vm2525_vm3, %v7880_v50  ;;  %v6834_v1 = vadd.f32 %v6800_v47, %v6511_v26 }
 0x5d4   : > { %v13234_v62 = vadd.f32 %v7123_v27, %v6831_v13  ;;  %v7895_v27 = vld [vmem:[#allocation6 + $0x3e] sm:$0xff] }
 0x5d6   : > { %v7276_v54 = vpop.f32.mrf.mxu2 }
 0x5d7   : > { %v7349_v12 = vadd.f32 %v7276_v54, %v12887_v20 }
 0x5d8   : > { %v7877_v23 = vld [vmem:[#allocation5 + $0x1a] sm:$0xff]  ;;  %v7524_v7 = vpop.f32.mrf.mxu3 }
 0x5d9   : > { %v7881_v34 = vadd.f32 %v7879_v51, %v7877_v23  ;;  %7381 = vst.msk [vmem:[#allocation5 + $0x28] sm:$0xff] %vm2525_vm3, %v7349_v12  ;;  %v13240_v44 = vadd.f32 %v7524_v7, %v7489_v35  ;;  %v7902_v12 = vld [vmem:[#allocation6 + $0x48] sm:$0xff] }
 0x5db   : > { %v7125_v42 = vpop.f32.mrf.mxu1  ;;  %7883 = vst.msk [vmem:[%s13203_s19 + $0x18] sm:$0xff] %vm2525_vm3, %v7881_v34  ;;  %8859 = vmatmul.msk.bf16.gmra.mxu2 %vm2525_vm3, %v14141_v16  ;;  %v7903_v16 = vld [vmem:[#allocation6 + $0x50] sm:$0xff] }
 0x5dc   : > { %v13244_v13 = vadd.f32 %v7125_v42, %v6832_v60 }
 0x5de   : > { %v7279_v5 = vpop.f32.mrf.mxu2 }
 0x5df   : > { %v7350_v20 = vadd.f32 %v7279_v5, %v12900_v22 }
 0x5e0   : > { %v7884_v41 = vld [vmem:[#allocation5 + $0x24] sm:$0xff]  ;;  %v7526_v61 = vpop.f32.mrf.mxu3 }
 0x5e1   : > { %v7888_v39 = vadd.f32 %v7886_v10, %v7884_v41  ;;  %7382 = vst.msk [vmem:[#allocation5 + $0x30] sm:$0xff] %vm2525_vm3, %v7350_v20  ;;  %v13250_v35 = vadd.f32 %v7526_v61, %v7491_v37  ;;  %v7574_v10 = vpop.f32.mrf.mxu0 }
 0x5e3   : > { %v7128_v38 = vpop.f32.mrf.mxu1  ;;  %7890 = vst.msk [vmem:[%s13203_s19 + $0x20] sm:$0xff] %vm2525_vm3, %v7888_v39  ;;  %v14144_v39 = vld [vmem:[#allocation38_spill] sm:$0xff] }
 0x5e4   : > { %v13254_v46 = vadd.f32 %v7128_v38, %v6833_v4  ;;  %v7894_v4 = vld [vmem:[#allocation6 + $0x36] sm:$0xff] }
 0x5e6   : > { %v7281_v8 = vpop.f32.mrf.mxu2 }
 0x5e7   : > { %v7351_v60 = vadd.f32 %v7281_v8, %v12915_v40 }
 0x5e8   : > { %v7885_v32 = vld [vmem:[#allocation5 + $0x2c] sm:$0xff]  ;;  %v7529_v9 = vpop.f32.mrf.mxu3 }
 0x5e9   : > { %v7889_v22 = vadd.f32 %v7887_v43, %v7885_v32  ;;  %7383 = vst.msk [vmem:[#allocation5 + $0x38] sm:$0xff] %vm2525_vm3, %v7351_v60  ;;  %v13258_v59 = vadd.f32 %v7529_v9, %v7494_v53  ;;  %v7576_v8 = vpop.f32.mrf.mxu0 }
 0x5eb   : > { %v7130_v58 = vpop.f32.mrf.mxu1  ;;  %7891 = vst.msk [vmem:[%s13203_s19 + $0x28] sm:$0xff] %vm2525_vm3, %v7889_v22  ;;  %8860 = vmatmul.msk.bf16.gmra.mxu2 %vm2525_vm3, %v14142_v29  ;;  %v7910_v22 = vld [vmem:[#allocation6 + $0x5a] sm:$0xff] }
 0x5ec   : > { %v13262_v37 = vadd.f32 %v7130_v58, %v6834_v1  ;;  %v14143_v1 = vld [vmem:[#allocation7_spill] sm:$0xff]  ;;  %v7202_v58 = vrot.slane %v13001_v21, 3 }
 0x5ee   : > { %v7284_v48 = vpop.f32.mrf.mxu2 }
 0x5ef   : > { %v7352_v40 = vadd.f32 %v7284_v48, %v12928_v14 }
 0x5f0   : > { %v7892_v17 = vld [vmem:[#allocation5 + $0x36] sm:$0xff]  ;;  %v7531_v31 = vpop.f32.mrf.mxu3 }
 0x5f1   : > { %v7896_v24 = vadd.f32 %v7894_v4, %v7892_v17  ;;  %7384 = vst.msk [vmem:[#allocation5 + $0x40] sm:$0xff] %vm2525_vm3, %v7352_v40  ;;  %v13268_v33 = vadd.f32 %v7531_v31, %v7496_v36  ;;  %v14145_v40 = vld [vmem:[#allocation37_spill] sm:$0xff]  ;;  %v7584_v17 = vadd.f32 %v7574_v10, %v13240_v44 }
 0x5f2   : > { %v14146_v4 = vrot.slane %v14145_v40, 3 }
 0x5f3   : > { %7898 = vst.msk [vmem:[%s13203_s19 + $0x30] sm:$0xff] %vm2525_vm3, %v7896_v24  ;;  %v7647_v50 = vpop.f32.mrf.mxu1 }
 0x5f6   : > { %v7286_v53 = vpop.f32.mrf.mxu2 }
 0x5f7   : > { %v7353_v57 = vadd.f32 %v7286_v53, %v12948_v52  ;;  %v14148_v53 = vld [vmem:[#allocation21_spill] sm:$0xff] }
 0x5f8   : > { %v7893_v26 = vld [vmem:[#allocation5 + $0x3e] sm:$0xff]  ;;  %v13274_v14 = vpop.f32.mrf.mxu3 }
 0x5f9   : > { %v7897_v47 = vadd.f32 %v7895_v27, %v7893_v26  ;;  %7385 = vst.msk [vmem:[#allocation5 + $0x48] sm:$0xff] %vm2525_vm3, %v7353_v57  ;;  %v7911_v57 = vld [vmem:[#allocation6 + $0x62] sm:$0xff]  ;;  %v7657_v27 = vadd.f32 %v7647_v50, %v7584_v17 }
 0x5fa   : > { %v7926_v17 = vld [vmem:[#allocation6 + $0x7e] sm:$0xff] }
 0x5fb   : > { %7899 = vst.msk [vmem:[%s13203_s19 + $0x38] sm:$0xff] %vm2525_vm3, %v7897_v47  ;;  %8861 = vmatmul.msk.bf16.gmra.mxu2 %vm2525_vm3, %v14143_v1  ;;  %v7649_v23 = vpop.f32.mrf.mxu1 }
 0x5fe   : > { %v7289_v36 = vpop.f32.mrf.mxu2 }
 0x5ff   : > { %v7354_v54 = vadd.f32 %v7289_v36, %v12961_v0 }
 0x600   : > { %v7900_v51 = vld [vmem:[#allocation5 + $0x48] sm:$0xff]  ;;  %v13282_v34 = vpop.f32.mrf.mxu3 }
 0x601   : > { %v7904_v52 = vadd.f32 %v7902_v12, %v7900_v51  ;;  %7386 = vst.msk [vmem:[#allocation5 + $0x50] sm:$0xff] %vm2525_vm3, %v7354_v54  ;;  %v7585_v54 = vadd.f32 %v7576_v8, %v13250_v35  ;;  %v14149_v51 = vld [vmem:[#allocation19_spill] sm:$0xff]  ;;  %v7586_v35 = vadd.f32 %v13274_v14, %v13258_v59 }
 0x603   : > { %7906 = vst.msk [vmem:[%s13203_s19 + $0x40] sm:$0xff] %vm2525_vm3, %v7904_v52  ;;  %v7652_v41 = vpop.f32.mrf.mxu1 }
 0x606   : > { %v7291_v7 = vpop.f32.mrf.mxu2 }
 0x607   : > { %v7355_v42 = vadd.f32 %v7291_v7, %v12977_v28  ;;  %v7918_v7 = vld [vmem:[#allocation6 + $0x6c] sm:$0xff] }
 0x608   : > { %v7901_v5 = vld [vmem:[#allocation5 + $0x50] sm:$0xff]  ;;  %v7689_v0 = vpop.f32.mrf.mxu3 }
 0x609   : > { %v7905_v20 = vadd.f32 %v7903_v16, %v7901_v5  ;;  %7387 = vst.msk [vmem:[#allocation5 + $0x58] sm:$0xff] %vm2525_vm3, %v7355_v42  ;;  %v7699_v36 = vadd.f32 %v7689_v0, %v7657_v27  ;;  %v7658_v42 = vadd.f32 %v7649_v23, %v7585_v54  ;;  %v7983_v27 = vld [vmem:[#allocation6 + $0x104] sm:$0xff] }
 0x60a   : > { %v7927_v54 = vld [vmem:[#allocation6 + $0x86] sm:$0xff] }
 0x60b   : > { %7907 = vst.msk [vmem:[%s13203_s19 + $0x48] sm:$0xff] %vm2525_vm3, %v7905_v20  ;;  %8862 = vmatmul.msk.bf16.gmra.mxu2 %vm2525_vm3, %v14144_v39  ;;  %v13294_v60 = vpop.f32.mrf.mxu1 }
 0x60e   : > { %v7294_v61 = vpop.f32.mrf.mxu2 }
 0x60f   : > { %v7356_v38 = vadd.f32 %v7294_v61, %v12992_v3  ;;  %v7203_v3 = vsel %vm14147_vm6, %v14146_v4, %v7202_v58 }
 0x610   : > { %v7691_v28 = vpop.f32.mrf.mxu3 }
 0x611   : > { %7388 = vst.msk [vmem:[#allocation5 + $0x60] sm:$0xff] %vm2525_vm3, %v7356_v38  ;;  %v7700_v0 = vadd.f32 %v7691_v28, %v7658_v42 }
 0x613   : > { %v7808_v31 = vpop.f32.mrf.mxu1 }
 0x616   : > { %v7296_v43 = vpop.f32.mrf.mxu2 }
 0x617   : > { %v7357_v32 = vadd.f32 %v7296_v43, %v13015_v19  ;;  %v7745_v19 = vpop.f32.mrf.mxu0  ;;  %v7919_v43 = vld [vmem:[#allocation6 + $0x74] sm:$0xff] }
 0x618   : > { %v7908_v9 = vld [vmem:[#allocation5 + $0x5a] sm:$0xff]  ;;  %v7694_v48 = vpop.f32.mrf.mxu3  ;;  %v7755_v12 = vadd.f32 %v7745_v19, %v7699_v36 }
 0x619   : > { %v7912_v29 = vadd.f32 %v7910_v22, %v7908_v9  ;;  %7389 = vst.msk [vmem:[#allocation5 + $0x68] sm:$0xff] %vm2525_vm3, %v7357_v32  ;;  %v7659_v32 = vadd.f32 %v7652_v41, %v7586_v35 }
 0x61a   : > { %v7818_v5 = vadd.f32 %v7808_v31, %v7755_v12 }
 0x61b   : > { %7914 = vst.msk [vmem:[%s13203_s19 + $0x50] sm:$0xff] %vm2525_vm3, %v7912_v29  ;;  %8863 = vmatmul.msk.bf16.gmra.mxu2 %vm2525_vm3, %v7203_v3  ;;  %v7810_v20 = vpop.f32.mrf.mxu1  ;;  %v7701_v29 = vadd.f32 %v7694_v48, %v7659_v32 }
 0x61e   : > { %v7299_v24 = vpop.f32.mrf.mxu2 }
 0x61f   : > { %v7358_v21 = vadd.f32 %v7299_v24, %v14148_v53  ;;  %v7747_v16 = vpop.f32.mrf.mxu0 }
 0x620   : > { %v7909_v26 = vld [vmem:[#allocation5 + $0x62] sm:$0xff]  ;;  %v7696_v1 = vpop.f32.mrf.mxu3  ;;  %v7756_v38 = vadd.f32 %v7747_v16, %v7700_v0 }
 0x621   : > { %v7913_v47 = vadd.f32 %v7911_v57, %v7909_v26  ;;  %7390 = vst.msk [vmem:[#allocation5 + $0x70] sm:$0xff] %vm2525_vm3, %v7358_v21 }
 0x622   : > { %v7819_v22 = vadd.f32 %v7810_v20, %v7756_v38 }
 0x623   : > { %7915 = vst.msk [vmem:[%s13203_s19 + $0x58] sm:$0xff] %vm2525_vm3, %v7913_v47  ;;  %v7813_v3 = vpop.f32.mrf.mxu1 }
 0x626   : > { %v7301_v44 = vpop.f32.mrf.mxu2 }
 0x627   : > { %v7359_v52 = vadd.f32 %v7301_v44, %v14149_v51  ;;  %v7750_v4 = vpop.f32.mrf.mxu0 }
 0x628   : > { %v7916_v50 = vld [vmem:[#allocation5 + $0x6c] sm:$0xff]  ;;  %v7850_v39 = vpop.f32.mrf.mxu3  ;;  %v7757_v59 = vadd.f32 %v7750_v4, %v7701_v29 }
 0x629   : > { %v7920_v10 = vadd.f32 %v7918_v7, %v7916_v50  ;;  %7391 = vst.msk [vmem:[#allocation5 + $0x78] sm:$0xff] %vm2525_vm3, %v7359_v52  ;;  %v7860_v61 = vadd.f32 %v7850_v39, %v7818_v5  ;;  %v7990_v7 = vld [vmem:[#allocation6 + $0x10e] sm:$0xff]  ;;  %v7991_v39 = vld [vmem:[#allocation6 + $0x116] sm:$0xff] }
 0x62a   : > { %v7820_v48 = vadd.f32 %v7813_v3, %v7757_v59  ;;  %v7934_v50 = vld [vmem:[#allocation6 + $0x90] sm:$0xff] }
 0x62b   : > { %7922 = vst.msk [vmem:[%s13203_s19 + $0x60] sm:$0xff] %vm2525_vm3, %v7920_v10  ;;  %v7815_v26 = vpop.f32.mrf.mxu1  ;;  %v7943_v4 = vld [vmem:[#allocation6 + $0xaa] sm:$0xff]  ;;  %v7950_v59 = vld [vmem:[#allocation6 + $0xb4] sm:$0xff] }
 0x62c   : > { %7864 = vst.msk [vmem:[#allocation5 + $0x100] sm:$0xff] %vm2525_vm3, %v7860_v61 }
 0x62e   : > { %v7304_v23 = vpop.f32.mrf.mxu2 }
 0x62f   : > { %v7360_v8 = vadd.f32 %v7304_v23, %v13084_v49  ;;  %v7587_v49 = vadd.f32 %v13282_v34, %v13268_v33  ;;  %v7935_v23 = vld [vmem:[#allocation6 + $0x98] sm:$0xff] }
 0x630   : > { %v7917_v9 = vld [vmem:[#allocation5 + $0x74] sm:$0xff]  ;;  %v7852_v28 = vpop.f32.mrf.mxu3 }
 0x631   : > { %v7921_v58 = vadd.f32 %v7919_v43, %v7917_v9  ;;  %7392 = vst.msk [vmem:[#allocation5 + $0x80] sm:$0xff] %vm2525_vm3, %v7360_v8  ;;  %v7861_v40 = vadd.f32 %v7852_v28, %v7819_v22  ;;  %v7660_v19 = vadd.f32 %v13294_v60, %v7587_v49 }
 0x633   : > { %7923 = vst.msk [vmem:[%s13203_s19 + $0x68] sm:$0xff] %vm2525_vm3, %v7921_v58  ;;  %v7702_v21 = vadd.f32 %v7696_v1, %v7660_v19  ;;  %v7942_v58 = vld [vmem:[#allocation6 + $0xa2] sm:$0xff] }
 0x634   : > { %7865 = vst.msk [vmem:[#allocation5 + $0x108] sm:$0xff] %vm2525_vm3, %v7861_v40  ;;  %v7951_v19 = vld [vmem:[#allocation6 + $0xbc] sm:$0xff] }
 0x636   : > { %v7306_v14 = vpop.f32.mrf.mxu2 }
 0x637   : > { %v7361_v41 = vadd.f32 %v7306_v14, %v13105_v18  ;;  %v7752_v18 = vpop.f32.mrf.mxu0 }
 0x638   : > { %v7924_v24 = vld [vmem:[#allocation5 + $0x7e] sm:$0xff]  ;;  %v7855_v53 = vpop.f32.mrf.mxu3  ;;  %v7758_v60 = vadd.f32 %v7752_v18, %v7702_v21 }
 0x639   : > { %v7928_v31 = vadd.f32 %v7926_v17, %v7924_v24  ;;  %7393 = vst.msk [vmem:[#allocation5 + $0x88] sm:$0xff] %vm2525_vm3, %v7361_v41  ;;  %v7862_v57 = vadd.f32 %v7855_v53, %v7820_v48  ;;  %v7958_v53 = vld [vmem:[#allocation6 + $0xc6] sm:$0xff] }
 0x63a   : > { %v7821_v1 = vadd.f32 %v7815_v26, %v7758_v60  ;;  %v7966_v60 = vld [vmem:[#allocation6 + $0xd8] sm:$0xff] }
 0x63b   : > { %7930 = vst.msk [vmem:[%s13203_s19 + $0x70] sm:$0xff] %vm2525_vm3, %v7928_v31  ;;  %v7981_v33 = vld [vmem:[#allocation5 + $0x104] sm:$0xff] }
 0x63c   : > { %v7985_v34 = vadd.f32 %v7983_v27, %v7981_v33  ;;  %7866 = vst.msk [vmem:[#allocation5 + $0x110] sm:$0xff] %vm2525_vm3, %v7862_v57  ;;  %v7959_v33 = vld [vmem:[#allocation6 + $0xce] sm:$0xff] }
 0x63e   : > { %7987 = vst.msk [vmem:[%s13203_s19 + $0xe8] sm:$0xff] %vm2525_vm3, %v7985_v34  ;;  %v7309_v47 = vpop.f32.mrf.mxu2 }
 0x63f   : > { %v7362_v36 = vadd.f32 %v7309_v47, %v13119_v15 }
 0x640   : > { %v7925_v12 = vld [vmem:[#allocation5 + $0x86] sm:$0xff]  ;;  %v7857_v51 = vpop.f32.mrf.mxu3 }
 0x641   : > { %v7929_v44 = vadd.f32 %v7927_v54, %v7925_v12  ;;  %7394 = vst.msk [vmem:[#allocation5 + $0x90] sm:$0xff] %vm2525_vm3, %v7362_v36  ;;  %v7863_v52 = vadd.f32 %v7857_v51, %v7821_v1  ;;  %v7967_v1 = vld [vmem:[#allocation6 + $0xe0] sm:$0xff] }
 0x643   : > { %7931 = vst.msk [vmem:[%s13203_s19 + $0x78] sm:$0xff] %vm2525_vm3, %v7929_v44  ;;  %v7988_v42 = vld [vmem:[#allocation5 + $0x10e] sm:$0xff] }
 0x644   : > { %v7992_v16 = vadd.f32 %v7990_v7, %v7988_v42  ;;  %7867 = vst.msk [vmem:[#allocation5 + $0x118] sm:$0x3f] %vm14150_vm12, %v7863_v52  ;;  %v7974_v42 = vld [vmem:[#allocation6 + $0xea] sm:$0xff] }
 0x646   : > { %7994 = vst.msk [vmem:[%s13203_s19 + $0xf0] sm:$0xff] %vm2525_vm3, %v7992_v16  ;;  %v7311_v15 = vpop.f32.mrf.mxu2 }
 0x647   : > { %v7363_v5 = vadd.f32 %v7311_v15, %v13141_v45  ;;  %v7975_v15 = vld [vmem:[#allocation6 + $0xf2] sm:$0xff] }
 0x648   : > { %v7932_v20 = vld [vmem:[#allocation5 + $0x90] sm:$0xff] }
 0x649   : > { %v7936_v10 = vadd.f32 %v7934_v50, %v7932_v20  ;;  %7395 = vst.msk [vmem:[#allocation5 + $0x98] sm:$0xff] %vm2525_vm3, %v7363_v5  ;;  %v7982_v5 = vld [vmem:[#allocation6 + $0xfc] sm:$0xff] }
 0x64b   : > { %7938 = vst.msk [vmem:[%s13203_s19 + $0x80] sm:$0xff] %vm2525_vm3, %v7936_v10  ;;  %v7989_v0 = vld [vmem:[#allocation5 + $0x116] sm:$0xff] }
 0x64c   : > { %v7993_v61 = vadd.f32 %v7991_v39, %v7989_v0 }
 0x64e   : > { %7995 = vst.msk [vmem:[%s13203_s19 + $0xf8] sm:$0xff] %vm2525_vm3, %v7993_v61  ;;  %v7314_v35 = vpop.f32.mrf.mxu2 }
 0x64f   : > { %v7364_v38 = vadd.f32 %v7314_v35, %v13151_v55 }
 0x650   : > { %v7933_v8 = vld [vmem:[#allocation5 + $0x98] sm:$0xff] }
 0x651   : > { %v7937_v45 = vadd.f32 %v7935_v23, %v7933_v8  ;;  %7396 = vst.msk [vmem:[#allocation5 + $0xa0] sm:$0xff] %vm2525_vm3, %v7364_v38 }
 0x653   : > { %7939 = vst.msk [vmem:[%s13203_s19 + $0x88] sm:$0xff] %vm2525_vm3, %v7937_v45 }
 0x656   : > { %v7316_v43 = vpop.f32.mrf.mxu2 }
 0x657   : > { %v7365_v32 = vadd.f32 %v7316_v43, %v13160_v30 }
 0x659   : > { %7397 = vst.msk [vmem:[#allocation5 + $0xa8] sm:$0xff] %vm2525_vm3, %v7365_v32 }
 0x65e   : > { %v7319_v22 = vpop.f32.mrf.mxu2 }
 0x65f   : > { %v7366_v9 = vadd.f32 %v7319_v22, %v13171_v11 }
 0x660   : > { %v7940_v28 = vld [vmem:[#allocation5 + $0xa2] sm:$0xff] }
 0x661   : > { %v7944_v29 = vadd.f32 %v7942_v58, %v7940_v28  ;;  %7398 = vst.msk [vmem:[#allocation5 + $0xb0] sm:$0xff] %vm2525_vm3, %v7366_v9 }
 0x663   : > { %7946 = vst.msk [vmem:[%s13203_s19 + $0x90] sm:$0xff] %vm2525_vm3, %v7944_v29 }
 0x666   : > { %v7321_v55 = vpop.f32.mrf.mxu2 }
 0x667   : > { %v7367_v40 = vadd.f32 %v7321_v55, %v13185_v56 }
 0x668   : > { %v7941_v3 = vld [vmem:[#allocation5 + $0xaa] sm:$0xff] }
 0x669   : > { %v7945_v49 = vadd.f32 %v7943_v4, %v7941_v3  ;;  %7399 = vst.msk [vmem:[#allocation5 + $0xb8] sm:$0xff] %vm2525_vm3, %v7367_v40 }
 0x66b   : > { %7947 = vst.msk [vmem:[%s13203_s19 + $0x98] sm:$0xff] %vm2525_vm3, %v7945_v49 }
 0x66e   : > { %v7324_v30 = vpop.f32.mrf.mxu2 }
 0x66f   : > { %v7368_v11 = vadd.f32 %v7324_v30, %v13191_v25 }
 0x670   : > { %v7948_v14 = vld [vmem:[#allocation5 + $0xb4] sm:$0xff] }
 0x671   : > { %v7952_v41 = vadd.f32 %v7950_v59, %v7948_v14  ;;  %7400 = vst.msk [vmem:[#allocation5 + $0xc0] sm:$0xff] %vm2525_vm3, %v7368_v11 }
 0x673   : > { %7954 = vst.msk [vmem:[%s13203_s19 + $0xa0] sm:$0xff] %vm2525_vm3, %v7952_v41 }
 0x676   : > { %v7326_v56 = vpop.f32.mrf.mxu2 }
 0x677   : > { %v7369_v17 = vadd.f32 %v7326_v56, %v13208_v2 }
 0x678   : > { %v7949_v48 = vld [vmem:[#allocation5 + $0xbc] sm:$0xff] }
 0x679   : > { %v7953_v24 = vadd.f32 %v7951_v19, %v7949_v48  ;;  %7401 = vst.msk [vmem:[#allocation5 + $0xc8] sm:$0xff] %vm2525_vm3, %v7369_v17 }
 0x67b   : > { %7955 = vst.msk [vmem:[%s13203_s19 + $0xa8] sm:$0xff] %vm2525_vm3, %v7953_v24 }
 0x67e   : > { %v7329_v25 = vpop.f32.mrf.mxu2 }
 0x67f   : > { %v7370_v31 = vadd.f32 %v7329_v25, %v13218_v6 }
 0x680   : > { %v7956_v21 = vld [vmem:[#allocation5 + $0xc6] sm:$0xff] }
 0x681   : > { %v7960_v57 = vadd.f32 %v7958_v53, %v7956_v21  ;;  %7402 = vst.msk [vmem:[#allocation5 + $0xd0] sm:$0xff] %vm2525_vm3, %v7370_v31 }
 0x683   : > { %7962 = vst.msk [vmem:[%s13203_s19 + $0xb0] sm:$0xff] %vm2525_vm3, %v7960_v57 }
 0x686   : > { %v7331_v2 = vpop.f32.mrf.mxu2 }
 0x687   : > { %v7371_v27 = vadd.f32 %v7331_v2, %v13224_v63 }
 0x688   : > { %v7957_v34 = vld [vmem:[#allocation5 + $0xce] sm:$0xff] }
 0x689   : > { %v7961_v18 = vadd.f32 %v7959_v33, %v7957_v34  ;;  %7403 = vst.msk [vmem:[#allocation5 + $0xd8] sm:$0xff] %vm2525_vm3, %v7371_v27 }
 0x68b   : > { %7963 = vst.msk [vmem:[%s13203_s19 + $0xb8] sm:$0xff] %vm2525_vm3, %v7961_v18 }
 0x68e   : > { %v7334_v6 = vpop.f32.mrf.mxu2 }
 0x68f   : > { %v7372_v26 = vadd.f32 %v7334_v6, %v13234_v62 }
 0x690   : > { %v7964_v47 = vld [vmem:[#allocation5 + $0xd8] sm:$0xff] }
 0x691   : > { %v7968_v36 = vadd.f32 %v7966_v60, %v7964_v47  ;;  %7404 = vst.msk [vmem:[#allocation5 + $0xe0] sm:$0xff] %vm2525_vm3, %v7372_v26 }
 0x693   : > { %7970 = vst.msk [vmem:[%s13203_s19 + $0xc0] sm:$0xff] %vm2525_vm3, %v7968_v36 }
 0x696   : > { %v7336_v54 = vpop.f32.mrf.mxu2 }
 0x697   : > { %v7373_v63 = vadd.f32 %v7336_v54, %v13244_v13 }
 0x698   : > { %v7965_v12 = vld [vmem:[#allocation5 + $0xe0] sm:$0xff] }
 0x699   : > { %v7969_v44 = vadd.f32 %v7967_v1, %v7965_v12  ;;  %7405 = vst.msk [vmem:[#allocation5 + $0xe8] sm:$0xff] %vm2525_vm3, %v7373_v63 }
 0x69b   : > { %7971 = vst.msk [vmem:[%s13203_s19 + $0xc8] sm:$0xff] %vm2525_vm3, %v7969_v44 }
 0x69e   : > { %v7339_v51 = vpop.f32.mrf.mxu2 }
 0x69f   : > { %v7374_v62 = vadd.f32 %v7339_v51, %v13254_v46 }
 0x6a1   : > { %7406 = vst.msk [vmem:[#allocation5 + $0xf0] sm:$0xff] %vm2525_vm3, %v7374_v62 }
 0x6a6   : > { %v7341_v52 = vpop.f32.mrf.mxu2 }
 0x6a7   : > { %v7375_v7 = vadd.f32 %v7341_v52, %v13262_v37 }
 0x6a8   : > { %v7972_v16 = vld [vmem:[#allocation5 + $0xea] sm:$0xff] }
 0x6a9   : > { %v7976_v13 = vadd.f32 %v7974_v42, %v7972_v16  ;;  %7407 = vst.msk [vmem:[#allocation5 + $0xf8] sm:$0xff] %vm2525_vm3, %v7375_v7 }
 0x6ab   : > { %7978 = vst.msk [vmem:[%s13203_s19 + $0xd0] sm:$0xff] %vm2525_vm3, %v7976_v13 }
 0x6b0   : > { %v7973_v50 = vld [vmem:[#allocation5 + $0xf2] sm:$0xff]  ;;  %v7980_v20 = vld [vmem:[#allocation5 + $0xfc] sm:$0xff] }
 0x6b1   : > { %v7977_v10 = vadd.f32 %v7975_v15, %v7973_v50  ;;  %v7984_v39 = vadd.f32 %v7982_v5, %v7980_v20 }
 0x6b3   : > { %7979 = vst.msk [vmem:[%s13203_s19 + $0xd8] sm:$0xff] %vm2525_vm3, %v7977_v10 }
 0x6b4   : > { %7986 = vst.msk [vmem:[%s13203_s19 + $0xe0] sm:$0xff] %vm2525_vm3, %v7984_v39 }
 0x6b5 PF: > { %s18_s27 = sadd.s32 1, %s9151_s27  }
 0x6b6   : > { %p15_p4 = scmp.ge.s32.totalorder %s18_s27, 4  }
 0x6b8   :  { %17 = sbr.rel (!%p15_p4) target bundleno = 1 (0x1), region = 98 }

</bundles_post_ra>
